<compile_context>
chip_gen: v7x
topology: tpu7x:2x2x1
jax: 0.10.0
libtpu: 0.0.40
codegen_flags: <defaults>
</compile_context>

<pallas_src>
import jax
import jax.numpy as jnp
from jax.experimental import pallas as pl
from jax.experimental.pallas import tpu as pltpu


# ----------------------------- recurrent kernel ------------------------------
def structure_rnn_kernel(
    x_ref,     # (T, B, IN)        padded per-step inputs, sequence-major
    wi0_ref,   # (3, IN, H)        cell-0 input weights, gate order [r, z, n]
    wh0_ref,   # (3, H, H)         cell-0 hidden weights
    b0_ref,    # (4, 1, H)         [b_ir+b_hr, b_iz+b_hz, b_in, b_hn]
    wir_ref,   # (DEPTH-1, 3, H, H) remaining cells, input weights
    whr_ref,   # (DEPTH-1, 3, H, H) remaining cells, hidden weights
    br_ref,    # (DEPTH-1, 4, 1, H) remaining cells, combined biases
    res_ref,   # out: (T, B, H)    per-step top-of-stack hidden state
):
    T, B, _ = x_ref.shape
    H = wh0_ref.shape[-1]
    depth_rest = wir_ref.shape[0]
    f32 = jnp.float32

    def gru(u, h, wi, wh, b):
        # PyTorch nn.GRUCell with per-gate weights; every matmul output is a
        # (B, H) tile starting at lane 0 (no mid-vreg gate slicing).
        r = jax.nn.sigmoid(
            jnp.dot(u, wi[0], preferred_element_type=f32)
            + jnp.dot(h, wh[0], preferred_element_type=f32) + b[0])
        z = jax.nn.sigmoid(
            jnp.dot(u, wi[1], preferred_element_type=f32)
            + jnp.dot(h, wh[1], preferred_element_type=f32) + b[1])
        n = jnp.tanh(
            jnp.dot(u, wi[2], preferred_element_type=f32) + b[2]
            + r * (jnp.dot(h, wh[2], preferred_element_type=f32) + b[3]))
        return (1.0 - z) * n + z * h

    # StackCell.init_state: zero hidden state for every cell, register-carried.
    state = [jnp.zeros((B, H), f32) for _ in range(depth_rest + 1)]

    # TODO(synk): MILAttention / collect_context are undefined in the source
    # snippet; the context vector therefore stays identically zero, and its
    # (exactly zero) contribution to cell 0 is dropped instead of computed.

    for t in range(T):  # static unroll: true recurrence, T is small
        # --- cell 0: input = data[:, t] (+ zero context, dropped) ------------
        out = gru(x_ref[t], state[0],
                  (wi0_ref[0], wi0_ref[1], wi0_ref[2]),
                  (wh0_ref[0], wh0_ref[1], wh0_ref[2]),
                  (b0_ref[0], b0_ref[1], b0_ref[2], b0_ref[3]))
        state[0] = out
        # --- remaining cells of the stack ------------------------------------
        for d in range(depth_rest):
            out = gru(out, state[d + 1],
                      (wir_ref[d, 0], wir_ref[d, 1], wir_ref[d, 2]),
                      (whr_ref[d, 0], whr_ref[d, 1], whr_ref[d, 2]),
                      (br_ref[d, 0], br_ref[d, 1], br_ref[d, 2], br_ref[d, 3]))
            state[d + 1] = out
        res_ref[t] = out.astype(res_ref.dtype)


# ----------------------- angle projection (hoisted) ---------------------------
def angle_projection_kernel(h_ref, w_ref, b_ref, o_ref):
    # AngleProject(hidden_size, 3): one batched matmul over all T*B rows,
    # hoisted out of the recurrent loop (removes per-step 3-wide stores).
    o_ref[...] = (jnp.dot(h_ref[...], w_ref[...],
                          preferred_element_type=jnp.float32)
                  + b_ref[...]).astype(o_ref.dtype)


# ---------------------------------- wrapper -----------------------------------
def structure_rnn_forward(data_tbf, params):
    """data_tbf: (T, B, IN) float32. Returns (positions, angles, results)."""
    T, B, IN = data_tbf.shape
    H = params["wh0"].shape[-1]

    # Pre-combine the biases the GRU always sums (done once, outside kernel).
    b0 = jnp.stack([
        params["bi0"][0] + params["bh0"][0],   # reset gate
        params["bi0"][1] + params["bh0"][1],   # update gate
        params["bi0"][2],                      # new gate, input part
        params["bh0"][2],                      # new gate, hidden part
    ])                                                     # (4, 1, H)
    br = jnp.stack([
        params["bir"][:, 0] + params["bhr"][:, 0],
        params["bir"][:, 1] + params["bhr"][:, 1],
        params["bir"][:, 2],
        params["bhr"][:, 2],
    ], axis=1)                                             # (DEPTH-1, 4, 1, H)

    inputs = [data_tbf, params["wi0"], params["wh0"], b0,
              params["wir"], params["whr"], br]

    def full_spec(a):
        nd = a.ndim
        return pl.BlockSpec(a.shape, lambda i, _nd=nd: (0,) * _nd)

    results = pl.pallas_call(
        structure_rnn_kernel,
        out_shape=jax.ShapeDtypeStruct((T, B, H), data_tbf.dtype),
        grid=(1,),                                   # single step: loop is in-kernel
        in_specs=[full_spec(a) for a in inputs],
        out_specs=pl.BlockSpec((T, B, H), lambda i: (0, 0, 0)),
        compiler_params=pltpu.CompilerParams(
            dimension_semantics=("arbitrary",),      # true recurrence inside
        ),
    )(*inputs)

    # Lane-dense batched angle projection over all T*B rows at once.
    angles2d = pl.pallas_call(
        angle_projection_kernel,
        out_shape=jax.ShapeDtypeStruct((T * B, 3), data_tbf.dtype),
    )(results.reshape(T * B, H), params["wang"], params["bang"])
    angles = angles2d.reshape(T, B, 3)

    # TODO(synk): LocalPositionLookup / scatter.pad / scatter.unpad are
    # undefined in the source snippet; positions stay at their zero init and
    # the input is assumed pre-padded to [T, B, F].
    positions = jnp.zeros((T, B, 3, 3), data_tbf.dtype)
    return positions, angles, results


# ---------------------------- pure-JAX reference ------------------------------
def reference_forward(data_tbf, params):
    T, B, IN = data_tbf.shape
    H = params["wh0"].shape[-1]
    DEPTH = params["wir"].shape[0] + 1

    def gru_ref(x, h, wi_g, bi_g, wh_g, bh_g):
        # Rebuild the PyTorch-style concatenated (K, 3H) gate weights so the
        # reference is structurally different from the kernel.
        wi = jnp.concatenate([wi_g[0], wi_g[1], wi_g[2]], axis=1)
        wh = jnp.concatenate([wh_g[0], wh_g[1], wh_g[2]], axis=1)
        bi = jnp.concatenate([bi_g[0], bi_g[1], bi_g[2]], axis=1)
        bh = jnp.concatenate([bh_g[0], bh_g[1], bh_g[2]], axis=1)
        gi = x @ wi + bi
        gh = h @ wh + bh
        ir, iz, inn = jnp.split(gi, 3, axis=-1)
        hr, hz, hn = jnp.split(gh, 3, axis=-1)
        r = jax.nn.sigmoid(ir + hr)
        z = jax.nn.sigmoid(iz + hz)
        n = jnp.tanh(inn + r * hn)
        return (1.0 - z) * n + z * h

    def step(state, x_t):
        out = gru_ref(x_t, state[0], params["wi0"], params["bi0"],
                      params["wh0"], params["bh0"])
        new_state = [out]
        for d in range(DEPTH - 1):
            out = gru_ref(out, state[d + 1], params["wir"][d], params["bir"][d],
                          params["whr"][d], params["bhr"][d])
            new_state.append(out)
        angle = out @ params["wang"] + params["bang"]
        return jnp.stack(new_state), (out, angle)

    state0 = jnp.zeros((DEPTH, B, H), jnp.float32)
    _, (results, angles) = jax.lax.scan(step, state0, data_tbf)
    return results, angles


# ------------------------------------ main ------------------------------------
if __name__ == "__main__":
    T, B = 8, 2          # padded sequence length, batch
    IN = 8               # in_size (context branch dropped; see TODO above)
    H = 32               # hidden_size
    DEPTH = 3            # StackCell depth

    key = jax.random.PRNGKey(0)
    ks = jax.random.split(key, 11)
    k_scale = 1.0 / (H ** 0.5)   # PyTorch GRUCell init range

    def uni(k, shape):
        return jax.random.uniform(k, shape, jnp.float32, -k_scale, k_scale)

    params = {
        # per-gate weights, gate order [reset, update, new], (K, H) layout
        "wi0":  uni(ks[0], (3, IN, H)),
        "wh0":  uni(ks[1], (3, H, H)),
        "bi0":  uni(ks[2], (3, 1, H)),
        "bh0":  uni(ks[3], (3, 1, H)),
        "wir":  uni(ks[4], (DEPTH - 1, 3, H, H)),
        "whr":  uni(ks[5], (DEPTH - 1, 3, H, H)),
        "bir":  uni(ks[6], (DEPTH - 1, 3, 1, H)),
        "bhr":  uni(ks[7], (DEPTH - 1, 3, 1, H)),
        # AngleProject(hidden_size, 3) as a linear layer
        "wang": uni(ks[8], (H, 3)),
        "bang": uni(ks[9], (1, 3)),
    }

    # padded input data, sequence-major [T, B, IN]
    data = jax.random.normal(ks[10], (T, B, IN), jnp.float32)

    positions, angles, results = structure_rnn_forward(data, params)
    jax.block_until_ready((positions, angles, results))

    # correctness check vs pure-JAX reference of the same recurrence
    ref_results, ref_angles = reference_forward(data, params)
    assert jnp.allclose(results, ref_results, atol=1e-5, rtol=1e-5)
    assert jnp.allclose(angles, ref_angles, atol=1e-5, rtol=1e-5)

    print("KERNEL_OK")
</pallas_src>

<mosaic_0001>
module attributes {stable_mosaic.version = 11 : i64} {
  func.func @structure_rnn_kernel(%arg0: i32, %arg1: memref<8x2x8xf32, #tpu.memory_space<vmem>>, %arg2: memref<3x8x32xf32, #tpu.memory_space<vmem>>, %arg3: memref<3x32x32xf32, #tpu.memory_space<vmem>>, %arg4: memref<4x1x32xf32, #tpu.memory_space<vmem>>, %arg5: memref<2x3x32x32xf32, #tpu.memory_space<vmem>>, %arg6: memref<2x3x32x32xf32, #tpu.memory_space<vmem>>, %arg7: memref<2x4x1x32xf32, #tpu.memory_space<vmem>>, %arg8: memref<8x2x32xf32, #tpu.memory_space<vmem>>) attributes {dimension_semantics = [#tpu.dimension_semantics<arbitrary>], iteration_bounds = array<i64: 1>, scalar_prefetch = 0 : i64, scratch_operands = 0 : i64, tpu.core_type = #tpu.core_type<tc>, window_params = [{pipeline_mode = #tpu.pipeline_mode<synchronous>, transform_indices = @transform_0, window_bounds = array<i64: 8, 2, 8>}, {pipeline_mode = #tpu.pipeline_mode<synchronous>, transform_indices = @transform_1, window_bounds = array<i64: 3, 8, 32>}, {pipeline_mode = #tpu.pipeline_mode<synchronous>, transform_indices = @transform_2, window_bounds = array<i64: 3, 32, 32>}, {pipeline_mode = #tpu.pipeline_mode<synchronous>, transform_indices = @transform_3, window_bounds = array<i64: 4, 1, 32>}, {pipeline_mode = #tpu.pipeline_mode<synchronous>, transform_indices = @transform_4, window_bounds = array<i64: 2, 3, 32, 32>}, {pipeline_mode = #tpu.pipeline_mode<synchronous>, transform_indices = @transform_5, window_bounds = array<i64: 2, 3, 32, 32>}, {pipeline_mode = #tpu.pipeline_mode<synchronous>, transform_indices = @transform_6, window_bounds = array<i64: 2, 4, 1, 32>}, {pipeline_mode = #tpu.pipeline_mode<synchronous>, transform_indices = @transform_7, window_bounds = array<i64: 8, 2, 32>}]} {
    %cst = arith.constant 0.000000e+00 : f32
    %0 = vector.broadcast %cst : f32 to vector<2x32xf32>
    %cst_0 = arith.constant 0.000000e+00 : f32
    %1 = vector.broadcast %cst_0 : f32 to vector<2x32xf32>
    %cst_1 = arith.constant 0.000000e+00 : f32
    %2 = vector.broadcast %cst_1 : f32 to vector<2x32xf32>
    %c0 = arith.constant 0 : index
    %c0_2 = arith.constant 0 : index
    %c0_3 = arith.constant 0 : index
    %3 = vector.load %arg1[%c0, %c0_2, %c0_3] : memref<8x2x8xf32, #tpu.memory_space<vmem>>, vector<1x2x8xf32>
    %4 = vector.shape_cast %3 : vector<1x2x8xf32> to vector<2x8xf32>
    %c0_4 = arith.constant 0 : index
    %c0_5 = arith.constant 0 : index
    %c0_6 = arith.constant 0 : index
    %5 = vector.load %arg2[%c0_4, %c0_5, %c0_6] : memref<3x8x32xf32, #tpu.memory_space<vmem>>, vector<1x8x32xf32>
    %6 = vector.shape_cast %5 : vector<1x8x32xf32> to vector<8x32xf32>
    %c1 = arith.constant 1 : index
    %c0_7 = arith.constant 0 : index
    %c0_8 = arith.constant 0 : index
    %7 = vector.load %arg2[%c1, %c0_7, %c0_8] : memref<3x8x32xf32, #tpu.memory_space<vmem>>, vector<1x8x32xf32>
    %8 = vector.shape_cast %7 : vector<1x8x32xf32> to vector<8x32xf32>
    %c2 = arith.constant 2 : index
    %c0_9 = arith.constant 0 : index
    %c0_10 = arith.constant 0 : index
    %9 = vector.load %arg2[%c2, %c0_9, %c0_10] : memref<3x8x32xf32, #tpu.memory_space<vmem>>, vector<1x8x32xf32>
    %10 = vector.shape_cast %9 : vector<1x8x32xf32> to vector<8x32xf32>
    %c0_11 = arith.constant 0 : index
    %c0_12 = arith.constant 0 : index
    %c0_13 = arith.constant 0 : index
    %11 = vector.load %arg3[%c0_11, %c0_12, %c0_13] : memref<3x32x32xf32, #tpu.memory_space<vmem>>, vector<1x32x32xf32>
    %12 = vector.shape_cast %11 : vector<1x32x32xf32> to vector<32x32xf32>
    %c1_14 = arith.constant 1 : index
    %c0_15 = arith.constant 0 : index
    %c0_16 = arith.constant 0 : index
    %13 = vector.load %arg3[%c1_14, %c0_15, %c0_16] : memref<3x32x32xf32, #tpu.memory_space<vmem>>, vector<1x32x32xf32>
    %14 = vector.shape_cast %13 : vector<1x32x32xf32> to vector<32x32xf32>
    %c2_17 = arith.constant 2 : index
    %c0_18 = arith.constant 0 : index
    %c0_19 = arith.constant 0 : index
    %15 = vector.load %arg3[%c2_17, %c0_18, %c0_19] : memref<3x32x32xf32, #tpu.memory_space<vmem>>, vector<1x32x32xf32>
    %16 = vector.shape_cast %15 : vector<1x32x32xf32> to vector<32x32xf32>
    %c0_20 = arith.constant 0 : index
    %c0_21 = arith.constant 0 : index
    %c0_22 = arith.constant 0 : index
    %17 = vector.load %arg4[%c0_20, %c0_21, %c0_22] : memref<4x1x32xf32, #tpu.memory_space<vmem>>, vector<1x1x32xf32>
    %18 = vector.shape_cast %17 : vector<1x1x32xf32> to vector<1x32xf32>
    %c1_23 = arith.constant 1 : index
    %c0_24 = arith.constant 0 : index
    %c0_25 = arith.constant 0 : index
    %19 = vector.load %arg4[%c1_23, %c0_24, %c0_25] : memref<4x1x32xf32, #tpu.memory_space<vmem>>, vector<1x1x32xf32>
    %20 = vector.shape_cast %19 : vector<1x1x32xf32> to vector<1x32xf32>
    %c2_26 = arith.constant 2 : index
    %c0_27 = arith.constant 0 : index
    %c0_28 = arith.constant 0 : index
    %21 = vector.load %arg4[%c2_26, %c0_27, %c0_28] : memref<4x1x32xf32, #tpu.memory_space<vmem>>, vector<1x1x32xf32>
    %22 = vector.shape_cast %21 : vector<1x1x32xf32> to vector<1x32xf32>
    %c3 = arith.constant 3 : index
    %c0_29 = arith.constant 0 : index
    %c0_30 = arith.constant 0 : index
    %23 = vector.load %arg4[%c3, %c0_29, %c0_30] : memref<4x1x32xf32, #tpu.memory_space<vmem>>, vector<1x1x32xf32>
    %24 = vector.shape_cast %23 : vector<1x1x32xf32> to vector<1x32xf32>
    %cst_31 = arith.constant dense<0.000000e+00> : vector<2x32xf32>
    %25 = tpu.matmul %4, %6, %cst_31 {dimension_numbers = #tpu.dot_dimension_numbers<[1], [0], [0], [1], [0, 0, 1, 1], [], []>} : vector<2x8xf32>, vector<8x32xf32>, vector<2x32xf32> -> vector<2x32xf32>
    %cst_32 = arith.constant dense<0.000000e+00> : vector<2x32xf32>
    %26 = tpu.matmul %0, %12, %cst_32 {dimension_numbers = #tpu.dot_dimension_numbers<[1], [0], [0], [1], [0, 0, 1, 1], [], []>} : vector<2x32xf32>, vector<32x32xf32>, vector<2x32xf32> -> vector<2x32xf32>
    %27 = arith.addf %25, %26 : vector<2x32xf32>
    %28 = vector.broadcast %18 : vector<1x32xf32> to vector<2x32xf32>
    %29 = arith.addf %27, %28 : vector<2x32xf32>
    %30 = arith.negf %29 : vector<2x32xf32>
    %31 = math.exp %30 : vector<2x32xf32>
    %cst_33 = arith.constant 1.000000e+00 : f32
    %32 = vector.broadcast %cst_33 : f32 to vector<2x32xf32>
    %33 = arith.addf %32, %31 : vector<2x32xf32>
    %34 = arith.divf %32, %33 : vector<2x32xf32>
    %cst_34 = arith.constant dense<0.000000e+00> : vector<2x32xf32>
    %35 = tpu.matmul %4, %8, %cst_34 {dimension_numbers = #tpu.dot_dimension_numbers<[1], [0], [0], [1], [0, 0, 1, 1], [], []>} : vector<2x8xf32>, vector<8x32xf32>, vector<2x32xf32> -> vector<2x32xf32>
    %cst_35 = arith.constant dense<0.000000e+00> : vector<2x32xf32>
    %36 = tpu.matmul %0, %14, %cst_35 {dimension_numbers = #tpu.dot_dimension_numbers<[1], [0], [0], [1], [0, 0, 1, 1], [], []>} : vector<2x32xf32>, vector<32x32xf32>, vector<2x32xf32> -> vector<2x32xf32>
    %37 = arith.addf %35, %36 : vector<2x32xf32>
    %38 = vector.broadcast %20 : vector<1x32xf32> to vector<2x32xf32>
    %39 = arith.addf %37, %38 : vector<2x32xf32>
    %40 = arith.negf %39 : vector<2x32xf32>
    %41 = math.exp %40 : vector<2x32xf32>
    %cst_36 = arith.constant 1.000000e+00 : f32
    %42 = vector.broadcast %cst_36 : f32 to vector<2x32xf32>
    %43 = arith.addf %42, %41 : vector<2x32xf32>
    %44 = arith.divf %42, %43 : vector<2x32xf32>
    %cst_37 = arith.constant dense<0.000000e+00> : vector<2x32xf32>
    %45 = tpu.matmul %4, %10, %cst_37 {dimension_numbers = #tpu.dot_dimension_numbers<[1], [0], [0], [1], [0, 0, 1, 1], [], []>} : vector<2x8xf32>, vector<8x32xf32>, vector<2x32xf32> -> vector<2x32xf32>
    %46 = vector.broadcast %22 : vector<1x32xf32> to vector<2x32xf32>
    %47 = arith.addf %45, %46 : vector<2x32xf32>
    %cst_38 = arith.constant dense<0.000000e+00> : vector<2x32xf32>
    %48 = tpu.matmul %0, %16, %cst_38 {dimension_numbers = #tpu.dot_dimension_numbers<[1], [0], [0], [1], [0, 0, 1, 1], [], []>} : vector<2x32xf32>, vector<32x32xf32>, vector<2x32xf32> -> vector<2x32xf32>
    %49 = vector.broadcast %24 : vector<1x32xf32> to vector<2x32xf32>
    %50 = arith.addf %48, %49 : vector<2x32xf32>
    %51 = arith.mulf %34, %50 : vector<2x32xf32>
    %52 = arith.addf %47, %51 : vector<2x32xf32>
    %53 = math.tanh %52 : vector<2x32xf32>
    %cst_39 = arith.constant 1.000000e+00 : f32
    %54 = vector.broadcast %cst_39 : f32 to vector<2x32xf32>
    %55 = arith.subf %54, %44 : vector<2x32xf32>
    %56 = arith.mulf %55, %53 : vector<2x32xf32>
    %57 = arith.mulf %44, %0 : vector<2x32xf32>
    %58 = arith.addf %56, %57 : vector<2x32xf32>
    %c0_40 = arith.constant 0 : index
    %c0_41 = arith.constant 0 : index
    %c0_42 = arith.constant 0 : index
    %c0_43 = arith.constant 0 : index
    %59 = vector.load %arg5[%c0_40, %c0_41, %c0_42, %c0_43] : memref<2x3x32x32xf32, #tpu.memory_space<vmem>>, vector<1x1x32x32xf32>
    %60 = vector.shape_cast %59 : vector<1x1x32x32xf32> to vector<32x32xf32>
    %c0_44 = arith.constant 0 : index
    %c1_45 = arith.constant 1 : index
    %c0_46 = arith.constant 0 : index
    %c0_47 = arith.constant 0 : index
    %61 = vector.load %arg5[%c0_44, %c1_45, %c0_46, %c0_47] : memref<2x3x32x32xf32, #tpu.memory_space<vmem>>, vector<1x1x32x32xf32>
    %62 = vector.shape_cast %61 : vector<1x1x32x32xf32> to vector<32x32xf32>
    %c0_48 = arith.constant 0 : index
    %c2_49 = arith.constant 2 : index
    %c0_50 = arith.constant 0 : index
    %c0_51 = arith.constant 0 : index
    %63 = vector.load %arg5[%c0_48, %c2_49, %c0_50, %c0_51] : memref<2x3x32x32xf32, #tpu.memory_space<vmem>>, vector<1x1x32x32xf32>
    %64 = vector.shape_cast %63 : vector<1x1x32x32xf32> to vector<32x32xf32>
    %c0_52 = arith.constant 0 : index
    %c0_53 = arith.constant 0 : index
    %c0_54 = arith.constant 0 : index
    %c0_55 = arith.constant 0 : index
    %65 = vector.load %arg6[%c0_52, %c0_53, %c0_54, %c0_55] : memref<2x3x32x32xf32, #tpu.memory_space<vmem>>, vector<1x1x32x32xf32>
    %66 = vector.shape_cast %65 : vector<1x1x32x32xf32> to vector<32x32xf32>
    %c0_56 = arith.constant 0 : index
    %c1_57 = arith.constant 1 : index
    %c0_58 = arith.constant 0 : index
    %c0_59 = arith.constant 0 : index
    %67 = vector.load %arg6[%c0_56, %c1_57, %c0_58, %c0_59] : memref<2x3x32x32xf32, #tpu.memory_space<vmem>>, vector<1x1x32x32xf32>
    %68 = vector.shape_cast %67 : vector<1x1x32x32xf32> to vector<32x32xf32>
    %c0_60 = arith.constant 0 : index
    %c2_61 = arith.constant 2 : index
    %c0_62 = arith.constant 0 : index
    %c0_63 = arith.constant 0 : index
    %69 = vector.load %arg6[%c0_60, %c2_61, %c0_62, %c0_63] : memref<2x3x32x32xf32, #tpu.memory_space<vmem>>, vector<1x1x32x32xf32>
    %70 = vector.shape_cast %69 : vector<1x1x32x32xf32> to vector<32x32xf32>
    %c0_64 = arith.constant 0 : index
    %c0_65 = arith.constant 0 : index
    %c0_66 = arith.constant 0 : index
    %c0_67 = arith.constant 0 : index
    %71 = vector.load %arg7[%c0_64, %c0_65, %c0_66, %c0_67] : memref<2x4x1x32xf32, #tpu.memory_space<vmem>>, vector<1x1x1x32xf32>
    %72 = vector.shape_cast %71 : vector<1x1x1x32xf32> to vector<1x32xf32>
    %c0_68 = arith.constant 0 : index
    %c1_69 = arith.constant 1 : index
    %c0_70 = arith.constant 0 : index
    %c0_71 = arith.constant 0 : index
    %73 = vector.load %arg7[%c0_68, %c1_69, %c0_70, %c0_71] : memref<2x4x1x32xf32, #tpu.memory_space<vmem>>, vector<1x1x1x32xf32>
    %74 = vector.shape_cast %73 : vector<1x1x1x32xf32> to vector<1x32xf32>
    %c0_72 = arith.constant 0 : index
    %c2_73 = arith.constant 2 : index
    %c0_74 = arith.constant 0 : index
    %c0_75 = arith.constant 0 : index
    %75 = vector.load %arg7[%c0_72, %c2_73, %c0_74, %c0_75] : memref<2x4x1x32xf32, #tpu.memory_space<vmem>>, vector<1x1x1x32xf32>
    %76 = vector.shape_cast %75 : vector<1x1x1x32xf32> to vector<1x32xf32>
    %c0_76 = arith.constant 0 : index
    %c3_77 = arith.constant 3 : index
    %c0_78 = arith.constant 0 : index
    %c0_79 = arith.constant 0 : index
    %77 = vector.load %arg7[%c0_76, %c3_77, %c0_78, %c0_79] : memref<2x4x1x32xf32, #tpu.memory_space<vmem>>, vector<1x1x1x32xf32>
    %78 = vector.shape_cast %77 : vector<1x1x1x32xf32> to vector<1x32xf32>
    %cst_80 = arith.constant dense<0.000000e+00> : vector<2x32xf32>
    %79 = tpu.matmul %58, %60, %cst_80 {dimension_numbers = #tpu.dot_dimension_numbers<[1], [0], [0], [1], [0, 0, 1, 1], [], []>} : vector<2x32xf32>, vector<32x32xf32>, vector<2x32xf32> -> vector<2x32xf32>
    %cst_81 = arith.constant dense<0.000000e+00> : vector<2x32xf32>
    %80 = tpu.matmul %1, %66, %cst_81 {dimension_numbers = #tpu.dot_dimension_numbers<[1], [0], [0], [1], [0, 0, 1, 1], [], []>} : vector<2x32xf32>, vector<32x32xf32>, vector<2x32xf32> -> vector<2x32xf32>
    %81 = arith.addf %79, %80 : vector<2x32xf32>
    %82 = vector.broadcast %72 : vector<1x32xf32> to vector<2x32xf32>
    %83 = arith.addf %81, %82 : vector<2x32xf32>
    %84 = arith.negf %83 : vector<2x32xf32>
    %85 = math.exp %84 : vector<2x32xf32>
    %cst_82 = arith.constant 1.000000e+00 : f32
    %86 = vector.broadcast %cst_82 : f32 to vector<2x32xf32>
    %87 = arith.addf %86, %85 : vector<2x32xf32>
    %88 = arith.divf %86, %87 : vector<2x32xf32>
    %cst_83 = arith.constant dense<0.000000e+00> : vector<2x32xf32>
    %89 = tpu.matmul %58, %62, %cst_83 {dimension_numbers = #tpu.dot_dimension_numbers<[1], [0], [0], [1], [0, 0, 1, 1], [], []>} : vector<2x32xf32>, vector<32x32xf32>, vector<2x32xf32> -> vector<2x32xf32>
    %cst_84 = arith.constant dense<0.000000e+00> : vector<2x32xf32>
    %90 = tpu.matmul %1, %68, %cst_84 {dimension_numbers = #tpu.dot_dimension_numbers<[1], [0], [0], [1], [0, 0, 1, 1], [], []>} : vector<2x32xf32>, vector<32x32xf32>, vector<2x32xf32> -> vector<2x32xf32>
    %91 = arith.addf %89, %90 : vector<2x32xf32>
    %92 = vector.broadcast %74 : vector<1x32xf32> to vector<2x32xf32>
    %93 = arith.addf %91, %92 : vector<2x32xf32>
    %94 = arith.negf %93 : vector<2x32xf32>
    %95 = math.exp %94 : vector<2x32xf32>
    %cst_85 = arith.constant 1.000000e+00 : f32
    %96 = vector.broadcast %cst_85 : f32 to vector<2x32xf32>
    %97 = arith.addf %96, %95 : vector<2x32xf32>
    %98 = arith.divf %96, %97 : vector<2x32xf32>
    %cst_86 = arith.constant dense<0.000000e+00> : vector<2x32xf32>
    %99 = tpu.matmul %58, %64, %cst_86 {dimension_numbers = #tpu.dot_dimension_numbers<[1], [0], [0], [1], [0, 0, 1, 1], [], []>} : vector<2x32xf32>, vector<32x32xf32>, vector<2x32xf32> -> vector<2x32xf32>
    %100 = vector.broadcast %76 : vector<1x32xf32> to vector<2x32xf32>
    %101 = arith.addf %99, %100 : vector<2x32xf32>
    %cst_87 = arith.constant dense<0.000000e+00> : vector<2x32xf32>
    %102 = tpu.matmul %1, %70, %cst_87 {dimension_numbers = #tpu.dot_dimension_numbers<[1], [0], [0], [1], [0, 0, 1, 1], [], []>} : vector<2x32xf32>, vector<32x32xf32>, vector<2x32xf32> -> vector<2x32xf32>
    %103 = vector.broadcast %78 : vector<1x32xf32> to vector<2x32xf32>
    %104 = arith.addf %102, %103 : vector<2x32xf32>
    %105 = arith.mulf %88, %104 : vector<2x32xf32>
    %106 = arith.addf %101, %105 : vector<2x32xf32>
    %107 = math.tanh %106 : vector<2x32xf32>
    %cst_88 = arith.constant 1.000000e+00 : f32
    %108 = vector.broadcast %cst_88 : f32 to vector<2x32xf32>
    %109 = arith.subf %108, %98 : vector<2x32xf32>
    %110 = arith.mulf %109, %107 : vector<2x32xf32>
    %111 = arith.mulf %98, %1 : vector<2x32xf32>
    %112 = arith.addf %110, %111 : vector<2x32xf32>
    %c1_89 = arith.constant 1 : index
    %c0_90 = arith.constant 0 : index
    %c0_91 = arith.constant 0 : index
    %c0_92 = arith.constant 0 : index
    %113 = vector.load %arg5[%c1_89, %c0_90, %c0_91, %c0_92] : memref<2x3x32x32xf32, #tpu.memory_space<vmem>>, vector<1x1x32x32xf32>
    %114 = vector.shape_cast %113 : vector<1x1x32x32xf32> to vector<32x32xf32>
    %c1_93 = arith.constant 1 : index
    %c1_94 = arith.constant 1 : index
    %c0_95 = arith.constant 0 : index
    %c0_96 = arith.constant 0 : index
    %115 = vector.load %arg5[%c1_93, %c1_94, %c0_95, %c0_96] : memref<2x3x32x32xf32, #tpu.memory_space<vmem>>, vector<1x1x32x32xf32>
    %116 = vector.shape_cast %115 : vector<1x1x32x32xf32> to vector<32x32xf32>
    %c1_97 = arith.constant 1 : index
    %c2_98 = arith.constant 2 : index
    %c0_99 = arith.constant 0 : index
    %c0_100 = arith.constant 0 : index
    %117 = vector.load %arg5[%c1_97, %c2_98, %c0_99, %c0_100] : memref<2x3x32x32xf32, #tpu.memory_space<vmem>>, vector<1x1x32x32xf32>
    %118 = vector.shape_cast %117 : vector<1x1x32x32xf32> to vector<32x32xf32>
    %c1_101 = arith.constant 1 : index
    %c0_102 = arith.constant 0 : index
    %c0_103 = arith.constant 0 : index
    %c0_104 = arith.constant 0 : index
    %119 = vector.load %arg6[%c1_101, %c0_102, %c0_103, %c0_104] : memref<2x3x32x32xf32, #tpu.memory_space<vmem>>, vector<1x1x32x32xf32>
    %120 = vector.shape_cast %119 : vector<1x1x32x32xf32> to vector<32x32xf32>
    %c1_105 = arith.constant 1 : index
    %c1_106 = arith.constant 1 : index
    %c0_107 = arith.constant 0 : index
    %c0_108 = arith.constant 0 : index
    %121 = vector.load %arg6[%c1_105, %c1_106, %c0_107, %c0_108] : memref<2x3x32x32xf32, #tpu.memory_space<vmem>>, vector<1x1x32x32xf32>
    %122 = vector.shape_cast %121 : vector<1x1x32x32xf32> to vector<32x32xf32>
    %c1_109 = arith.constant 1 : index
    %c2_110 = arith.constant 2 : index
    %c0_111 = arith.constant 0 : index
    %c0_112 = arith.constant 0 : index
    %123 = vector.load %arg6[%c1_109, %c2_110, %c0_111, %c0_112] : memref<2x3x32x32xf32, #tpu.memory_space<vmem>>, vector<1x1x32x32xf32>
    %124 = vector.shape_cast %123 : vector<1x1x32x32xf32> to vector<32x32xf32>
    %c1_113 = arith.constant 1 : index
    %c0_114 = arith.constant 0 : index
    %c0_115 = arith.constant 0 : index
    %c0_116 = arith.constant 0 : index
    %125 = vector.load %arg7[%c1_113, %c0_114, %c0_115, %c0_116] : memref<2x4x1x32xf32, #tpu.memory_space<vmem>>, vector<1x1x1x32xf32>
    %126 = vector.shape_cast %125 : vector<1x1x1x32xf32> to vector<1x32xf32>
    %c1_117 = arith.constant 1 : index
    %c1_118 = arith.constant 1 : index
    %c0_119 = arith.constant 0 : index
    %c0_120 = arith.constant 0 : index
    %127 = vector.load %arg7[%c1_117, %c1_118, %c0_119, %c0_120] : memref<2x4x1x32xf32, #tpu.memory_space<vmem>>, vector<1x1x1x32xf32>
    %128 = vector.shape_cast %127 : vector<1x1x1x32xf32> to vector<1x32xf32>
    %c1_121 = arith.constant 1 : index
    %c2_122 = arith.constant 2 : index
    %c0_123 = arith.constant 0 : index
    %c0_124 = arith.constant 0 : index
    %129 = vector.load %arg7[%c1_121, %c2_122, %c0_123, %c0_124] : memref<2x4x1x32xf32, #tpu.memory_space<vmem>>, vector<1x1x1x32xf32>
    %130 = vector.shape_cast %129 : vector<1x1x1x32xf32> to vector<1x32xf32>
    %c1_125 = arith.constant 1 : index
    %c3_126 = arith.constant 3 : index
    %c0_127 = arith.constant 0 : index
    %c0_128 = arith.constant 0 : index
    %131 = vector.load %arg7[%c1_125, %c3_126, %c0_127, %c0_128] : memref<2x4x1x32xf32, #tpu.memory_space<vmem>>, vector<1x1x1x32xf32>
    %132 = vector.shape_cast %131 : vector<1x1x1x32xf32> to vector<1x32xf32>
    %cst_129 = arith.constant dense<0.000000e+00> : vector<2x32xf32>
    %133 = tpu.matmul %112, %114, %cst_129 {dimension_numbers = #tpu.dot_dimension_numbers<[1], [0], [0], [1], [0, 0, 1, 1], [], []>} : vector<2x32xf32>, vector<32x32xf32>, vector<2x32xf32> -> vector<2x32xf32>
    %cst_130 = arith.constant dense<0.000000e+00> : vector<2x32xf32>
    %134 = tpu.matmul %2, %120, %cst_130 {dimension_numbers = #tpu.dot_dimension_numbers<[1], [0], [0], [1], [0, 0, 1, 1], [], []>} : vector<2x32xf32>, vector<32x32xf32>, vector<2x32xf32> -> vector<2x32xf32>
    %135 = arith.addf %133, %134 : vector<2x32xf32>
    %136 = vector.broadcast %126 : vector<1x32xf32> to vector<2x32xf32>
    %137 = arith.addf %135, %136 : vector<2x32xf32>
    %138 = arith.negf %137 : vector<2x32xf32>
    %139 = math.exp %138 : vector<2x32xf32>
    %cst_131 = arith.constant 1.000000e+00 : f32
    %140 = vector.broadcast %cst_131 : f32 to vector<2x32xf32>
    %141 = arith.addf %140, %139 : vector<2x32xf32>
    %142 = arith.divf %140, %141 : vector<2x32xf32>
    %cst_132 = arith.constant dense<0.000000e+00> : vector<2x32xf32>
    %143 = tpu.matmul %112, %116, %cst_132 {dimension_numbers = #tpu.dot_dimension_numbers<[1], [0], [0], [1], [0, 0, 1, 1], [], []>} : vector<2x32xf32>, vector<32x32xf32>, vector<2x32xf32> -> vector<2x32xf32>
    %cst_133 = arith.constant dense<0.000000e+00> : vector<2x32xf32>
    %144 = tpu.matmul %2, %122, %cst_133 {dimension_numbers = #tpu.dot_dimension_numbers<[1], [0], [0], [1], [0, 0, 1, 1], [], []>} : vector<2x32xf32>, vector<32x32xf32>, vector<2x32xf32> -> vector<2x32xf32>
    %145 = arith.addf %143, %144 : vector<2x32xf32>
    %146 = vector.broadcast %128 : vector<1x32xf32> to vector<2x32xf32>
    %147 = arith.addf %145, %146 : vector<2x32xf32>
    %148 = arith.negf %147 : vector<2x32xf32>
    %149 = math.exp %148 : vector<2x32xf32>
    %cst_134 = arith.constant 1.000000e+00 : f32
    %150 = vector.broadcast %cst_134 : f32 to vector<2x32xf32>
    %151 = arith.addf %150, %149 : vector<2x32xf32>
    %152 = arith.divf %150, %151 : vector<2x32xf32>
    %cst_135 = arith.constant dense<0.000000e+00> : vector<2x32xf32>
    %153 = tpu.matmul %112, %118, %cst_135 {dimension_numbers = #tpu.dot_dimension_numbers<[1], [0], [0], [1], [0, 0, 1, 1], [], []>} : vector<2x32xf32>, vector<32x32xf32>, vector<2x32xf32> -> vector<2x32xf32>
    %154 = vector.broadcast %130 : vector<1x32xf32> to vector<2x32xf32>
    %155 = arith.addf %153, %154 : vector<2x32xf32>
    %cst_136 = arith.constant dense<0.000000e+00> : vector<2x32xf32>
    %156 = tpu.matmul %2, %124, %cst_136 {dimension_numbers = #tpu.dot_dimension_numbers<[1], [0], [0], [1], [0, 0, 1, 1], [], []>} : vector<2x32xf32>, vector<32x32xf32>, vector<2x32xf32> -> vector<2x32xf32>
    %157 = vector.broadcast %132 : vector<1x32xf32> to vector<2x32xf32>
    %158 = arith.addf %156, %157 : vector<2x32xf32>
    %159 = arith.mulf %142, %158 : vector<2x32xf32>
    %160 = arith.addf %155, %159 : vector<2x32xf32>
    %161 = math.tanh %160 : vector<2x32xf32>
    %cst_137 = arith.constant 1.000000e+00 : f32
    %162 = vector.broadcast %cst_137 : f32 to vector<2x32xf32>
    %163 = arith.subf %162, %152 : vector<2x32xf32>
    %164 = arith.mulf %163, %161 : vector<2x32xf32>
    %165 = arith.mulf %152, %2 : vector<2x32xf32>
    %166 = arith.addf %164, %165 : vector<2x32xf32>
    %c0_138 = arith.constant 0 : index
    %c0_139 = arith.constant 0 : index
    %c0_140 = arith.constant 0 : index
    %167 = vector.load %arg8[%c0_138, %c0_139, %c0_140] : memref<8x2x32xf32, #tpu.memory_space<vmem>>, vector<1x2x32xf32>
    %168 = vector.shape_cast %167 : vector<1x2x32xf32> to vector<2x32xf32>
    %169 = vector.shape_cast %166 : vector<2x32xf32> to vector<1x2x32xf32>
    tpu.vector_store %arg8[%c0_138, %c0_139, %c0_140], %169 {strides = array<i32>} : memref<8x2x32xf32, #tpu.memory_space<vmem>>, vector<1x2x32xf32>,
    %c1_141 = arith.constant 1 : index
    %c0_142 = arith.constant 0 : index
    %c0_143 = arith.constant 0 : index
    %170 = vector.load %arg1[%c1_141, %c0_142, %c0_143] : memref<8x2x8xf32, #tpu.memory_space<vmem>>, vector<1x2x8xf32>
    %171 = vector.shape_cast %170 : vector<1x2x8xf32> to vector<2x8xf32>
    %c0_144 = arith.constant 0 : index
    %c0_145 = arith.constant 0 : index
    %c0_146 = arith.constant 0 : index
    %172 = vector.load %arg2[%c0_144, %c0_145, %c0_146] : memref<3x8x32xf32, #tpu.memory_space<vmem>>, vector<1x8x32xf32>
    %173 = vector.shape_cast %172 : vector<1x8x32xf32> to vector<8x32xf32>
    %c1_147 = arith.constant 1 : index
    %c0_148 = arith.constant 0 : index
    %c0_149 = arith.constant 0 : index
    %174 = vector.load %arg2[%c1_147, %c0_148, %c0_149] : memref<3x8x32xf32, #tpu.memory_space<vmem>>, vector<1x8x32xf32>
    %175 = vector.shape_cast %174 : vector<1x8x32xf32> to vector<8x32xf32>
    %c2_150 = arith.constant 2 : index
    %c0_151 = arith.constant 0 : index
    %c0_152 = arith.constant 0 : index
    %176 = vector.load %arg2[%c2_150, %c0_151, %c0_152] : memref<3x8x32xf32, #tpu.memory_space<vmem>>, vector<1x8x32xf32>
    %177 = vector.shape_cast %176 : vector<1x8x32xf32> to vector<8x32xf32>
    %c0_153 = arith.constant 0 : index
    %c0_154 = arith.constant 0 : index
    %c0_155 = arith.constant 0 : index
    %178 = vector.load %arg3[%c0_153, %c0_154, %c0_155] : memref<3x32x32xf32, #tpu.memory_space<vmem>>, vector<1x32x32xf32>
    %179 = vector.shape_cast %178 : vector<1x32x32xf32> to vector<32x32xf32>
    %c1_156 = arith.constant 1 : index
    %c0_157 = arith.constant 0 : index
    %c0_158 = arith.constant 0 : index
    %180 = vector.load %arg3[%c1_156, %c0_157, %c0_158] : memref<3x32x32xf32, #tpu.memory_space<vmem>>, vector<1x32x32xf32>
    %181 = vector.shape_cast %180 : vector<1x32x32xf32> to vector<32x32xf32>
    %c2_159 = arith.constant 2 : index
    %c0_160 = arith.constant 0 : index
    %c0_161 = arith.constant 0 : index
    %182 = vector.load %arg3[%c2_159, %c0_160, %c0_161] : memref<3x32x32xf32, #tpu.memory_space<vmem>>, vector<1x32x32xf32>
    %183 = vector.shape_cast %182 : vector<1x32x32xf32> to vector<32x32xf32>
    %c0_162 = arith.constant 0 : index
    %c0_163 = arith.constant 0 : index
    %c0_164 = arith.constant 0 : index
    %184 = vector.load %arg4[%c0_162, %c0_163, %c0_164] : memref<4x1x32xf32, #tpu.memory_space<vmem>>, vector<1x1x32xf32>
    %185 = vector.shape_cast %184 : vector<1x1x32xf32> to vector<1x32xf32>
    %c1_165 = arith.constant 1 : index
    %c0_166 = arith.constant 0 : index
    %c0_167 = arith.constant 0 : index
    %186 = vector.load %arg4[%c1_165, %c0_166, %c0_167] : memref<4x1x32xf32, #tpu.memory_space<vmem>>, vector<1x1x32xf32>
    %187 = vector.shape_cast %186 : vector<1x1x32xf32> to vector<1x32xf32>
    %c2_168 = arith.constant 2 : index
    %c0_169 = arith.constant 0 : index
    %c0_170 = arith.constant 0 : index
    %188 = vector.load %arg4[%c2_168, %c0_169, %c0_170] : memref<4x1x32xf32, #tpu.memory_space<vmem>>, vector<1x1x32xf32>
    %189 = vector.shape_cast %188 : vector<1x1x32xf32> to vector<1x32xf32>
    %c3_171 = arith.constant 3 : index
    %c0_172 = arith.constant 0 : index
    %c0_173 = arith.constant 0 : index
    %190 = vector.load %arg4[%c3_171, %c0_172, %c0_173] : memref<4x1x32xf32, #tpu.memory_space<vmem>>, vector<1x1x32xf32>
    %191 = vector.shape_cast %190 : vector<1x1x32xf32> to vector<1x32xf32>
    %cst_174 = arith.constant dense<0.000000e+00> : vector<2x32xf32>
    %192 = tpu.matmul %171, %173, %cst_174 {dimension_numbers = #tpu.dot_dimension_numbers<[1], [0], [0], [1], [0, 0, 1, 1], [], []>} : vector<2x8xf32>, vector<8x32xf32>, vector<2x32xf32> -> vector<2x32xf32>
    %cst_175 = arith.constant dense<0.000000e+00> : vector<2x32xf32>
    %193 = tpu.matmul %58, %179, %cst_175 {dimension_numbers = #tpu.dot_dimension_numbers<[1], [0], [0], [1], [0, 0, 1, 1], [], []>} : vector<2x32xf32>, vector<32x32xf32>, vector<2x32xf32> -> vector<2x32xf32>
    %194 = arith.addf %192, %193 : vector<2x32xf32>
    %195 = vector.broadcast %185 : vector<1x32xf32> to vector<2x32xf32>
    %196 = arith.addf %194, %195 : vector<2x32xf32>
    %197 = arith.negf %196 : vector<2x32xf32>
    %198 = math.exp %197 : vector<2x32xf32>
    %cst_176 = arith.constant 1.000000e+00 : f32
    %199 = vector.broadcast %cst_176 : f32 to vector<2x32xf32>
    %200 = arith.addf %199, %198 : vector<2x32xf32>
    %201 = arith.divf %199, %200 : vector<2x32xf32>
    %cst_177 = arith.constant dense<0.000000e+00> : vector<2x32xf32>
    %202 = tpu.matmul %171, %175, %cst_177 {dimension_numbers = #tpu.dot_dimension_numbers<[1], [0], [0], [1], [0, 0, 1, 1], [], []>} : vector<2x8xf32>, vector<8x32xf32>, vector<2x32xf32> -> vector<2x32xf32>
    %cst_178 = arith.constant dense<0.000000e+00> : vector<2x32xf32>
    %203 = tpu.matmul %58, %181, %cst_178 {dimension_numbers = #tpu.dot_dimension_numbers<[1], [0], [0], [1], [0, 0, 1, 1], [], []>} : vector<2x32xf32>, vector<32x32xf32>, vector<2x32xf32> -> vector<2x32xf32>
    %204 = arith.addf %202, %203 : vector<2x32xf32>
    %205 = vector.broadcast %187 : vector<1x32xf32> to vector<2x32xf32>
    %206 = arith.addf %204, %205 : vector<2x32xf32>
    %207 = arith.negf %206 : vector<2x32xf32>
    %208 = math.exp %207 : vector<2x32xf32>
    %cst_179 = arith.constant 1.000000e+00 : f32
    %209 = vector.broadcast %cst_179 : f32 to vector<2x32xf32>
    %210 = arith.addf %209, %208 : vector<2x32xf32>
    %211 = arith.divf %209, %210 : vector<2x32xf32>
    %cst_180 = arith.constant dense<0.000000e+00> : vector<2x32xf32>
    %212 = tpu.matmul %171, %177, %cst_180 {dimension_numbers = #tpu.dot_dimension_numbers<[1], [0], [0], [1], [0, 0, 1, 1], [], []>} : vector<2x8xf32>, vector<8x32xf32>, vector<2x32xf32> -> vector<2x32xf32>
    %213 = vector.broadcast %189 : vector<1x32xf32> to vector<2x32xf32>
    %214 = arith.addf %212, %213 : vector<2x32xf32>
    %cst_181 = arith.constant dense<0.000000e+00> : vector<2x32xf32>
    %215 = tpu.matmul %58, %183, %cst_181 {dimension_numbers = #tpu.dot_dimension_numbers<[1], [0], [0], [1], [0, 0, 1, 1], [], []>} : vector<2x32xf32>, vector<32x32xf32>, vector<2x32xf32> -> vector<2x32xf32>
    %216 = vector.broadcast %191 : vector<1x32xf32> to vector<2x32xf32>
    %217 = arith.addf %215, %216 : vector<2x32xf32>
    %218 = arith.mulf %201, %217 : vector<2x32xf32>
    %219 = arith.addf %214, %218 : vector<2x32xf32>
    %220 = math.tanh %219 : vector<2x32xf32>
    %cst_182 = arith.constant 1.000000e+00 : f32
    %221 = vector.broadcast %cst_182 : f32 to vector<2x32xf32>
    %222 = arith.subf %221, %211 : vector<2x32xf32>
    %223 = arith.mulf %222, %220 : vector<2x32xf32>
    %224 = arith.mulf %211, %58 : vector<2x32xf32>
    %225 = arith.addf %223, %224 : vector<2x32xf32>
    %c0_183 = arith.constant 0 : index
    %c0_184 = arith.constant 0 : index
    %c0_185 = arith.constant 0 : index
    %c0_186 = arith.constant 0 : index
    %226 = vector.load %arg5[%c0_183, %c0_184, %c0_185, %c0_186] : memref<2x3x32x32xf32, #tpu.memory_space<vmem>>, vector<1x1x32x32xf32>
    %227 = vector.shape_cast %226 : vector<1x1x32x32xf32> to vector<32x32xf32>
    %c0_187 = arith.constant 0 : index
    %c1_188 = arith.constant 1 : index
    %c0_189 = arith.constant 0 : index
    %c0_190 = arith.constant 0 : index
    %228 = vector.load %arg5[%c0_187, %c1_188, %c0_189, %c0_190] : memref<2x3x32x32xf32, #tpu.memory_space<vmem>>, vector<1x1x32x32xf32>
    %229 = vector.shape_cast %228 : vector<1x1x32x32xf32> to vector<32x32xf32>
    %c0_191 = arith.constant 0 : index
    %c2_192 = arith.constant 2 : index
    %c0_193 = arith.constant 0 : index
    %c0_194 = arith.constant 0 : index
    %230 = vector.load %arg5[%c0_191, %c2_192, %c0_193, %c0_194] : memref<2x3x32x32xf32, #tpu.memory_space<vmem>>, vector<1x1x32x32xf32>
    %231 = vector.shape_cast %230 : vector<1x1x32x32xf32> to vector<32x32xf32>
    %c0_195 = arith.constant 0 : index
    %c0_196 = arith.constant 0 : index
    %c0_197 = arith.constant 0 : index
    %c0_198 = arith.constant 0 : index
    %232 = vector.load %arg6[%c0_195, %c0_196, %c0_197, %c0_198] : memref<2x3x32x32xf32, #tpu.memory_space<vmem>>, vector<1x1x32x32xf32>
    %233 = vector.shape_cast %232 : vector<1x1x32x32xf32> to vector<32x32xf32>
    %c0_199 = arith.constant 0 : index
    %c1_200 = arith.constant 1 : index
    %c0_201 = arith.constant 0 : index
    %c0_202 = arith.constant 0 : index
    %234 = vector.load %arg6[%c0_199, %c1_200, %c0_201, %c0_202] : memref<2x3x32x32xf32, #tpu.memory_space<vmem>>, vector<1x1x32x32xf32>
    %235 = vector.shape_cast %234 : vector<1x1x32x32xf32> to vector<32x32xf32>
    %c0_203 = arith.constant 0 : index
    %c2_204 = arith.constant 2 : index
    %c0_205 = arith.constant 0 : index
    %c0_206 = arith.constant 0 : index
    %236 = vector.load %arg6[%c0_203, %c2_204, %c0_205, %c0_206] : memref<2x3x32x32xf32, #tpu.memory_space<vmem>>, vector<1x1x32x32xf32>
    %237 = vector.shape_cast %236 : vector<1x1x32x32xf32> to vector<32x32xf32>
    %c0_207 = arith.constant 0 : index
    %c0_208 = arith.constant 0 : index
    %c0_209 = arith.constant 0 : index
    %c0_210 = arith.constant 0 : index
    %238 = vector.load %arg7[%c0_207, %c0_208, %c0_209, %c0_210] : memref<2x4x1x32xf32, #tpu.memory_space<vmem>>, vector<1x1x1x32xf32>
    %239 = vector.shape_cast %238 : vector<1x1x1x32xf32> to vector<1x32xf32>
    %c0_211 = arith.constant 0 : index
    %c1_212 = arith.constant 1 : index
    %c0_213 = arith.constant 0 : index
    %c0_214 = arith.constant 0 : index
    %240 = vector.load %arg7[%c0_211, %c1_212, %c0_213, %c0_214] : memref<2x4x1x32xf32, #tpu.memory_space<vmem>>, vector<1x1x1x32xf32>
    %241 = vector.shape_cast %240 : vector<1x1x1x32xf32> to vector<1x32xf32>
    %c0_215 = arith.constant 0 : index
    %c2_216 = arith.constant 2 : index
    %c0_217 = arith.constant 0 : index
    %c0_218 = arith.constant 0 : index
    %242 = vector.load %arg7[%c0_215, %c2_216, %c0_217, %c0_218] : memref<2x4x1x32xf32, #tpu.memory_space<vmem>>, vector<1x1x1x32xf32>
    %243 = vector.shape_cast %242 : vector<1x1x1x32xf32> to vector<1x32xf32>
    %c0_219 = arith.constant 0 : index
    %c3_220 = arith.constant 3 : index
    %c0_221 = arith.constant 0 : index
    %c0_222 = arith.constant 0 : index
    %244 = vector.load %arg7[%c0_219, %c3_220, %c0_221, %c0_222] : memref<2x4x1x32xf32, #tpu.memory_space<vmem>>, vector<1x1x1x32xf32>
    %245 = vector.shape_cast %244 : vector<1x1x1x32xf32> to vector<1x32xf32>
    %cst_223 = arith.constant dense<0.000000e+00> : vector<2x32xf32>
    %246 = tpu.matmul %225, %227, %cst_223 {dimension_numbers = #tpu.dot_dimension_numbers<[1], [0], [0], [1], [0, 0, 1, 1], [], []>} : vector<2x32xf32>, vector<32x32xf32>, vector<2x32xf32> -> vector<2x32xf32>
    %cst_224 = arith.constant dense<0.000000e+00> : vector<2x32xf32>
    %247 = tpu.matmul %112, %233, %cst_224 {dimension_numbers = #tpu.dot_dimension_numbers<[1], [0], [0], [1], [0, 0, 1, 1], [], []>} : vector<2x32xf32>, vector<32x32xf32>, vector<2x32xf32> -> vector<2x32xf32>
    %248 = arith.addf %246, %247 : vector<2x32xf32>
    %249 = vector.broadcast %239 : vector<1x32xf32> to vector<2x32xf32>
    %250 = arith.addf %248, %249 : vector<2x32xf32>
    %251 = arith.negf %250 : vector<2x32xf32>
    %252 = math.exp %251 : vector<2x32xf32>
    %cst_225 = arith.constant 1.000000e+00 : f32
    %253 = vector.broadcast %cst_225 : f32 to vector<2x32xf32>
    %254 = arith.addf %253, %252 : vector<2x32xf32>
    %255 = arith.divf %253, %254 : vector<2x32xf32>
    %cst_226 = arith.constant dense<0.000000e+00> : vector<2x32xf32>
    %256 = tpu.matmul %225, %229, %cst_226 {dimension_numbers = #tpu.dot_dimension_numbers<[1], [0], [0], [1], [0, 0, 1, 1], [], []>} : vector<2x32xf32>, vector<32x32xf32>, vector<2x32xf32> -> vector<2x32xf32>
    %cst_227 = arith.constant dense<0.000000e+00> : vector<2x32xf32>
    %257 = tpu.matmul %112, %235, %cst_227 {dimension_numbers = #tpu.dot_dimension_numbers<[1], [0], [0], [1], [0, 0, 1, 1], [], []>} : vector<2x32xf32>, vector<32x32xf32>, vector<2x32xf32> -> vector<2x32xf32>
    %258 = arith.addf %256, %257 : vector<2x32xf32>
    %259 = vector.broadcast %241 : vector<1x32xf32> to vector<2x32xf32>
    %260 = arith.addf %258, %259 : vector<2x32xf32>
    %261 = arith.negf %260 : vector<2x32xf32>
    %262 = math.exp %261 : vector<2x32xf32>
    %cst_228 = arith.constant 1.000000e+00 : f32
    %263 = vector.broadcast %cst_228 : f32 to vector<2x32xf32>
    %264 = arith.addf %263, %262 : vector<2x32xf32>
    %265 = arith.divf %263, %264 : vector<2x32xf32>
    %cst_229 = arith.constant dense<0.000000e+00> : vector<2x32xf32>
    %266 = tpu.matmul %225, %231, %cst_229 {dimension_numbers = #tpu.dot_dimension_numbers<[1], [0], [0], [1], [0, 0, 1, 1], [], []>} : vector<2x32xf32>, vector<32x32xf32>, vector<2x32xf32> -> vector<2x32xf32>
    %267 = vector.broadcast %243 : vector<1x32xf32> to vector<2x32xf32>
    %268 = arith.addf %266, %267 : vector<2x32xf32>
    %cst_230 = arith.constant dense<0.000000e+00> : vector<2x32xf32>
    %269 = tpu.matmul %112, %237, %cst_230 {dimension_numbers = #tpu.dot_dimension_numbers<[1], [0], [0], [1], [0, 0, 1, 1], [], []>} : vector<2x32xf32>, vector<32x32xf32>, vector<2x32xf32> -> vector<2x32xf32>
    %270 = vector.broadcast %245 : vector<1x32xf32> to vector<2x32xf32>
    %271 = arith.addf %269, %270 : vector<2x32xf32>
    %272 = arith.mulf %255, %271 : vector<2x32xf32>
    %273 = arith.addf %268, %272 : vector<2x32xf32>
    %274 = math.tanh %273 : vector<2x32xf32>
    %cst_231 = arith.constant 1.000000e+00 : f32
    %275 = vector.broadcast %cst_231 : f32 to vector<2x32xf32>
    %276 = arith.subf %275, %265 : vector<2x32xf32>
    %277 = arith.mulf %276, %274 : vector<2x32xf32>
    %278 = arith.mulf %265, %112 : vector<2x32xf32>
    %279 = arith.addf %277, %278 : vector<2x32xf32>
    %c1_232 = arith.constant 1 : index
    %c0_233 = arith.constant 0 : index
    %c0_234 = arith.constant 0 : index
    %c0_235 = arith.constant 0 : index
    %280 = vector.load %arg5[%c1_232, %c0_233, %c0_234, %c0_235] : memref<2x3x32x32xf32, #tpu.memory_space<vmem>>, vector<1x1x32x32xf32>
    %281 = vector.shape_cast %280 : vector<1x1x32x32xf32> to vector<32x32xf32>
    %c1_236 = arith.constant 1 : index
    %c1_237 = arith.constant 1 : index
    %c0_238 = arith.constant 0 : index
    %c0_239 = arith.constant 0 : index
    %282 = vector.load %arg5[%c1_236, %c1_237, %c0_238, %c0_239] : memref<2x3x32x32xf32, #tpu.memory_space<vmem>>, vector<1x1x32x32xf32>
    %283 = vector.shape_cast %282 : vector<1x1x32x32xf32> to vector<32x32xf32>
    %c1_240 = arith.constant 1 : index
    %c2_241 = arith.constant 2 : index
    %c0_242 = arith.constant 0 : index
    %c0_243 = arith.constant 0 : index
    %284 = vector.load %arg5[%c1_240, %c2_241, %c0_242, %c0_243] : memref<2x3x32x32xf32, #tpu.memory_space<vmem>>, vector<1x1x32x32xf32>
    %285 = vector.shape_cast %284 : vector<1x1x32x32xf32> to vector<32x32xf32>
    %c1_244 = arith.constant 1 : index
    %c0_245 = arith.constant 0 : index
    %c0_246 = arith.constant 0 : index
    %c0_247 = arith.constant 0 : index
    %286 = vector.load %arg6[%c1_244, %c0_245, %c0_246, %c0_247] : memref<2x3x32x32xf32, #tpu.memory_space<vmem>>, vector<1x1x32x32xf32>
    %287 = vector.shape_cast %286 : vector<1x1x32x32xf32> to vector<32x32xf32>
    %c1_248 = arith.constant 1 : index
    %c1_249 = arith.constant 1 : index
    %c0_250 = arith.constant 0 : index
    %c0_251 = arith.constant 0 : index
    %288 = vector.load %arg6[%c1_248, %c1_249, %c0_250, %c0_251] : memref<2x3x32x32xf32, #tpu.memory_space<vmem>>, vector<1x1x32x32xf32>
    %289 = vector.shape_cast %288 : vector<1x1x32x32xf32> to vector<32x32xf32>
    %c1_252 = arith.constant 1 : index
    %c2_253 = arith.constant 2 : index
    %c0_254 = arith.constant 0 : index
    %c0_255 = arith.constant 0 : index
    %290 = vector.load %arg6[%c1_252, %c2_253, %c0_254, %c0_255] : memref<2x3x32x32xf32, #tpu.memory_space<vmem>>, vector<1x1x32x32xf32>
    %291 = vector.shape_cast %290 : vector<1x1x32x32xf32> to vector<32x32xf32>
    %c1_256 = arith.constant 1 : index
    %c0_257 = arith.constant 0 : index
    %c0_258 = arith.constant 0 : index
    %c0_259 = arith.constant 0 : index
    %292 = vector.load %arg7[%c1_256, %c0_257, %c0_258, %c0_259] : memref<2x4x1x32xf32, #tpu.memory_space<vmem>>, vector<1x1x1x32xf32>
    %293 = vector.shape_cast %292 : vector<1x1x1x32xf32> to vector<1x32xf32>
    %c1_260 = arith.constant 1 : index
    %c1_261 = arith.constant 1 : index
    %c0_262 = arith.constant 0 : index
    %c0_263 = arith.constant 0 : index
    %294 = vector.load %arg7[%c1_260, %c1_261, %c0_262, %c0_263] : memref<2x4x1x32xf32, #tpu.memory_space<vmem>>, vector<1x1x1x32xf32>
    %295 = vector.shape_cast %294 : vector<1x1x1x32xf32> to vector<1x32xf32>
    %c1_264 = arith.constant 1 : index
    %c2_265 = arith.constant 2 : index
    %c0_266 = arith.constant 0 : index
    %c0_267 = arith.constant 0 : index
    %296 = vector.load %arg7[%c1_264, %c2_265, %c0_266, %c0_267] : memref<2x4x1x32xf32, #tpu.memory_space<vmem>>, vector<1x1x1x32xf32>
    %297 = vector.shape_cast %296 : vector<1x1x1x32xf32> to vector<1x32xf32>
    %c1_268 = arith.constant 1 : index
    %c3_269 = arith.constant 3 : index
    %c0_270 = arith.constant 0 : index
    %c0_271 = arith.constant 0 : index
    %298 = vector.load %arg7[%c1_268, %c3_269, %c0_270, %c0_271] : memref<2x4x1x32xf32, #tpu.memory_space<vmem>>, vector<1x1x1x32xf32>
    %299 = vector.shape_cast %298 : vector<1x1x1x32xf32> to vector<1x32xf32>
    %cst_272 = arith.constant dense<0.000000e+00> : vector<2x32xf32>
    %300 = tpu.matmul %279, %281, %cst_272 {dimension_numbers = #tpu.dot_dimension_numbers<[1], [0], [0], [1], [0, 0, 1, 1], [], []>} : vector<2x32xf32>, vector<32x32xf32>, vector<2x32xf32> -> vector<2x32xf32>
    %cst_273 = arith.constant dense<0.000000e+00> : vector<2x32xf32>
    %301 = tpu.matmul %166, %287, %cst_273 {dimension_numbers = #tpu.dot_dimension_numbers<[1], [0], [0], [1], [0, 0, 1, 1], [], []>} : vector<2x32xf32>, vector<32x32xf32>, vector<2x32xf32> -> vector<2x32xf32>
    %302 = arith.addf %300, %301 : vector<2x32xf32>
    %303 = vector.broadcast %293 : vector<1x32xf32> to vector<2x32xf32>
    %304 = arith.addf %302, %303 : vector<2x32xf32>
    %305 = arith.negf %304 : vector<2x32xf32>
    %306 = math.exp %305 : vector<2x32xf32>
    %cst_274 = arith.constant 1.000000e+00 : f32
    %307 = vector.broadcast %cst_274 : f32 to vector<2x32xf32>
    %308 = arith.addf %307, %306 : vector<2x32xf32>
    %309 = arith.divf %307, %308 : vector<2x32xf32>
    %cst_275 = arith.constant dense<0.000000e+00> : vector<2x32xf32>
    %310 = tpu.matmul %279, %283, %cst_275 {dimension_numbers = #tpu.dot_dimension_numbers<[1], [0], [0], [1], [0, 0, 1, 1], [], []>} : vector<2x32xf32>, vector<32x32xf32>, vector<2x32xf32> -> vector<2x32xf32>
    %cst_276 = arith.constant dense<0.000000e+00> : vector<2x32xf32>
    %311 = tpu.matmul %166, %289, %cst_276 {dimension_numbers = #tpu.dot_dimension_numbers<[1], [0], [0], [1], [0, 0, 1, 1], [], []>} : vector<2x32xf32>, vector<32x32xf32>, vector<2x32xf32> -> vector<2x32xf32>
    %312 = arith.addf %310, %311 : vector<2x32xf32>
    %313 = vector.broadcast %295 : vector<1x32xf32> to vector<2x32xf32>
    %314 = arith.addf %312, %313 : vector<2x32xf32>
    %315 = arith.negf %314 : vector<2x32xf32>
    %316 = math.exp %315 : vector<2x32xf32>
    %cst_277 = arith.constant 1.000000e+00 : f32
    %317 = vector.broadcast %cst_277 : f32 to vector<2x32xf32>
    %318 = arith.addf %317, %316 : vector<2x32xf32>
    %319 = arith.divf %317, %318 : vector<2x32xf32>
    %cst_278 = arith.constant dense<0.000000e+00> : vector<2x32xf32>
    %320 = tpu.matmul %279, %285, %cst_278 {dimension_numbers = #tpu.dot_dimension_numbers<[1], [0], [0], [1], [0, 0, 1, 1], [], []>} : vector<2x32xf32>, vector<32x32xf32>, vector<2x32xf32> -> vector<2x32xf32>
    %321 = vector.broadcast %297 : vector<1x32xf32> to vector<2x32xf32>
    %322 = arith.addf %320, %321 : vector<2x32xf32>
    %cst_279 = arith.constant dense<0.000000e+00> : vector<2x32xf32>
    %323 = tpu.matmul %166, %291, %cst_279 {dimension_numbers = #tpu.dot_dimension_numbers<[1], [0], [0], [1], [0, 0, 1, 1], [], []>} : vector<2x32xf32>, vector<32x32xf32>, vector<2x32xf32> -> vector<2x32xf32>
    %324 = vector.broadcast %299 : vector<1x32xf32> to vector<2x32xf32>
    %325 = arith.addf %323, %324 : vector<2x32xf32>
    %326 = arith.mulf %309, %325 : vector<2x32xf32>
    %327 = arith.addf %322, %326 : vector<2x32xf32>
    %328 = math.tanh %327 : vector<2x32xf32>
    %cst_280 = arith.constant 1.000000e+00 : f32
    %329 = vector.broadcast %cst_280 : f32 to vector<2x32xf32>
    %330 = arith.subf %329, %319 : vector<2x32xf32>
    %331 = arith.mulf %330, %328 : vector<2x32xf32>
    %332 = arith.mulf %319, %166 : vector<2x32xf32>
    %333 = arith.addf %331, %332 : vector<2x32xf32>
    %c1_281 = arith.constant 1 : index
    %c0_282 = arith.constant 0 : index
    %c0_283 = arith.constant 0 : index
    %334 = vector.load %arg8[%c1_281, %c0_282, %c0_283] : memref<8x2x32xf32, #tpu.memory_space<vmem>>, vector<1x2x32xf32>
    %335 = vector.shape_cast %334 : vector<1x2x32xf32> to vector<2x32xf32>
    %336 = vector.shape_cast %333 : vector<2x32xf32> to vector<1x2x32xf32>
    tpu.vector_store %arg8[%c1_281, %c0_282, %c0_283], %336 {strides = array<i32>} : memref<8x2x32xf32, #tpu.memory_space<vmem>>, vector<1x2x32xf32>,
    %c2_284 = arith.constant 2 : index
    %c0_285 = arith.constant 0 : index
    %c0_286 = arith.constant 0 : index
    %337 = vector.load %arg1[%c2_284, %c0_285, %c0_286] : memref<8x2x8xf32, #tpu.memory_space<vmem>>, vector<1x2x8xf32>
    %338 = vector.shape_cast %337 : vector<1x2x8xf32> to vector<2x8xf32>
    %c0_287 = arith.constant 0 : index
    %c0_288 = arith.constant 0 : index
    %c0_289 = arith.constant 0 : index
    %339 = vector.load %arg2[%c0_287, %c0_288, %c0_289] : memref<3x8x32xf32, #tpu.memory_space<vmem>>, vector<1x8x32xf32>
    %340 = vector.shape_cast %339 : vector<1x8x32xf32> to vector<8x32xf32>
    %c1_290 = arith.constant 1 : index
    %c0_291 = arith.constant 0 : index
    %c0_292 = arith.constant 0 : index
    %341 = vector.load %arg2[%c1_290, %c0_291, %c0_292] : memref<3x8x32xf32, #tpu.memory_space<vmem>>, vector<1x8x32xf32>
    %342 = vector.shape_cast %341 : vector<1x8x32xf32> to vector<8x32xf32>
    %c2_293 = arith.constant 2 : index
    %c0_294 = arith.constant 0 : index
    %c0_295 = arith.constant 0 : index
    %343 = vector.load %arg2[%c2_293, %c0_294, %c0_295] : memref<3x8x32xf32, #tpu.memory_space<vmem>>, vector<1x8x32xf32>
    %344 = vector.shape_cast %343 : vector<1x8x32xf32> to vector<8x32xf32>
    %c0_296 = arith.constant 0 : index
    %c0_297 = arith.constant 0 : index
    %c0_298 = arith.constant 0 : index
    %345 = vector.load %arg3[%c0_296, %c0_297, %c0_298] : memref<3x32x32xf32, #tpu.memory_space<vmem>>, vector<1x32x32xf32>
    %346 = vector.shape_cast %345 : vector<1x32x32xf32> to vector<32x32xf32>
    %c1_299 = arith.constant 1 : index
    %c0_300 = arith.constant 0 : index
    %c0_301 = arith.constant 0 : index
    %347 = vector.load %arg3[%c1_299, %c0_300, %c0_301] : memref<3x32x32xf32, #tpu.memory_space<vmem>>, vector<1x32x32xf32>
    %348 = vector.shape_cast %347 : vector<1x32x32xf32> to vector<32x32xf32>
    %c2_302 = arith.constant 2 : index
    %c0_303 = arith.constant 0 : index
    %c0_304 = arith.constant 0 : index
    %349 = vector.load %arg3[%c2_302, %c0_303, %c0_304] : memref<3x32x32xf32, #tpu.memory_space<vmem>>, vector<1x32x32xf32>
    %350 = vector.shape_cast %349 : vector<1x32x32xf32> to vector<32x32xf32>
    %c0_305 = arith.constant 0 : index
    %c0_306 = arith.constant 0 : index
    %c0_307 = arith.constant 0 : index
    %351 = vector.load %arg4[%c0_305, %c0_306, %c0_307] : memref<4x1x32xf32, #tpu.memory_space<vmem>>, vector<1x1x32xf32>
    %352 = vector.shape_cast %351 : vector<1x1x32xf32> to vector<1x32xf32>
    %c1_308 = arith.constant 1 : index
    %c0_309 = arith.constant 0 : index
    %c0_310 = arith.constant 0 : index
    %353 = vector.load %arg4[%c1_308, %c0_309, %c0_310] : memref<4x1x32xf32, #tpu.memory_space<vmem>>, vector<1x1x32xf32>
    %354 = vector.shape_cast %353 : vector<1x1x32xf32> to vector<1x32xf32>
    %c2_311 = arith.constant 2 : index
    %c0_312 = arith.constant 0 : index
    %c0_313 = arith.constant 0 : index
    %355 = vector.load %arg4[%c2_311, %c0_312, %c0_313] : memref<4x1x32xf32, #tpu.memory_space<vmem>>, vector<1x1x32xf32>
    %356 = vector.shape_cast %355 : vector<1x1x32xf32> to vector<1x32xf32>
    %c3_314 = arith.constant 3 : index
    %c0_315 = arith.constant 0 : index
    %c0_316 = arith.constant 0 : index
    %357 = vector.load %arg4[%c3_314, %c0_315, %c0_316] : memref<4x1x32xf32, #tpu.memory_space<vmem>>, vector<1x1x32xf32>
    %358 = vector.shape_cast %357 : vector<1x1x32xf32> to vector<1x32xf32>
    %cst_317 = arith.constant dense<0.000000e+00> : vector<2x32xf32>
    %359 = tpu.matmul %338, %340, %cst_317 {dimension_numbers = #tpu.dot_dimension_numbers<[1], [0], [0], [1], [0, 0, 1, 1], [], []>} : vector<2x8xf32>, vector<8x32xf32>, vector<2x32xf32> -> vector<2x32xf32>
    %cst_318 = arith.constant dense<0.000000e+00> : vector<2x32xf32>
    %360 = tpu.matmul %225, %346, %cst_318 {dimension_numbers = #tpu.dot_dimension_numbers<[1], [0], [0], [1], [0, 0, 1, 1], [], []>} : vector<2x32xf32>, vector<32x32xf32>, vector<2x32xf32> -> vector<2x32xf32>
    %361 = arith.addf %359, %360 : vector<2x32xf32>
    %362 = vector.broadcast %352 : vector<1x32xf32> to vector<2x32xf32>
    %363 = arith.addf %361, %362 : vector<2x32xf32>
    %364 = arith.negf %363 : vector<2x32xf32>
    %365 = math.exp %364 : vector<2x32xf32>
    %cst_319 = arith.constant 1.000000e+00 : f32
    %366 = vector.broadcast %cst_319 : f32 to vector<2x32xf32>
    %367 = arith.addf %366, %365 : vector<2x32xf32>
    %368 = arith.divf %366, %367 : vector<2x32xf32>
    %cst_320 = arith.constant dense<0.000000e+00> : vector<2x32xf32>
    %369 = tpu.matmul %338, %342, %cst_320 {dimension_numbers = #tpu.dot_dimension_numbers<[1], [0], [0], [1], [0, 0, 1, 1], [], []>} : vector<2x8xf32>, vector<8x32xf32>, vector<2x32xf32> -> vector<2x32xf32>
    %cst_321 = arith.constant dense<0.000000e+00> : vector<2x32xf32>
    %370 = tpu.matmul %225, %348, %cst_321 {dimension_numbers = #tpu.dot_dimension_numbers<[1], [0], [0], [1], [0, 0, 1, 1], [], []>} : vector<2x32xf32>, vector<32x32xf32>, vector<2x32xf32> -> vector<2x32xf32>
    %371 = arith.addf %369, %370 : vector<2x32xf32>
    %372 = vector.broadcast %354 : vector<1x32xf32> to vector<2x32xf32>
    %373 = arith.addf %371, %372 : vector<2x32xf32>
    %374 = arith.negf %373 : vector<2x32xf32>
    %375 = math.exp %374 : vector<2x32xf32>
    %cst_322 = arith.constant 1.000000e+00 : f32
    %376 = vector.broadcast %cst_322 : f32 to vector<2x32xf32>
    %377 = arith.addf %376, %375 : vector<2x32xf32>
    %378 = arith.divf %376, %377 : vector<2x32xf32>
    %cst_323 = arith.constant dense<0.000000e+00> : vector<2x32xf32>
    %379 = tpu.matmul %338, %344, %cst_323 {dimension_numbers = #tpu.dot_dimension_numbers<[1], [0], [0], [1], [0, 0, 1, 1], [], []>} : vector<2x8xf32>, vector<8x32xf32>, vector<2x32xf32> -> vector<2x32xf32>
    %380 = vector.broadcast %356 : vector<1x32xf32> to vector<2x32xf32>
    %381 = arith.addf %379, %380 : vector<2x32xf32>
    %cst_324 = arith.constant dense<0.000000e+00> : vector<2x32xf32>
    %382 = tpu.matmul %225, %350, %cst_324 {dimension_numbers = #tpu.dot_dimension_numbers<[1], [0], [0], [1], [0, 0, 1, 1], [], []>} : vector<2x32xf32>, vector<32x32xf32>, vector<2x32xf32> -> vector<2x32xf32>
    %383 = vector.broadcast %358 : vector<1x32xf32> to vector<2x32xf32>
    %384 = arith.addf %382, %383 : vector<2x32xf32>
    %385 = arith.mulf %368, %384 : vector<2x32xf32>
    %386 = arith.addf %381, %385 : vector<2x32xf32>
    %387 = math.tanh %386 : vector<2x32xf32>
    %cst_325 = arith.constant 1.000000e+00 : f32
    %388 = vector.broadcast %cst_325 : f32 to vector<2x32xf32>
    %389 = arith.subf %388, %378 : vector<2x32xf32>
    %390 = arith.mulf %389, %387 : vector<2x32xf32>
    %391 = arith.mulf %378, %225 : vector<2x32xf32>
    %392 = arith.addf %390, %391 : vector<2x32xf32>
    %c0_326 = arith.constant 0 : index
    %c0_327 = arith.constant 0 : index
    %c0_328 = arith.constant 0 : index
    %c0_329 = arith.constant 0 : index
    %393 = vector.load %arg5[%c0_326, %c0_327, %c0_328, %c0_329] : memref<2x3x32x32xf32, #tpu.memory_space<vmem>>, vector<1x1x32x32xf32>
    %394 = vector.shape_cast %393 : vector<1x1x32x32xf32> to vector<32x32xf32>
    %c0_330 = arith.constant 0 : index
    %c1_331 = arith.constant 1 : index
    %c0_332 = arith.constant 0 : index
    %c0_333 = arith.constant 0 : index
    %395 = vector.load %arg5[%c0_330, %c1_331, %c0_332, %c0_333] : memref<2x3x32x32xf32, #tpu.memory_space<vmem>>, vector<1x1x32x32xf32>
    %396 = vector.shape_cast %395 : vector<1x1x32x32xf32> to vector<32x32xf32>
    %c0_334 = arith.constant 0 : index
    %c2_335 = arith.constant 2 : index
    %c0_336 = arith.constant 0 : index
    %c0_337 = arith.constant 0 : index
    %397 = vector.load %arg5[%c0_334, %c2_335, %c0_336, %c0_337] : memref<2x3x32x32xf32, #tpu.memory_space<vmem>>, vector<1x1x32x32xf32>
    %398 = vector.shape_cast %397 : vector<1x1x32x32xf32> to vector<32x32xf32>
    %c0_338 = arith.constant 0 : index
    %c0_339 = arith.constant 0 : index
    %c0_340 = arith.constant 0 : index
    %c0_341 = arith.constant 0 : index
    %399 = vector.load %arg6[%c0_338, %c0_339, %c0_340, %c0_341] : memref<2x3x32x32xf32, #tpu.memory_space<vmem>>, vector<1x1x32x32xf32>
    %400 = vector.shape_cast %399 : vector<1x1x32x32xf32> to vector<32x32xf32>
    %c0_342 = arith.constant 0 : index
    %c1_343 = arith.constant 1 : index
    %c0_344 = arith.constant 0 : index
    %c0_345 = arith.constant 0 : index
    %401 = vector.load %arg6[%c0_342, %c1_343, %c0_344, %c0_345] : memref<2x3x32x32xf32, #tpu.memory_space<vmem>>, vector<1x1x32x32xf32>
    %402 = vector.shape_cast %401 : vector<1x1x32x32xf32> to vector<32x32xf32>
    %c0_346 = arith.constant 0 : index
    %c2_347 = arith.constant 2 : index
    %c0_348 = arith.constant 0 : index
    %c0_349 = arith.constant 0 : index
    %403 = vector.load %arg6[%c0_346, %c2_347, %c0_348, %c0_349] : memref<2x3x32x32xf32, #tpu.memory_space<vmem>>, vector<1x1x32x32xf32>
    %404 = vector.shape_cast %403 : vector<1x1x32x32xf32> to vector<32x32xf32>
    %c0_350 = arith.constant 0 : index
    %c0_351 = arith.constant 0 : index
    %c0_352 = arith.constant 0 : index
    %c0_353 = arith.constant 0 : index
    %405 = vector.load %arg7[%c0_350, %c0_351, %c0_352, %c0_353] : memref<2x4x1x32xf32, #tpu.memory_space<vmem>>, vector<1x1x1x32xf32>
    %406 = vector.shape_cast %405 : vector<1x1x1x32xf32> to vector<1x32xf32>
    %c0_354 = arith.constant 0 : index
    %c1_355 = arith.constant 1 : index
    %c0_356 = arith.constant 0 : index
    %c0_357 = arith.constant 0 : index
    %407 = vector.load %arg7[%c0_354, %c1_355, %c0_356, %c0_357] : memref<2x4x1x32xf32, #tpu.memory_space<vmem>>, vector<1x1x1x32xf32>
    %408 = vector.shape_cast %407 : vector<1x1x1x32xf32> to vector<1x32xf32>
    %c0_358 = arith.constant 0 : index
    %c2_359 = arith.constant 2 : index
    %c0_360 = arith.constant 0 : index
    %c0_361 = arith.constant 0 : index
    %409 = vector.load %arg7[%c0_358, %c2_359, %c0_360, %c0_361] : memref<2x4x1x32xf32, #tpu.memory_space<vmem>>, vector<1x1x1x32xf32>
    %410 = vector.shape_cast %409 : vector<1x1x1x32xf32> to vector<1x32xf32>
    %c0_362 = arith.constant 0 : index
    %c3_363 = arith.constant 3 : index
    %c0_364 = arith.constant 0 : index
    %c0_365 = arith.constant 0 : index
    %411 = vector.load %arg7[%c0_362, %c3_363, %c0_364, %c0_365] : memref<2x4x1x32xf32, #tpu.memory_space<vmem>>, vector<1x1x1x32xf32>
    %412 = vector.shape_cast %411 : vector<1x1x1x32xf32> to vector<1x32xf32>
    %cst_366 = arith.constant dense<0.000000e+00> : vector<2x32xf32>
    %413 = tpu.matmul %392, %394, %cst_366 {dimension_numbers = #tpu.dot_dimension_numbers<[1], [0], [0], [1], [0, 0, 1, 1], [], []>} : vector<2x32xf32>, vector<32x32xf32>, vector<2x32xf32> -> vector<2x32xf32>
    %cst_367 = arith.constant dense<0.000000e+00> : vector<2x32xf32>
    %414 = tpu.matmul %279, %400, %cst_367 {dimension_numbers = #tpu.dot_dimension_numbers<[1], [0], [0], [1], [0, 0, 1, 1], [], []>} : vector<2x32xf32>, vector<32x32xf32>, vector<2x32xf32> -> vector<2x32xf32>
    %415 = arith.addf %413, %414 : vector<2x32xf32>
    %416 = vector.broadcast %406 : vector<1x32xf32> to vector<2x32xf32>
    %417 = arith.addf %415, %416 : vector<2x32xf32>
    %418 = arith.negf %417 : vector<2x32xf32>
    %419 = math.exp %418 : vector<2x32xf32>
    %cst_368 = arith.constant 1.000000e+00 : f32
    %420 = vector.broadcast %cst_368 : f32 to vector<2x32xf32>
    %421 = arith.addf %420, %419 : vector<2x32xf32>
    %422 = arith.divf %420, %421 : vector<2x32xf32>
    %cst_369 = arith.constant dense<0.000000e+00> : vector<2x32xf32>
    %423 = tpu.matmul %392, %396, %cst_369 {dimension_numbers = #tpu.dot_dimension_numbers<[1], [0], [0], [1], [0, 0, 1, 1], [], []>} : vector<2x32xf32>, vector<32x32xf32>, vector<2x32xf32> -> vector<2x32xf32>
    %cst_370 = arith.constant dense<0.000000e+00> : vector<2x32xf32>
    %424 = tpu.matmul %279, %402, %cst_370 {dimension_numbers = #tpu.dot_dimension_numbers<[1], [0], [0], [1], [0, 0, 1, 1], [], []>} : vector<2x32xf32>, vector<32x32xf32>, vector<2x32xf32> -> vector<2x32xf32>
    %425 = arith.addf %423, %424 : vector<2x32xf32>
    %426 = vector.broadcast %408 : vector<1x32xf32> to vector<2x32xf32>
    %427 = arith.addf %425, %426 : vector<2x32xf32>
    %428 = arith.negf %427 : vector<2x32xf32>
    %429 = math.exp %428 : vector<2x32xf32>
    %cst_371 = arith.constant 1.000000e+00 : f32
    %430 = vector.broadcast %cst_371 : f32 to vector<2x32xf32>
    %431 = arith.addf %430, %429 : vector<2x32xf32>
    %432 = arith.divf %430, %431 : vector<2x32xf32>
    %cst_372 = arith.constant dense<0.000000e+00> : vector<2x32xf32>
    %433 = tpu.matmul %392, %398, %cst_372 {dimension_numbers = #tpu.dot_dimension_numbers<[1], [0], [0], [1], [0, 0, 1, 1], [], []>} : vector<2x32xf32>, vector<32x32xf32>, vector<2x32xf32> -> vector<2x32xf32>
    %434 = vector.broadcast %410 : vector<1x32xf32> to vector<2x32xf32>
    %435 = arith.addf %433, %434 : vector<2x32xf32>
    %cst_373 = arith.constant dense<0.000000e+00> : vector<2x32xf32>
    %436 = tpu.matmul %279, %404, %cst_373 {dimension_numbers = #tpu.dot_dimension_numbers<[1], [0], [0], [1], [0, 0, 1, 1], [], []>} : vector<2x32xf32>, vector<32x32xf32>, vector<2x32xf32> -> vector<2x32xf32>
    %437 = vector.broadcast %412 : vector<1x32xf32> to vector<2x32xf32>
    %438 = arith.addf %436, %437 : vector<2x32xf32>
    %439 = arith.mulf %422, %438 : vector<2x32xf32>
    %440 = arith.addf %435, %439 : vector<2x32xf32>
    %441 = math.tanh %440 : vector<2x32xf32>
    %cst_374 = arith.constant 1.000000e+00 : f32
    %442 = vector.broadcast %cst_374 : f32 to vector<2x32xf32>
    %443 = arith.subf %442, %432 : vector<2x32xf32>
    %444 = arith.mulf %443, %441 : vector<2x32xf32>
    %445 = arith.mulf %432, %279 : vector<2x32xf32>
    %446 = arith.addf %444, %445 : vector<2x32xf32>
    %c1_375 = arith.constant 1 : index
    %c0_376 = arith.constant 0 : index
    %c0_377 = arith.constant 0 : index
    %c0_378 = arith.constant 0 : index
    %447 = vector.load %arg5[%c1_375, %c0_376, %c0_377, %c0_378] : memref<2x3x32x32xf32, #tpu.memory_space<vmem>>, vector<1x1x32x32xf32>
    %448 = vector.shape_cast %447 : vector<1x1x32x32xf32> to vector<32x32xf32>
    %c1_379 = arith.constant 1 : index
    %c1_380 = arith.constant 1 : index
    %c0_381 = arith.constant 0 : index
    %c0_382 = arith.constant 0 : index
    %449 = vector.load %arg5[%c1_379, %c1_380, %c0_381, %c0_382] : memref<2x3x32x32xf32, #tpu.memory_space<vmem>>, vector<1x1x32x32xf32>
    %450 = vector.shape_cast %449 : vector<1x1x32x32xf32> to vector<32x32xf32>
    %c1_383 = arith.constant 1 : index
    %c2_384 = arith.constant 2 : index
    %c0_385 = arith.constant 0 : index
    %c0_386 = arith.constant 0 : index
    %451 = vector.load %arg5[%c1_383, %c2_384, %c0_385, %c0_386] : memref<2x3x32x32xf32, #tpu.memory_space<vmem>>, vector<1x1x32x32xf32>
    %452 = vector.shape_cast %451 : vector<1x1x32x32xf32> to vector<32x32xf32>
    %c1_387 = arith.constant 1 : index
    %c0_388 = arith.constant 0 : index
    %c0_389 = arith.constant 0 : index
    %c0_390 = arith.constant 0 : index
    %453 = vector.load %arg6[%c1_387, %c0_388, %c0_389, %c0_390] : memref<2x3x32x32xf32, #tpu.memory_space<vmem>>, vector<1x1x32x32xf32>
    %454 = vector.shape_cast %453 : vector<1x1x32x32xf32> to vector<32x32xf32>
    %c1_391 = arith.constant 1 : index
    %c1_392 = arith.constant 1 : index
    %c0_393 = arith.constant 0 : index
    %c0_394 = arith.constant 0 : index
    %455 = vector.load %arg6[%c1_391, %c1_392, %c0_393, %c0_394] : memref<2x3x32x32xf32, #tpu.memory_space<vmem>>, vector<1x1x32x32xf32>
    %456 = vector.shape_cast %455 : vector<1x1x32x32xf32> to vector<32x32xf32>
    %c1_395 = arith.constant 1 : index
    %c2_396 = arith.constant 2 : index
    %c0_397 = arith.constant 0 : index
    %c0_398 = arith.constant 0 : index
    %457 = vector.load %arg6[%c1_395, %c2_396, %c0_397, %c0_398] : memref<2x3x32x32xf32, #tpu.memory_space<vmem>>, vector<1x1x32x32xf32>
    %458 = vector.shape_cast %457 : vector<1x1x32x32xf32> to vector<32x32xf32>
    %c1_399 = arith.constant 1 : index
    %c0_400 = arith.constant 0 : index
    %c0_401 = arith.constant 0 : index
    %c0_402 = arith.constant 0 : index
    %459 = vector.load %arg7[%c1_399, %c0_400, %c0_401, %c0_402] : memref<2x4x1x32xf32, #tpu.memory_space<vmem>>, vector<1x1x1x32xf32>
    %460 = vector.shape_cast %459 : vector<1x1x1x32xf32> to vector<1x32xf32>
    %c1_403 = arith.constant 1 : index
    %c1_404 = arith.constant 1 : index
    %c0_405 = arith.constant 0 : index
    %c0_406 = arith.constant 0 : index
    %461 = vector.load %arg7[%c1_403, %c1_404, %c0_405, %c0_406] : memref<2x4x1x32xf32, #tpu.memory_space<vmem>>, vector<1x1x1x32xf32>
    %462 = vector.shape_cast %461 : vector<1x1x1x32xf32> to vector<1x32xf32>
    %c1_407 = arith.constant 1 : index
    %c2_408 = arith.constant 2 : index
    %c0_409 = arith.constant 0 : index
    %c0_410 = arith.constant 0 : index
    %463 = vector.load %arg7[%c1_407, %c2_408, %c0_409, %c0_410] : memref<2x4x1x32xf32, #tpu.memory_space<vmem>>, vector<1x1x1x32xf32>
    %464 = vector.shape_cast %463 : vector<1x1x1x32xf32> to vector<1x32xf32>
    %c1_411 = arith.constant 1 : index
    %c3_412 = arith.constant 3 : index
    %c0_413 = arith.constant 0 : index
    %c0_414 = arith.constant 0 : index
    %465 = vector.load %arg7[%c1_411, %c3_412, %c0_413, %c0_414] : memref<2x4x1x32xf32, #tpu.memory_space<vmem>>, vector<1x1x1x32xf32>
    %466 = vector.shape_cast %465 : vector<1x1x1x32xf32> to vector<1x32xf32>
    %cst_415 = arith.constant dense<0.000000e+00> : vector<2x32xf32>
    %467 = tpu.matmul %446, %448, %cst_415 {dimension_numbers = #tpu.dot_dimension_numbers<[1], [0], [0], [1], [0, 0, 1, 1], [], []>} : vector<2x32xf32>, vector<32x32xf32>, vector<2x32xf32> -> vector<2x32xf32>
    %cst_416 = arith.constant dense<0.000000e+00> : vector<2x32xf32>
    %468 = tpu.matmul %333, %454, %cst_416 {dimension_numbers = #tpu.dot_dimension_numbers<[1], [0], [0], [1], [0, 0, 1, 1], [], []>} : vector<2x32xf32>, vector<32x32xf32>, vector<2x32xf32> -> vector<2x32xf32>
    %469 = arith.addf %467, %468 : vector<2x32xf32>
    %470 = vector.broadcast %460 : vector<1x32xf32> to vector<2x32xf32>
    %471 = arith.addf %469, %470 : vector<2x32xf32>
    %472 = arith.negf %471 : vector<2x32xf32>
    %473 = math.exp %472 : vector<2x32xf32>
    %cst_417 = arith.constant 1.000000e+00 : f32
    %474 = vector.broadcast %cst_417 : f32 to vector<2x32xf32>
    %475 = arith.addf %474, %473 : vector<2x32xf32>
    %476 = arith.divf %474, %475 : vector<2x32xf32>
    %cst_418 = arith.constant dense<0.000000e+00> : vector<2x32xf32>
    %477 = tpu.matmul %446, %450, %cst_418 {dimension_numbers = #tpu.dot_dimension_numbers<[1], [0], [0], [1], [0, 0, 1, 1], [], []>} : vector<2x32xf32>, vector<32x32xf32>, vector<2x32xf32> -> vector<2x32xf32>
    %cst_419 = arith.constant dense<0.000000e+00> : vector<2x32xf32>
    %478 = tpu.matmul %333, %456, %cst_419 {dimension_numbers = #tpu.dot_dimension_numbers<[1], [0], [0], [1], [0, 0, 1, 1], [], []>} : vector<2x32xf32>, vector<32x32xf32>, vector<2x32xf32> -> vector<2x32xf32>
    %479 = arith.addf %477, %478 : vector<2x32xf32>
    %480 = vector.broadcast %462 : vector<1x32xf32> to vector<2x32xf32>
    %481 = arith.addf %479, %480 : vector<2x32xf32>
    %482 = arith.negf %481 : vector<2x32xf32>
    %483 = math.exp %482 : vector<2x32xf32>
    %cst_420 = arith.constant 1.000000e+00 : f32
    %484 = vector.broadcast %cst_420 : f32 to vector<2x32xf32>
    %485 = arith.addf %484, %483 : vector<2x32xf32>
    %486 = arith.divf %484, %485 : vector<2x32xf32>
    %cst_421 = arith.constant dense<0.000000e+00> : vector<2x32xf32>
    %487 = tpu.matmul %446, %452, %cst_421 {dimension_numbers = #tpu.dot_dimension_numbers<[1], [0], [0], [1], [0, 0, 1, 1], [], []>} : vector<2x32xf32>, vector<32x32xf32>, vector<2x32xf32> -> vector<2x32xf32>
    %488 = vector.broadcast %464 : vector<1x32xf32> to vector<2x32xf32>
    %489 = arith.addf %487, %488 : vector<2x32xf32>
    %cst_422 = arith.constant dense<0.000000e+00> : vector<2x32xf32>
    %490 = tpu.matmul %333, %458, %cst_422 {dimension_numbers = #tpu.dot_dimension_numbers<[1], [0], [0], [1], [0, 0, 1, 1], [], []>} : vector<2x32xf32>, vector<32x32xf32>, vector<2x32xf32> -> vector<2x32xf32>
    %491 = vector.broadcast %466 : vector<1x32xf32> to vector<2x32xf32>
    %492 = arith.addf %490, %491 : vector<2x32xf32>
    %493 = arith.mulf %476, %492 : vector<2x32xf32>
    %494 = arith.addf %489, %493 : vector<2x32xf32>
    %495 = math.tanh %494 : vector<2x32xf32>
    %cst_423 = arith.constant 1.000000e+00 : f32
    %496 = vector.broadcast %cst_423 : f32 to vector<2x32xf32>
    %497 = arith.subf %496, %486 : vector<2x32xf32>
    %498 = arith.mulf %497, %495 : vector<2x32xf32>
    %499 = arith.mulf %486, %333 : vector<2x32xf32>
    %500 = arith.addf %498, %499 : vector<2x32xf32>
    %c2_424 = arith.constant 2 : index
    %c0_425 = arith.constant 0 : index
    %c0_426 = arith.constant 0 : index
    %501 = vector.load %arg8[%c2_424, %c0_425, %c0_426] : memref<8x2x32xf32, #tpu.memory_space<vmem>>, vector<1x2x32xf32>
    %502 = vector.shape_cast %501 : vector<1x2x32xf32> to vector<2x32xf32>
    %503 = vector.shape_cast %500 : vector<2x32xf32> to vector<1x2x32xf32>
    tpu.vector_store %arg8[%c2_424, %c0_425, %c0_426], %503 {strides = array<i32>} : memref<8x2x32xf32, #tpu.memory_space<vmem>>, vector<1x2x32xf32>,
    %c3_427 = arith.constant 3 : index
    %c0_428 = arith.constant 0 : index
    %c0_429 = arith.constant 0 : index
    %504 = vector.load %arg1[%c3_427, %c0_428, %c0_429] : memref<8x2x8xf32, #tpu.memory_space<vmem>>, vector<1x2x8xf32>
    %505 = vector.shape_cast %504 : vector<1x2x8xf32> to vector<2x8xf32>
    %c0_430 = arith.constant 0 : index
    %c0_431 = arith.constant 0 : index
    %c0_432 = arith.constant 0 : index
    %506 = vector.load %arg2[%c0_430, %c0_431, %c0_432] : memref<3x8x32xf32, #tpu.memory_space<vmem>>, vector<1x8x32xf32>
    %507 = vector.shape_cast %506 : vector<1x8x32xf32> to vector<8x32xf32>
    %c1_433 = arith.constant 1 : index
    %c0_434 = arith.constant 0 : index
    %c0_435 = arith.constant 0 : index
    %508 = vector.load %arg2[%c1_433, %c0_434, %c0_435] : memref<3x8x32xf32, #tpu.memory_space<vmem>>, vector<1x8x32xf32>
    %509 = vector.shape_cast %508 : vector<1x8x32xf32> to vector<8x32xf32>
    %c2_436 = arith.constant 2 : index
    %c0_437 = arith.constant 0 : index
    %c0_438 = arith.constant 0 : index
    %510 = vector.load %arg2[%c2_436, %c0_437, %c0_438] : memref<3x8x32xf32, #tpu.memory_space<vmem>>, vector<1x8x32xf32>
    %511 = vector.shape_cast %510 : vector<1x8x32xf32> to vector<8x32xf32>
    %c0_439 = arith.constant 0 : index
    %c0_440 = arith.constant 0 : index
    %c0_441 = arith.constant 0 : index
    %512 = vector.load %arg3[%c0_439, %c0_440, %c0_441] : memref<3x32x32xf32, #tpu.memory_space<vmem>>, vector<1x32x32xf32>
    %513 = vector.shape_cast %512 : vector<1x32x32xf32> to vector<32x32xf32>
    %c1_442 = arith.constant 1 : index
    %c0_443 = arith.constant 0 : index
    %c0_444 = arith.constant 0 : index
    %514 = vector.load %arg3[%c1_442, %c0_443, %c0_444] : memref<3x32x32xf32, #tpu.memory_space<vmem>>, vector<1x32x32xf32>
    %515 = vector.shape_cast %514 : vector<1x32x32xf32> to vector<32x32xf32>
    %c2_445 = arith.constant 2 : index
    %c0_446 = arith.constant 0 : index
    %c0_447 = arith.constant 0 : index
    %516 = vector.load %arg3[%c2_445, %c0_446, %c0_447] : memref<3x32x32xf32, #tpu.memory_space<vmem>>, vector<1x32x32xf32>
    %517 = vector.shape_cast %516 : vector<1x32x32xf32> to vector<32x32xf32>
    %c0_448 = arith.constant 0 : index
    %c0_449 = arith.constant 0 : index
    %c0_450 = arith.constant 0 : index
    %518 = vector.load %arg4[%c0_448, %c0_449, %c0_450] : memref<4x1x32xf32, #tpu.memory_space<vmem>>, vector<1x1x32xf32>
    %519 = vector.shape_cast %518 : vector<1x1x32xf32> to vector<1x32xf32>
    %c1_451 = arith.constant 1 : index
    %c0_452 = arith.constant 0 : index
    %c0_453 = arith.constant 0 : index
    %520 = vector.load %arg4[%c1_451, %c0_452, %c0_453] : memref<4x1x32xf32, #tpu.memory_space<vmem>>, vector<1x1x32xf32>
    %521 = vector.shape_cast %520 : vector<1x1x32xf32> to vector<1x32xf32>
    %c2_454 = arith.constant 2 : index
    %c0_455 = arith.constant 0 : index
    %c0_456 = arith.constant 0 : index
    %522 = vector.load %arg4[%c2_454, %c0_455, %c0_456] : memref<4x1x32xf32, #tpu.memory_space<vmem>>, vector<1x1x32xf32>
    %523 = vector.shape_cast %522 : vector<1x1x32xf32> to vector<1x32xf32>
    %c3_457 = arith.constant 3 : index
    %c0_458 = arith.constant 0 : index
    %c0_459 = arith.constant 0 : index
    %524 = vector.load %arg4[%c3_457, %c0_458, %c0_459] : memref<4x1x32xf32, #tpu.memory_space<vmem>>, vector<1x1x32xf32>
    %525 = vector.shape_cast %524 : vector<1x1x32xf32> to vector<1x32xf32>
    %cst_460 = arith.constant dense<0.000000e+00> : vector<2x32xf32>
    %526 = tpu.matmul %505, %507, %cst_460 {dimension_numbers = #tpu.dot_dimension_numbers<[1], [0], [0], [1], [0, 0, 1, 1], [], []>} : vector<2x8xf32>, vector<8x32xf32>, vector<2x32xf32> -> vector<2x32xf32>
    %cst_461 = arith.constant dense<0.000000e+00> : vector<2x32xf32>
    %527 = tpu.matmul %392, %513, %cst_461 {dimension_numbers = #tpu.dot_dimension_numbers<[1], [0], [0], [1], [0, 0, 1, 1], [], []>} : vector<2x32xf32>, vector<32x32xf32>, vector<2x32xf32> -> vector<2x32xf32>
    %528 = arith.addf %526, %527 : vector<2x32xf32>
    %529 = vector.broadcast %519 : vector<1x32xf32> to vector<2x32xf32>
    %530 = arith.addf %528, %529 : vector<2x32xf32>
    %531 = arith.negf %530 : vector<2x32xf32>
    %532 = math.exp %531 : vector<2x32xf32>
    %cst_462 = arith.constant 1.000000e+00 : f32
    %533 = vector.broadcast %cst_462 : f32 to vector<2x32xf32>
    %534 = arith.addf %533, %532 : vector<2x32xf32>
    %535 = arith.divf %533, %534 : vector<2x32xf32>
    %cst_463 = arith.constant dense<0.000000e+00> : vector<2x32xf32>
    %536 = tpu.matmul %505, %509, %cst_463 {dimension_numbers = #tpu.dot_dimension_numbers<[1], [0], [0], [1], [0, 0, 1, 1], [], []>} : vector<2x8xf32>, vector<8x32xf32>, vector<2x32xf32> -> vector<2x32xf32>
    %cst_464 = arith.constant dense<0.000000e+00> : vector<2x32xf32>
    %537 = tpu.matmul %392, %515, %cst_464 {dimension_numbers = #tpu.dot_dimension_numbers<[1], [0], [0], [1], [0, 0, 1, 1], [], []>} : vector<2x32xf32>, vector<32x32xf32>, vector<2x32xf32> -> vector<2x32xf32>
    %538 = arith.addf %536, %537 : vector<2x32xf32>
    %539 = vector.broadcast %521 : vector<1x32xf32> to vector<2x32xf32>
    %540 = arith.addf %538, %539 : vector<2x32xf32>
    %541 = arith.negf %540 : vector<2x32xf32>
    %542 = math.exp %541 : vector<2x32xf32>
    %cst_465 = arith.constant 1.000000e+00 : f32
    %543 = vector.broadcast %cst_465 : f32 to vector<2x32xf32>
    %544 = arith.addf %543, %542 : vector<2x32xf32>
    %545 = arith.divf %543, %544 : vector<2x32xf32>
    %cst_466 = arith.constant dense<0.000000e+00> : vector<2x32xf32>
    %546 = tpu.matmul %505, %511, %cst_466 {dimension_numbers = #tpu.dot_dimension_numbers<[1], [0], [0], [1], [0, 0, 1, 1], [], []>} : vector<2x8xf32>, vector<8x32xf32>, vector<2x32xf32> -> vector<2x32xf32>
    %547 = vector.broadcast %523 : vector<1x32xf32> to vector<2x32xf32>
    %548 = arith.addf %546, %547 : vector<2x32xf32>
    %cst_467 = arith.constant dense<0.000000e+00> : vector<2x32xf32>
    %549 = tpu.matmul %392, %517, %cst_467 {dimension_numbers = #tpu.dot_dimension_numbers<[1], [0], [0], [1], [0, 0, 1, 1], [], []>} : vector<2x32xf32>, vector<32x32xf32>, vector<2x32xf32> -> vector<2x32xf32>
    %550 = vector.broadcast %525 : vector<1x32xf32> to vector<2x32xf32>
    %551 = arith.addf %549, %550 : vector<2x32xf32>
    %552 = arith.mulf %535, %551 : vector<2x32xf32>
    %553 = arith.addf %548, %552 : vector<2x32xf32>
    %554 = math.tanh %553 : vector<2x32xf32>
    %cst_468 = arith.constant 1.000000e+00 : f32
    %555 = vector.broadcast %cst_468 : f32 to vector<2x32xf32>
    %556 = arith.subf %555, %545 : vector<2x32xf32>
    %557 = arith.mulf %556, %554 : vector<2x32xf32>
    %558 = arith.mulf %545, %392 : vector<2x32xf32>
    %559 = arith.addf %557, %558 : vector<2x32xf32>
    %c0_469 = arith.constant 0 : index
    %c0_470 = arith.constant 0 : index
    %c0_471 = arith.constant 0 : index
    %c0_472 = arith.constant 0 : index
    %560 = vector.load %arg5[%c0_469, %c0_470, %c0_471, %c0_472] : memref<2x3x32x32xf32, #tpu.memory_space<vmem>>, vector<1x1x32x32xf32>
    %561 = vector.shape_cast %560 : vector<1x1x32x32xf32> to vector<32x32xf32>
    %c0_473 = arith.constant 0 : index
    %c1_474 = arith.constant 1 : index
    %c0_475 = arith.constant 0 : index
    %c0_476 = arith.constant 0 : index
    %562 = vector.load %arg5[%c0_473, %c1_474, %c0_475, %c0_476] : memref<2x3x32x32xf32, #tpu.memory_space<vmem>>, vector<1x1x32x32xf32>
    %563 = vector.shape_cast %562 : vector<1x1x32x32xf32> to vector<32x32xf32>
    %c0_477 = arith.constant 0 : index
    %c2_478 = arith.constant 2 : index
    %c0_479 = arith.constant 0 : index
    %c0_480 = arith.constant 0 : index
    %564 = vector.load %arg5[%c0_477, %c2_478, %c0_479, %c0_480] : memref<2x3x32x32xf32, #tpu.memory_space<vmem>>, vector<1x1x32x32xf32>
    %565 = vector.shape_cast %564 : vector<1x1x32x32xf32> to vector<32x32xf32>
    %c0_481 = arith.constant 0 : index
    %c0_482 = arith.constant 0 : index
    %c0_483 = arith.constant 0 : index
    %c0_484 = arith.constant 0 : index
    %566 = vector.load %arg6[%c0_481, %c0_482, %c0_483, %c0_484] : memref<2x3x32x32xf32, #tpu.memory_space<vmem>>, vector<1x1x32x32xf32>
    %567 = vector.shape_cast %566 : vector<1x1x32x32xf32> to vector<32x32xf32>
    %c0_485 = arith.constant 0 : index
    %c1_486 = arith.constant 1 : index
    %c0_487 = arith.constant 0 : index
    %c0_488 = arith.constant 0 : index
    %568 = vector.load %arg6[%c0_485, %c1_486, %c0_487, %c0_488] : memref<2x3x32x32xf32, #tpu.memory_space<vmem>>, vector<1x1x32x32xf32>
    %569 = vector.shape_cast %568 : vector<1x1x32x32xf32> to vector<32x32xf32>
    %c0_489 = arith.constant 0 : index
    %c2_490 = arith.constant 2 : index
    %c0_491 = arith.constant 0 : index
    %c0_492 = arith.constant 0 : index
    %570 = vector.load %arg6[%c0_489, %c2_490, %c0_491, %c0_492] : memref<2x3x32x32xf32, #tpu.memory_space<vmem>>, vector<1x1x32x32xf32>
    %571 = vector.shape_cast %570 : vector<1x1x32x32xf32> to vector<32x32xf32>
    %c0_493 = arith.constant 0 : index
    %c0_494 = arith.constant 0 : index
    %c0_495 = arith.constant 0 : index
    %c0_496 = arith.constant 0 : index
    %572 = vector.load %arg7[%c0_493, %c0_494, %c0_495, %c0_496] : memref<2x4x1x32xf32, #tpu.memory_space<vmem>>, vector<1x1x1x32xf32>
    %573 = vector.shape_cast %572 : vector<1x1x1x32xf32> to vector<1x32xf32>
    %c0_497 = arith.constant 0 : index
    %c1_498 = arith.constant 1 : index
    %c0_499 = arith.constant 0 : index
    %c0_500 = arith.constant 0 : index
    %574 = vector.load %arg7[%c0_497, %c1_498, %c0_499, %c0_500] : memref<2x4x1x32xf32, #tpu.memory_space<vmem>>, vector<1x1x1x32xf32>
    %575 = vector.shape_cast %574 : vector<1x1x1x32xf32> to vector<1x32xf32>
    %c0_501 = arith.constant 0 : index
    %c2_502 = arith.constant 2 : index
    %c0_503 = arith.constant 0 : index
    %c0_504 = arith.constant 0 : index
    %576 = vector.load %arg7[%c0_501, %c2_502, %c0_503, %c0_504] : memref<2x4x1x32xf32, #tpu.memory_space<vmem>>, vector<1x1x1x32xf32>
    %577 = vector.shape_cast %576 : vector<1x1x1x32xf32> to vector<1x32xf32>
    %c0_505 = arith.constant 0 : index
    %c3_506 = arith.constant 3 : index
    %c0_507 = arith.constant 0 : index
    %c0_508 = arith.constant 0 : index
    %578 = vector.load %arg7[%c0_505, %c3_506, %c0_507, %c0_508] : memref<2x4x1x32xf32, #tpu.memory_space<vmem>>, vector<1x1x1x32xf32>
    %579 = vector.shape_cast %578 : vector<1x1x1x32xf32> to vector<1x32xf32>
    %cst_509 = arith.constant dense<0.000000e+00> : vector<2x32xf32>
    %580 = tpu.matmul %559, %561, %cst_509 {dimension_numbers = #tpu.dot_dimension_numbers<[1], [0], [0], [1], [0, 0, 1, 1], [], []>} : vector<2x32xf32>, vector<32x32xf32>, vector<2x32xf32> -> vector<2x32xf32>
    %cst_510 = arith.constant dense<0.000000e+00> : vector<2x32xf32>
    %581 = tpu.matmul %446, %567, %cst_510 {dimension_numbers = #tpu.dot_dimension_numbers<[1], [0], [0], [1], [0, 0, 1, 1], [], []>} : vector<2x32xf32>, vector<32x32xf32>, vector<2x32xf32> -> vector<2x32xf32>
    %582 = arith.addf %580, %581 : vector<2x32xf32>
    %583 = vector.broadcast %573 : vector<1x32xf32> to vector<2x32xf32>
    %584 = arith.addf %582, %583 : vector<2x32xf32>
    %585 = arith.negf %584 : vector<2x32xf32>
    %586 = math.exp %585 : vector<2x32xf32>
    %cst_511 = arith.constant 1.000000e+00 : f32
    %587 = vector.broadcast %cst_511 : f32 to vector<2x32xf32>
    %588 = arith.addf %587, %586 : vector<2x32xf32>
    %589 = arith.divf %587, %588 : vector<2x32xf32>
    %cst_512 = arith.constant dense<0.000000e+00> : vector<2x32xf32>
    %590 = tpu.matmul %559, %563, %cst_512 {dimension_numbers = #tpu.dot_dimension_numbers<[1], [0], [0], [1], [0, 0, 1, 1], [], []>} : vector<2x32xf32>, vector<32x32xf32>, vector<2x32xf32> -> vector<2x32xf32>
    %cst_513 = arith.constant dense<0.000000e+00> : vector<2x32xf32>
    %591 = tpu.matmul %446, %569, %cst_513 {dimension_numbers = #tpu.dot_dimension_numbers<[1], [0], [0], [1], [0, 0, 1, 1], [], []>} : vector<2x32xf32>, vector<32x32xf32>, vector<2x32xf32> -> vector<2x32xf32>
    %592 = arith.addf %590, %591 : vector<2x32xf32>
    %593 = vector.broadcast %575 : vector<1x32xf32> to vector<2x32xf32>
    %594 = arith.addf %592, %593 : vector<2x32xf32>
    %595 = arith.negf %594 : vector<2x32xf32>
    %596 = math.exp %595 : vector<2x32xf32>
    %cst_514 = arith.constant 1.000000e+00 : f32
    %597 = vector.broadcast %cst_514 : f32 to vector<2x32xf32>
    %598 = arith.addf %597, %596 : vector<2x32xf32>
    %599 = arith.divf %597, %598 : vector<2x32xf32>
    %cst_515 = arith.constant dense<0.000000e+00> : vector<2x32xf32>
    %600 = tpu.matmul %559, %565, %cst_515 {dimension_numbers = #tpu.dot_dimension_numbers<[1], [0], [0], [1], [0, 0, 1, 1], [], []>} : vector<2x32xf32>, vector<32x32xf32>, vector<2x32xf32> -> vector<2x32xf32>
    %601 = vector.broadcast %577 : vector<1x32xf32> to vector<2x32xf32>
    %602 = arith.addf %600, %601 : vector<2x32xf32>
    %cst_516 = arith.constant dense<0.000000e+00> : vector<2x32xf32>
    %603 = tpu.matmul %446, %571, %cst_516 {dimension_numbers = #tpu.dot_dimension_numbers<[1], [0], [0], [1], [0, 0, 1, 1], [], []>} : vector<2x32xf32>, vector<32x32xf32>, vector<2x32xf32> -> vector<2x32xf32>
    %604 = vector.broadcast %579 : vector<1x32xf32> to vector<2x32xf32>
    %605 = arith.addf %603, %604 : vector<2x32xf32>
    %606 = arith.mulf %589, %605 : vector<2x32xf32>
    %607 = arith.addf %602, %606 : vector<2x32xf32>
    %608 = math.tanh %607 : vector<2x32xf32>
    %cst_517 = arith.constant 1.000000e+00 : f32
    %609 = vector.broadcast %cst_517 : f32 to vector<2x32xf32>
    %610 = arith.subf %609, %599 : vector<2x32xf32>
    %611 = arith.mulf %610, %608 : vector<2x32xf32>
    %612 = arith.mulf %599, %446 : vector<2x32xf32>
    %613 = arith.addf %611, %612 : vector<2x32xf32>
    %c1_518 = arith.constant 1 : index
    %c0_519 = arith.constant 0 : index
    %c0_520 = arith.constant 0 : index
    %c0_521 = arith.constant 0 : index
    %614 = vector.load %arg5[%c1_518, %c0_519, %c0_520, %c0_521] : memref<2x3x32x32xf32, #tpu.memory_space<vmem>>, vector<1x1x32x32xf32>
    %615 = vector.shape_cast %614 : vector<1x1x32x32xf32> to vector<32x32xf32>
    %c1_522 = arith.constant 1 : index
    %c1_523 = arith.constant 1 : index
    %c0_524 = arith.constant 0 : index
    %c0_525 = arith.constant 0 : index
    %616 = vector.load %arg5[%c1_522, %c1_523, %c0_524, %c0_525] : memref<2x3x32x32xf32, #tpu.memory_space<vmem>>, vector<1x1x32x32xf32>
    %617 = vector.shape_cast %616 : vector<1x1x32x32xf32> to vector<32x32xf32>
    %c1_526 = arith.constant 1 : index
    %c2_527 = arith.constant 2 : index
    %c0_528 = arith.constant 0 : index
    %c0_529 = arith.constant 0 : index
    %618 = vector.load %arg5[%c1_526, %c2_527, %c0_528, %c0_529] : memref<2x3x32x32xf32, #tpu.memory_space<vmem>>, vector<1x1x32x32xf32>
    %619 = vector.shape_cast %618 : vector<1x1x32x32xf32> to vector<32x32xf32>
    %c1_530 = arith.constant 1 : index
    %c0_531 = arith.constant 0 : index
    %c0_532 = arith.constant 0 : index
    %c0_533 = arith.constant 0 : index
    %620 = vector.load %arg6[%c1_530, %c0_531, %c0_532, %c0_533] : memref<2x3x32x32xf32, #tpu.memory_space<vmem>>, vector<1x1x32x32xf32>
    %621 = vector.shape_cast %620 : vector<1x1x32x32xf32> to vector<32x32xf32>
    %c1_534 = arith.constant 1 : index
    %c1_535 = arith.constant 1 : index
    %c0_536 = arith.constant 0 : index
    %c0_537 = arith.constant 0 : index
    %622 = vector.load %arg6[%c1_534, %c1_535, %c0_536, %c0_537] : memref<2x3x32x32xf32, #tpu.memory_space<vmem>>, vector<1x1x32x32xf32>
    %623 = vector.shape_cast %622 : vector<1x1x32x32xf32> to vector<32x32xf32>
    %c1_538 = arith.constant 1 : index
    %c2_539 = arith.constant 2 : index
    %c0_540 = arith.constant 0 : index
    %c0_541 = arith.constant 0 : index
    %624 = vector.load %arg6[%c1_538, %c2_539, %c0_540, %c0_541] : memref<2x3x32x32xf32, #tpu.memory_space<vmem>>, vector<1x1x32x32xf32>
    %625 = vector.shape_cast %624 : vector<1x1x32x32xf32> to vector<32x32xf32>
    %c1_542 = arith.constant 1 : index
    %c0_543 = arith.constant 0 : index
    %c0_544 = arith.constant 0 : index
    %c0_545 = arith.constant 0 : index
    %626 = vector.load %arg7[%c1_542, %c0_543, %c0_544, %c0_545] : memref<2x4x1x32xf32, #tpu.memory_space<vmem>>, vector<1x1x1x32xf32>
    %627 = vector.shape_cast %626 : vector<1x1x1x32xf32> to vector<1x32xf32>
    %c1_546 = arith.constant 1 : index
    %c1_547 = arith.constant 1 : index
    %c0_548 = arith.constant 0 : index
    %c0_549 = arith.constant 0 : index
    %628 = vector.load %arg7[%c1_546, %c1_547, %c0_548, %c0_549] : memref<2x4x1x32xf32, #tpu.memory_space<vmem>>, vector<1x1x1x32xf32>
    %629 = vector.shape_cast %628 : vector<1x1x1x32xf32> to vector<1x32xf32>
    %c1_550 = arith.constant 1 : index
    %c2_551 = arith.constant 2 : index
    %c0_552 = arith.constant 0 : index
    %c0_553 = arith.constant 0 : index
    %630 = vector.load %arg7[%c1_550, %c2_551, %c0_552, %c0_553] : memref<2x4x1x32xf32, #tpu.memory_space<vmem>>, vector<1x1x1x32xf32>
    %631 = vector.shape_cast %630 : vector<1x1x1x32xf32> to vector<1x32xf32>
    %c1_554 = arith.constant 1 : index
    %c3_555 = arith.constant 3 : index
    %c0_556 = arith.constant 0 : index
    %c0_557 = arith.constant 0 : index
    %632 = vector.load %arg7[%c1_554, %c3_555, %c0_556, %c0_557] : memref<2x4x1x32xf32, #tpu.memory_space<vmem>>, vector<1x1x1x32xf32>
    %633 = vector.shape_cast %632 : vector<1x1x1x32xf32> to vector<1x32xf32>
    %cst_558 = arith.constant dense<0.000000e+00> : vector<2x32xf32>
    %634 = tpu.matmul %613, %615, %cst_558 {dimension_numbers = #tpu.dot_dimension_numbers<[1], [0], [0], [1], [0, 0, 1, 1], [], []>} : vector<2x32xf32>, vector<32x32xf32>, vector<2x32xf32> -> vector<2x32xf32>
    %cst_559 = arith.constant dense<0.000000e+00> : vector<2x32xf32>
    %635 = tpu.matmul %500, %621, %cst_559 {dimension_numbers = #tpu.dot_dimension_numbers<[1], [0], [0], [1], [0, 0, 1, 1], [], []>} : vector<2x32xf32>, vector<32x32xf32>, vector<2x32xf32> -> vector<2x32xf32>
    %636 = arith.addf %634, %635 : vector<2x32xf32>
    %637 = vector.broadcast %627 : vector<1x32xf32> to vector<2x32xf32>
    %638 = arith.addf %636, %637 : vector<2x32xf32>
    %639 = arith.negf %638 : vector<2x32xf32>
    %640 = math.exp %639 : vector<2x32xf32>
    %cst_560 = arith.constant 1.000000e+00 : f32
    %641 = vector.broadcast %cst_560 : f32 to vector<2x32xf32>
    %642 = arith.addf %641, %640 : vector<2x32xf32>
    %643 = arith.divf %641, %642 : vector<2x32xf32>
    %cst_561 = arith.constant dense<0.000000e+00> : vector<2x32xf32>
    %644 = tpu.matmul %613, %617, %cst_561 {dimension_numbers = #tpu.dot_dimension_numbers<[1], [0], [0], [1], [0, 0, 1, 1], [], []>} : vector<2x32xf32>, vector<32x32xf32>, vector<2x32xf32> -> vector<2x32xf32>
    %cst_562 = arith.constant dense<0.000000e+00> : vector<2x32xf32>
    %645 = tpu.matmul %500, %623, %cst_562 {dimension_numbers = #tpu.dot_dimension_numbers<[1], [0], [0], [1], [0, 0, 1, 1], [], []>} : vector<2x32xf32>, vector<32x32xf32>, vector<2x32xf32> -> vector<2x32xf32>
    %646 = arith.addf %644, %645 : vector<2x32xf32>
    %647 = vector.broadcast %629 : vector<1x32xf32> to vector<2x32xf32>
    %648 = arith.addf %646, %647 : vector<2x32xf32>
    %649 = arith.negf %648 : vector<2x32xf32>
    %650 = math.exp %649 : vector<2x32xf32>
    %cst_563 = arith.constant 1.000000e+00 : f32
    %651 = vector.broadcast %cst_563 : f32 to vector<2x32xf32>
    %652 = arith.addf %651, %650 : vector<2x32xf32>
    %653 = arith.divf %651, %652 : vector<2x32xf32>
    %cst_564 = arith.constant dense<0.000000e+00> : vector<2x32xf32>
    %654 = tpu.matmul %613, %619, %cst_564 {dimension_numbers = #tpu.dot_dimension_numbers<[1], [0], [0], [1], [0, 0, 1, 1], [], []>} : vector<2x32xf32>, vector<32x32xf32>, vector<2x32xf32> -> vector<2x32xf32>
    %655 = vector.broadcast %631 : vector<1x32xf32> to vector<2x32xf32>
    %656 = arith.addf %654, %655 : vector<2x32xf32>
    %cst_565 = arith.constant dense<0.000000e+00> : vector<2x32xf32>
    %657 = tpu.matmul %500, %625, %cst_565 {dimension_numbers = #tpu.dot_dimension_numbers<[1], [0], [0], [1], [0, 0, 1, 1], [], []>} : vector<2x32xf32>, vector<32x32xf32>, vector<2x32xf32> -> vector<2x32xf32>
    %658 = vector.broadcast %633 : vector<1x32xf32> to vector<2x32xf32>
    %659 = arith.addf %657, %658 : vector<2x32xf32>
    %660 = arith.mulf %643, %659 : vector<2x32xf32>
    %661 = arith.addf %656, %660 : vector<2x32xf32>
    %662 = math.tanh %661 : vector<2x32xf32>
    %cst_566 = arith.constant 1.000000e+00 : f32
    %663 = vector.broadcast %cst_566 : f32 to vector<2x32xf32>
    %664 = arith.subf %663, %653 : vector<2x32xf32>
    %665 = arith.mulf %664, %662 : vector<2x32xf32>
    %666 = arith.mulf %653, %500 : vector<2x32xf32>
    %667 = arith.addf %665, %666 : vector<2x32xf32>
    %c3_567 = arith.constant 3 : index
    %c0_568 = arith.constant 0 : index
    %c0_569 = arith.constant 0 : index
    %668 = vector.load %arg8[%c3_567, %c0_568, %c0_569] : memref<8x2x32xf32, #tpu.memory_space<vmem>>, vector<1x2x32xf32>
    %669 = vector.shape_cast %668 : vector<1x2x32xf32> to vector<2x32xf32>
    %670 = vector.shape_cast %667 : vector<2x32xf32> to vector<1x2x32xf32>
    tpu.vector_store %arg8[%c3_567, %c0_568, %c0_569], %670 {strides = array<i32>} : memref<8x2x32xf32, #tpu.memory_space<vmem>>, vector<1x2x32xf32>,
    %c4 = arith.constant 4 : index
    %c0_570 = arith.constant 0 : index
    %c0_571 = arith.constant 0 : index
    %671 = vector.load %arg1[%c4, %c0_570, %c0_571] : memref<8x2x8xf32, #tpu.memory_space<vmem>>, vector<1x2x8xf32>
    %672 = vector.shape_cast %671 : vector<1x2x8xf32> to vector<2x8xf32>
    %c0_572 = arith.constant 0 : index
    %c0_573 = arith.constant 0 : index
    %c0_574 = arith.constant 0 : index
    %673 = vector.load %arg2[%c0_572, %c0_573, %c0_574] : memref<3x8x32xf32, #tpu.memory_space<vmem>>, vector<1x8x32xf32>
    %674 = vector.shape_cast %673 : vector<1x8x32xf32> to vector<8x32xf32>
    %c1_575 = arith.constant 1 : index
    %c0_576 = arith.constant 0 : index
    %c0_577 = arith.constant 0 : index
    %675 = vector.load %arg2[%c1_575, %c0_576, %c0_577] : memref<3x8x32xf32, #tpu.memory_space<vmem>>, vector<1x8x32xf32>
    %676 = vector.shape_cast %675 : vector<1x8x32xf32> to vector<8x32xf32>
    %c2_578 = arith.constant 2 : index
    %c0_579 = arith.constant 0 : index
    %c0_580 = arith.constant 0 : index
    %677 = vector.load %arg2[%c2_578, %c0_579, %c0_580] : memref<3x8x32xf32, #tpu.memory_space<vmem>>, vector<1x8x32xf32>
    %678 = vector.shape_cast %677 : vector<1x8x32xf32> to vector<8x32xf32>
    %c0_581 = arith.constant 0 : index
    %c0_582 = arith.constant 0 : index
    %c0_583 = arith.constant 0 : index
    %679 = vector.load %arg3[%c0_581, %c0_582, %c0_583] : memref<3x32x32xf32, #tpu.memory_space<vmem>>, vector<1x32x32xf32>
    %680 = vector.shape_cast %679 : vector<1x32x32xf32> to vector<32x32xf32>
    %c1_584 = arith.constant 1 : index
    %c0_585 = arith.constant 0 : index
    %c0_586 = arith.constant 0 : index
    %681 = vector.load %arg3[%c1_584, %c0_585, %c0_586] : memref<3x32x32xf32, #tpu.memory_space<vmem>>, vector<1x32x32xf32>
    %682 = vector.shape_cast %681 : vector<1x32x32xf32> to vector<32x32xf32>
    %c2_587 = arith.constant 2 : index
    %c0_588 = arith.constant 0 : index
    %c0_589 = arith.constant 0 : index
    %683 = vector.load %arg3[%c2_587, %c0_588, %c0_589] : memref<3x32x32xf32, #tpu.memory_space<vmem>>, vector<1x32x32xf32>
    %684 = vector.shape_cast %683 : vector<1x32x32xf32> to vector<32x32xf32>
    %c0_590 = arith.constant 0 : index
    %c0_591 = arith.constant 0 : index
    %c0_592 = arith.constant 0 : index
    %685 = vector.load %arg4[%c0_590, %c0_591, %c0_592] : memref<4x1x32xf32, #tpu.memory_space<vmem>>, vector<1x1x32xf32>
    %686 = vector.shape_cast %685 : vector<1x1x32xf32> to vector<1x32xf32>
    %c1_593 = arith.constant 1 : index
    %c0_594 = arith.constant 0 : index
    %c0_595 = arith.constant 0 : index
    %687 = vector.load %arg4[%c1_593, %c0_594, %c0_595] : memref<4x1x32xf32, #tpu.memory_space<vmem>>, vector<1x1x32xf32>
    %688 = vector.shape_cast %687 : vector<1x1x32xf32> to vector<1x32xf32>
    %c2_596 = arith.constant 2 : index
    %c0_597 = arith.constant 0 : index
    %c0_598 = arith.constant 0 : index
    %689 = vector.load %arg4[%c2_596, %c0_597, %c0_598] : memref<4x1x32xf32, #tpu.memory_space<vmem>>, vector<1x1x32xf32>
    %690 = vector.shape_cast %689 : vector<1x1x32xf32> to vector<1x32xf32>
    %c3_599 = arith.constant 3 : index
    %c0_600 = arith.constant 0 : index
    %c0_601 = arith.constant 0 : index
    %691 = vector.load %arg4[%c3_599, %c0_600, %c0_601] : memref<4x1x32xf32, #tpu.memory_space<vmem>>, vector<1x1x32xf32>
    %692 = vector.shape_cast %691 : vector<1x1x32xf32> to vector<1x32xf32>
    %cst_602 = arith.constant dense<0.000000e+00> : vector<2x32xf32>
    %693 = tpu.matmul %672, %674, %cst_602 {dimension_numbers = #tpu.dot_dimension_numbers<[1], [0], [0], [1], [0, 0, 1, 1], [], []>} : vector<2x8xf32>, vector<8x32xf32>, vector<2x32xf32> -> vector<2x32xf32>
    %cst_603 = arith.constant dense<0.000000e+00> : vector<2x32xf32>
    %694 = tpu.matmul %559, %680, %cst_603 {dimension_numbers = #tpu.dot_dimension_numbers<[1], [0], [0], [1], [0, 0, 1, 1], [], []>} : vector<2x32xf32>, vector<32x32xf32>, vector<2x32xf32> -> vector<2x32xf32>
    %695 = arith.addf %693, %694 : vector<2x32xf32>
    %696 = vector.broadcast %686 : vector<1x32xf32> to vector<2x32xf32>
    %697 = arith.addf %695, %696 : vector<2x32xf32>
    %698 = arith.negf %697 : vector<2x32xf32>
    %699 = math.exp %698 : vector<2x32xf32>
    %cst_604 = arith.constant 1.000000e+00 : f32
    %700 = vector.broadcast %cst_604 : f32 to vector<2x32xf32>
    %701 = arith.addf %700, %699 : vector<2x32xf32>
    %702 = arith.divf %700, %701 : vector<2x32xf32>
    %cst_605 = arith.constant dense<0.000000e+00> : vector<2x32xf32>
    %703 = tpu.matmul %672, %676, %cst_605 {dimension_numbers = #tpu.dot_dimension_numbers<[1], [0], [0], [1], [0, 0, 1, 1], [], []>} : vector<2x8xf32>, vector<8x32xf32>, vector<2x32xf32> -> vector<2x32xf32>
    %cst_606 = arith.constant dense<0.000000e+00> : vector<2x32xf32>
    %704 = tpu.matmul %559, %682, %cst_606 {dimension_numbers = #tpu.dot_dimension_numbers<[1], [0], [0], [1], [0, 0, 1, 1], [], []>} : vector<2x32xf32>, vector<32x32xf32>, vector<2x32xf32> -> vector<2x32xf32>
    %705 = arith.addf %703, %704 : vector<2x32xf32>
    %706 = vector.broadcast %688 : vector<1x32xf32> to vector<2x32xf32>
    %707 = arith.addf %705, %706 : vector<2x32xf32>
    %708 = arith.negf %707 : vector<2x32xf32>
    %709 = math.exp %708 : vector<2x32xf32>
    %cst_607 = arith.constant 1.000000e+00 : f32
    %710 = vector.broadcast %cst_607 : f32 to vector<2x32xf32>
    %711 = arith.addf %710, %709 : vector<2x32xf32>
    %712 = arith.divf %710, %711 : vector<2x32xf32>
    %cst_608 = arith.constant dense<0.000000e+00> : vector<2x32xf32>
    %713 = tpu.matmul %672, %678, %cst_608 {dimension_numbers = #tpu.dot_dimension_numbers<[1], [0], [0], [1], [0, 0, 1, 1], [], []>} : vector<2x8xf32>, vector<8x32xf32>, vector<2x32xf32> -> vector<2x32xf32>
    %714 = vector.broadcast %690 : vector<1x32xf32> to vector<2x32xf32>
    %715 = arith.addf %713, %714 : vector<2x32xf32>
    %cst_609 = arith.constant dense<0.000000e+00> : vector<2x32xf32>
    %716 = tpu.matmul %559, %684, %cst_609 {dimension_numbers = #tpu.dot_dimension_numbers<[1], [0], [0], [1], [0, 0, 1, 1], [], []>} : vector<2x32xf32>, vector<32x32xf32>, vector<2x32xf32> -> vector<2x32xf32>
    %717 = vector.broadcast %692 : vector<1x32xf32> to vector<2x32xf32>
    %718 = arith.addf %716, %717 : vector<2x32xf32>
    %719 = arith.mulf %702, %718 : vector<2x32xf32>
    %720 = arith.addf %715, %719 : vector<2x32xf32>
    %721 = math.tanh %720 : vector<2x32xf32>
    %cst_610 = arith.constant 1.000000e+00 : f32
    %722 = vector.broadcast %cst_610 : f32 to vector<2x32xf32>
    %723 = arith.subf %722, %712 : vector<2x32xf32>
    %724 = arith.mulf %723, %721 : vector<2x32xf32>
    %725 = arith.mulf %712, %559 : vector<2x32xf32>
    %726 = arith.addf %724, %725 : vector<2x32xf32>
    %c0_611 = arith.constant 0 : index
    %c0_612 = arith.constant 0 : index
    %c0_613 = arith.constant 0 : index
    %c0_614 = arith.constant 0 : index
    %727 = vector.load %arg5[%c0_611, %c0_612, %c0_613, %c0_614] : memref<2x3x32x32xf32, #tpu.memory_space<vmem>>, vector<1x1x32x32xf32>
    %728 = vector.shape_cast %727 : vector<1x1x32x32xf32> to vector<32x32xf32>
    %c0_615 = arith.constant 0 : index
    %c1_616 = arith.constant 1 : index
    %c0_617 = arith.constant 0 : index
    %c0_618 = arith.constant 0 : index
    %729 = vector.load %arg5[%c0_615, %c1_616, %c0_617, %c0_618] : memref<2x3x32x32xf32, #tpu.memory_space<vmem>>, vector<1x1x32x32xf32>
    %730 = vector.shape_cast %729 : vector<1x1x32x32xf32> to vector<32x32xf32>
    %c0_619 = arith.constant 0 : index
    %c2_620 = arith.constant 2 : index
    %c0_621 = arith.constant 0 : index
    %c0_622 = arith.constant 0 : index
    %731 = vector.load %arg5[%c0_619, %c2_620, %c0_621, %c0_622] : memref<2x3x32x32xf32, #tpu.memory_space<vmem>>, vector<1x1x32x32xf32>
    %732 = vector.shape_cast %731 : vector<1x1x32x32xf32> to vector<32x32xf32>
    %c0_623 = arith.constant 0 : index
    %c0_624 = arith.constant 0 : index
    %c0_625 = arith.constant 0 : index
    %c0_626 = arith.constant 0 : index
    %733 = vector.load %arg6[%c0_623, %c0_624, %c0_625, %c0_626] : memref<2x3x32x32xf32, #tpu.memory_space<vmem>>, vector<1x1x32x32xf32>
    %734 = vector.shape_cast %733 : vector<1x1x32x32xf32> to vector<32x32xf32>
    %c0_627 = arith.constant 0 : index
    %c1_628 = arith.constant 1 : index
    %c0_629 = arith.constant 0 : index
    %c0_630 = arith.constant 0 : index
    %735 = vector.load %arg6[%c0_627, %c1_628, %c0_629, %c0_630] : memref<2x3x32x32xf32, #tpu.memory_space<vmem>>, vector<1x1x32x32xf32>
    %736 = vector.shape_cast %735 : vector<1x1x32x32xf32> to vector<32x32xf32>
    %c0_631 = arith.constant 0 : index
    %c2_632 = arith.constant 2 : index
    %c0_633 = arith.constant 0 : index
    %c0_634 = arith.constant 0 : index
    %737 = vector.load %arg6[%c0_631, %c2_632, %c0_633, %c0_634] : memref<2x3x32x32xf32, #tpu.memory_space<vmem>>, vector<1x1x32x32xf32>
    %738 = vector.shape_cast %737 : vector<1x1x32x32xf32> to vector<32x32xf32>
    %c0_635 = arith.constant 0 : index
    %c0_636 = arith.constant 0 : index
    %c0_637 = arith.constant 0 : index
    %c0_638 = arith.constant 0 : index
    %739 = vector.load %arg7[%c0_635, %c0_636, %c0_637, %c0_638] : memref<2x4x1x32xf32, #tpu.memory_space<vmem>>, vector<1x1x1x32xf32>
    %740 = vector.shape_cast %739 : vector<1x1x1x32xf32> to vector<1x32xf32>
    %c0_639 = arith.constant 0 : index
    %c1_640 = arith.constant 1 : index
    %c0_641 = arith.constant 0 : index
    %c0_642 = arith.constant 0 : index
    %741 = vector.load %arg7[%c0_639, %c1_640, %c0_641, %c0_642] : memref<2x4x1x32xf32, #tpu.memory_space<vmem>>, vector<1x1x1x32xf32>
    %742 = vector.shape_cast %741 : vector<1x1x1x32xf32> to vector<1x32xf32>
    %c0_643 = arith.constant 0 : index
    %c2_644 = arith.constant 2 : index
    %c0_645 = arith.constant 0 : index
    %c0_646 = arith.constant 0 : index
    %743 = vector.load %arg7[%c0_643, %c2_644, %c0_645, %c0_646] : memref<2x4x1x32xf32, #tpu.memory_space<vmem>>, vector<1x1x1x32xf32>
    %744 = vector.shape_cast %743 : vector<1x1x1x32xf32> to vector<1x32xf32>
    %c0_647 = arith.constant 0 : index
    %c3_648 = arith.constant 3 : index
    %c0_649 = arith.constant 0 : index
    %c0_650 = arith.constant 0 : index
    %745 = vector.load %arg7[%c0_647, %c3_648, %c0_649, %c0_650] : memref<2x4x1x32xf32, #tpu.memory_space<vmem>>, vector<1x1x1x32xf32>
    %746 = vector.shape_cast %745 : vector<1x1x1x32xf32> to vector<1x32xf32>
    %cst_651 = arith.constant dense<0.000000e+00> : vector<2x32xf32>
    %747 = tpu.matmul %726, %728, %cst_651 {dimension_numbers = #tpu.dot_dimension_numbers<[1], [0], [0], [1], [0, 0, 1, 1], [], []>} : vector<2x32xf32>, vector<32x32xf32>, vector<2x32xf32> -> vector<2x32xf32>
    %cst_652 = arith.constant dense<0.000000e+00> : vector<2x32xf32>
    %748 = tpu.matmul %613, %734, %cst_652 {dimension_numbers = #tpu.dot_dimension_numbers<[1], [0], [0], [1], [0, 0, 1, 1], [], []>} : vector<2x32xf32>, vector<32x32xf32>, vector<2x32xf32> -> vector<2x32xf32>
    %749 = arith.addf %747, %748 : vector<2x32xf32>
    %750 = vector.broadcast %740 : vector<1x32xf32> to vector<2x32xf32>
    %751 = arith.addf %749, %750 : vector<2x32xf32>
    %752 = arith.negf %751 : vector<2x32xf32>
    %753 = math.exp %752 : vector<2x32xf32>
    %cst_653 = arith.constant 1.000000e+00 : f32
    %754 = vector.broadcast %cst_653 : f32 to vector<2x32xf32>
    %755 = arith.addf %754, %753 : vector<2x32xf32>
    %756 = arith.divf %754, %755 : vector<2x32xf32>
    %cst_654 = arith.constant dense<0.000000e+00> : vector<2x32xf32>
    %757 = tpu.matmul %726, %730, %cst_654 {dimension_numbers = #tpu.dot_dimension_numbers<[1], [0], [0], [1], [0, 0, 1, 1], [], []>} : vector<2x32xf32>, vector<32x32xf32>, vector<2x32xf32> -> vector<2x32xf32>
    %cst_655 = arith.constant dense<0.000000e+00> : vector<2x32xf32>
    %758 = tpu.matmul %613, %736, %cst_655 {dimension_numbers = #tpu.dot_dimension_numbers<[1], [0], [0], [1], [0, 0, 1, 1], [], []>} : vector<2x32xf32>, vector<32x32xf32>, vector<2x32xf32> -> vector<2x32xf32>
    %759 = arith.addf %757, %758 : vector<2x32xf32>
    %760 = vector.broadcast %742 : vector<1x32xf32> to vector<2x32xf32>
    %761 = arith.addf %759, %760 : vector<2x32xf32>
    %762 = arith.negf %761 : vector<2x32xf32>
    %763 = math.exp %762 : vector<2x32xf32>
    %cst_656 = arith.constant 1.000000e+00 : f32
    %764 = vector.broadcast %cst_656 : f32 to vector<2x32xf32>
    %765 = arith.addf %764, %763 : vector<2x32xf32>
    %766 = arith.divf %764, %765 : vector<2x32xf32>
    %cst_657 = arith.constant dense<0.000000e+00> : vector<2x32xf32>
    %767 = tpu.matmul %726, %732, %cst_657 {dimension_numbers = #tpu.dot_dimension_numbers<[1], [0], [0], [1], [0, 0, 1, 1], [], []>} : vector<2x32xf32>, vector<32x32xf32>, vector<2x32xf32> -> vector<2x32xf32>
    %768 = vector.broadcast %744 : vector<1x32xf32> to vector<2x32xf32>
    %769 = arith.addf %767, %768 : vector<2x32xf32>
    %cst_658 = arith.constant dense<0.000000e+00> : vector<2x32xf32>
    %770 = tpu.matmul %613, %738, %cst_658 {dimension_numbers = #tpu.dot_dimension_numbers<[1], [0], [0], [1], [0, 0, 1, 1], [], []>} : vector<2x32xf32>, vector<32x32xf32>, vector<2x32xf32> -> vector<2x32xf32>
    %771 = vector.broadcast %746 : vector<1x32xf32> to vector<2x32xf32>
    %772 = arith.addf %770, %771 : vector<2x32xf32>
    %773 = arith.mulf %756, %772 : vector<2x32xf32>
    %774 = arith.addf %769, %773 : vector<2x32xf32>
    %775 = math.tanh %774 : vector<2x32xf32>
    %cst_659 = arith.constant 1.000000e+00 : f32
    %776 = vector.broadcast %cst_659 : f32 to vector<2x32xf32>
    %777 = arith.subf %776, %766 : vector<2x32xf32>
    %778 = arith.mulf %777, %775 : vector<2x32xf32>
    %779 = arith.mulf %766, %613 : vector<2x32xf32>
    %780 = arith.addf %778, %779 : vector<2x32xf32>
    %c1_660 = arith.constant 1 : index
    %c0_661 = arith.constant 0 : index
    %c0_662 = arith.constant 0 : index
    %c0_663 = arith.constant 0 : index
    %781 = vector.load %arg5[%c1_660, %c0_661, %c0_662, %c0_663] : memref<2x3x32x32xf32, #tpu.memory_space<vmem>>, vector<1x1x32x32xf32>
    %782 = vector.shape_cast %781 : vector<1x1x32x32xf32> to vector<32x32xf32>
    %c1_664 = arith.constant 1 : index
    %c1_665 = arith.constant 1 : index
    %c0_666 = arith.constant 0 : index
    %c0_667 = arith.constant 0 : index
    %783 = vector.load %arg5[%c1_664, %c1_665, %c0_666, %c0_667] : memref<2x3x32x32xf32, #tpu.memory_space<vmem>>, vector<1x1x32x32xf32>
    %784 = vector.shape_cast %783 : vector<1x1x32x32xf32> to vector<32x32xf32>
    %c1_668 = arith.constant 1 : index
    %c2_669 = arith.constant 2 : index
    %c0_670 = arith.constant 0 : index
    %c0_671 = arith.constant 0 : index
    %785 = vector.load %arg5[%c1_668, %c2_669, %c0_670, %c0_671] : memref<2x3x32x32xf32, #tpu.memory_space<vmem>>, vector<1x1x32x32xf32>
    %786 = vector.shape_cast %785 : vector<1x1x32x32xf32> to vector<32x32xf32>
    %c1_672 = arith.constant 1 : index
    %c0_673 = arith.constant 0 : index
    %c0_674 = arith.constant 0 : index
    %c0_675 = arith.constant 0 : index
    %787 = vector.load %arg6[%c1_672, %c0_673, %c0_674, %c0_675] : memref<2x3x32x32xf32, #tpu.memory_space<vmem>>, vector<1x1x32x32xf32>
    %788 = vector.shape_cast %787 : vector<1x1x32x32xf32> to vector<32x32xf32>
    %c1_676 = arith.constant 1 : index
    %c1_677 = arith.constant 1 : index
    %c0_678 = arith.constant 0 : index
    %c0_679 = arith.constant 0 : index
    %789 = vector.load %arg6[%c1_676, %c1_677, %c0_678, %c0_679] : memref<2x3x32x32xf32, #tpu.memory_space<vmem>>, vector<1x1x32x32xf32>
    %790 = vector.shape_cast %789 : vector<1x1x32x32xf32> to vector<32x32xf32>
    %c1_680 = arith.constant 1 : index
    %c2_681 = arith.constant 2 : index
    %c0_682 = arith.constant 0 : index
    %c0_683 = arith.constant 0 : index
    %791 = vector.load %arg6[%c1_680, %c2_681, %c0_682, %c0_683] : memref<2x3x32x32xf32, #tpu.memory_space<vmem>>, vector<1x1x32x32xf32>
    %792 = vector.shape_cast %791 : vector<1x1x32x32xf32> to vector<32x32xf32>
    %c1_684 = arith.constant 1 : index
    %c0_685 = arith.constant 0 : index
    %c0_686 = arith.constant 0 : index
    %c0_687 = arith.constant 0 : index
    %793 = vector.load %arg7[%c1_684, %c0_685, %c0_686, %c0_687] : memref<2x4x1x32xf32, #tpu.memory_space<vmem>>, vector<1x1x1x32xf32>
    %794 = vector.shape_cast %793 : vector<1x1x1x32xf32> to vector<1x32xf32>
    %c1_688 = arith.constant 1 : index
    %c1_689 = arith.constant 1 : index
    %c0_690 = arith.constant 0 : index
    %c0_691 = arith.constant 0 : index
    %795 = vector.load %arg7[%c1_688, %c1_689, %c0_690, %c0_691] : memref<2x4x1x32xf32, #tpu.memory_space<vmem>>, vector<1x1x1x32xf32>
    %796 = vector.shape_cast %795 : vector<1x1x1x32xf32> to vector<1x32xf32>
    %c1_692 = arith.constant 1 : index
    %c2_693 = arith.constant 2 : index
    %c0_694 = arith.constant 0 : index
    %c0_695 = arith.constant 0 : index
    %797 = vector.load %arg7[%c1_692, %c2_693, %c0_694, %c0_695] : memref<2x4x1x32xf32, #tpu.memory_space<vmem>>, vector<1x1x1x32xf32>
    %798 = vector.shape_cast %797 : vector<1x1x1x32xf32> to vector<1x32xf32>
    %c1_696 = arith.constant 1 : index
    %c3_697 = arith.constant 3 : index
    %c0_698 = arith.constant 0 : index
    %c0_699 = arith.constant 0 : index
    %799 = vector.load %arg7[%c1_696, %c3_697, %c0_698, %c0_699] : memref<2x4x1x32xf32, #tpu.memory_space<vmem>>, vector<1x1x1x32xf32>
    %800 = vector.shape_cast %799 : vector<1x1x1x32xf32> to vector<1x32xf32>
    %cst_700 = arith.constant dense<0.000000e+00> : vector<2x32xf32>
    %801 = tpu.matmul %780, %782, %cst_700 {dimension_numbers = #tpu.dot_dimension_numbers<[1], [0], [0], [1], [0, 0, 1, 1], [], []>} : vector<2x32xf32>, vector<32x32xf32>, vector<2x32xf32> -> vector<2x32xf32>
    %cst_701 = arith.constant dense<0.000000e+00> : vector<2x32xf32>
    %802 = tpu.matmul %667, %788, %cst_701 {dimension_numbers = #tpu.dot_dimension_numbers<[1], [0], [0], [1], [0, 0, 1, 1], [], []>} : vector<2x32xf32>, vector<32x32xf32>, vector<2x32xf32> -> vector<2x32xf32>
    %803 = arith.addf %801, %802 : vector<2x32xf32>
    %804 = vector.broadcast %794 : vector<1x32xf32> to vector<2x32xf32>
    %805 = arith.addf %803, %804 : vector<2x32xf32>
    %806 = arith.negf %805 : vector<2x32xf32>
    %807 = math.exp %806 : vector<2x32xf32>
    %cst_702 = arith.constant 1.000000e+00 : f32
    %808 = vector.broadcast %cst_702 : f32 to vector<2x32xf32>
    %809 = arith.addf %808, %807 : vector<2x32xf32>
    %810 = arith.divf %808, %809 : vector<2x32xf32>
    %cst_703 = arith.constant dense<0.000000e+00> : vector<2x32xf32>
    %811 = tpu.matmul %780, %784, %cst_703 {dimension_numbers = #tpu.dot_dimension_numbers<[1], [0], [0], [1], [0, 0, 1, 1], [], []>} : vector<2x32xf32>, vector<32x32xf32>, vector<2x32xf32> -> vector<2x32xf32>
    %cst_704 = arith.constant dense<0.000000e+00> : vector<2x32xf32>
    %812 = tpu.matmul %667, %790, %cst_704 {dimension_numbers = #tpu.dot_dimension_numbers<[1], [0], [0], [1], [0, 0, 1, 1], [], []>} : vector<2x32xf32>, vector<32x32xf32>, vector<2x32xf32> -> vector<2x32xf32>
    %813 = arith.addf %811, %812 : vector<2x32xf32>
    %814 = vector.broadcast %796 : vector<1x32xf32> to vector<2x32xf32>
    %815 = arith.addf %813, %814 : vector<2x32xf32>
    %816 = arith.negf %815 : vector<2x32xf32>
    %817 = math.exp %816 : vector<2x32xf32>
    %cst_705 = arith.constant 1.000000e+00 : f32
    %818 = vector.broadcast %cst_705 : f32 to vector<2x32xf32>
    %819 = arith.addf %818, %817 : vector<2x32xf32>
    %820 = arith.divf %818, %819 : vector<2x32xf32>
    %cst_706 = arith.constant dense<0.000000e+00> : vector<2x32xf32>
    %821 = tpu.matmul %780, %786, %cst_706 {dimension_numbers = #tpu.dot_dimension_numbers<[1], [0], [0], [1], [0, 0, 1, 1], [], []>} : vector<2x32xf32>, vector<32x32xf32>, vector<2x32xf32> -> vector<2x32xf32>
    %822 = vector.broadcast %798 : vector<1x32xf32> to vector<2x32xf32>
    %823 = arith.addf %821, %822 : vector<2x32xf32>
    %cst_707 = arith.constant dense<0.000000e+00> : vector<2x32xf32>
    %824 = tpu.matmul %667, %792, %cst_707 {dimension_numbers = #tpu.dot_dimension_numbers<[1], [0], [0], [1], [0, 0, 1, 1], [], []>} : vector<2x32xf32>, vector<32x32xf32>, vector<2x32xf32> -> vector<2x32xf32>
    %825 = vector.broadcast %800 : vector<1x32xf32> to vector<2x32xf32>
    %826 = arith.addf %824, %825 : vector<2x32xf32>
    %827 = arith.mulf %810, %826 : vector<2x32xf32>
    %828 = arith.addf %823, %827 : vector<2x32xf32>
    %829 = math.tanh %828 : vector<2x32xf32>
    %cst_708 = arith.constant 1.000000e+00 : f32
    %830 = vector.broadcast %cst_708 : f32 to vector<2x32xf32>
    %831 = arith.subf %830, %820 : vector<2x32xf32>
    %832 = arith.mulf %831, %829 : vector<2x32xf32>
    %833 = arith.mulf %820, %667 : vector<2x32xf32>
    %834 = arith.addf %832, %833 : vector<2x32xf32>
    %c4_709 = arith.constant 4 : index
    %c0_710 = arith.constant 0 : index
    %c0_711 = arith.constant 0 : index
    %835 = vector.load %arg8[%c4_709, %c0_710, %c0_711] : memref<8x2x32xf32, #tpu.memory_space<vmem>>, vector<1x2x32xf32>
    %836 = vector.shape_cast %835 : vector<1x2x32xf32> to vector<2x32xf32>
    %837 = vector.shape_cast %834 : vector<2x32xf32> to vector<1x2x32xf32>
    tpu.vector_store %arg8[%c4_709, %c0_710, %c0_711], %837 {strides = array<i32>} : memref<8x2x32xf32, #tpu.memory_space<vmem>>, vector<1x2x32xf32>,
    %c5 = arith.constant 5 : index
    %c0_712 = arith.constant 0 : index
    %c0_713 = arith.constant 0 : index
    %838 = vector.load %arg1[%c5, %c0_712, %c0_713] : memref<8x2x8xf32, #tpu.memory_space<vmem>>, vector<1x2x8xf32>
    %839 = vector.shape_cast %838 : vector<1x2x8xf32> to vector<2x8xf32>
    %c0_714 = arith.constant 0 : index
    %c0_715 = arith.constant 0 : index
    %c0_716 = arith.constant 0 : index
    %840 = vector.load %arg2[%c0_714, %c0_715, %c0_716] : memref<3x8x32xf32, #tpu.memory_space<vmem>>, vector<1x8x32xf32>
    %841 = vector.shape_cast %840 : vector<1x8x32xf32> to vector<8x32xf32>
    %c1_717 = arith.constant 1 : index
    %c0_718 = arith.constant 0 : index
    %c0_719 = arith.constant 0 : index
    %842 = vector.load %arg2[%c1_717, %c0_718, %c0_719] : memref<3x8x32xf32, #tpu.memory_space<vmem>>, vector<1x8x32xf32>
    %843 = vector.shape_cast %842 : vector<1x8x32xf32> to vector<8x32xf32>
    %c2_720 = arith.constant 2 : index
    %c0_721 = arith.constant 0 : index
    %c0_722 = arith.constant 0 : index
    %844 = vector.load %arg2[%c2_720, %c0_721, %c0_722] : memref<3x8x32xf32, #tpu.memory_space<vmem>>, vector<1x8x32xf32>
    %845 = vector.shape_cast %844 : vector<1x8x32xf32> to vector<8x32xf32>
    %c0_723 = arith.constant 0 : index
    %c0_724 = arith.constant 0 : index
    %c0_725 = arith.constant 0 : index
    %846 = vector.load %arg3[%c0_723, %c0_724, %c0_725] : memref<3x32x32xf32, #tpu.memory_space<vmem>>, vector<1x32x32xf32>
    %847 = vector.shape_cast %846 : vector<1x32x32xf32> to vector<32x32xf32>
    %c1_726 = arith.constant 1 : index
    %c0_727 = arith.constant 0 : index
    %c0_728 = arith.constant 0 : index
    %848 = vector.load %arg3[%c1_726, %c0_727, %c0_728] : memref<3x32x32xf32, #tpu.memory_space<vmem>>, vector<1x32x32xf32>
    %849 = vector.shape_cast %848 : vector<1x32x32xf32> to vector<32x32xf32>
    %c2_729 = arith.constant 2 : index
    %c0_730 = arith.constant 0 : index
    %c0_731 = arith.constant 0 : index
    %850 = vector.load %arg3[%c2_729, %c0_730, %c0_731] : memref<3x32x32xf32, #tpu.memory_space<vmem>>, vector<1x32x32xf32>
    %851 = vector.shape_cast %850 : vector<1x32x32xf32> to vector<32x32xf32>
    %c0_732 = arith.constant 0 : index
    %c0_733 = arith.constant 0 : index
    %c0_734 = arith.constant 0 : index
    %852 = vector.load %arg4[%c0_732, %c0_733, %c0_734] : memref<4x1x32xf32, #tpu.memory_space<vmem>>, vector<1x1x32xf32>
    %853 = vector.shape_cast %852 : vector<1x1x32xf32> to vector<1x32xf32>
    %c1_735 = arith.constant 1 : index
    %c0_736 = arith.constant 0 : index
    %c0_737 = arith.constant 0 : index
    %854 = vector.load %arg4[%c1_735, %c0_736, %c0_737] : memref<4x1x32xf32, #tpu.memory_space<vmem>>, vector<1x1x32xf32>
    %855 = vector.shape_cast %854 : vector<1x1x32xf32> to vector<1x32xf32>
    %c2_738 = arith.constant 2 : index
    %c0_739 = arith.constant 0 : index
    %c0_740 = arith.constant 0 : index
    %856 = vector.load %arg4[%c2_738, %c0_739, %c0_740] : memref<4x1x32xf32, #tpu.memory_space<vmem>>, vector<1x1x32xf32>
    %857 = vector.shape_cast %856 : vector<1x1x32xf32> to vector<1x32xf32>
    %c3_741 = arith.constant 3 : index
    %c0_742 = arith.constant 0 : index
    %c0_743 = arith.constant 0 : index
    %858 = vector.load %arg4[%c3_741, %c0_742, %c0_743] : memref<4x1x32xf32, #tpu.memory_space<vmem>>, vector<1x1x32xf32>
    %859 = vector.shape_cast %858 : vector<1x1x32xf32> to vector<1x32xf32>
    %cst_744 = arith.constant dense<0.000000e+00> : vector<2x32xf32>
    %860 = tpu.matmul %839, %841, %cst_744 {dimension_numbers = #tpu.dot_dimension_numbers<[1], [0], [0], [1], [0, 0, 1, 1], [], []>} : vector<2x8xf32>, vector<8x32xf32>, vector<2x32xf32> -> vector<2x32xf32>
    %cst_745 = arith.constant dense<0.000000e+00> : vector<2x32xf32>
    %861 = tpu.matmul %726, %847, %cst_745 {dimension_numbers = #tpu.dot_dimension_numbers<[1], [0], [0], [1], [0, 0, 1, 1], [], []>} : vector<2x32xf32>, vector<32x32xf32>, vector<2x32xf32> -> vector<2x32xf32>
    %862 = arith.addf %860, %861 : vector<2x32xf32>
    %863 = vector.broadcast %853 : vector<1x32xf32> to vector<2x32xf32>
    %864 = arith.addf %862, %863 : vector<2x32xf32>
    %865 = arith.negf %864 : vector<2x32xf32>
    %866 = math.exp %865 : vector<2x32xf32>
    %cst_746 = arith.constant 1.000000e+00 : f32
    %867 = vector.broadcast %cst_746 : f32 to vector<2x32xf32>
    %868 = arith.addf %867, %866 : vector<2x32xf32>
    %869 = arith.divf %867, %868 : vector<2x32xf32>
    %cst_747 = arith.constant dense<0.000000e+00> : vector<2x32xf32>
    %870 = tpu.matmul %839, %843, %cst_747 {dimension_numbers = #tpu.dot_dimension_numbers<[1], [0], [0], [1], [0, 0, 1, 1], [], []>} : vector<2x8xf32>, vector<8x32xf32>, vector<2x32xf32> -> vector<2x32xf32>
    %cst_748 = arith.constant dense<0.000000e+00> : vector<2x32xf32>
    %871 = tpu.matmul %726, %849, %cst_748 {dimension_numbers = #tpu.dot_dimension_numbers<[1], [0], [0], [1], [0, 0, 1, 1], [], []>} : vector<2x32xf32>, vector<32x32xf32>, vector<2x32xf32> -> vector<2x32xf32>
    %872 = arith.addf %870, %871 : vector<2x32xf32>
    %873 = vector.broadcast %855 : vector<1x32xf32> to vector<2x32xf32>
    %874 = arith.addf %872, %873 : vector<2x32xf32>
    %875 = arith.negf %874 : vector<2x32xf32>
    %876 = math.exp %875 : vector<2x32xf32>
    %cst_749 = arith.constant 1.000000e+00 : f32
    %877 = vector.broadcast %cst_749 : f32 to vector<2x32xf32>
    %878 = arith.addf %877, %876 : vector<2x32xf32>
    %879 = arith.divf %877, %878 : vector<2x32xf32>
    %cst_750 = arith.constant dense<0.000000e+00> : vector<2x32xf32>
    %880 = tpu.matmul %839, %845, %cst_750 {dimension_numbers = #tpu.dot_dimension_numbers<[1], [0], [0], [1], [0, 0, 1, 1], [], []>} : vector<2x8xf32>, vector<8x32xf32>, vector<2x32xf32> -> vector<2x32xf32>
    %881 = vector.broadcast %857 : vector<1x32xf32> to vector<2x32xf32>
    %882 = arith.addf %880, %881 : vector<2x32xf32>
    %cst_751 = arith.constant dense<0.000000e+00> : vector<2x32xf32>
    %883 = tpu.matmul %726, %851, %cst_751 {dimension_numbers = #tpu.dot_dimension_numbers<[1], [0], [0], [1], [0, 0, 1, 1], [], []>} : vector<2x32xf32>, vector<32x32xf32>, vector<2x32xf32> -> vector<2x32xf32>
    %884 = vector.broadcast %859 : vector<1x32xf32> to vector<2x32xf32>
    %885 = arith.addf %883, %884 : vector<2x32xf32>
    %886 = arith.mulf %869, %885 : vector<2x32xf32>
    %887 = arith.addf %882, %886 : vector<2x32xf32>
    %888 = math.tanh %887 : vector<2x32xf32>
    %cst_752 = arith.constant 1.000000e+00 : f32
    %889 = vector.broadcast %cst_752 : f32 to vector<2x32xf32>
    %890 = arith.subf %889, %879 : vector<2x32xf32>
    %891 = arith.mulf %890, %888 : vector<2x32xf32>
    %892 = arith.mulf %879, %726 : vector<2x32xf32>
    %893 = arith.addf %891, %892 : vector<2x32xf32>
    %c0_753 = arith.constant 0 : index
    %c0_754 = arith.constant 0 : index
    %c0_755 = arith.constant 0 : index
    %c0_756 = arith.constant 0 : index
    %894 = vector.load %arg5[%c0_753, %c0_754, %c0_755, %c0_756] : memref<2x3x32x32xf32, #tpu.memory_space<vmem>>, vector<1x1x32x32xf32>
    %895 = vector.shape_cast %894 : vector<1x1x32x32xf32> to vector<32x32xf32>
    %c0_757 = arith.constant 0 : index
    %c1_758 = arith.constant 1 : index
    %c0_759 = arith.constant 0 : index
    %c0_760 = arith.constant 0 : index
    %896 = vector.load %arg5[%c0_757, %c1_758, %c0_759, %c0_760] : memref<2x3x32x32xf32, #tpu.memory_space<vmem>>, vector<1x1x32x32xf32>
    %897 = vector.shape_cast %896 : vector<1x1x32x32xf32> to vector<32x32xf32>
    %c0_761 = arith.constant 0 : index
    %c2_762 = arith.constant 2 : index
    %c0_763 = arith.constant 0 : index
    %c0_764 = arith.constant 0 : index
    %898 = vector.load %arg5[%c0_761, %c2_762, %c0_763, %c0_764] : memref<2x3x32x32xf32, #tpu.memory_space<vmem>>, vector<1x1x32x32xf32>
    %899 = vector.shape_cast %898 : vector<1x1x32x32xf32> to vector<32x32xf32>
    %c0_765 = arith.constant 0 : index
    %c0_766 = arith.constant 0 : index
    %c0_767 = arith.constant 0 : index
    %c0_768 = arith.constant 0 : index
    %900 = vector.load %arg6[%c0_765, %c0_766, %c0_767, %c0_768] : memref<2x3x32x32xf32, #tpu.memory_space<vmem>>, vector<1x1x32x32xf32>
    %901 = vector.shape_cast %900 : vector<1x1x32x32xf32> to vector<32x32xf32>
    %c0_769 = arith.constant 0 : index
    %c1_770 = arith.constant 1 : index
    %c0_771 = arith.constant 0 : index
    %c0_772 = arith.constant 0 : index
    %902 = vector.load %arg6[%c0_769, %c1_770, %c0_771, %c0_772] : memref<2x3x32x32xf32, #tpu.memory_space<vmem>>, vector<1x1x32x32xf32>
    %903 = vector.shape_cast %902 : vector<1x1x32x32xf32> to vector<32x32xf32>
    %c0_773 = arith.constant 0 : index
    %c2_774 = arith.constant 2 : index
    %c0_775 = arith.constant 0 : index
    %c0_776 = arith.constant 0 : index
    %904 = vector.load %arg6[%c0_773, %c2_774, %c0_775, %c0_776] : memref<2x3x32x32xf32, #tpu.memory_space<vmem>>, vector<1x1x32x32xf32>
    %905 = vector.shape_cast %904 : vector<1x1x32x32xf32> to vector<32x32xf32>
    %c0_777 = arith.constant 0 : index
    %c0_778 = arith.constant 0 : index
    %c0_779 = arith.constant 0 : index
    %c0_780 = arith.constant 0 : index
    %906 = vector.load %arg7[%c0_777, %c0_778, %c0_779, %c0_780] : memref<2x4x1x32xf32, #tpu.memory_space<vmem>>, vector<1x1x1x32xf32>
    %907 = vector.shape_cast %906 : vector<1x1x1x32xf32> to vector<1x32xf32>
    %c0_781 = arith.constant 0 : index
    %c1_782 = arith.constant 1 : index
    %c0_783 = arith.constant 0 : index
    %c0_784 = arith.constant 0 : index
    %908 = vector.load %arg7[%c0_781, %c1_782, %c0_783, %c0_784] : memref<2x4x1x32xf32, #tpu.memory_space<vmem>>, vector<1x1x1x32xf32>
    %909 = vector.shape_cast %908 : vector<1x1x1x32xf32> to vector<1x32xf32>
    %c0_785 = arith.constant 0 : index
    %c2_786 = arith.constant 2 : index
    %c0_787 = arith.constant 0 : index
    %c0_788 = arith.constant 0 : index
    %910 = vector.load %arg7[%c0_785, %c2_786, %c0_787, %c0_788] : memref<2x4x1x32xf32, #tpu.memory_space<vmem>>, vector<1x1x1x32xf32>
    %911 = vector.shape_cast %910 : vector<1x1x1x32xf32> to vector<1x32xf32>
    %c0_789 = arith.constant 0 : index
    %c3_790 = arith.constant 3 : index
    %c0_791 = arith.constant 0 : index
    %c0_792 = arith.constant 0 : index
    %912 = vector.load %arg7[%c0_789, %c3_790, %c0_791, %c0_792] : memref<2x4x1x32xf32, #tpu.memory_space<vmem>>, vector<1x1x1x32xf32>
    %913 = vector.shape_cast %912 : vector<1x1x1x32xf32> to vector<1x32xf32>
    %cst_793 = arith.constant dense<0.000000e+00> : vector<2x32xf32>
    %914 = tpu.matmul %893, %895, %cst_793 {dimension_numbers = #tpu.dot_dimension_numbers<[1], [0], [0], [1], [0, 0, 1, 1], [], []>} : vector<2x32xf32>, vector<32x32xf32>, vector<2x32xf32> -> vector<2x32xf32>
    %cst_794 = arith.constant dense<0.000000e+00> : vector<2x32xf32>
    %915 = tpu.matmul %780, %901, %cst_794 {dimension_numbers = #tpu.dot_dimension_numbers<[1], [0], [0], [1], [0, 0, 1, 1], [], []>} : vector<2x32xf32>, vector<32x32xf32>, vector<2x32xf32> -> vector<2x32xf32>
    %916 = arith.addf %914, %915 : vector<2x32xf32>
    %917 = vector.broadcast %907 : vector<1x32xf32> to vector<2x32xf32>
    %918 = arith.addf %916, %917 : vector<2x32xf32>
    %919 = arith.negf %918 : vector<2x32xf32>
    %920 = math.exp %919 : vector<2x32xf32>
    %cst_795 = arith.constant 1.000000e+00 : f32
    %921 = vector.broadcast %cst_795 : f32 to vector<2x32xf32>
    %922 = arith.addf %921, %920 : vector<2x32xf32>
    %923 = arith.divf %921, %922 : vector<2x32xf32>
    %cst_796 = arith.constant dense<0.000000e+00> : vector<2x32xf32>
    %924 = tpu.matmul %893, %897, %cst_796 {dimension_numbers = #tpu.dot_dimension_numbers<[1], [0], [0], [1], [0, 0, 1, 1], [], []>} : vector<2x32xf32>, vector<32x32xf32>, vector<2x32xf32> -> vector<2x32xf32>
    %cst_797 = arith.constant dense<0.000000e+00> : vector<2x32xf32>
    %925 = tpu.matmul %780, %903, %cst_797 {dimension_numbers = #tpu.dot_dimension_numbers<[1], [0], [0], [1], [0, 0, 1, 1], [], []>} : vector<2x32xf32>, vector<32x32xf32>, vector<2x32xf32> -> vector<2x32xf32>
    %926 = arith.addf %924, %925 : vector<2x32xf32>
    %927 = vector.broadcast %909 : vector<1x32xf32> to vector<2x32xf32>
    %928 = arith.addf %926, %927 : vector<2x32xf32>
    %929 = arith.negf %928 : vector<2x32xf32>
    %930 = math.exp %929 : vector<2x32xf32>
    %cst_798 = arith.constant 1.000000e+00 : f32
    %931 = vector.broadcast %cst_798 : f32 to vector<2x32xf32>
    %932 = arith.addf %931, %930 : vector<2x32xf32>
    %933 = arith.divf %931, %932 : vector<2x32xf32>
    %cst_799 = arith.constant dense<0.000000e+00> : vector<2x32xf32>
    %934 = tpu.matmul %893, %899, %cst_799 {dimension_numbers = #tpu.dot_dimension_numbers<[1], [0], [0], [1], [0, 0, 1, 1], [], []>} : vector<2x32xf32>, vector<32x32xf32>, vector<2x32xf32> -> vector<2x32xf32>
    %935 = vector.broadcast %911 : vector<1x32xf32> to vector<2x32xf32>
    %936 = arith.addf %934, %935 : vector<2x32xf32>
    %cst_800 = arith.constant dense<0.000000e+00> : vector<2x32xf32>
    %937 = tpu.matmul %780, %905, %cst_800 {dimension_numbers = #tpu.dot_dimension_numbers<[1], [0], [0], [1], [0, 0, 1, 1], [], []>} : vector<2x32xf32>, vector<32x32xf32>, vector<2x32xf32> -> vector<2x32xf32>
    %938 = vector.broadcast %913 : vector<1x32xf32> to vector<2x32xf32>
    %939 = arith.addf %937, %938 : vector<2x32xf32>
    %940 = arith.mulf %923, %939 : vector<2x32xf32>
    %941 = arith.addf %936, %940 : vector<2x32xf32>
    %942 = math.tanh %941 : vector<2x32xf32>
    %cst_801 = arith.constant 1.000000e+00 : f32
    %943 = vector.broadcast %cst_801 : f32 to vector<2x32xf32>
    %944 = arith.subf %943, %933 : vector<2x32xf32>
    %945 = arith.mulf %944, %942 : vector<2x32xf32>
    %946 = arith.mulf %933, %780 : vector<2x32xf32>
    %947 = arith.addf %945, %946 : vector<2x32xf32>
    %c1_802 = arith.constant 1 : index
    %c0_803 = arith.constant 0 : index
    %c0_804 = arith.constant 0 : index
    %c0_805 = arith.constant 0 : index
    %948 = vector.load %arg5[%c1_802, %c0_803, %c0_804, %c0_805] : memref<2x3x32x32xf32, #tpu.memory_space<vmem>>, vector<1x1x32x32xf32>
    %949 = vector.shape_cast %948 : vector<1x1x32x32xf32> to vector<32x32xf32>
    %c1_806 = arith.constant 1 : index
    %c1_807 = arith.constant 1 : index
    %c0_808 = arith.constant 0 : index
    %c0_809 = arith.constant 0 : index
    %950 = vector.load %arg5[%c1_806, %c1_807, %c0_808, %c0_809] : memref<2x3x32x32xf32, #tpu.memory_space<vmem>>, vector<1x1x32x32xf32>
    %951 = vector.shape_cast %950 : vector<1x1x32x32xf32> to vector<32x32xf32>
    %c1_810 = arith.constant 1 : index
    %c2_811 = arith.constant 2 : index
    %c0_812 = arith.constant 0 : index
    %c0_813 = arith.constant 0 : index
    %952 = vector.load %arg5[%c1_810, %c2_811, %c0_812, %c0_813] : memref<2x3x32x32xf32, #tpu.memory_space<vmem>>, vector<1x1x32x32xf32>
    %953 = vector.shape_cast %952 : vector<1x1x32x32xf32> to vector<32x32xf32>
    %c1_814 = arith.constant 1 : index
    %c0_815 = arith.constant 0 : index
    %c0_816 = arith.constant 0 : index
    %c0_817 = arith.constant 0 : index
    %954 = vector.load %arg6[%c1_814, %c0_815, %c0_816, %c0_817] : memref<2x3x32x32xf32, #tpu.memory_space<vmem>>, vector<1x1x32x32xf32>
    %955 = vector.shape_cast %954 : vector<1x1x32x32xf32> to vector<32x32xf32>
    %c1_818 = arith.constant 1 : index
    %c1_819 = arith.constant 1 : index
    %c0_820 = arith.constant 0 : index
    %c0_821 = arith.constant 0 : index
    %956 = vector.load %arg6[%c1_818, %c1_819, %c0_820, %c0_821] : memref<2x3x32x32xf32, #tpu.memory_space<vmem>>, vector<1x1x32x32xf32>
    %957 = vector.shape_cast %956 : vector<1x1x32x32xf32> to vector<32x32xf32>
    %c1_822 = arith.constant 1 : index
    %c2_823 = arith.constant 2 : index
    %c0_824 = arith.constant 0 : index
    %c0_825 = arith.constant 0 : index
    %958 = vector.load %arg6[%c1_822, %c2_823, %c0_824, %c0_825] : memref<2x3x32x32xf32, #tpu.memory_space<vmem>>, vector<1x1x32x32xf32>
    %959 = vector.shape_cast %958 : vector<1x1x32x32xf32> to vector<32x32xf32>
    %c1_826 = arith.constant 1 : index
    %c0_827 = arith.constant 0 : index
    %c0_828 = arith.constant 0 : index
    %c0_829 = arith.constant 0 : index
    %960 = vector.load %arg7[%c1_826, %c0_827, %c0_828, %c0_829] : memref<2x4x1x32xf32, #tpu.memory_space<vmem>>, vector<1x1x1x32xf32>
    %961 = vector.shape_cast %960 : vector<1x1x1x32xf32> to vector<1x32xf32>
    %c1_830 = arith.constant 1 : index
    %c1_831 = arith.constant 1 : index
    %c0_832 = arith.constant 0 : index
    %c0_833 = arith.constant 0 : index
    %962 = vector.load %arg7[%c1_830, %c1_831, %c0_832, %c0_833] : memref<2x4x1x32xf32, #tpu.memory_space<vmem>>, vector<1x1x1x32xf32>
    %963 = vector.shape_cast %962 : vector<1x1x1x32xf32> to vector<1x32xf32>
    %c1_834 = arith.constant 1 : index
    %c2_835 = arith.constant 2 : index
    %c0_836 = arith.constant 0 : index
    %c0_837 = arith.constant 0 : index
    %964 = vector.load %arg7[%c1_834, %c2_835, %c0_836, %c0_837] : memref<2x4x1x32xf32, #tpu.memory_space<vmem>>, vector<1x1x1x32xf32>
    %965 = vector.shape_cast %964 : vector<1x1x1x32xf32> to vector<1x32xf32>
    %c1_838 = arith.constant 1 : index
    %c3_839 = arith.constant 3 : index
    %c0_840 = arith.constant 0 : index
    %c0_841 = arith.constant 0 : index
    %966 = vector.load %arg7[%c1_838, %c3_839, %c0_840, %c0_841] : memref<2x4x1x32xf32, #tpu.memory_space<vmem>>, vector<1x1x1x32xf32>
    %967 = vector.shape_cast %966 : vector<1x1x1x32xf32> to vector<1x32xf32>
    %cst_842 = arith.constant dense<0.000000e+00> : vector<2x32xf32>
    %968 = tpu.matmul %947, %949, %cst_842 {dimension_numbers = #tpu.dot_dimension_numbers<[1], [0], [0], [1], [0, 0, 1, 1], [], []>} : vector<2x32xf32>, vector<32x32xf32>, vector<2x32xf32> -> vector<2x32xf32>
    %cst_843 = arith.constant dense<0.000000e+00> : vector<2x32xf32>
    %969 = tpu.matmul %834, %955, %cst_843 {dimension_numbers = #tpu.dot_dimension_numbers<[1], [0], [0], [1], [0, 0, 1, 1], [], []>} : vector<2x32xf32>, vector<32x32xf32>, vector<2x32xf32> -> vector<2x32xf32>
    %970 = arith.addf %968, %969 : vector<2x32xf32>
    %971 = vector.broadcast %961 : vector<1x32xf32> to vector<2x32xf32>
    %972 = arith.addf %970, %971 : vector<2x32xf32>
    %973 = arith.negf %972 : vector<2x32xf32>
    %974 = math.exp %973 : vector<2x32xf32>
    %cst_844 = arith.constant 1.000000e+00 : f32
    %975 = vector.broadcast %cst_844 : f32 to vector<2x32xf32>
    %976 = arith.addf %975, %974 : vector<2x32xf32>
    %977 = arith.divf %975, %976 : vector<2x32xf32>
    %cst_845 = arith.constant dense<0.000000e+00> : vector<2x32xf32>
    %978 = tpu.matmul %947, %951, %cst_845 {dimension_numbers = #tpu.dot_dimension_numbers<[1], [0], [0], [1], [0, 0, 1, 1], [], []>} : vector<2x32xf32>, vector<32x32xf32>, vector<2x32xf32> -> vector<2x32xf32>
    %cst_846 = arith.constant dense<0.000000e+00> : vector<2x32xf32>
    %979 = tpu.matmul %834, %957, %cst_846 {dimension_numbers = #tpu.dot_dimension_numbers<[1], [0], [0], [1], [0, 0, 1, 1], [], []>} : vector<2x32xf32>, vector<32x32xf32>, vector<2x32xf32> -> vector<2x32xf32>
    %980 = arith.addf %978, %979 : vector<2x32xf32>
    %981 = vector.broadcast %963 : vector<1x32xf32> to vector<2x32xf32>
    %982 = arith.addf %980, %981 : vector<2x32xf32>
    %983 = arith.negf %982 : vector<2x32xf32>
    %984 = math.exp %983 : vector<2x32xf32>
    %cst_847 = arith.constant 1.000000e+00 : f32
    %985 = vector.broadcast %cst_847 : f32 to vector<2x32xf32>
    %986 = arith.addf %985, %984 : vector<2x32xf32>
    %987 = arith.divf %985, %986 : vector<2x32xf32>
    %cst_848 = arith.constant dense<0.000000e+00> : vector<2x32xf32>
    %988 = tpu.matmul %947, %953, %cst_848 {dimension_numbers = #tpu.dot_dimension_numbers<[1], [0], [0], [1], [0, 0, 1, 1], [], []>} : vector<2x32xf32>, vector<32x32xf32>, vector<2x32xf32> -> vector<2x32xf32>
    %989 = vector.broadcast %965 : vector<1x32xf32> to vector<2x32xf32>
    %990 = arith.addf %988, %989 : vector<2x32xf32>
    %cst_849 = arith.constant dense<0.000000e+00> : vector<2x32xf32>
    %991 = tpu.matmul %834, %959, %cst_849 {dimension_numbers = #tpu.dot_dimension_numbers<[1], [0], [0], [1], [0, 0, 1, 1], [], []>} : vector<2x32xf32>, vector<32x32xf32>, vector<2x32xf32> -> vector<2x32xf32>
    %992 = vector.broadcast %967 : vector<1x32xf32> to vector<2x32xf32>
    %993 = arith.addf %991, %992 : vector<2x32xf32>
    %994 = arith.mulf %977, %993 : vector<2x32xf32>
    %995 = arith.addf %990, %994 : vector<2x32xf32>
    %996 = math.tanh %995 : vector<2x32xf32>
    %cst_850 = arith.constant 1.000000e+00 : f32
    %997 = vector.broadcast %cst_850 : f32 to vector<2x32xf32>
    %998 = arith.subf %997, %987 : vector<2x32xf32>
    %999 = arith.mulf %998, %996 : vector<2x32xf32>
    %1000 = arith.mulf %987, %834 : vector<2x32xf32>
    %1001 = arith.addf %999, %1000 : vector<2x32xf32>
    %c5_851 = arith.constant 5 : index
    %c0_852 = arith.constant 0 : index
    %c0_853 = arith.constant 0 : index
    %1002 = vector.load %arg8[%c5_851, %c0_852, %c0_853] : memref<8x2x32xf32, #tpu.memory_space<vmem>>, vector<1x2x32xf32>
    %1003 = vector.shape_cast %1002 : vector<1x2x32xf32> to vector<2x32xf32>
    %1004 = vector.shape_cast %1001 : vector<2x32xf32> to vector<1x2x32xf32>
    tpu.vector_store %arg8[%c5_851, %c0_852, %c0_853], %1004 {strides = array<i32>} : memref<8x2x32xf32, #tpu.memory_space<vmem>>, vector<1x2x32xf32>,
    %c6 = arith.constant 6 : index
    %c0_854 = arith.constant 0 : index
    %c0_855 = arith.constant 0 : index
    %1005 = vector.load %arg1[%c6, %c0_854, %c0_855] : memref<8x2x8xf32, #tpu.memory_space<vmem>>, vector<1x2x8xf32>
    %1006 = vector.shape_cast %1005 : vector<1x2x8xf32> to vector<2x8xf32>
    %c0_856 = arith.constant 0 : index
    %c0_857 = arith.constant 0 : index
    %c0_858 = arith.constant 0 : index
    %1007 = vector.load %arg2[%c0_856, %c0_857, %c0_858] : memref<3x8x32xf32, #tpu.memory_space<vmem>>, vector<1x8x32xf32>
    %1008 = vector.shape_cast %1007 : vector<1x8x32xf32> to vector<8x32xf32>
    %c1_859 = arith.constant 1 : index
    %c0_860 = arith.constant 0 : index
    %c0_861 = arith.constant 0 : index
    %1009 = vector.load %arg2[%c1_859, %c0_860, %c0_861] : memref<3x8x32xf32, #tpu.memory_space<vmem>>, vector<1x8x32xf32>
    %1010 = vector.shape_cast %1009 : vector<1x8x32xf32> to vector<8x32xf32>
    %c2_862 = arith.constant 2 : index
    %c0_863 = arith.constant 0 : index
    %c0_864 = arith.constant 0 : index
    %1011 = vector.load %arg2[%c2_862, %c0_863, %c0_864] : memref<3x8x32xf32, #tpu.memory_space<vmem>>, vector<1x8x32xf32>
    %1012 = vector.shape_cast %1011 : vector<1x8x32xf32> to vector<8x32xf32>
    %c0_865 = arith.constant 0 : index
    %c0_866 = arith.constant 0 : index
    %c0_867 = arith.constant 0 : index
    %1013 = vector.load %arg3[%c0_865, %c0_866, %c0_867] : memref<3x32x32xf32, #tpu.memory_space<vmem>>, vector<1x32x32xf32>
    %1014 = vector.shape_cast %1013 : vector<1x32x32xf32> to vector<32x32xf32>
    %c1_868 = arith.constant 1 : index
    %c0_869 = arith.constant 0 : index
    %c0_870 = arith.constant 0 : index
    %1015 = vector.load %arg3[%c1_868, %c0_869, %c0_870] : memref<3x32x32xf32, #tpu.memory_space<vmem>>, vector<1x32x32xf32>
    %1016 = vector.shape_cast %1015 : vector<1x32x32xf32> to vector<32x32xf32>
    %c2_871 = arith.constant 2 : index
    %c0_872 = arith.constant 0 : index
    %c0_873 = arith.constant 0 : index
    %1017 = vector.load %arg3[%c2_871, %c0_872, %c0_873] : memref<3x32x32xf32, #tpu.memory_space<vmem>>, vector<1x32x32xf32>
    %1018 = vector.shape_cast %1017 : vector<1x32x32xf32> to vector<32x32xf32>
    %c0_874 = arith.constant 0 : index
    %c0_875 = arith.constant 0 : index
    %c0_876 = arith.constant 0 : index
    %1019 = vector.load %arg4[%c0_874, %c0_875, %c0_876] : memref<4x1x32xf32, #tpu.memory_space<vmem>>, vector<1x1x32xf32>
    %1020 = vector.shape_cast %1019 : vector<1x1x32xf32> to vector<1x32xf32>
    %c1_877 = arith.constant 1 : index
    %c0_878 = arith.constant 0 : index
    %c0_879 = arith.constant 0 : index
    %1021 = vector.load %arg4[%c1_877, %c0_878, %c0_879] : memref<4x1x32xf32, #tpu.memory_space<vmem>>, vector<1x1x32xf32>
    %1022 = vector.shape_cast %1021 : vector<1x1x32xf32> to vector<1x32xf32>
    %c2_880 = arith.constant 2 : index
    %c0_881 = arith.constant 0 : index
    %c0_882 = arith.constant 0 : index
    %1023 = vector.load %arg4[%c2_880, %c0_881, %c0_882] : memref<4x1x32xf32, #tpu.memory_space<vmem>>, vector<1x1x32xf32>
    %1024 = vector.shape_cast %1023 : vector<1x1x32xf32> to vector<1x32xf32>
    %c3_883 = arith.constant 3 : index
    %c0_884 = arith.constant 0 : index
    %c0_885 = arith.constant 0 : index
    %1025 = vector.load %arg4[%c3_883, %c0_884, %c0_885] : memref<4x1x32xf32, #tpu.memory_space<vmem>>, vector<1x1x32xf32>
    %1026 = vector.shape_cast %1025 : vector<1x1x32xf32> to vector<1x32xf32>
    %cst_886 = arith.constant dense<0.000000e+00> : vector<2x32xf32>
    %1027 = tpu.matmul %1006, %1008, %cst_886 {dimension_numbers = #tpu.dot_dimension_numbers<[1], [0], [0], [1], [0, 0, 1, 1], [], []>} : vector<2x8xf32>, vector<8x32xf32>, vector<2x32xf32> -> vector<2x32xf32>
    %cst_887 = arith.constant dense<0.000000e+00> : vector<2x32xf32>
    %1028 = tpu.matmul %893, %1014, %cst_887 {dimension_numbers = #tpu.dot_dimension_numbers<[1], [0], [0], [1], [0, 0, 1, 1], [], []>} : vector<2x32xf32>, vector<32x32xf32>, vector<2x32xf32> -> vector<2x32xf32>
    %1029 = arith.addf %1027, %1028 : vector<2x32xf32>
    %1030 = vector.broadcast %1020 : vector<1x32xf32> to vector<2x32xf32>
    %1031 = arith.addf %1029, %1030 : vector<2x32xf32>
    %1032 = arith.negf %1031 : vector<2x32xf32>
    %1033 = math.exp %1032 : vector<2x32xf32>
    %cst_888 = arith.constant 1.000000e+00 : f32
    %1034 = vector.broadcast %cst_888 : f32 to vector<2x32xf32>
    %1035 = arith.addf %1034, %1033 : vector<2x32xf32>
    %1036 = arith.divf %1034, %1035 : vector<2x32xf32>
    %cst_889 = arith.constant dense<0.000000e+00> : vector<2x32xf32>
    %1037 = tpu.matmul %1006, %1010, %cst_889 {dimension_numbers = #tpu.dot_dimension_numbers<[1], [0], [0], [1], [0, 0, 1, 1], [], []>} : vector<2x8xf32>, vector<8x32xf32>, vector<2x32xf32> -> vector<2x32xf32>
    %cst_890 = arith.constant dense<0.000000e+00> : vector<2x32xf32>
    %1038 = tpu.matmul %893, %1016, %cst_890 {dimension_numbers = #tpu.dot_dimension_numbers<[1], [0], [0], [1], [0, 0, 1, 1], [], []>} : vector<2x32xf32>, vector<32x32xf32>, vector<2x32xf32> -> vector<2x32xf32>
    %1039 = arith.addf %1037, %1038 : vector<2x32xf32>
    %1040 = vector.broadcast %1022 : vector<1x32xf32> to vector<2x32xf32>
    %1041 = arith.addf %1039, %1040 : vector<2x32xf32>
    %1042 = arith.negf %1041 : vector<2x32xf32>
    %1043 = math.exp %1042 : vector<2x32xf32>
    %cst_891 = arith.constant 1.000000e+00 : f32
    %1044 = vector.broadcast %cst_891 : f32 to vector<2x32xf32>
    %1045 = arith.addf %1044, %1043 : vector<2x32xf32>
    %1046 = arith.divf %1044, %1045 : vector<2x32xf32>
    %cst_892 = arith.constant dense<0.000000e+00> : vector<2x32xf32>
    %1047 = tpu.matmul %1006, %1012, %cst_892 {dimension_numbers = #tpu.dot_dimension_numbers<[1], [0], [0], [1], [0, 0, 1, 1], [], []>} : vector<2x8xf32>, vector<8x32xf32>, vector<2x32xf32> -> vector<2x32xf32>
    %1048 = vector.broadcast %1024 : vector<1x32xf32> to vector<2x32xf32>
    %1049 = arith.addf %1047, %1048 : vector<2x32xf32>
    %cst_893 = arith.constant dense<0.000000e+00> : vector<2x32xf32>
    %1050 = tpu.matmul %893, %1018, %cst_893 {dimension_numbers = #tpu.dot_dimension_numbers<[1], [0], [0], [1], [0, 0, 1, 1], [], []>} : vector<2x32xf32>, vector<32x32xf32>, vector<2x32xf32> -> vector<2x32xf32>
    %1051 = vector.broadcast %1026 : vector<1x32xf32> to vector<2x32xf32>
    %1052 = arith.addf %1050, %1051 : vector<2x32xf32>
    %1053 = arith.mulf %1036, %1052 : vector<2x32xf32>
    %1054 = arith.addf %1049, %1053 : vector<2x32xf32>
    %1055 = math.tanh %1054 : vector<2x32xf32>
    %cst_894 = arith.constant 1.000000e+00 : f32
    %1056 = vector.broadcast %cst_894 : f32 to vector<2x32xf32>
    %1057 = arith.subf %1056, %1046 : vector<2x32xf32>
    %1058 = arith.mulf %1057, %1055 : vector<2x32xf32>
    %1059 = arith.mulf %1046, %893 : vector<2x32xf32>
    %1060 = arith.addf %1058, %1059 : vector<2x32xf32>
    %c0_895 = arith.constant 0 : index
    %c0_896 = arith.constant 0 : index
    %c0_897 = arith.constant 0 : index
    %c0_898 = arith.constant 0 : index
    %1061 = vector.load %arg5[%c0_895, %c0_896, %c0_897, %c0_898] : memref<2x3x32x32xf32, #tpu.memory_space<vmem>>, vector<1x1x32x32xf32>
    %1062 = vector.shape_cast %1061 : vector<1x1x32x32xf32> to vector<32x32xf32>
    %c0_899 = arith.constant 0 : index
    %c1_900 = arith.constant 1 : index
    %c0_901 = arith.constant 0 : index
    %c0_902 = arith.constant 0 : index
    %1063 = vector.load %arg5[%c0_899, %c1_900, %c0_901, %c0_902] : memref<2x3x32x32xf32, #tpu.memory_space<vmem>>, vector<1x1x32x32xf32>
    %1064 = vector.shape_cast %1063 : vector<1x1x32x32xf32> to vector<32x32xf32>
    %c0_903 = arith.constant 0 : index
    %c2_904 = arith.constant 2 : index
    %c0_905 = arith.constant 0 : index
    %c0_906 = arith.constant 0 : index
    %1065 = vector.load %arg5[%c0_903, %c2_904, %c0_905, %c0_906] : memref<2x3x32x32xf32, #tpu.memory_space<vmem>>, vector<1x1x32x32xf32>
    %1066 = vector.shape_cast %1065 : vector<1x1x32x32xf32> to vector<32x32xf32>
    %c0_907 = arith.constant 0 : index
    %c0_908 = arith.constant 0 : index
    %c0_909 = arith.constant 0 : index
    %c0_910 = arith.constant 0 : index
    %1067 = vector.load %arg6[%c0_907, %c0_908, %c0_909, %c0_910] : memref<2x3x32x32xf32, #tpu.memory_space<vmem>>, vector<1x1x32x32xf32>
    %1068 = vector.shape_cast %1067 : vector<1x1x32x32xf32> to vector<32x32xf32>
    %c0_911 = arith.constant 0 : index
    %c1_912 = arith.constant 1 : index
    %c0_913 = arith.constant 0 : index
    %c0_914 = arith.constant 0 : index
    %1069 = vector.load %arg6[%c0_911, %c1_912, %c0_913, %c0_914] : memref<2x3x32x32xf32, #tpu.memory_space<vmem>>, vector<1x1x32x32xf32>
    %1070 = vector.shape_cast %1069 : vector<1x1x32x32xf32> to vector<32x32xf32>
    %c0_915 = arith.constant 0 : index
    %c2_916 = arith.constant 2 : index
    %c0_917 = arith.constant 0 : index
    %c0_918 = arith.constant 0 : index
    %1071 = vector.load %arg6[%c0_915, %c2_916, %c0_917, %c0_918] : memref<2x3x32x32xf32, #tpu.memory_space<vmem>>, vector<1x1x32x32xf32>
    %1072 = vector.shape_cast %1071 : vector<1x1x32x32xf32> to vector<32x32xf32>
    %c0_919 = arith.constant 0 : index
    %c0_920 = arith.constant 0 : index
    %c0_921 = arith.constant 0 : index
    %c0_922 = arith.constant 0 : index
    %1073 = vector.load %arg7[%c0_919, %c0_920, %c0_921, %c0_922] : memref<2x4x1x32xf32, #tpu.memory_space<vmem>>, vector<1x1x1x32xf32>
    %1074 = vector.shape_cast %1073 : vector<1x1x1x32xf32> to vector<1x32xf32>
    %c0_923 = arith.constant 0 : index
    %c1_924 = arith.constant 1 : index
    %c0_925 = arith.constant 0 : index
    %c0_926 = arith.constant 0 : index
    %1075 = vector.load %arg7[%c0_923, %c1_924, %c0_925, %c0_926] : memref<2x4x1x32xf32, #tpu.memory_space<vmem>>, vector<1x1x1x32xf32>
    %1076 = vector.shape_cast %1075 : vector<1x1x1x32xf32> to vector<1x32xf32>
    %c0_927 = arith.constant 0 : index
    %c2_928 = arith.constant 2 : index
    %c0_929 = arith.constant 0 : index
    %c0_930 = arith.constant 0 : index
    %1077 = vector.load %arg7[%c0_927, %c2_928, %c0_929, %c0_930] : memref<2x4x1x32xf32, #tpu.memory_space<vmem>>, vector<1x1x1x32xf32>
    %1078 = vector.shape_cast %1077 : vector<1x1x1x32xf32> to vector<1x32xf32>
    %c0_931 = arith.constant 0 : index
    %c3_932 = arith.constant 3 : index
    %c0_933 = arith.constant 0 : index
    %c0_934 = arith.constant 0 : index
    %1079 = vector.load %arg7[%c0_931, %c3_932, %c0_933, %c0_934] : memref<2x4x1x32xf32, #tpu.memory_space<vmem>>, vector<1x1x1x32xf32>
    %1080 = vector.shape_cast %1079 : vector<1x1x1x32xf32> to vector<1x32xf32>
    %cst_935 = arith.constant dense<0.000000e+00> : vector<2x32xf32>
    %1081 = tpu.matmul %1060, %1062, %cst_935 {dimension_numbers = #tpu.dot_dimension_numbers<[1], [0], [0], [1], [0, 0, 1, 1], [], []>} : vector<2x32xf32>, vector<32x32xf32>, vector<2x32xf32> -> vector<2x32xf32>
    %cst_936 = arith.constant dense<0.000000e+00> : vector<2x32xf32>
    %1082 = tpu.matmul %947, %1068, %cst_936 {dimension_numbers = #tpu.dot_dimension_numbers<[1], [0], [0], [1], [0, 0, 1, 1], [], []>} : vector<2x32xf32>, vector<32x32xf32>, vector<2x32xf32> -> vector<2x32xf32>
    %1083 = arith.addf %1081, %1082 : vector<2x32xf32>
    %1084 = vector.broadcast %1074 : vector<1x32xf32> to vector<2x32xf32>
    %1085 = arith.addf %1083, %1084 : vector<2x32xf32>
    %1086 = arith.negf %1085 : vector<2x32xf32>
    %1087 = math.exp %1086 : vector<2x32xf32>
    %cst_937 = arith.constant 1.000000e+00 : f32
    %1088 = vector.broadcast %cst_937 : f32 to vector<2x32xf32>
    %1089 = arith.addf %1088, %1087 : vector<2x32xf32>
    %1090 = arith.divf %1088, %1089 : vector<2x32xf32>
    %cst_938 = arith.constant dense<0.000000e+00> : vector<2x32xf32>
    %1091 = tpu.matmul %1060, %1064, %cst_938 {dimension_numbers = #tpu.dot_dimension_numbers<[1], [0], [0], [1], [0, 0, 1, 1], [], []>} : vector<2x32xf32>, vector<32x32xf32>, vector<2x32xf32> -> vector<2x32xf32>
    %cst_939 = arith.constant dense<0.000000e+00> : vector<2x32xf32>
    %1092 = tpu.matmul %947, %1070, %cst_939 {dimension_numbers = #tpu.dot_dimension_numbers<[1], [0], [0], [1], [0, 0, 1, 1], [], []>} : vector<2x32xf32>, vector<32x32xf32>, vector<2x32xf32> -> vector<2x32xf32>
    %1093 = arith.addf %1091, %1092 : vector<2x32xf32>
    %1094 = vector.broadcast %1076 : vector<1x32xf32> to vector<2x32xf32>
    %1095 = arith.addf %1093, %1094 : vector<2x32xf32>
    %1096 = arith.negf %1095 : vector<2x32xf32>
    %1097 = math.exp %1096 : vector<2x32xf32>
    %cst_940 = arith.constant 1.000000e+00 : f32
    %1098 = vector.broadcast %cst_940 : f32 to vector<2x32xf32>
    %1099 = arith.addf %1098, %1097 : vector<2x32xf32>
    %1100 = arith.divf %1098, %1099 : vector<2x32xf32>
    %cst_941 = arith.constant dense<0.000000e+00> : vector<2x32xf32>
    %1101 = tpu.matmul %1060, %1066, %cst_941 {dimension_numbers = #tpu.dot_dimension_numbers<[1], [0], [0], [1], [0, 0, 1, 1], [], []>} : vector<2x32xf32>, vector<32x32xf32>, vector<2x32xf32> -> vector<2x32xf32>
    %1102 = vector.broadcast %1078 : vector<1x32xf32> to vector<2x32xf32>
    %1103 = arith.addf %1101, %1102 : vector<2x32xf32>
    %cst_942 = arith.constant dense<0.000000e+00> : vector<2x32xf32>
    %1104 = tpu.matmul %947, %1072, %cst_942 {dimension_numbers = #tpu.dot_dimension_numbers<[1], [0], [0], [1], [0, 0, 1, 1], [], []>} : vector<2x32xf32>, vector<32x32xf32>, vector<2x32xf32> -> vector<2x32xf32>
    %1105 = vector.broadcast %1080 : vector<1x32xf32> to vector<2x32xf32>
    %1106 = arith.addf %1104, %1105 : vector<2x32xf32>
    %1107 = arith.mulf %1090, %1106 : vector<2x32xf32>
    %1108 = arith.addf %1103, %1107 : vector<2x32xf32>
    %1109 = math.tanh %1108 : vector<2x32xf32>
    %cst_943 = arith.constant 1.000000e+00 : f32
    %1110 = vector.broadcast %cst_943 : f32 to vector<2x32xf32>
    %1111 = arith.subf %1110, %1100 : vector<2x32xf32>
    %1112 = arith.mulf %1111, %1109 : vector<2x32xf32>
    %1113 = arith.mulf %1100, %947 : vector<2x32xf32>
    %1114 = arith.addf %1112, %1113 : vector<2x32xf32>
    %c1_944 = arith.constant 1 : index
    %c0_945 = arith.constant 0 : index
    %c0_946 = arith.constant 0 : index
    %c0_947 = arith.constant 0 : index
    %1115 = vector.load %arg5[%c1_944, %c0_945, %c0_946, %c0_947] : memref<2x3x32x32xf32, #tpu.memory_space<vmem>>, vector<1x1x32x32xf32>
    %1116 = vector.shape_cast %1115 : vector<1x1x32x32xf32> to vector<32x32xf32>
    %c1_948 = arith.constant 1 : index
    %c1_949 = arith.constant 1 : index
    %c0_950 = arith.constant 0 : index
    %c0_951 = arith.constant 0 : index
    %1117 = vector.load %arg5[%c1_948, %c1_949, %c0_950, %c0_951] : memref<2x3x32x32xf32, #tpu.memory_space<vmem>>, vector<1x1x32x32xf32>
    %1118 = vector.shape_cast %1117 : vector<1x1x32x32xf32> to vector<32x32xf32>
    %c1_952 = arith.constant 1 : index
    %c2_953 = arith.constant 2 : index
    %c0_954 = arith.constant 0 : index
    %c0_955 = arith.constant 0 : index
    %1119 = vector.load %arg5[%c1_952, %c2_953, %c0_954, %c0_955] : memref<2x3x32x32xf32, #tpu.memory_space<vmem>>, vector<1x1x32x32xf32>
    %1120 = vector.shape_cast %1119 : vector<1x1x32x32xf32> to vector<32x32xf32>
    %c1_956 = arith.constant 1 : index
    %c0_957 = arith.constant 0 : index
    %c0_958 = arith.constant 0 : index
    %c0_959 = arith.constant 0 : index
    %1121 = vector.load %arg6[%c1_956, %c0_957, %c0_958, %c0_959] : memref<2x3x32x32xf32, #tpu.memory_space<vmem>>, vector<1x1x32x32xf32>
    %1122 = vector.shape_cast %1121 : vector<1x1x32x32xf32> to vector<32x32xf32>
    %c1_960 = arith.constant 1 : index
    %c1_961 = arith.constant 1 : index
    %c0_962 = arith.constant 0 : index
    %c0_963 = arith.constant 0 : index
    %1123 = vector.load %arg6[%c1_960, %c1_961, %c0_962, %c0_963] : memref<2x3x32x32xf32, #tpu.memory_space<vmem>>, vector<1x1x32x32xf32>
    %1124 = vector.shape_cast %1123 : vector<1x1x32x32xf32> to vector<32x32xf32>
    %c1_964 = arith.constant 1 : index
    %c2_965 = arith.constant 2 : index
    %c0_966 = arith.constant 0 : index
    %c0_967 = arith.constant 0 : index
    %1125 = vector.load %arg6[%c1_964, %c2_965, %c0_966, %c0_967] : memref<2x3x32x32xf32, #tpu.memory_space<vmem>>, vector<1x1x32x32xf32>
    %1126 = vector.shape_cast %1125 : vector<1x1x32x32xf32> to vector<32x32xf32>
    %c1_968 = arith.constant 1 : index
    %c0_969 = arith.constant 0 : index
    %c0_970 = arith.constant 0 : index
    %c0_971 = arith.constant 0 : index
    %1127 = vector.load %arg7[%c1_968, %c0_969, %c0_970, %c0_971] : memref<2x4x1x32xf32, #tpu.memory_space<vmem>>, vector<1x1x1x32xf32>
    %1128 = vector.shape_cast %1127 : vector<1x1x1x32xf32> to vector<1x32xf32>
    %c1_972 = arith.constant 1 : index
    %c1_973 = arith.constant 1 : index
    %c0_974 = arith.constant 0 : index
    %c0_975 = arith.constant 0 : index
    %1129 = vector.load %arg7[%c1_972, %c1_973, %c0_974, %c0_975] : memref<2x4x1x32xf32, #tpu.memory_space<vmem>>, vector<1x1x1x32xf32>
    %1130 = vector.shape_cast %1129 : vector<1x1x1x32xf32> to vector<1x32xf32>
    %c1_976 = arith.constant 1 : index
    %c2_977 = arith.constant 2 : index
    %c0_978 = arith.constant 0 : index
    %c0_979 = arith.constant 0 : index
    %1131 = vector.load %arg7[%c1_976, %c2_977, %c0_978, %c0_979] : memref<2x4x1x32xf32, #tpu.memory_space<vmem>>, vector<1x1x1x32xf32>
    %1132 = vector.shape_cast %1131 : vector<1x1x1x32xf32> to vector<1x32xf32>
    %c1_980 = arith.constant 1 : index
    %c3_981 = arith.constant 3 : index
    %c0_982 = arith.constant 0 : index
    %c0_983 = arith.constant 0 : index
    %1133 = vector.load %arg7[%c1_980, %c3_981, %c0_982, %c0_983] : memref<2x4x1x32xf32, #tpu.memory_space<vmem>>, vector<1x1x1x32xf32>
    %1134 = vector.shape_cast %1133 : vector<1x1x1x32xf32> to vector<1x32xf32>
    %cst_984 = arith.constant dense<0.000000e+00> : vector<2x32xf32>
    %1135 = tpu.matmul %1114, %1116, %cst_984 {dimension_numbers = #tpu.dot_dimension_numbers<[1], [0], [0], [1], [0, 0, 1, 1], [], []>} : vector<2x32xf32>, vector<32x32xf32>, vector<2x32xf32> -> vector<2x32xf32>
    %cst_985 = arith.constant dense<0.000000e+00> : vector<2x32xf32>
    %1136 = tpu.matmul %1001, %1122, %cst_985 {dimension_numbers = #tpu.dot_dimension_numbers<[1], [0], [0], [1], [0, 0, 1, 1], [], []>} : vector<2x32xf32>, vector<32x32xf32>, vector<2x32xf32> -> vector<2x32xf32>
    %1137 = arith.addf %1135, %1136 : vector<2x32xf32>
    %1138 = vector.broadcast %1128 : vector<1x32xf32> to vector<2x32xf32>
    %1139 = arith.addf %1137, %1138 : vector<2x32xf32>
    %1140 = arith.negf %1139 : vector<2x32xf32>
    %1141 = math.exp %1140 : vector<2x32xf32>
    %cst_986 = arith.constant 1.000000e+00 : f32
    %1142 = vector.broadcast %cst_986 : f32 to vector<2x32xf32>
    %1143 = arith.addf %1142, %1141 : vector<2x32xf32>
    %1144 = arith.divf %1142, %1143 : vector<2x32xf32>
    %cst_987 = arith.constant dense<0.000000e+00> : vector<2x32xf32>
    %1145 = tpu.matmul %1114, %1118, %cst_987 {dimension_numbers = #tpu.dot_dimension_numbers<[1], [0], [0], [1], [0, 0, 1, 1], [], []>} : vector<2x32xf32>, vector<32x32xf32>, vector<2x32xf32> -> vector<2x32xf32>
    %cst_988 = arith.constant dense<0.000000e+00> : vector<2x32xf32>
    %1146 = tpu.matmul %1001, %1124, %cst_988 {dimension_numbers = #tpu.dot_dimension_numbers<[1], [0], [0], [1], [0, 0, 1, 1], [], []>} : vector<2x32xf32>, vector<32x32xf32>, vector<2x32xf32> -> vector<2x32xf32>
    %1147 = arith.addf %1145, %1146 : vector<2x32xf32>
    %1148 = vector.broadcast %1130 : vector<1x32xf32> to vector<2x32xf32>
    %1149 = arith.addf %1147, %1148 : vector<2x32xf32>
    %1150 = arith.negf %1149 : vector<2x32xf32>
    %1151 = math.exp %1150 : vector<2x32xf32>
    %cst_989 = arith.constant 1.000000e+00 : f32
    %1152 = vector.broadcast %cst_989 : f32 to vector<2x32xf32>
    %1153 = arith.addf %1152, %1151 : vector<2x32xf32>
    %1154 = arith.divf %1152, %1153 : vector<2x32xf32>
    %cst_990 = arith.constant dense<0.000000e+00> : vector<2x32xf32>
    %1155 = tpu.matmul %1114, %1120, %cst_990 {dimension_numbers = #tpu.dot_dimension_numbers<[1], [0], [0], [1], [0, 0, 1, 1], [], []>} : vector<2x32xf32>, vector<32x32xf32>, vector<2x32xf32> -> vector<2x32xf32>
    %1156 = vector.broadcast %1132 : vector<1x32xf32> to vector<2x32xf32>
    %1157 = arith.addf %1155, %1156 : vector<2x32xf32>
    %cst_991 = arith.constant dense<0.000000e+00> : vector<2x32xf32>
    %1158 = tpu.matmul %1001, %1126, %cst_991 {dimension_numbers = #tpu.dot_dimension_numbers<[1], [0], [0], [1], [0, 0, 1, 1], [], []>} : vector<2x32xf32>, vector<32x32xf32>, vector<2x32xf32> -> vector<2x32xf32>
    %1159 = vector.broadcast %1134 : vector<1x32xf32> to vector<2x32xf32>
    %1160 = arith.addf %1158, %1159 : vector<2x32xf32>
    %1161 = arith.mulf %1144, %1160 : vector<2x32xf32>
    %1162 = arith.addf %1157, %1161 : vector<2x32xf32>
    %1163 = math.tanh %1162 : vector<2x32xf32>
    %cst_992 = arith.constant 1.000000e+00 : f32
    %1164 = vector.broadcast %cst_992 : f32 to vector<2x32xf32>
    %1165 = arith.subf %1164, %1154 : vector<2x32xf32>
    %1166 = arith.mulf %1165, %1163 : vector<2x32xf32>
    %1167 = arith.mulf %1154, %1001 : vector<2x32xf32>
    %1168 = arith.addf %1166, %1167 : vector<2x32xf32>
    %c6_993 = arith.constant 6 : index
    %c0_994 = arith.constant 0 : index
    %c0_995 = arith.constant 0 : index
    %1169 = vector.load %arg8[%c6_993, %c0_994, %c0_995] : memref<8x2x32xf32, #tpu.memory_space<vmem>>, vector<1x2x32xf32>
    %1170 = vector.shape_cast %1169 : vector<1x2x32xf32> to vector<2x32xf32>
    %1171 = vector.shape_cast %1168 : vector<2x32xf32> to vector<1x2x32xf32>
    tpu.vector_store %arg8[%c6_993, %c0_994, %c0_995], %1171 {strides = array<i32>} : memref<8x2x32xf32, #tpu.memory_space<vmem>>, vector<1x2x32xf32>,
    %c7 = arith.constant 7 : index
    %c0_996 = arith.constant 0 : index
    %c0_997 = arith.constant 0 : index
    %1172 = vector.load %arg1[%c7, %c0_996, %c0_997] : memref<8x2x8xf32, #tpu.memory_space<vmem>>, vector<1x2x8xf32>
    %1173 = vector.shape_cast %1172 : vector<1x2x8xf32> to vector<2x8xf32>
    %c0_998 = arith.constant 0 : index
    %c0_999 = arith.constant 0 : index
    %c0_1000 = arith.constant 0 : index
    %1174 = vector.load %arg2[%c0_998, %c0_999, %c0_1000] : memref<3x8x32xf32, #tpu.memory_space<vmem>>, vector<1x8x32xf32>
    %1175 = vector.shape_cast %1174 : vector<1x8x32xf32> to vector<8x32xf32>
    %c1_1001 = arith.constant 1 : index
    %c0_1002 = arith.constant 0 : index
    %c0_1003 = arith.constant 0 : index
    %1176 = vector.load %arg2[%c1_1001, %c0_1002, %c0_1003] : memref<3x8x32xf32, #tpu.memory_space<vmem>>, vector<1x8x32xf32>
    %1177 = vector.shape_cast %1176 : vector<1x8x32xf32> to vector<8x32xf32>
    %c2_1004 = arith.constant 2 : index
    %c0_1005 = arith.constant 0 : index
    %c0_1006 = arith.constant 0 : index
    %1178 = vector.load %arg2[%c2_1004, %c0_1005, %c0_1006] : memref<3x8x32xf32, #tpu.memory_space<vmem>>, vector<1x8x32xf32>
    %1179 = vector.shape_cast %1178 : vector<1x8x32xf32> to vector<8x32xf32>
    %c0_1007 = arith.constant 0 : index
    %c0_1008 = arith.constant 0 : index
    %c0_1009 = arith.constant 0 : index
    %1180 = vector.load %arg3[%c0_1007, %c0_1008, %c0_1009] : memref<3x32x32xf32, #tpu.memory_space<vmem>>, vector<1x32x32xf32>
    %1181 = vector.shape_cast %1180 : vector<1x32x32xf32> to vector<32x32xf32>
    %c1_1010 = arith.constant 1 : index
    %c0_1011 = arith.constant 0 : index
    %c0_1012 = arith.constant 0 : index
    %1182 = vector.load %arg3[%c1_1010, %c0_1011, %c0_1012] : memref<3x32x32xf32, #tpu.memory_space<vmem>>, vector<1x32x32xf32>
    %1183 = vector.shape_cast %1182 : vector<1x32x32xf32> to vector<32x32xf32>
    %c2_1013 = arith.constant 2 : index
    %c0_1014 = arith.constant 0 : index
    %c0_1015 = arith.constant 0 : index
    %1184 = vector.load %arg3[%c2_1013, %c0_1014, %c0_1015] : memref<3x32x32xf32, #tpu.memory_space<vmem>>, vector<1x32x32xf32>
    %1185 = vector.shape_cast %1184 : vector<1x32x32xf32> to vector<32x32xf32>
    %c0_1016 = arith.constant 0 : index
    %c0_1017 = arith.constant 0 : index
    %c0_1018 = arith.constant 0 : index
    %1186 = vector.load %arg4[%c0_1016, %c0_1017, %c0_1018] : memref<4x1x32xf32, #tpu.memory_space<vmem>>, vector<1x1x32xf32>
    %1187 = vector.shape_cast %1186 : vector<1x1x32xf32> to vector<1x32xf32>
    %c1_1019 = arith.constant 1 : index
    %c0_1020 = arith.constant 0 : index
    %c0_1021 = arith.constant 0 : index
    %1188 = vector.load %arg4[%c1_1019, %c0_1020, %c0_1021] : memref<4x1x32xf32, #tpu.memory_space<vmem>>, vector<1x1x32xf32>
    %1189 = vector.shape_cast %1188 : vector<1x1x32xf32> to vector<1x32xf32>
    %c2_1022 = arith.constant 2 : index
    %c0_1023 = arith.constant 0 : index
    %c0_1024 = arith.constant 0 : index
    %1190 = vector.load %arg4[%c2_1022, %c0_1023, %c0_1024] : memref<4x1x32xf32, #tpu.memory_space<vmem>>, vector<1x1x32xf32>
    %1191 = vector.shape_cast %1190 : vector<1x1x32xf32> to vector<1x32xf32>
    %c3_1025 = arith.constant 3 : index
    %c0_1026 = arith.constant 0 : index
    %c0_1027 = arith.constant 0 : index
    %1192 = vector.load %arg4[%c3_1025, %c0_1026, %c0_1027] : memref<4x1x32xf32, #tpu.memory_space<vmem>>, vector<1x1x32xf32>
    %1193 = vector.shape_cast %1192 : vector<1x1x32xf32> to vector<1x32xf32>
    %cst_1028 = arith.constant dense<0.000000e+00> : vector<2x32xf32>
    %1194 = tpu.matmul %1173, %1175, %cst_1028 {dimension_numbers = #tpu.dot_dimension_numbers<[1], [0], [0], [1], [0, 0, 1, 1], [], []>} : vector<2x8xf32>, vector<8x32xf32>, vector<2x32xf32> -> vector<2x32xf32>
    %cst_1029 = arith.constant dense<0.000000e+00> : vector<2x32xf32>
    %1195 = tpu.matmul %1060, %1181, %cst_1029 {dimension_numbers = #tpu.dot_dimension_numbers<[1], [0], [0], [1], [0, 0, 1, 1], [], []>} : vector<2x32xf32>, vector<32x32xf32>, vector<2x32xf32> -> vector<2x32xf32>
    %1196 = arith.addf %1194, %1195 : vector<2x32xf32>
    %1197 = vector.broadcast %1187 : vector<1x32xf32> to vector<2x32xf32>
    %1198 = arith.addf %1196, %1197 : vector<2x32xf32>
    %1199 = arith.negf %1198 : vector<2x32xf32>
    %1200 = math.exp %1199 : vector<2x32xf32>
    %cst_1030 = arith.constant 1.000000e+00 : f32
    %1201 = vector.broadcast %cst_1030 : f32 to vector<2x32xf32>
    %1202 = arith.addf %1201, %1200 : vector<2x32xf32>
    %1203 = arith.divf %1201, %1202 : vector<2x32xf32>
    %cst_1031 = arith.constant dense<0.000000e+00> : vector<2x32xf32>
    %1204 = tpu.matmul %1173, %1177, %cst_1031 {dimension_numbers = #tpu.dot_dimension_numbers<[1], [0], [0], [1], [0, 0, 1, 1], [], []>} : vector<2x8xf32>, vector<8x32xf32>, vector<2x32xf32> -> vector<2x32xf32>
    %cst_1032 = arith.constant dense<0.000000e+00> : vector<2x32xf32>
    %1205 = tpu.matmul %1060, %1183, %cst_1032 {dimension_numbers = #tpu.dot_dimension_numbers<[1], [0], [0], [1], [0, 0, 1, 1], [], []>} : vector<2x32xf32>, vector<32x32xf32>, vector<2x32xf32> -> vector<2x32xf32>
    %1206 = arith.addf %1204, %1205 : vector<2x32xf32>
    %1207 = vector.broadcast %1189 : vector<1x32xf32> to vector<2x32xf32>
    %1208 = arith.addf %1206, %1207 : vector<2x32xf32>
    %1209 = arith.negf %1208 : vector<2x32xf32>
    %1210 = math.exp %1209 : vector<2x32xf32>
    %cst_1033 = arith.constant 1.000000e+00 : f32
    %1211 = vector.broadcast %cst_1033 : f32 to vector<2x32xf32>
    %1212 = arith.addf %1211, %1210 : vector<2x32xf32>
    %1213 = arith.divf %1211, %1212 : vector<2x32xf32>
    %cst_1034 = arith.constant dense<0.000000e+00> : vector<2x32xf32>
    %1214 = tpu.matmul %1173, %1179, %cst_1034 {dimension_numbers = #tpu.dot_dimension_numbers<[1], [0], [0], [1], [0, 0, 1, 1], [], []>} : vector<2x8xf32>, vector<8x32xf32>, vector<2x32xf32> -> vector<2x32xf32>
    %1215 = vector.broadcast %1191 : vector<1x32xf32> to vector<2x32xf32>
    %1216 = arith.addf %1214, %1215 : vector<2x32xf32>
    %cst_1035 = arith.constant dense<0.000000e+00> : vector<2x32xf32>
    %1217 = tpu.matmul %1060, %1185, %cst_1035 {dimension_numbers = #tpu.dot_dimension_numbers<[1], [0], [0], [1], [0, 0, 1, 1], [], []>} : vector<2x32xf32>, vector<32x32xf32>, vector<2x32xf32> -> vector<2x32xf32>
    %1218 = vector.broadcast %1193 : vector<1x32xf32> to vector<2x32xf32>
    %1219 = arith.addf %1217, %1218 : vector<2x32xf32>
    %1220 = arith.mulf %1203, %1219 : vector<2x32xf32>
    %1221 = arith.addf %1216, %1220 : vector<2x32xf32>
    %1222 = math.tanh %1221 : vector<2x32xf32>
    %cst_1036 = arith.constant 1.000000e+00 : f32
    %1223 = vector.broadcast %cst_1036 : f32 to vector<2x32xf32>
    %1224 = arith.subf %1223, %1213 : vector<2x32xf32>
    %1225 = arith.mulf %1224, %1222 : vector<2x32xf32>
    %1226 = arith.mulf %1213, %1060 : vector<2x32xf32>
    %1227 = arith.addf %1225, %1226 : vector<2x32xf32>
    %c0_1037 = arith.constant 0 : index
    %c0_1038 = arith.constant 0 : index
    %c0_1039 = arith.constant 0 : index
    %c0_1040 = arith.constant 0 : index
    %1228 = vector.load %arg5[%c0_1037, %c0_1038, %c0_1039, %c0_1040] : memref<2x3x32x32xf32, #tpu.memory_space<vmem>>, vector<1x1x32x32xf32>
    %1229 = vector.shape_cast %1228 : vector<1x1x32x32xf32> to vector<32x32xf32>
    %c0_1041 = arith.constant 0 : index
    %c1_1042 = arith.constant 1 : index
    %c0_1043 = arith.constant 0 : index
    %c0_1044 = arith.constant 0 : index
    %1230 = vector.load %arg5[%c0_1041, %c1_1042, %c0_1043, %c0_1044] : memref<2x3x32x32xf32, #tpu.memory_space<vmem>>, vector<1x1x32x32xf32>
    %1231 = vector.shape_cast %1230 : vector<1x1x32x32xf32> to vector<32x32xf32>
    %c0_1045 = arith.constant 0 : index
    %c2_1046 = arith.constant 2 : index
    %c0_1047 = arith.constant 0 : index
    %c0_1048 = arith.constant 0 : index
    %1232 = vector.load %arg5[%c0_1045, %c2_1046, %c0_1047, %c0_1048] : memref<2x3x32x32xf32, #tpu.memory_space<vmem>>, vector<1x1x32x32xf32>
    %1233 = vector.shape_cast %1232 : vector<1x1x32x32xf32> to vector<32x32xf32>
    %c0_1049 = arith.constant 0 : index
    %c0_1050 = arith.constant 0 : index
    %c0_1051 = arith.constant 0 : index
    %c0_1052 = arith.constant 0 : index
    %1234 = vector.load %arg6[%c0_1049, %c0_1050, %c0_1051, %c0_1052] : memref<2x3x32x32xf32, #tpu.memory_space<vmem>>, vector<1x1x32x32xf32>
    %1235 = vector.shape_cast %1234 : vector<1x1x32x32xf32> to vector<32x32xf32>
    %c0_1053 = arith.constant 0 : index
    %c1_1054 = arith.constant 1 : index
    %c0_1055 = arith.constant 0 : index
    %c0_1056 = arith.constant 0 : index
    %1236 = vector.load %arg6[%c0_1053, %c1_1054, %c0_1055, %c0_1056] : memref<2x3x32x32xf32, #tpu.memory_space<vmem>>, vector<1x1x32x32xf32>
    %1237 = vector.shape_cast %1236 : vector<1x1x32x32xf32> to vector<32x32xf32>
    %c0_1057 = arith.constant 0 : index
    %c2_1058 = arith.constant 2 : index
    %c0_1059 = arith.constant 0 : index
    %c0_1060 = arith.constant 0 : index
    %1238 = vector.load %arg6[%c0_1057, %c2_1058, %c0_1059, %c0_1060] : memref<2x3x32x32xf32, #tpu.memory_space<vmem>>, vector<1x1x32x32xf32>
    %1239 = vector.shape_cast %1238 : vector<1x1x32x32xf32> to vector<32x32xf32>
    %c0_1061 = arith.constant 0 : index
    %c0_1062 = arith.constant 0 : index
    %c0_1063 = arith.constant 0 : index
    %c0_1064 = arith.constant 0 : index
    %1240 = vector.load %arg7[%c0_1061, %c0_1062, %c0_1063, %c0_1064] : memref<2x4x1x32xf32, #tpu.memory_space<vmem>>, vector<1x1x1x32xf32>
    %1241 = vector.shape_cast %1240 : vector<1x1x1x32xf32> to vector<1x32xf32>
    %c0_1065 = arith.constant 0 : index
    %c1_1066 = arith.constant 1 : index
    %c0_1067 = arith.constant 0 : index
    %c0_1068 = arith.constant 0 : index
    %1242 = vector.load %arg7[%c0_1065, %c1_1066, %c0_1067, %c0_1068] : memref<2x4x1x32xf32, #tpu.memory_space<vmem>>, vector<1x1x1x32xf32>
    %1243 = vector.shape_cast %1242 : vector<1x1x1x32xf32> to vector<1x32xf32>
    %c0_1069 = arith.constant 0 : index
    %c2_1070 = arith.constant 2 : index
    %c0_1071 = arith.constant 0 : index
    %c0_1072 = arith.constant 0 : index
    %1244 = vector.load %arg7[%c0_1069, %c2_1070, %c0_1071, %c0_1072] : memref<2x4x1x32xf32, #tpu.memory_space<vmem>>, vector<1x1x1x32xf32>
    %1245 = vector.shape_cast %1244 : vector<1x1x1x32xf32> to vector<1x32xf32>
    %c0_1073 = arith.constant 0 : index
    %c3_1074 = arith.constant 3 : index
    %c0_1075 = arith.constant 0 : index
    %c0_1076 = arith.constant 0 : index
    %1246 = vector.load %arg7[%c0_1073, %c3_1074, %c0_1075, %c0_1076] : memref<2x4x1x32xf32, #tpu.memory_space<vmem>>, vector<1x1x1x32xf32>
    %1247 = vector.shape_cast %1246 : vector<1x1x1x32xf32> to vector<1x32xf32>
    %cst_1077 = arith.constant dense<0.000000e+00> : vector<2x32xf32>
    %1248 = tpu.matmul %1227, %1229, %cst_1077 {dimension_numbers = #tpu.dot_dimension_numbers<[1], [0], [0], [1], [0, 0, 1, 1], [], []>} : vector<2x32xf32>, vector<32x32xf32>, vector<2x32xf32> -> vector<2x32xf32>
    %cst_1078 = arith.constant dense<0.000000e+00> : vector<2x32xf32>
    %1249 = tpu.matmul %1114, %1235, %cst_1078 {dimension_numbers = #tpu.dot_dimension_numbers<[1], [0], [0], [1], [0, 0, 1, 1], [], []>} : vector<2x32xf32>, vector<32x32xf32>, vector<2x32xf32> -> vector<2x32xf32>
    %1250 = arith.addf %1248, %1249 : vector<2x32xf32>
    %1251 = vector.broadcast %1241 : vector<1x32xf32> to vector<2x32xf32>
    %1252 = arith.addf %1250, %1251 : vector<2x32xf32>
    %1253 = arith.negf %1252 : vector<2x32xf32>
    %1254 = math.exp %1253 : vector<2x32xf32>
    %cst_1079 = arith.constant 1.000000e+00 : f32
    %1255 = vector.broadcast %cst_1079 : f32 to vector<2x32xf32>
    %1256 = arith.addf %1255, %1254 : vector<2x32xf32>
    %1257 = arith.divf %1255, %1256 : vector<2x32xf32>
    %cst_1080 = arith.constant dense<0.000000e+00> : vector<2x32xf32>
    %1258 = tpu.matmul %1227, %1231, %cst_1080 {dimension_numbers = #tpu.dot_dimension_numbers<[1], [0], [0], [1], [0, 0, 1, 1], [], []>} : vector<2x32xf32>, vector<32x32xf32>, vector<2x32xf32> -> vector<2x32xf32>
    %cst_1081 = arith.constant dense<0.000000e+00> : vector<2x32xf32>
    %1259 = tpu.matmul %1114, %1237, %cst_1081 {dimension_numbers = #tpu.dot_dimension_numbers<[1], [0], [0], [1], [0, 0, 1, 1], [], []>} : vector<2x32xf32>, vector<32x32xf32>, vector<2x32xf32> -> vector<2x32xf32>
    %1260 = arith.addf %1258, %1259 : vector<2x32xf32>
    %1261 = vector.broadcast %1243 : vector<1x32xf32> to vector<2x32xf32>
    %1262 = arith.addf %1260, %1261 : vector<2x32xf32>
    %1263 = arith.negf %1262 : vector<2x32xf32>
    %1264 = math.exp %1263 : vector<2x32xf32>
    %cst_1082 = arith.constant 1.000000e+00 : f32
    %1265 = vector.broadcast %cst_1082 : f32 to vector<2x32xf32>
    %1266 = arith.addf %1265, %1264 : vector<2x32xf32>
    %1267 = arith.divf %1265, %1266 : vector<2x32xf32>
    %cst_1083 = arith.constant dense<0.000000e+00> : vector<2x32xf32>
    %1268 = tpu.matmul %1227, %1233, %cst_1083 {dimension_numbers = #tpu.dot_dimension_numbers<[1], [0], [0], [1], [0, 0, 1, 1], [], []>} : vector<2x32xf32>, vector<32x32xf32>, vector<2x32xf32> -> vector<2x32xf32>
    %1269 = vector.broadcast %1245 : vector<1x32xf32> to vector<2x32xf32>
    %1270 = arith.addf %1268, %1269 : vector<2x32xf32>
    %cst_1084 = arith.constant dense<0.000000e+00> : vector<2x32xf32>
    %1271 = tpu.matmul %1114, %1239, %cst_1084 {dimension_numbers = #tpu.dot_dimension_numbers<[1], [0], [0], [1], [0, 0, 1, 1], [], []>} : vector<2x32xf32>, vector<32x32xf32>, vector<2x32xf32> -> vector<2x32xf32>
    %1272 = vector.broadcast %1247 : vector<1x32xf32> to vector<2x32xf32>
    %1273 = arith.addf %1271, %1272 : vector<2x32xf32>
    %1274 = arith.mulf %1257, %1273 : vector<2x32xf32>
    %1275 = arith.addf %1270, %1274 : vector<2x32xf32>
    %1276 = math.tanh %1275 : vector<2x32xf32>
    %cst_1085 = arith.constant 1.000000e+00 : f32
    %1277 = vector.broadcast %cst_1085 : f32 to vector<2x32xf32>
    %1278 = arith.subf %1277, %1267 : vector<2x32xf32>
    %1279 = arith.mulf %1278, %1276 : vector<2x32xf32>
    %1280 = arith.mulf %1267, %1114 : vector<2x32xf32>
    %1281 = arith.addf %1279, %1280 : vector<2x32xf32>
    %c1_1086 = arith.constant 1 : index
    %c0_1087 = arith.constant 0 : index
    %c0_1088 = arith.constant 0 : index
    %c0_1089 = arith.constant 0 : index
    %1282 = vector.load %arg5[%c1_1086, %c0_1087, %c0_1088, %c0_1089] : memref<2x3x32x32xf32, #tpu.memory_space<vmem>>, vector<1x1x32x32xf32>
    %1283 = vector.shape_cast %1282 : vector<1x1x32x32xf32> to vector<32x32xf32>
    %c1_1090 = arith.constant 1 : index
    %c1_1091 = arith.constant 1 : index
    %c0_1092 = arith.constant 0 : index
    %c0_1093 = arith.constant 0 : index
    %1284 = vector.load %arg5[%c1_1090, %c1_1091, %c0_1092, %c0_1093] : memref<2x3x32x32xf32, #tpu.memory_space<vmem>>, vector<1x1x32x32xf32>
    %1285 = vector.shape_cast %1284 : vector<1x1x32x32xf32> to vector<32x32xf32>
    %c1_1094 = arith.constant 1 : index
    %c2_1095 = arith.constant 2 : index
    %c0_1096 = arith.constant 0 : index
    %c0_1097 = arith.constant 0 : index
    %1286 = vector.load %arg5[%c1_1094, %c2_1095, %c0_1096, %c0_1097] : memref<2x3x32x32xf32, #tpu.memory_space<vmem>>, vector<1x1x32x32xf32>
    %1287 = vector.shape_cast %1286 : vector<1x1x32x32xf32> to vector<32x32xf32>
    %c1_1098 = arith.constant 1 : index
    %c0_1099 = arith.constant 0 : index
    %c0_1100 = arith.constant 0 : index
    %c0_1101 = arith.constant 0 : index
    %1288 = vector.load %arg6[%c1_1098, %c0_1099, %c0_1100, %c0_1101] : memref<2x3x32x32xf32, #tpu.memory_space<vmem>>, vector<1x1x32x32xf32>
    %1289 = vector.shape_cast %1288 : vector<1x1x32x32xf32> to vector<32x32xf32>
    %c1_1102 = arith.constant 1 : index
    %c1_1103 = arith.constant 1 : index
    %c0_1104 = arith.constant 0 : index
    %c0_1105 = arith.constant 0 : index
    %1290 = vector.load %arg6[%c1_1102, %c1_1103, %c0_1104, %c0_1105] : memref<2x3x32x32xf32, #tpu.memory_space<vmem>>, vector<1x1x32x32xf32>
    %1291 = vector.shape_cast %1290 : vector<1x1x32x32xf32> to vector<32x32xf32>
    %c1_1106 = arith.constant 1 : index
    %c2_1107 = arith.constant 2 : index
    %c0_1108 = arith.constant 0 : index
    %c0_1109 = arith.constant 0 : index
    %1292 = vector.load %arg6[%c1_1106, %c2_1107, %c0_1108, %c0_1109] : memref<2x3x32x32xf32, #tpu.memory_space<vmem>>, vector<1x1x32x32xf32>
    %1293 = vector.shape_cast %1292 : vector<1x1x32x32xf32> to vector<32x32xf32>
    %c1_1110 = arith.constant 1 : index
    %c0_1111 = arith.constant 0 : index
    %c0_1112 = arith.constant 0 : index
    %c0_1113 = arith.constant 0 : index
    %1294 = vector.load %arg7[%c1_1110, %c0_1111, %c0_1112, %c0_1113] : memref<2x4x1x32xf32, #tpu.memory_space<vmem>>, vector<1x1x1x32xf32>
    %1295 = vector.shape_cast %1294 : vector<1x1x1x32xf32> to vector<1x32xf32>
    %c1_1114 = arith.constant 1 : index
    %c1_1115 = arith.constant 1 : index
    %c0_1116 = arith.constant 0 : index
    %c0_1117 = arith.constant 0 : index
    %1296 = vector.load %arg7[%c1_1114, %c1_1115, %c0_1116, %c0_1117] : memref<2x4x1x32xf32, #tpu.memory_space<vmem>>, vector<1x1x1x32xf32>
    %1297 = vector.shape_cast %1296 : vector<1x1x1x32xf32> to vector<1x32xf32>
    %c1_1118 = arith.constant 1 : index
    %c2_1119 = arith.constant 2 : index
    %c0_1120 = arith.constant 0 : index
    %c0_1121 = arith.constant 0 : index
    %1298 = vector.load %arg7[%c1_1118, %c2_1119, %c0_1120, %c0_1121] : memref<2x4x1x32xf32, #tpu.memory_space<vmem>>, vector<1x1x1x32xf32>
    %1299 = vector.shape_cast %1298 : vector<1x1x1x32xf32> to vector<1x32xf32>
    %c1_1122 = arith.constant 1 : index
    %c3_1123 = arith.constant 3 : index
    %c0_1124 = arith.constant 0 : index
    %c0_1125 = arith.constant 0 : index
    %1300 = vector.load %arg7[%c1_1122, %c3_1123, %c0_1124, %c0_1125] : memref<2x4x1x32xf32, #tpu.memory_space<vmem>>, vector<1x1x1x32xf32>
    %1301 = vector.shape_cast %1300 : vector<1x1x1x32xf32> to vector<1x32xf32>
    %cst_1126 = arith.constant dense<0.000000e+00> : vector<2x32xf32>
    %1302 = tpu.matmul %1281, %1283, %cst_1126 {dimension_numbers = #tpu.dot_dimension_numbers<[1], [0], [0], [1], [0, 0, 1, 1], [], []>} : vector<2x32xf32>, vector<32x32xf32>, vector<2x32xf32> -> vector<2x32xf32>
    %cst_1127 = arith.constant dense<0.000000e+00> : vector<2x32xf32>
    %1303 = tpu.matmul %1168, %1289, %cst_1127 {dimension_numbers = #tpu.dot_dimension_numbers<[1], [0], [0], [1], [0, 0, 1, 1], [], []>} : vector<2x32xf32>, vector<32x32xf32>, vector<2x32xf32> -> vector<2x32xf32>
    %1304 = arith.addf %1302, %1303 : vector<2x32xf32>
    %1305 = vector.broadcast %1295 : vector<1x32xf32> to vector<2x32xf32>
    %1306 = arith.addf %1304, %1305 : vector<2x32xf32>
    %1307 = arith.negf %1306 : vector<2x32xf32>
    %1308 = math.exp %1307 : vector<2x32xf32>
    %cst_1128 = arith.constant 1.000000e+00 : f32
    %1309 = vector.broadcast %cst_1128 : f32 to vector<2x32xf32>
    %1310 = arith.addf %1309, %1308 : vector<2x32xf32>
    %1311 = arith.divf %1309, %1310 : vector<2x32xf32>
    %cst_1129 = arith.constant dense<0.000000e+00> : vector<2x32xf32>
    %1312 = tpu.matmul %1281, %1285, %cst_1129 {dimension_numbers = #tpu.dot_dimension_numbers<[1], [0], [0], [1], [0, 0, 1, 1], [], []>} : vector<2x32xf32>, vector<32x32xf32>, vector<2x32xf32> -> vector<2x32xf32>
    %cst_1130 = arith.constant dense<0.000000e+00> : vector<2x32xf32>
    %1313 = tpu.matmul %1168, %1291, %cst_1130 {dimension_numbers = #tpu.dot_dimension_numbers<[1], [0], [0], [1], [0, 0, 1, 1], [], []>} : vector<2x32xf32>, vector<32x32xf32>, vector<2x32xf32> -> vector<2x32xf32>
    %1314 = arith.addf %1312, %1313 : vector<2x32xf32>
    %1315 = vector.broadcast %1297 : vector<1x32xf32> to vector<2x32xf32>
    %1316 = arith.addf %1314, %1315 : vector<2x32xf32>
    %1317 = arith.negf %1316 : vector<2x32xf32>
    %1318 = math.exp %1317 : vector<2x32xf32>
    %cst_1131 = arith.constant 1.000000e+00 : f32
    %1319 = vector.broadcast %cst_1131 : f32 to vector<2x32xf32>
    %1320 = arith.addf %1319, %1318 : vector<2x32xf32>
    %1321 = arith.divf %1319, %1320 : vector<2x32xf32>
    %cst_1132 = arith.constant dense<0.000000e+00> : vector<2x32xf32>
    %1322 = tpu.matmul %1281, %1287, %cst_1132 {dimension_numbers = #tpu.dot_dimension_numbers<[1], [0], [0], [1], [0, 0, 1, 1], [], []>} : vector<2x32xf32>, vector<32x32xf32>, vector<2x32xf32> -> vector<2x32xf32>
    %1323 = vector.broadcast %1299 : vector<1x32xf32> to vector<2x32xf32>
    %1324 = arith.addf %1322, %1323 : vector<2x32xf32>
    %cst_1133 = arith.constant dense<0.000000e+00> : vector<2x32xf32>
    %1325 = tpu.matmul %1168, %1293, %cst_1133 {dimension_numbers = #tpu.dot_dimension_numbers<[1], [0], [0], [1], [0, 0, 1, 1], [], []>} : vector<2x32xf32>, vector<32x32xf32>, vector<2x32xf32> -> vector<2x32xf32>
    %1326 = vector.broadcast %1301 : vector<1x32xf32> to vector<2x32xf32>
    %1327 = arith.addf %1325, %1326 : vector<2x32xf32>
    %1328 = arith.mulf %1311, %1327 : vector<2x32xf32>
    %1329 = arith.addf %1324, %1328 : vector<2x32xf32>
    %1330 = math.tanh %1329 : vector<2x32xf32>
    %cst_1134 = arith.constant 1.000000e+00 : f32
    %1331 = vector.broadcast %cst_1134 : f32 to vector<2x32xf32>
    %1332 = arith.subf %1331, %1321 : vector<2x32xf32>
    %1333 = arith.mulf %1332, %1330 : vector<2x32xf32>
    %1334 = arith.mulf %1321, %1168 : vector<2x32xf32>
    %1335 = arith.addf %1333, %1334 : vector<2x32xf32>
    %c7_1135 = arith.constant 7 : index
    %c0_1136 = arith.constant 0 : index
    %c0_1137 = arith.constant 0 : index
    %1336 = vector.load %arg8[%c7_1135, %c0_1136, %c0_1137] : memref<8x2x32xf32, #tpu.memory_space<vmem>>, vector<1x2x32xf32>
    %1337 = vector.shape_cast %1336 : vector<1x2x32xf32> to vector<2x32xf32>
    %1338 = vector.shape_cast %1335 : vector<2x32xf32> to vector<1x2x32xf32>
    tpu.vector_store %arg8[%c7_1135, %c0_1136, %c0_1137], %1338 {strides = array<i32>} : memref<8x2x32xf32, #tpu.memory_space<vmem>>, vector<1x2x32xf32>,
    return
  }
  func.func @transform_0(%arg0: i32) -> (i32, i32, i32) {
    %c0_i32 = arith.constant 0 : i32
    %c0_i32_0 = arith.constant 0 : i32
    %c0_i32_1 = arith.constant 0 : i32
    %c0_i32_2 = arith.constant 0 : i32
    return %c0_i32, %c0_i32_0, %c0_i32_1 : i32, i32, i32
  }
  func.func @transform_1(%arg0: i32) -> (i32, i32, i32) {
    %c0_i32 = arith.constant 0 : i32
    %c0_i32_0 = arith.constant 0 : i32
    %c0_i32_1 = arith.constant 0 : i32
    %c0_i32_2 = arith.constant 0 : i32
    return %c0_i32, %c0_i32_0, %c0_i32_1 : i32, i32, i32
  }
  func.func @transform_2(%arg0: i32) -> (i32, i32, i32) {
    %c0_i32 = arith.constant 0 : i32
    %c0_i32_0 = arith.constant 0 : i32
    %c0_i32_1 = arith.constant 0 : i32
    %c0_i32_2 = arith.constant 0 : i32
    return %c0_i32, %c0_i32_0, %c0_i32_1 : i32, i32, i32
  }
  func.func @transform_3(%arg0: i32) -> (i32, i32, i32) {
    %c0_i32 = arith.constant 0 : i32
    %c0_i32_0 = arith.constant 0 : i32
    %c0_i32_1 = arith.constant 0 : i32
    %c0_i32_2 = arith.constant 0 : i32
    return %c0_i32, %c0_i32_0, %c0_i32_1 : i32, i32, i32
  }
  func.func @transform_4(%arg0: i32) -> (i32, i32, i32, i32) {
    %c0_i32 = arith.constant 0 : i32
    %c0_i32_0 = arith.constant 0 : i32
    %c0_i32_1 = arith.constant 0 : i32
    %c0_i32_2 = arith.constant 0 : i32
    %c0_i32_3 = arith.constant 0 : i32
    return %c0_i32, %c0_i32_0, %c0_i32_1, %c0_i32_2 : i32, i32, i32, i32
  }
  func.func @transform_5(%arg0: i32) -> (i32, i32, i32, i32) {
    %c0_i32 = arith.constant 0 : i32
    %c0_i32_0 = arith.constant 0 : i32
    %c0_i32_1 = arith.constant 0 : i32
    %c0_i32_2 = arith.constant 0 : i32
    %c0_i32_3 = arith.constant 0 : i32
    return %c0_i32, %c0_i32_0, %c0_i32_1, %c0_i32_2 : i32, i32, i32, i32
  }
  func.func @transform_6(%arg0: i32) -> (i32, i32, i32, i32) {
    %c0_i32 = arith.constant 0 : i32
    %c0_i32_0 = arith.constant 0 : i32
    %c0_i32_1 = arith.constant 0 : i32
    %c0_i32_2 = arith.constant 0 : i32
    %c0_i32_3 = arith.constant 0 : i32
    return %c0_i32, %c0_i32_0, %c0_i32_1, %c0_i32_2 : i32, i32, i32, i32
  }
  func.func @transform_7(%arg0: i32) -> (i32, i32, i32) {
    %c0_i32 = arith.constant 0 : i32
    %c0_i32_0 = arith.constant 0 : i32
    %c0_i32_1 = arith.constant 0 : i32
    %c0_i32_2 = arith.constant 0 : i32
    return %c0_i32, %c0_i32_0, %c0_i32_1 : i32, i32, i32
  }
}

</mosaic_0001>

<bundles_post_ra>
// kernel: tpu_custom_call.1
= control target key start
LH: loop header
LB: loop body
LE: loop exit
PB: predicated region body
PF: predicated region fallthrough
CT: control target
= control target key end

     0   :  { %12 = vsyncpa [#allocation3], 0  ;;  %s17551_s0 = inlined_call_operand.hbm [shape: f32[8,2,8], index: 0, kind: input, shape index: {}]   ;;  %s17552_s1 = inlined_call_operand.hbm [shape: f32[3,8,32], index: 1, kind: input, shape index: {}]   ;;  %s17553_s2 = inlined_call_operand.hbm [shape: f32[3,32,32], index: 2, kind: input, shape index: {}]   ;;  %s17554_s3 = inlined_call_operand.vmem [shape: f32[4,1,32], index: 3, kind: input, shape index: {}]   ;;  %s17555_s4 = inlined_call_operand.hbm [shape: f32[2,3,32,32], index: 4, kind: input, shape index: {}]   ;;  %s17556_s5 = inlined_call_operand.hbm [shape: f32[2,3,32,32], index: 5, kind: input, shape index: {}]   ;;  %s17557_s6 = inlined_call_operand.vmem [shape: f32[2,4,1,32], index: 6, kind: input, shape index: {}]   ;;  %s17558_s7 = inlined_call_operand.hbm [shape: f32[8,2,32], index: 7, kind: output, shape index: {}]  }
   0x1   :  { %13 = vsyncpa [#allocation6], 0 }
   0x2   :  { %14 = vsyncpa [#allocation9], 0 }
   0x3   :  { %15 = vsyncpa [#allocation4], 0  ;;  %s15587_s24 = smov [#allocation5]   ;;  %s15447_s28 = scalar_lea.hbm %s17552_s1, 384 }
   0x4   :  { %s33_s25 = sshll.u32 %s15587_s24, 4  ;;  %p15448_p0 = scmp.ne.s32.totalorder %s17552_s1, %s15447_s28  ;;  %s34_s25 = int_to_ptr.vmem [resolvable:$true] %s33_s25 }
   0x5   :  { %p15451_p1 = scmp.lt.u32.totalorder %s15447_s28, %s17552_s1 }
   0x7   :  { %p15453_p2 = pnand %p15451_p1, %p15448_p0 }
   0x9   :  { %15456 = shalt.err (!%p15453_p2)
}
   0xa   :  { %s15457_s10 = scalar_lea.vmem %s34_s25, 384  ;;  %p15462_p4 = scmp.lt.s32.totalorder %s34_s25, %s34_s25 }
   0xb   :  { %p15458_p3 = scmp.ne.s32.totalorder %s34_s25, %s15457_s10  ;;  %p15463_p5 = scmp.lt.s32.totalorder %s15457_s10, %s15457_s10 }
   0xd   :  { %p15464_p6 = por %p15463_p5, %p15462_p4 }
   0xf   :  { %p15465_p7 = pnand %p15464_p6, %p15458_p3 }
  0x11   :  { %15468 = shalt.err (!%p15465_p7)
}
  0x12   :  { %s15588_s11 = smov 128   ;;  %s15589_s12 = smov 8  }
  0x13   :  { %39 = dma.hbm_to_vmem [thread:$0]  %s17552_s1, 384, %s34_s25, [#allocation6], %s15588_s11, %s15588_s11, %s15589_s12  }
  0x14   :  { %s15590_s15 = smov [#allocation8]   ;;  %s15591_s17 = smov [#allocation2]  }
  0x15   :  { %s59_s16 = sshll.u32 %s15590_s15, 4  ;;  %s21_s18 = sshll.u32 %s15591_s17, 4  ;;  %s60_s16 = int_to_ptr.vmem [resolvable:$true] %s59_s16  ;;  %s22_s18 = int_to_ptr.vmem [resolvable:$true] %s21_s18 }
  0x16   :  { %s15469_s21 = scalar_lea.hbm %s17555_s4, 3072 }
  0x17   :  { %p15470_p8 = scmp.ne.s32.totalorder %s17555_s4, %s15469_s21  ;;  %p15473_p9 = scmp.lt.u32.totalorder %s15469_s21, %s17555_s4 }
  0x19   :  { %p15475_p10 = pnand %p15473_p9, %p15470_p8 }
  0x1b   :  { %15478 = shalt.err (!%p15475_p10)
}
  0x1c   :  { %s15479_s1 = scalar_lea.vmem %s60_s16, 3072  ;;  %p15484_p12 = scmp.lt.s32.totalorder %s60_s16, %s60_s16 }
  0x1d   :  { %p15480_p11 = scmp.ne.s32.totalorder %s60_s16, %s15479_s1  ;;  %p15485_p13 = scmp.lt.s32.totalorder %s15479_s1, %s15479_s1 }
  0x1f   :  { %p15486_p0 = por %p15485_p13, %p15484_p12 }
  0x21   :  { %p15487_p1 = pnand %p15486_p0, %p15480_p11 }
  0x23   :  { %15490 = shalt.err (!%p15487_p1)
}
  0x24   :  { %65 = dma.hbm_to_vmem [thread:$0]  %s17555_s4, 3072, %s60_s16, [#allocation9], %s15588_s11, %s15588_s11, %s15589_s12  }
  0x25   :  { %s15491_s30 = scalar_lea.hbm %s17551_s0, 256 }
  0x26   :  { %p15492_p2 = scmp.ne.s32.totalorder %s17551_s0, %s15491_s30  ;;  %p15495_p3 = scmp.lt.u32.totalorder %s15491_s30, %s17551_s0 }
  0x28   :  { %p15497_p4 = pnand %p15495_p3, %p15492_p2 }
  0x2a   :  { %15500 = shalt.err (!%p15497_p4)
}
  0x2b   :  { %s15501_s14 = scalar_lea.vmem %s22_s18, 256  ;;  %p15506_p6 = scmp.lt.s32.totalorder %s22_s18, %s22_s18 }
  0x2c   :  { %p15502_p5 = scmp.ne.s32.totalorder %s22_s18, %s15501_s14  ;;  %p15507_p7 = scmp.lt.s32.totalorder %s15501_s14, %s15501_s14 }
  0x2e   :  { %p15508_p8 = por %p15507_p7, %p15506_p6 }
  0x30   :  { %p15509_p9 = pnand %p15508_p8, %p15502_p5 }
  0x32   :  { %15512 = shalt.err (!%p15509_p9)
}
  0x33   :  { %s15592_s4 = smov 32   ;;  %s15593_s15 = smov 2  }
  0x34   :  { %27 = dma.hbm_to_vmem [thread:$0]  %s17551_s0, 256, %s22_s18, [#allocation3], %s15592_s4, %s15592_s4, %s15593_s15  }
  0x35   :  { %s15594_s19 = smov [#allocation7]   ;;  %s15595_s21 = smov [#allocation10]  }
  0x36   :  { %s45_s20 = sshll.u32 %s15594_s19, 4  ;;  %s71_s22 = sshll.u32 %s15595_s21, 4  ;;  %s46_s20 = int_to_ptr.vmem [resolvable:$true] %s45_s20  ;;  %s72_s22 = int_to_ptr.vmem [resolvable:$true] %s71_s22 }
  0x37   :  { %s15513_s26 = scalar_lea.hbm %s17553_s2, 1536 }
  0x38   :  { %p15514_p10 = scmp.ne.s32.totalorder %s17553_s2, %s15513_s26  ;;  %p15517_p11 = scmp.lt.u32.totalorder %s15513_s26, %s17553_s2 }
  0x3a   :  { %p15519_p12 = pnand %p15517_p11, %p15514_p10 }
  0x3c   :  { %15522 = shalt.err (!%p15519_p12)
}
  0x3d   :  { %s15523_s0 = scalar_lea.vmem %s46_s20, 1536  ;;  %p15528_p0 = scmp.lt.s32.totalorder %s46_s20, %s46_s20 }
  0x3e   :  { %p15524_p13 = scmp.ne.s32.totalorder %s46_s20, %s15523_s0  ;;  %p15529_p1 = scmp.lt.s32.totalorder %s15523_s0, %s15523_s0 }
  0x40   :  { %p15530_p2 = por %p15529_p1, %p15528_p0 }
  0x42   :  { %p15531_p3 = pnand %p15530_p2, %p15524_p13 }
  0x44   :  { %15534 = shalt.err (!%p15531_p3)
}
  0x45   :  { %51 = dma.hbm_to_vmem [thread:$0]  %s17553_s2, 1536, %s46_s20, [#allocation6], %s15588_s11, %s15588_s11, %s15589_s12  }
  0x46   :  { %s15535_s9 = scalar_lea.hbm %s17556_s5, 3072 }
  0x47   :  { %p15536_p4 = scmp.ne.s32.totalorder %s17556_s5, %s15535_s9  ;;  %p15539_p5 = scmp.lt.u32.totalorder %s15535_s9, %s17556_s5 }
  0x49   :  { %p15541_p6 = pnand %p15539_p5, %p15536_p4 }
  0x4b   :  { %15544 = shalt.err (!%p15541_p6)
}
  0x4c   :  { %s15545_s17 = scalar_lea.vmem %s72_s22, 3072  ;;  %p15550_p8 = scmp.lt.s32.totalorder %s72_s22, %s72_s22 }
  0x4d   :  { %p15546_p7 = scmp.ne.s32.totalorder %s72_s22, %s15545_s17  ;;  %p15551_p9 = scmp.lt.s32.totalorder %s15545_s17, %s15545_s17 }
  0x4f   :  { %p15552_p10 = por %p15551_p9, %p15550_p8 }
  0x51   :  { %p15553_p11 = pnand %p15552_p10, %p15546_p7 }
  0x53   :  { %15556 = shalt.err (!%p15553_p11)
}
  0x54   :  { %77 = dma.hbm_to_vmem [thread:$0]  %s17556_s5, 3072, %s72_s22, [#allocation9], %s15588_s11, %s15588_s11, %s15589_s12  }
  0x55   :  { %15579 = dma.done.wait [#allocation3], 256  }
  0x56   :  { %15580 = vsyncadd [#allocation3], 4294967040 }
  0x57   :  { %15581 = dma.done.wait [#allocation6], 1920  }
  0x58   :  { %15582 = vsyncadd [#allocation6], 4294965376 }
  0x59   :  { %15583 = dma.done.wait [#allocation9], 6144  }
  0x5a   :  { %15584 = vsyncadd [#allocation9], 4294961152  ;;  %v15596_v0 = vmov 0.0|0.0   ;;  %vm15597_vm0 = vmmov 0   ;;  %v15598_v1 = vmov 0.0   ;;  %v101_v2 = vld [vmem:[#allocation7] sm:$0xff] }
  0x5b   :  { %14474 = vmatprep.subr.bf16.mxu0 %v15596_v0  ;;  %13042 = vmatprep.mubr.msk.f32.mxu0 %vm15597_vm0, %v15598_v1  ;;  %v102_v3 = vld [vmem:[#allocation7 + $0x8] sm:$0xff]  ;;  %v103_v4 = vld [vmem:[#allocation7 + $0x10] sm:$0xff]  ;;  %v104_v6 = vld [vmem:[#allocation7 + $0x18] sm:$0xff]  ;;  %vm196_vm1 = vcmask 64512   ;;  %vm122_vm2 = vcmask 261120   ;;  %vm1604_vm3 = vcmask 254976  }
  0x5c   :  { %14480 = vmatprep.subr.bf16.mxu1 %v15596_v0  ;;  %13058 = vmatprep.mubr.msk.f32.mxu1 %vm15597_vm0, %v15598_v1  ;;  %v15721_v5 = vpack.c.bf16 %v102_v3, %v101_v2  ;;  %v106_v7 = vld [vmem:[#allocation7 + $0x20] sm:$0xff]  ;;  %v107_v8 = vld [vmem:[#allocation7 + $0x28] sm:$0xff]  ;;  %v108_v9 = vld [vmem:[#allocation7 + $0x30] sm:$0xff]  ;;  %v15724_v10 = vpack.c.bf16 %v104_v6, %v103_v4 }
  0x5d   :  { %v15726_v11 = vpack.c.bf16 %v107_v8, %v106_v7  ;;  %v109_v12 = vld [vmem:[#allocation7 + $0x38] sm:$0xff]  ;;  %v15735_v14 = vld [vmem:[#allocation5] sm:$0xff]  ;;  %v15746_v17 = vld [vmem:[#allocation5 + $0x8] sm:$0xff] }
  0x5e   :  { %14476 = vmatpush3.bf16.msra.mxu0 %v15721_v5  ;;  %v15730_v13 = vpack.c.bf16 %v109_v12, %v108_v9  ;;  %v15740_v15 = vld [vmem:[#allocation5 + $0x10] sm:$0xff]  ;;  %v111_v18 = vld [vmem:[#allocation7 + $0x40] sm:$0xff]  ;;  %v112_v19 = vld [vmem:[#allocation7 + $0x48] sm:$0xff] }
  0x5f   :  { %14477 = vmatprep.subr.bf16.mxu0 %v15596_v0  ;;  %14482 = vmatpush3.bf16.msra.mxu1 %v15726_v11  ;;  %v95_v16 = vld [vmem:[#allocation2] sm:$0x3]  ;;  %v15757_v20 = vpack.c.bf16 %v112_v19, %v111_v18  ;;  %v113_v21 = vld [vmem:[#allocation7 + $0x50] sm:$0xff]  ;;  %v609_v24 = vld [vmem:[#allocation10] sm:$0xff] }
  0x60   :  { %14483 = vmatprep.subr.bf16.mxu1 %v15596_v0  ;;  %v114_v22 = vld [vmem:[#allocation7 + $0x58] sm:$0xff]  ;;  %v610_v25 = vld [vmem:[#allocation10 + $0x8] sm:$0xff]  ;;  %v611_v27 = vld [vmem:[#allocation10 + $0x10] sm:$0xff] }
  0x61   :  { %v15765_v23 = vpack.c.bf16 %v114_v22, %v113_v21  ;;  %v15775_v26 = vpack.c.bf16 %v610_v25, %v609_v24  ;;  %v612_v28 = vld [vmem:[#allocation10 + $0x18] sm:$0xff]  ;;  %v614_v30 = vld [vmem:[#allocation10 + $0x20] sm:$0xff]  ;;  %v615_v31 = vld [vmem:[#allocation10 + $0x28] sm:$0xff] }
  0x62   :  { %14479 = vmatpush3.bf16.msra.mxu0 %v15724_v10  ;;  %v15779_v29 = vpack.c.bf16 %v612_v28, %v611_v27  ;;  %v15783_v32 = vpack.c.bf16 %v615_v31, %v614_v30  ;;  %v616_v33 = vld [vmem:[#allocation10 + $0x30] sm:$0xff]  ;;  %v617_v34 = vld [vmem:[#allocation10 + $0x38] sm:$0xff]  ;;  %v595_v36 = vld [vmem:[#allocation8] sm:$0xff] }
  0x63   :  { %13045 = vmatprep.subr.mxu0 %v15598_v1  ;;  %14485 = vmatpush3.bf16.msra.mxu1 %v15730_v13  ;;  %v15790_v35 = vpack.c.bf16 %v617_v34, %v616_v33  ;;  %v596_v37 = vld [vmem:[#allocation8 + $0x8] sm:$0xff]  ;;  %v605_v39 = vld [vmem:[#allocation8 + $0x40] sm:$0xff]  ;;  %v597_v42 = vld [vmem:[#allocation8 + $0x10] sm:$0xff] }
  0x64   :  { %13066 = vmatprep.subr.mxu1 %v15598_v1  ;;  %v15793_v38 = vpack.c.bf16 %v596_v37, %v595_v36  ;;  %v606_v40 = vld [vmem:[#allocation8 + $0x48] sm:$0xff]  ;;  %v598_v43 = vld [vmem:[#allocation8 + $0x18] sm:$0xff]  ;;  %v607_v45 = vld [vmem:[#allocation8 + $0x50] sm:$0xff] }
  0x65   :  { %13043 = vmatmul.mubr.f32.vlgmr.msra.gmra.mrb[0].mxu0 %v15598_v1  ;;  %v15796_v41 = vpack.c.bf16 %v606_v40, %v605_v39  ;;  %v15802_v44 = vpack.c.bf16 %v598_v43, %v597_v42  ;;  %v608_v46 = vld [vmem:[#allocation8 + $0x58] sm:$0xff]  ;;  %v600_v30 = vld [vmem:[#allocation8 + $0x20] sm:$0xff]  ;;  %v601_v31 = vld [vmem:[#allocation8 + $0x28] sm:$0xff] }
  0x66   :  { %13046 = vmatpush3.msra.mxu0 %v15735_v14  ;;  %13047 = vmatprep.mubr.msk.f32.mxu0 %vm15597_vm0, %v15598_v1  ;;  %v15807_v47 = vpack.c.bf16 %v608_v46, %v607_v45  ;;  %v15816_v52 = vld [vmem:[%s17554_s3] ss:$0 sm:$0xff]  ;;  %v15822_v59 = vld [vmem:[%s17554_s3 + $0x1] ss:$0 sm:$0xff]  ;;  %v15828_v12 = vld [vmem:[%s17554_s3 + $0x3] ss:$0 sm:$0xff]  ;;  %v15837_v37 = vpack.c.bf16 %v601_v31, %v600_v30 }
  0x67   :  { %13061 = vmatprep.subr.mxu0 %v15598_v1  ;;  %13059 = vmatmul.mubr.f32.vlgmr.msra.gmra.mrb[0].mxu1 %v15598_v1  ;;  %v15833_v18 = vld [vmem:[%s17554_s3 + $0x2] ss:$0 sm:$0xff]  ;;  %v602_v40 = vld [vmem:[#allocation8 + $0x30] sm:$0xff]  ;;  %v619_v45 = vld [vmem:[#allocation10 + $0x40] sm:$0xff] }
  0x68   :  { %13067 = vmatpush3.msra.mxu1 %v15740_v15  ;;  %13068 = vmatprep.mubr.msk.f32.mxu1 %vm15597_vm0, %v15598_v1  ;;  %v603_v42 = vld [vmem:[#allocation8 + $0x38] sm:$0xff]  ;;  %v620_v46 = vld [vmem:[#allocation10 + $0x48] sm:$0xff] }
  0x69   :  { %13048 = vmatmul.mubr.msk.f32.vlgmr.msra.gmra.mrb[2].mxu0 %vm196_vm1, %v95_v16  ;;  %14492 = vmatprep.subr.bf16.mxu1 %v15596_v0  ;;  %v15846_v43 = vpack.c.bf16 %v603_v42, %v602_v40  ;;  %v1112_v31 = vld [vmem:[#allocation8 + $0xb8] sm:$0xff] }
  0x6a   :  { %13062 = vmatpush3.msra.mxu0 %v15746_v17  ;;  %13063 = vmatprep.mubr.msk.f32.mxu0 %vm15597_vm0, %v15598_v1 }
  0x6b   :  { %14486 = vmatprep.subr.bf16.mxu0 %v15596_v0  ;;  %13069 = vmatmul.mubr.msk.f32.vlgmr.msra.gmra.mrb[2].mxu1 %vm196_vm1, %v95_v16 }
  0x6c   :  { %13090 = vmatprep.mubr.msk.f32.mxu1 %vm15597_vm0, %v15598_v1  ;;  %14494 = vmatpush3.bf16.msra.mxu1 %v15775_v26 }
  0x6d   :  { %13064 = vmatmul.mubr.msk.f32.vlgmr.msra.gmra.mrb[4].mxu0 %vm196_vm1, %v95_v16  ;;  %14495 = vmatprep.subr.bf16.mxu1 %v15596_v0 }
  0x6e   :  { %14488 = vmatpush3.bf16.msra.mxu0 %v15757_v20  ;;  %13079 = vmatprep.mubr.msk.f32.mxu0 %vm15597_vm0, %v15598_v1 }
  0x6f   :  { %14489 = vmatprep.subr.bf16.mxu0 %v15596_v0 }
  0x70   :  { %14497 = vmatpush3.bf16.msra.mxu1 %v15779_v29 }
  0x71   :  { %14504 = vmatprep.subr.bf16.mxu1 %v15596_v0 }
  0x72   :  { %14491 = vmatpush3.bf16.msra.mxu0 %v15765_v23 }
  0x73   :  { %14498 = vmatprep.subr.bf16.mxu0 %v15596_v0  ;;  %13091 = vmatmul.mubr.f32.vlgmr.msra.gmra.mrb[4].mxu1 %v15598_v1 }
  0x74   :  { %14506 = vmatpush3.bf16.msra.mxu1 %v15783_v32  ;;  %13112 = vmatprep.mubr.msk.f32.mxu1 %vm15597_vm0, %v15598_v1 }
  0x75   :  { %13080 = vmatmul.mubr.f32.vlgmr.msra.gmra.mrb[6].mxu0 %v15598_v1  ;;  %14507 = vmatprep.subr.bf16.mxu1 %v15596_v0 }
  0x76   :  { %13101 = vmatprep.mubr.msk.f32.mxu0 %vm15597_vm0, %v15598_v1  ;;  %14500 = vmatpush3.bf16.msra.mxu0 %v15793_v38 }
  0x77   :  { %14501 = vmatprep.subr.bf16.mxu0 %v15596_v0 }
  0x78   :  { %14509 = vmatpush3.bf16.msra.mxu1 %v15790_v35 }
  0x79   :  { %14516 = vmatprep.subr.bf16.mxu1 %v15596_v0 }
  0x7a   :  { %14503 = vmatpush3.bf16.msra.mxu0 %v15802_v44 }
  0x7b   :  { %13113 = vmatmul.mubr.f32.vlgmr.msra.gmra.mrb[6].mxu1 %v15598_v1  ;;  %14510 = vmatprep.subr.bf16.mxu0 %v15596_v0 }
  0x7c   :  { %14518 = vmatpush3.bf16.msra.mxu1 %v15796_v41  ;;  %13134 = vmatprep.mubr.msk.f32.mxu1 %vm15597_vm0, %v15598_v1 }
  0x7d   :  { %14519 = vmatprep.subr.bf16.mxu1 %v15596_v0 }
  0x80   :  { %14521 = vmatpush3.bf16.msra.mxu1 %v15807_v47 }
  0x81   :  { %14528 = vmatprep.subr.bf16.mxu1 %v15596_v0 }
 0x138   :  { %v192_v48 = vpop.f32.mrb[0].mxu0 }
 0x139   :  { %v13044_v49 = vpop.f32.mrb[1].mxu0 }
 0x13a   :  { %v349_v50 = vpop.f32.mrb[0].mxu1  ;;  %v621_v49 = vld [vmem:[#allocation10 + $0x50] sm:$0xff] }
 0x13b   :  { %v13060_v51 = vpop.f32.mrb[1].mxu1 }
 0x13c   :  { %v266_v53 = vpop.f32.mrb[2].mxu0 }
 0x13d   :  { %v267_v54 = vadd.f32 %v266_v53, %v192_v48  ;;  %v13049_v55 = vpop.f32.mrb[3].mxu0  ;;  %v15854_v48 = vpack.c.bf16 %v620_v46, %v619_v45 }
 0x13e   :  { %v508_v56 = vpop.f32.mrb[2].mxu1 }
 0x13f   :  { %v276_v57 = vadd.f32 %v15816_v52, %v267_v54  ;;  %v13070_v58 = vpop.f32.mrb[3].mxu1  ;;  %v509_v21 = vadd.f32 %v15833_v18, %v508_v56 }
 0x140   :  { %v419_v60 = vpop.f32.mrb[4].mxu0  ;;  %v1115_v58 = vld [vmem:[#allocation10 + $0x68] sm:$0xff] }
 0x141   :  { %v12032_v61 = vmul.f32 -1.442695, %v276_v57  ;;  %v420_v62 = vadd.f32 %v419_v60, %v349_v50  ;;  %v13065_v63 = vpop.f32.mrb[5].mxu0  ;;  %v622_v50 = vld [vmem:[#allocation10 + $0x58] sm:$0xff]  ;;  %v1114_v57 = vld [vmem:[#allocation10 + $0x60] sm:$0xff] }
 0x142   :  { %v15860_v51 = vpack.c.bf16 %v622_v50, %v621_v49  ;;  %v15870_v60 = vpack.c.bf16 %v1115_v58, %v1114_v57 }
 0x143   :  { %15207 = vpow2.f32 %v12032_v61  ;;  %v429_v2 = vadd.f32 %v15822_v59, %v420_v62  ;;  %v1116_v61 = vld [vmem:[#allocation10 + $0x70] sm:$0xff]  ;;  %v1117_v62 = vld [vmem:[#allocation10 + $0x78] sm:$0xff] }
 0x144   :  { %v15874_v63 = vpack.c.bf16 %v1117_v62, %v1116_v61 }
 0x145   :  { %v12035_v3 = vmul.f32 -1.442695, %v429_v2  ;;  %v1119_v2 = vld [vmem:[#allocation10 + $0x80] sm:$0xff] }
 0x146   :  { %v696_v53 = vpop.f32.mrb[4].mxu1 }
 0x147   :  { %15209 = vpow2.f32 %v12035_v3  ;;  %v13092_v54 = vpop.f32.mrb[5].mxu1  ;;  %v1120_v3 = vld [vmem:[#allocation10 + $0x88] sm:$0xff] }
 0x148   :  { %v584_v4 = vpop.f32.mrb[6].mxu0  ;;  %v15917_v54 = vld [vmem:[%s17557_s6 + $0x1] ss:$0 sm:$0xff] }
 0x149   :  { %v13081_v6 = vpop.f32.mrb[7].mxu0  ;;  %v585_v19 = vadd.f32 %v15828_v12, %v584_v4  ;;  %v15878_v4 = vpack.c.bf16 %v1120_v3, %v1119_v2 }
 0x14a   :  { %v1121_v6 = vld [vmem:[#allocation10 + $0x90] sm:$0xff] }
 0x14d   :  { %v15208_v7 = vpop.eup %15207 }
 0x14e   :  { %v280_v8 = vadd.f32 1.0, %v15208_v7  ;;  %v852_v55 = vpop.f32.mrb[6].mxu1  ;;  %v1122_v7 = vld [vmem:[#allocation10 + $0x98] sm:$0xff] }
 0x14f   :  { %v13114_v56 = vpop.f32.mrb[7].mxu1 }
 0x150   :  { %15211 = vrcp.f32 %v280_v8  ;;  %v15885_v8 = vpack.c.bf16 %v1122_v7, %v1121_v6  ;;  %v15923_v7 = vld [vmem:[%s17557_s6 + $0x3] ss:$0 sm:$0xff] }
 0x151   :  { %v15210_v9 = vpop.eup %15209 }
 0x152   :  { %v433_v16 = vadd.f32 1.0, %v15210_v9  ;;  %v1099_v9 = vld [vmem:[#allocation8 + $0x60] sm:$0xff] }
 0x154   :  { %15213 = vrcp.f32 %v433_v16  ;;  %v1100_v16 = vld [vmem:[#allocation8 + $0x68] sm:$0xff] }
 0x15a   :  { %v15212_v22 = vpop.eup %15211 }
 0x15b   :  { %v588_v24 = vmul.f32 %v15212_v22, %v585_v19  ;;  %v1109_v19 = vld [vmem:[#allocation8 + $0xa0] sm:$0xff]  ;;  %v1110_v22 = vld [vmem:[#allocation8 + $0xa8] sm:$0xff] }
 0x15d   :  { %v589_v25 = vadd.f32 %v588_v24, %v509_v21  ;;  %v15889_v21 = vpack.c.bf16 %v1100_v16, %v1099_v9  ;;  %v15892_v24 = vpack.c.bf16 %v1110_v22, %v1109_v19 }
 0x15e   :  { %v15214_v27 = vpop.eup %15213 }
 0x15f   :  { %15215 = vtanh.f32 %v589_v25  ;;  %v591_v28 = vsub.f32 1.0, %v15214_v27  ;;  %v593_v34 = vmul.f32 0.0, %v15214_v27  ;;  %v1101_v25 = vld [vmem:[#allocation8 + $0x70] sm:$0xff]  ;;  %v1102_v27 = vld [vmem:[#allocation8 + $0x78] sm:$0xff] }
 0x160   :  { %v15900_v30 = vpack.c.bf16 %v1102_v27, %v1101_v25 }
 0x169   :  { %v15216_v33 = vpop.eup %15215 }
 0x16a   :  { %v592_v36 = vmul.f32 %v15216_v33, %v591_v28  ;;  %v1111_v28 = vld [vmem:[#allocation8 + $0xb0] sm:$0xff] }
 0x16b   :  { %v15902_v33 = vpack.c.bf16 %v1112_v31, %v1111_v28 }
 0x16c   :  { %v15839_v39 = vadd.f32 %v593_v34, %v592_v36  ;;  %v15911_v34 = vld [vmem:[%s17557_s6] ss:$0 sm:$0xff] }
 0x16e   :  { %13102 = vmatmul.mubr.msk.f32.vlgmr.msra.gmra.mrb[8].mxu0 %vm122_vm2, %v15839_v39  ;;  %13135 = vmatmul.mubr.msk.f32.vlgmr.msra.gmra.mrb[8].mxu1 %vm122_vm2, %v15839_v39 }
 0x16f   :  { %14512 = vmatpush3.bf16.msra.mxu0 %v15837_v37  ;;  %13123 = vmatprep.mubr.msk.f32.mxu0 %vm15597_vm0, %v15598_v1 }
 0x170   :  { %14513 = vmatprep.subr.bf16.mxu0 %v15596_v0  ;;  %13156 = vmatprep.mubr.msk.f32.mxu1 %vm15597_vm0, %v15598_v1 }
 0x171   :  { %14530 = vmatpush3.bf16.msra.mxu1 %v15870_v60 }
 0x172   :  { %14531 = vmatprep.subr.bf16.mxu1 %v15596_v0 }
 0x173   :  { %14515 = vmatpush3.bf16.msra.mxu0 %v15846_v43 }
 0x174   :  { %14522 = vmatprep.subr.bf16.mxu0 %v15596_v0 }
 0x175   :  { %14533 = vmatpush3.bf16.msra.mxu1 %v15874_v63 }
 0x176   :  { %13124 = vmatmul.mubr.msk.f32.vlgmr.msra.gmra.mrb[10].mxu0 %vm122_vm2, %v15839_v39  ;;  %14540 = vmatprep.subr.bf16.mxu1 %v15596_v0 }
 0x177   :  { %14524 = vmatpush3.bf16.msra.mxu0 %v15854_v48  ;;  %13145 = vmatprep.mubr.msk.f32.mxu0 %vm15597_vm0, %v15598_v1 }
 0x178   :  { %14525 = vmatprep.subr.bf16.mxu0 %v15596_v0  ;;  %13157 = vmatmul.mubr.f32.vlgmr.msra.gmra.mrb[10].mxu1 %v15598_v1 }
 0x179   :  { %14542 = vmatpush3.bf16.msra.mxu1 %v15878_v4  ;;  %13178 = vmatprep.mubr.msk.f32.mxu1 %vm15597_vm0, %v15598_v1 }
 0x17a   :  { %14543 = vmatprep.subr.bf16.mxu1 %v15596_v0 }
 0x17b   :  { %14527 = vmatpush3.bf16.msra.mxu0 %v15860_v51 }
 0x17c   :  { %14534 = vmatprep.subr.bf16.mxu0 %v15596_v0 }
 0x17d   :  { %14545 = vmatpush3.bf16.msra.mxu1 %v15885_v8 }
 0x17e   :  { %13146 = vmatmul.mubr.f32.vlgmr.msra.gmra.mrb[12].mxu0 %v15598_v1  ;;  %14552 = vmatprep.subr.bf16.mxu1 %v15596_v0 }
 0x17f   :  { %13167 = vmatprep.mubr.msk.f32.mxu0 %vm15597_vm0, %v15598_v1  ;;  %14536 = vmatpush3.bf16.msra.mxu0 %v15889_v21 }
 0x180   :  { %13179 = vmatmul.mubr.f32.vlgmr.msra.gmra.mrb[12].mxu1 %v15598_v1  ;;  %14537 = vmatprep.subr.bf16.mxu0 %v15596_v0 }
 0x181   :  { %13200 = vmatprep.mubr.msk.f32.mxu1 %vm15597_vm0, %v15598_v1  ;;  %14554 = vmatpush3.bf16.msra.mxu1 %v15892_v24 }
 0x182   :  { %14555 = vmatprep.subr.bf16.mxu1 %v15596_v0 }
 0x183   :  { %14539 = vmatpush3.bf16.msra.mxu0 %v15900_v30 }
 0x184   :  { %14546 = vmatprep.subr.bf16.mxu0 %v15596_v0 }
 0x185   :  { %14557 = vmatpush3.bf16.msra.mxu1 %v15902_v33 }
 0x186   :  { %14564 = vmatprep.subr.bf16.mxu1 %v15596_v0 }
 0x241   :  { %v769_v36 = vpop.f32.mrb[8].mxu0  ;;  %v1011_v40 = vpop.f32.mrb[8].mxu1 }
 0x242   :  { %v770_v42 = vadd.f32 %v769_v36, %v696_v53  ;;  %v13103_v45 = vpop.f32.mrb[9].mxu0  ;;  %v13136_v46 = vpop.f32.mrb[9].mxu1 }
 0x243   :  { %v1105_v45 = vld [vmem:[#allocation8 + $0x88] sm:$0xff] }
 0x244   :  { %v779_v49 = vadd.f32 %v15911_v34, %v770_v42  ;;  %v1104_v42 = vld [vmem:[#allocation8 + $0x80] sm:$0xff] }
 0x246   :  { %v12044_v50 = vmul.f32 -1.442695, %v779_v49 }
 0x248   :  { %15217 = vpow2.f32 %v12044_v50 }
 0x249   :  { %v922_v56 = vpop.f32.mrb[10].mxu0 }
 0x24a   :  { %v923_v57 = vadd.f32 %v922_v56, %v852_v55  ;;  %v13125_v58 = vpop.f32.mrb[11].mxu0  ;;  %v15929_v55 = vld [vmem:[%s17557_s6 + $0x2] ss:$0 sm:$0xff]  ;;  %v15932_v56 = vpack.c.bf16 %v1105_v45, %v1104_v42 }
 0x24b   :  { %v1012_v25 = vadd.f32 %v15929_v55, %v1011_v40  ;;  %v1106_v58 = vld [vmem:[#allocation8 + $0x90] sm:$0xff] }
 0x24c   :  { %v932_v61 = vadd.f32 %v15917_v54, %v923_v57 }
 0x24e   :  { %v12047_v62 = vmul.f32 -1.442695, %v932_v61  ;;  %v1107_v61 = vld [vmem:[#allocation8 + $0x98] sm:$0xff] }
 0x24f   :  { %v15942_v40 = vpack.c.bf16 %v1107_v61, %v1106_v58 }
 0x250   :  { %15219 = vpow2.f32 %v12047_v62  ;;  %v1124_v62 = vld [vmem:[#allocation10 + $0xa0] sm:$0xff] }
 0x251   :  { %v1087_v2 = vpop.f32.mrb[12].mxu0 }
 0x252   :  { %v15218_v53 = vpop.eup %15217  ;;  %v13147_v3 = vpop.f32.mrb[13].mxu0  ;;  %v1088_v19 = vadd.f32 %v15923_v7, %v1087_v2  ;;  %v1125_v2 = vld [vmem:[#allocation10 + $0xa8] sm:$0xff] }
 0x253   :  { %v783_v6 = vadd.f32 1.0, %v15218_v53  ;;  %v15952_v53 = vpack.c.bf16 %v1125_v2, %v1124_v62  ;;  %v1127_v3 = vld [vmem:[#allocation10 + $0xb8] sm:$0xff] }
 0x255   :  { %15221 = vrcp.f32 %v783_v6 }
 0x25a   :  { %v15220_v9 = vpop.eup %15219 }
 0x25b   :  { %v936_v16 = vadd.f32 1.0, %v15220_v9 }
 0x25d   :  { %15223 = vrcp.f32 %v936_v16 }
 0x25f   :  { %v15222_v22 = vpop.eup %15221 }
 0x260   :  { %v1091_v27 = vmul.f32 %v15222_v22, %v1088_v19 }
 0x262   :  { %v1092_v28 = vadd.f32 %v1091_v27, %v1012_v25 }
 0x264   :  { %15225 = vtanh.f32 %v1092_v28 }
 0x267   :  { %v15224_v31 = vpop.eup %15223 }
 0x268   :  { %v1094_v36 = vsub.f32 1.0, %v15224_v31  ;;  %v1096_v49 = vmul.f32 0.0, %v15224_v31 }
 0x26e   :  { %v15226_v46 = vpop.eup %15225 }
 0x26f   :  { %v1095_v50 = vmul.f32 %v15226_v46, %v1094_v36 }
 0x271   :  { %v15934_v57 = vadd.f32 %v1096_v49, %v1095_v50 }
 0x273   :  { %13168 = vmatmul.mubr.msk.f32.vlgmr.msra.gmra.mrb[14].mxu0 %vm122_vm2, %v15934_v57  ;;  %13201 = vmatmul.mubr.msk.f32.vlgmr.msra.gmra.mrb[14].mxu1 %vm122_vm2, %v15934_v57 }
 0x274   :  { %14548 = vmatpush3.bf16.msra.mxu0 %v15932_v56  ;;  %14566 = vmatpush3.bf16.msra.mxu1 %v15721_v5  ;;  %v1126_v5 = vld [vmem:[#allocation10 + $0xb0] sm:$0xff] }
 0x275   :  { %14549 = vmatprep.subr.bf16.mxu0 %v15596_v0  ;;  %14567 = vmatprep.subr.bf16.mxu1 %v15596_v0  ;;  %v15962_v6 = vpack.c.bf16 %v1127_v3, %v1126_v5 }
 0x276   :  { %13189 = vmatprep.mubr.msk.f32.mxu0 %vm15597_vm0, %v15598_v1  ;;  %13222 = vmatprep.mubr.msk.f32.mxu1 %vm15597_vm0, %v15598_v1 }
 0x278   :  { %14551 = vmatpush3.bf16.msra.mxu0 %v15942_v40  ;;  %14569 = vmatpush3.bf16.msra.mxu1 %v15724_v10  ;;  %v1607_v10 = vld [vmem:[#allocation2 + $0x2] sm:$0x3] }
 0x279   :  { %14558 = vmatprep.subr.bf16.mxu0 %v15596_v0  ;;  %14570 = vmatprep.subr.bf16.mxu1 %v15596_v0 }
 0x27b   :  { %13190 = vmatmul.mubr.msk.f32.vlgmr.msra.gmra.mrb[16].mxu0 %vm122_vm2, %v15934_v57  ;;  %13223 = vmatmul.mubr.msk.f32.vlgmr.msra.gmra.mrb[16].mxu1 %vm122_vm2, %v15839_v39 }
 0x27c   :  { %14560 = vmatpush3.bf16.msra.mxu0 %v15952_v53  ;;  %14572 = vmatpush3.bf16.msra.mxu1 %v15726_v11  ;;  %v1202_v11 = vpop.f32.mrb[10].mxu1 }
 0x27d   :  { %14561 = vmatprep.subr.bf16.mxu0 %v15596_v0  ;;  %14573 = vmatprep.subr.bf16.mxu1 %v15596_v0 }
 0x27e   :  { %13211 = vmatprep.mubr.msk.f32.mxu0 %vm15597_vm0, %v15598_v1  ;;  %13238 = vmatprep.mubr.msk.f32.mxu1 %vm15597_vm0, %v15598_v1 }
 0x280   :  { %14563 = vmatpush3.bf16.msra.mxu0 %v15962_v6  ;;  %14575 = vmatpush3.bf16.msra.mxu1 %v15730_v13  ;;  %v13158_v13 = vpop.f32.mrb[11].mxu1 }
 0x281   :  { %13225 = vmatprep.subr.mxu0 %v15598_v1  ;;  %14576 = vmatprep.subr.bf16.mxu1 %v15596_v0  ;;  %v16044_v13 = vld [vmem:[%s17557_s6 + $0x7] ss:$0 sm:$0xff] }
 0x283   :  { %13212 = vmatmul.mubr.f32.vlgmr.msra.gmra.mrb[18].mxu0 %v15598_v1  ;;  %13239 = vmatmul.mubr.msk.f32.vlgmr.msra.gmra.mrb[18].mxu1 %vm122_vm2, %v15839_v39 }
 0x284   :  { %13226 = vmatpush3.msra.mxu0 %v15735_v14  ;;  %14578 = vmatpush3.bf16.msra.mxu1 %v15757_v20  ;;  %v1358_v14 = vpop.f32.mrb[12].mxu1 }
 0x285   :  { %13227 = vmatprep.mubr.msk.f32.mxu0 %vm15597_vm0, %v15598_v1  ;;  %14579 = vmatprep.subr.bf16.mxu1 %v15596_v0 }
 0x286   :  { %13241 = vmatprep.subr.mxu0 %v15598_v1  ;;  %13259 = vmatprep.mubr.msk.f32.mxu1 %vm15597_vm0, %v15598_v1 }
 0x287   :  { %13228 = vmatmul.mubr.msk.f32.vlgmr.msra.gmra.mrb[20].mxu0 %vm196_vm1, %v1607_v10 }
 0x288   :  { %14581 = vmatpush3.bf16.msra.mxu1 %v15765_v23  ;;  %13242 = vmatpush3.msra.mxu0 %v15746_v17  ;;  %v16031_v17 = vld [vmem:[%s17557_s6 + $0x4] ss:$0 sm:$0xff] }
 0x289   :  { %13243 = vmatprep.mubr.msk.f32.mxu0 %vm15597_vm0, %v15598_v1  ;;  %13246 = vmatprep.subr.mxu0 %v15598_v1 }
 0x28a   :  { %14588 = vmatprep.subr.bf16.mxu1 %v15596_v0 }
 0x28b   :  { %13244 = vmatmul.mubr.msk.f32.vlgmr.msra.gmra.mrb[22].mxu0 %vm196_vm1, %v1607_v10  ;;  %13260 = vmatmul.mubr.msk.f32.vlgmr.msra.gmra.mrb[20].mxu1 %vm122_vm2, %v15839_v39 }
 0x28c   :  { %13247 = vmatpush3.msra.mxu0 %v15740_v15  ;;  %13248 = vmatprep.mubr.msk.f32.mxu0 %vm15597_vm0, %v15598_v1  ;;  %v13180_v15 = vpop.f32.mrb[13].mxu1 }
 0x28d   :  { %14582 = vmatprep.subr.bf16.mxu0 %v15596_v0  ;;  %14590 = vmatpush3.bf16.msra.mxu1 %v15793_v38 }
 0x28e   :  { %14591 = vmatprep.subr.bf16.mxu1 %v15596_v0  ;;  %13281 = vmatprep.mubr.msk.f32.mxu1 %vm15597_vm0, %v15598_v1 }
 0x28f   :  { %13249 = vmatmul.mubr.msk.f32.vlgmr.msra.gmra.mrb[24].mxu0 %vm196_vm1, %v1607_v10 }
 0x290   :  { %14584 = vmatpush3.bf16.msra.mxu0 %v15775_v26  ;;  %13270 = vmatprep.mubr.msk.f32.mxu0 %vm15597_vm0, %v15598_v1 }
 0x291   :  { %14585 = vmatprep.subr.bf16.mxu0 %v15596_v0  ;;  %14593 = vmatpush3.bf16.msra.mxu1 %v15802_v44 }
 0x292   :  { %14600 = vmatprep.subr.bf16.mxu1 %v15596_v0 }
 0x294   :  { %14587 = vmatpush3.bf16.msra.mxu0 %v15779_v29 }
 0x295   :  { %14594 = vmatprep.subr.bf16.mxu0 %v15596_v0 }
 0x297   :  { %13271 = vmatmul.mubr.msk.f32.vlgmr.msra.gmra.mrb[26].mxu0 %vm122_vm2, %v15934_v57 }
 0x298   :  { %14596 = vmatpush3.bf16.msra.mxu0 %v15783_v32  ;;  %13292 = vmatprep.mubr.msk.f32.mxu0 %vm15597_vm0, %v15598_v1 }
 0x299   :  { %14597 = vmatprep.subr.bf16.mxu0 %v15596_v0 }
 0x29c   :  { %14599 = vmatpush3.bf16.msra.mxu0 %v15790_v35 }
 0x29d   :  { %14606 = vmatprep.subr.bf16.mxu0 %v15596_v0 }
 0x29f   :  { %13293 = vmatmul.mubr.msk.f32.vlgmr.msra.gmra.mrb[28].mxu0 %vm122_vm2, %v15934_v57 }
 0x2a0   :  { %14608 = vmatpush3.bf16.msra.mxu0 %v15796_v41  ;;  %13314 = vmatprep.mubr.msk.f32.mxu0 %vm15597_vm0, %v15598_v1  ;;  %v16037_v41 = vld [vmem:[%s17557_s6 + $0x5] ss:$0 sm:$0xff] }
 0x2a1   :  { %14609 = vmatprep.subr.bf16.mxu0 %v15596_v0 }
 0x2a4   :  { %14611 = vmatpush3.bf16.msra.mxu0 %v15807_v47 }
 0x2a5   :  { %14618 = vmatprep.subr.bf16.mxu0 %v15596_v0 }
 0x346   :  { %v1275_v20 = vpop.f32.mrb[14].mxu0  ;;  %v1517_v23 = vpop.f32.mrb[14].mxu1 }
 0x347   :  { %v1276_v26 = vadd.f32 %v1275_v20, %v1202_v11  ;;  %v13169_v29 = vpop.f32.mrb[15].mxu0  ;;  %v13202_v32 = vpop.f32.mrb[15].mxu1 }
 0x349   :  { %v1285_v35 = vadd.f32 %v16031_v17, %v1276_v26 }
 0x34b   :  { %v12057_v38 = vmul.f32 -1.442695, %v1285_v35 }
 0x34d   :  { %15227 = vpow2.f32 %v12057_v38 }
 0x34e   :  { %v1428_v44 = vpop.f32.mrb[16].mxu0  ;;  %v1693_v47 = vpop.f32.mrb[16].mxu1 }
 0x34f   :  { %v1429_v9 = vadd.f32 %v1428_v44, %v1358_v14  ;;  %v13191_v16 = vpop.f32.mrb[17].mxu0  ;;  %v13224_v19 = vpop.f32.mrb[17].mxu1 }
 0x351   :  { %v1438_v22 = vadd.f32 %v16037_v41, %v1429_v9 }
 0x353   :  { %v12060_v25 = vmul.f32 -1.442695, %v1438_v22 }
 0x355   :  { %15229 = vpow2.f32 %v12060_v25 }
 0x356   :  { %v1593_v27 = vpop.f32.mrb[18].mxu0  ;;  %v1849_v28 = vpop.f32.mrb[18].mxu1 }
 0x357   :  { %v15228_v31 = vpop.eup %15227  ;;  %v13213_v36 = vpop.f32.mrb[19].mxu0  ;;  %v1594_v26 = vadd.f32 %v16044_v13, %v1593_v27 }
 0x358   :  { %v13240_v42 = vpop.f32.mrb[19].mxu1  ;;  %v1289_v45 = vadd.f32 1.0, %v15228_v31 }
 0x35a   :  { %15231 = vrcp.f32 %v1289_v45  ;;  %v1766_v46 = vpop.f32.mrb[20].mxu0 }
 0x35b   :  { %v1767_v49 = vadd.f32 %v1766_v46, %v1693_v47  ;;  %v13229_v50 = vpop.f32.mrb[21].mxu0 }
 0x35d   :  { %v1776_v58 = vadd.f32 %v15816_v52, %v1767_v49  ;;  %v16050_v52 = vld [vmem:[%s17557_s6 + $0x6] ss:$0 sm:$0xff] }
 0x35e   :  { %v1919_v61 = vpop.f32.mrb[22].mxu0  ;;  %v2084_v62 = vpop.f32.mrb[20].mxu1  ;;  %v1518_v38 = vadd.f32 %v16050_v52, %v1517_v23 }
 0x35f   :  { %v15230_v2 = vpop.eup %15229  ;;  %v12070_v5 = vmul.f32 -1.442695, %v1776_v58  ;;  %v1920_v3 = vadd.f32 %v1919_v61, %v1849_v28  ;;  %v13261_v10 = vpop.f32.mrb[21].mxu1  ;;  %v2085_v49 = vadd.f32 %v15828_v12, %v2084_v62 }
 0x360   :  { %v13245_v11 = vpop.f32.mrb[23].mxu0  ;;  %v1442_v14 = vadd.f32 1.0, %v15230_v2 }
 0x361   :  { %15233 = vpow2.f32 %v12070_v5  ;;  %v1929_v15 = vadd.f32 %v15822_v59, %v1920_v3 }
 0x362   :  { %v2008_v20 = vpop.f32.mrb[24].mxu0  ;;  %15235 = vrcp.f32 %v1442_v14 }
 0x363   :  { %v13250_v29 = vpop.f32.mrb[25].mxu0  ;;  %v12074_v35 = vmul.f32 -1.442695, %v1929_v15  ;;  %v2009_v50 = vadd.f32 %v15833_v18, %v2008_v20 }
 0x364   :  { %v15232_v32 = vpop.eup %15231 }
 0x365   :  { %v1597_v44 = vmul.f32 %v15232_v32, %v1594_v26  ;;  %15237 = vpow2.f32 %v12074_v35 }
 0x367   :  { %v1598_v47 = vadd.f32 %v1597_v44, %v1518_v38 }
 0x369   :  { %15239 = vtanh.f32 %v1598_v47 }
 0x36a   :  { %v16054_v9 = vpop.f32.mrb[26].mxu0 }
 0x36b   :  { %v15234_v59 = vpop.eup %15233  ;;  %v13272_v16 = vpop.f32.mrb[27].mxu0 }
 0x36c   :  { %v1780_v19 = vadd.f32 1.0, %v15234_v59  ;;  %v15236_v22 = vpop.eup %15235 }
 0x36d   :  { %v1600_v27 = vsub.f32 1.0, %v15236_v22  ;;  %v1602_v23 = vmul.f32 0.0, %v15236_v22  ;;  %v3098_v22 = vld [vmem:[#allocation7 + $0x8] sm:$0xff] }
 0x36e   :  { %15241 = vrcp.f32 %v1780_v19  ;;  %v3097_v19 = vld [vmem:[#allocation7] sm:$0xff] }
 0x36f   :  { %v15238_v25 = vpop.eup %15237 }
 0x370   :  { %v1933_v45 = vadd.f32 1.0, %v15238_v25 }
 0x372   :  { %v16056_v28 = vpop.f32.mrb[28].mxu0  ;;  %15243 = vrcp.f32 %v1933_v45  ;;  %v3103_v45 = vld [vmem:[#allocation7 + $0x30] sm:$0xff] }
 0x373   :  { %v15240_v31 = vpop.eup %15239  ;;  %v13294_v36 = vpop.f32.mrb[29].mxu0 }
 0x374   :  { %v1601_v42 = vmul.f32 %v15240_v31, %v1600_v27  ;;  %v16126_v31 = vpack.c.bf16 %v3098_v22, %v3097_v19 }
 0x376   :  { %v16058_v46 = vadd.f32 %v1602_v23, %v1601_v42  ;;  %v3100_v42 = vld [vmem:[#allocation7 + $0x18] sm:$0xff]  ;;  %v3102_v23 = vld [vmem:[#allocation7 + $0x28] sm:$0xff] }
 0x378   :  { %v15242_v58 = vpop.eup %15241  ;;  %1605 = vst.msk [vmem:[#allocation11] sm:$0x3] %vm1604_vm3, %v16058_v46 }
 0x379   :  { %v2088_v61 = vmul.f32 %v15242_v58, %v2085_v49  ;;  %v3104_v49 = vld [vmem:[#allocation7 + $0x38] sm:$0xff]  ;;  %v3106_v58 = vld [vmem:[#allocation7 + $0x48] sm:$0xff] }
 0x37b   :  { %v2089_v2 = vadd.f32 %v2088_v61, %v2009_v50  ;;  %v3105_v50 = vld [vmem:[#allocation7 + $0x40] sm:$0xff]  ;;  %v16170_v61 = vld [vmem:[#allocation5] sm:$0xff] }
 0x37c   :  { %v15244_v5 = vpop.eup %15243 }
 0x37d   :  { %15245 = vtanh.f32 %v2089_v2  ;;  %v2091_v3 = vsub.f32 1.0, %v15244_v5  ;;  %v2093_v11 = vmul.f32 %v15244_v5, %v15839_v39  ;;  %v3107_v2 = vld [vmem:[#allocation7 + $0x50] sm:$0xff]  ;;  %v3108_v5 = vld [vmem:[#allocation7 + $0x58] sm:$0xff] }
 0x387   :  { %v15246_v10 = vpop.eup %15245 }
 0x388   :  { %v2092_v14 = vmul.f32 %v15246_v10, %v2091_v3  ;;  %v16178_v3 = vpack.c.bf16 %v3108_v5, %v3107_v2  ;;  %v16183_v10 = vld [vmem:[#allocation5 + $0x8] sm:$0xff] }
 0x38a   :  { %v16065_v15 = vadd.f32 %v2093_v11, %v2092_v14  ;;  %v16194_v11 = vld [vmem:[#allocation5 + $0x10] sm:$0xff]  ;;  %v3593_v14 = vld [vmem:[#allocation10] sm:$0xff] }
 0x38c   :  { %13282 = vmatmul.mubr.msk.f32.vlgmr.msra.gmra.mrb[22].mxu1 %vm122_vm2, %v16065_v15  ;;  %13315 = vmatmul.mubr.msk.f32.vlgmr.msra.gmra.mrb[30].mxu0 %vm122_vm2, %v16065_v15 }
 0x38d   :  { %14602 = vmatpush3.bf16.msra.mxu1 %v15837_v37  ;;  %14620 = vmatpush3.bf16.msra.mxu0 %v15870_v60 }
 0x38e   :  { %14603 = vmatprep.subr.bf16.mxu1 %v15596_v0  ;;  %14621 = vmatprep.subr.bf16.mxu0 %v15596_v0 }
 0x38f   :  { %13303 = vmatprep.mubr.msk.f32.mxu1 %vm15597_vm0, %v15598_v1  ;;  %13336 = vmatprep.mubr.msk.f32.mxu0 %vm15597_vm0, %v15598_v1 }
 0x391   :  { %14605 = vmatpush3.bf16.msra.mxu1 %v15846_v43  ;;  %14623 = vmatpush3.bf16.msra.mxu0 %v15874_v63 }
 0x392   :  { %14612 = vmatprep.subr.bf16.mxu1 %v15596_v0  ;;  %14630 = vmatprep.subr.bf16.mxu0 %v15596_v0 }
 0x394   :  { %13304 = vmatmul.mubr.msk.f32.vlgmr.msra.gmra.mrb[24].mxu1 %vm122_vm2, %v16065_v15  ;;  %13337 = vmatmul.mubr.msk.f32.vlgmr.msra.gmra.mrb[32].mxu0 %vm122_vm2, %v16058_v46 }
 0x395   :  { %14614 = vmatpush3.bf16.msra.mxu1 %v15854_v48  ;;  %14632 = vmatpush3.bf16.msra.mxu0 %v15878_v4 }
 0x396   :  { %14615 = vmatprep.subr.bf16.mxu1 %v15596_v0  ;;  %14633 = vmatprep.subr.bf16.mxu0 %v15596_v0 }
 0x397   :  { %13325 = vmatprep.mubr.msk.f32.mxu1 %vm15597_vm0, %v15598_v1  ;;  %13358 = vmatprep.mubr.msk.f32.mxu0 %vm15597_vm0, %v15598_v1 }
 0x399   :  { %14617 = vmatpush3.bf16.msra.mxu1 %v15860_v51  ;;  %14635 = vmatpush3.bf16.msra.mxu0 %v15885_v8 }
 0x39a   :  { %14624 = vmatprep.subr.bf16.mxu1 %v15596_v0  ;;  %14642 = vmatprep.subr.bf16.mxu0 %v15596_v0 }
 0x39c   :  { %13326 = vmatmul.mubr.msk.f32.vlgmr.msra.gmra.mrb[26].mxu1 %vm122_vm2, %v15934_v57  ;;  %13359 = vmatmul.mubr.msk.f32.vlgmr.msra.gmra.mrb[34].mxu0 %vm122_vm2, %v16058_v46 }
 0x39d   :  { %14626 = vmatpush3.bf16.msra.mxu1 %v15889_v21  ;;  %14644 = vmatpush3.bf16.msra.mxu0 %v15892_v24 }
 0x39e   :  { %14627 = vmatprep.subr.bf16.mxu1 %v15596_v0  ;;  %14645 = vmatprep.subr.bf16.mxu0 %v15596_v0 }
 0x39f   :  { %13347 = vmatprep.mubr.msk.f32.mxu1 %vm15597_vm0, %v15598_v1  ;;  %13380 = vmatprep.mubr.msk.f32.mxu0 %vm15597_vm0, %v15598_v1 }
 0x3a1   :  { %14629 = vmatpush3.bf16.msra.mxu1 %v15900_v30  ;;  %14647 = vmatpush3.bf16.msra.mxu0 %v15902_v33 }
 0x3a2   :  { %14636 = vmatprep.subr.bf16.mxu1 %v15596_v0  ;;  %14654 = vmatprep.subr.bf16.mxu0 %v15596_v0 }
 0x45f   :  { %v2262_v12 = vpop.f32.mrb[22].mxu1  ;;  %v2504_v18 = vpop.f32.mrb[30].mxu0 }
 0x460   :  { %v2263_v37 = vadd.f32 %v2262_v12, %v16054_v9  ;;  %v13283_v39 = vpop.f32.mrb[23].mxu1  ;;  %v13316_v43 = vpop.f32.mrb[31].mxu0  ;;  %v2505_v47 = vadd.f32 %v15929_v55, %v2504_v18  ;;  %v3594_v12 = vld [vmem:[#allocation10 + $0x8] sm:$0xff] }
 0x461   :  { %v16203_v18 = vpack.c.bf16 %v3594_v12, %v3593_v14  ;;  %v3596_v39 = vld [vmem:[#allocation10 + $0x18] sm:$0xff] }
 0x462   :  { %v2272_v48 = vadd.f32 %v15911_v34, %v2263_v37  ;;  %v3595_v37 = vld [vmem:[#allocation10 + $0x10] sm:$0xff] }
 0x463   :  { %v16210_v43 = vpack.c.bf16 %v3596_v39, %v3595_v37 }
 0x464   :  { %v12085_v51 = vmul.f32 -1.442695, %v2272_v48  ;;  %v3597_v48 = vld [vmem:[#allocation10 + $0x20] sm:$0xff] }
 0x466   :  { %15247 = vpow2.f32 %v12085_v51  ;;  %v3598_v51 = vld [vmem:[#allocation10 + $0x28] sm:$0xff] }
 0x467   :  { %v2415_v60 = vpop.f32.mrb[24].mxu1  ;;  %v16117_v63 = vpop.f32.mrb[32].mxu0 }
 0x468   :  { %v2416_v4 = vadd.f32 %v2415_v60, %v16056_v28  ;;  %v13305_v8 = vpop.f32.mrb[25].mxu1  ;;  %v13338_v21 = vpop.f32.mrb[33].mxu0  ;;  %v16216_v60 = vpack.c.bf16 %v3598_v51, %v3597_v48 }
 0x469   :  { %v3600_v8 = vld [vmem:[#allocation10 + $0x38] sm:$0xff] }
 0x46a   :  { %v2425_v24 = vadd.f32 %v15917_v54, %v2416_v4  ;;  %v3599_v4 = vld [vmem:[#allocation10 + $0x30] sm:$0xff] }
 0x46b   :  { %v16222_v21 = vpack.c.bf16 %v3600_v8, %v3599_v4 }
 0x46c   :  { %v12089_v30 = vmul.f32 -1.442695, %v2425_v24  ;;  %v3581_v24 = vld [vmem:[#allocation8] sm:$0xff] }
 0x46e   :  { %15249 = vpow2.f32 %v12089_v30  ;;  %v3582_v30 = vld [vmem:[#allocation8 + $0x8] sm:$0xff] }
 0x46f   :  { %v2580_v33 = vpop.f32.mrb[26].mxu1  ;;  %v16121_v62 = vpop.f32.mrb[34].mxu0 }
 0x470   :  { %v15248_v20 = vpop.eup %15247  ;;  %v13327_v26 = vpop.f32.mrb[27].mxu1  ;;  %v2581_v38 = vadd.f32 %v15923_v7, %v2580_v33  ;;  %v3099_v7 = vld [vmem:[#allocation7 + $0x10] sm:$0xff]  ;;  %v3589_v33 = vld [vmem:[#allocation8 + $0x40] sm:$0xff] }
 0x471   :  { %v13360_v29 = vpop.f32.mrb[35].mxu0  ;;  %v2276_v34 = vadd.f32 1.0, %v15248_v20  ;;  %v16136_v55 = vpack.c.bf16 %v3100_v42, %v3099_v7  ;;  %v16233_v20 = vpack.c.bf16 %v3582_v30, %v3581_v24  ;;  %v3590_v26 = vld [vmem:[#allocation8 + $0x48] sm:$0xff] }
 0x472   :  { %v16235_v29 = vpack.c.bf16 %v3590_v26, %v3589_v33 }
 0x473   :  { %15251 = vrcp.f32 %v2276_v34  ;;  %v3583_v34 = vld [vmem:[#allocation8 + $0x10] sm:$0xff] }
 0x478   :  { %v15250_v32 = vpop.eup %15249 }
 0x479   :  { %v2429_v35 = vadd.f32 1.0, %v15250_v32  ;;  %v3584_v32 = vld [vmem:[#allocation8 + $0x18] sm:$0xff] }
 0x47b   :  { %15253 = vrcp.f32 %v2429_v35  ;;  %v3591_v35 = vld [vmem:[#allocation8 + $0x50] sm:$0xff] }
 0x47d   :  { %v15252_v44 = vpop.eup %15251 }
 0x47e   :  { %v2584_v9 = vmul.f32 %v15252_v44, %v2581_v38  ;;  %v16241_v38 = vpack.c.bf16 %v3584_v32, %v3583_v34  ;;  %v3592_v44 = vld [vmem:[#allocation8 + $0x58] sm:$0xff] }
 0x480   :  { %v2585_v54 = vadd.f32 %v2584_v9, %v2505_v47  ;;  %v16243_v47 = vpack.c.bf16 %v3592_v44, %v3591_v35 }
 0x482   :  { %15255 = vtanh.f32 %v2585_v54 }
 0x485   :  { %v15254_v59 = vpop.eup %15253 }
 0x486   :  { %v2587_v16 = vsub.f32 1.0, %v15254_v59  ;;  %v2589_v28 = vmul.f32 %v15254_v59, %v15934_v57  ;;  %v3101_v57 = vld [vmem:[#allocation7 + $0x20] sm:$0xff] }
 0x48c   :  { %v15256_v25 = vpop.eup %15255 }
 0x48d   :  { %v2588_v27 = vmul.f32 %v15256_v25, %v2587_v16 }
 0x48f   :  { %v16128_v36 = vadd.f32 %v2589_v28, %v2588_v27 }
 0x491   :  { %13348 = vmatmul.mubr.msk.f32.vlgmr.msra.gmra.mrb[28].mxu1 %vm122_vm2, %v16128_v36  ;;  %13381 = vmatmul.mubr.msk.f32.vlgmr.msra.gmra.mrb[36].mxu0 %vm122_vm2, %v16128_v36 }
 0x492   :  { %14638 = vmatpush3.bf16.msra.mxu1 %v15932_v56  ;;  %14656 = vmatpush3.bf16.msra.mxu0 %v16126_v31  ;;  %v16146_v56 = vpack.c.bf16 %v3102_v23, %v3101_v57 }
 0x493   :  { %14639 = vmatprep.subr.bf16.mxu1 %v15596_v0  ;;  %14657 = vmatprep.subr.bf16.mxu0 %v15596_v0 }
 0x494   :  { %13369 = vmatprep.mubr.msk.f32.mxu1 %vm15597_vm0, %v15598_v1  ;;  %13402 = vmatprep.mubr.msk.f32.mxu0 %vm15597_vm0, %v15598_v1 }
 0x496   :  { %14641 = vmatpush3.bf16.msra.mxu1 %v15942_v40  ;;  %14659 = vmatpush3.bf16.msra.mxu0 %v16136_v55  ;;  %v16156_v40 = vpack.c.bf16 %v3104_v49, %v3103_v45 }
 0x497   :  { %14648 = vmatprep.subr.bf16.mxu1 %v15596_v0  ;;  %14660 = vmatprep.subr.bf16.mxu0 %v15596_v0 }
 0x499   :  { %13370 = vmatmul.mubr.msk.f32.vlgmr.msra.gmra.mrb[30].mxu1 %vm122_vm2, %v16128_v36  ;;  %13403 = vmatmul.mubr.msk.f32.vlgmr.msra.gmra.mrb[38].mxu0 %vm122_vm2, %v16065_v15 }
 0x49a   :  { %14650 = vmatpush3.bf16.msra.mxu1 %v15952_v53  ;;  %14662 = vmatpush3.bf16.msra.mxu0 %v16146_v56  ;;  %v16166_v53 = vpack.c.bf16 %v3106_v58, %v3105_v50 }
 0x49b   :  { %14651 = vmatprep.subr.bf16.mxu1 %v15596_v0  ;;  %14663 = vmatprep.subr.bf16.mxu0 %v15596_v0 }
 0x49c   :  { %13391 = vmatprep.mubr.msk.f32.mxu1 %vm15597_vm0, %v15598_v1  ;;  %13418 = vmatprep.mubr.msk.f32.mxu0 %vm15597_vm0, %v15598_v1 }
 0x49e   :  { %14653 = vmatpush3.bf16.msra.mxu1 %v15962_v6  ;;  %14665 = vmatpush3.bf16.msra.mxu0 %v16156_v40  ;;  %v3093_v6 = vld [vmem:[#allocation2 + $0x4] sm:$0x3] }
 0x49f   :  { %13405 = vmatprep.subr.mxu1 %v15598_v1  ;;  %14666 = vmatprep.subr.bf16.mxu0 %v15596_v0 }
 0x4a1   :  { %13392 = vmatmul.mubr.msk.f32.vlgmr.msra.gmra.mrb[32].mxu1 %vm122_vm2, %v16058_v46  ;;  %13419 = vmatmul.mubr.msk.f32.vlgmr.msra.gmra.mrb[40].mxu0 %vm122_vm2, %v16065_v15 }
 0x4a2   :  { %13406 = vmatpush3.msra.mxu1 %v16170_v61  ;;  %14668 = vmatpush3.bf16.msra.mxu0 %v16166_v53 }
 0x4a3   :  { %13407 = vmatprep.mubr.msk.f32.mxu1 %vm15597_vm0, %v15598_v1  ;;  %14669 = vmatprep.subr.bf16.mxu0 %v15596_v0 }
 0x4a4   :  { %13421 = vmatprep.subr.mxu1 %v15598_v1  ;;  %13439 = vmatprep.mubr.msk.f32.mxu0 %vm15597_vm0, %v15598_v1 }
 0x4a5   :  { %13408 = vmatmul.mubr.msk.f32.vlgmr.msra.gmra.mrb[34].mxu1 %vm196_vm1, %v3093_v6 }
 0x4a6   :  { %14671 = vmatpush3.bf16.msra.mxu0 %v16178_v3  ;;  %13422 = vmatpush3.msra.mxu1 %v16183_v10 }
 0x4a7   :  { %13423 = vmatprep.mubr.msk.f32.mxu1 %vm15597_vm0, %v15598_v1  ;;  %13426 = vmatprep.subr.mxu1 %v15598_v1 }
 0x4a8   :  { %14678 = vmatprep.subr.bf16.mxu0 %v15596_v0 }
 0x4a9   :  { %13424 = vmatmul.mubr.msk.f32.vlgmr.msra.gmra.mrb[36].mxu1 %vm196_vm1, %v3093_v6  ;;  %13440 = vmatmul.mubr.msk.f32.vlgmr.msra.gmra.mrb[42].mxu0 %vm122_vm2, %v16065_v15 }
 0x4aa   :  { %13427 = vmatpush3.msra.mxu1 %v16194_v11  ;;  %13428 = vmatprep.mubr.msk.f32.mxu1 %vm15597_vm0, %v15598_v1 }
 0x4ab   :  { %14672 = vmatprep.subr.bf16.mxu1 %v15596_v0  ;;  %13461 = vmatprep.mubr.msk.f32.mxu0 %vm15597_vm0, %v15598_v1 }
 0x4ac   :  { %14680 = vmatpush3.bf16.msra.mxu0 %v16233_v20 }
 0x4ad   :  { %13429 = vmatmul.mubr.msk.f32.vlgmr.msra.gmra.mrb[38].mxu1 %vm196_vm1, %v3093_v6  ;;  %14681 = vmatprep.subr.bf16.mxu0 %v15596_v0 }
 0x4ae   :  { %14674 = vmatpush3.bf16.msra.mxu1 %v16203_v18  ;;  %13450 = vmatprep.mubr.msk.f32.mxu1 %vm15597_vm0, %v15598_v1 }
 0x4af   :  { %14675 = vmatprep.subr.bf16.mxu1 %v15596_v0 }
 0x4b0   :  { %14683 = vmatpush3.bf16.msra.mxu0 %v16241_v38 }
 0x4b1   :  { %14690 = vmatprep.subr.bf16.mxu0 %v15596_v0 }
 0x4b2   :  { %14677 = vmatpush3.bf16.msra.mxu1 %v16210_v43 }
 0x4b3   :  { %14684 = vmatprep.subr.bf16.mxu1 %v15596_v0 }
 0x4b5   :  { %13451 = vmatmul.mubr.msk.f32.vlgmr.msra.gmra.mrb[40].mxu1 %vm122_vm2, %v16128_v36 }
 0x4b6   :  { %14686 = vmatpush3.bf16.msra.mxu1 %v16216_v60  ;;  %13472 = vmatprep.mubr.msk.f32.mxu1 %vm15597_vm0, %v15598_v1 }
 0x4b7   :  { %14687 = vmatprep.subr.bf16.mxu1 %v15596_v0 }
 0x4ba   :  { %14689 = vmatpush3.bf16.msra.mxu1 %v16222_v21 }
 0x4bb   :  { %14696 = vmatprep.subr.bf16.mxu1 %v15596_v0 }
 0x4bd   :  { %13473 = vmatmul.mubr.msk.f32.vlgmr.msra.gmra.mrb[42].mxu1 %vm122_vm2, %v16128_v36 }
 0x4be   :  { %13494 = vmatprep.mubr.msk.f32.mxu1 %vm15597_vm0, %v15598_v1  ;;  %14698 = vmatpush3.bf16.msra.mxu1 %v16235_v29 }
 0x4bf   :  { %14699 = vmatprep.subr.bf16.mxu1 %v15596_v0 }
 0x4c2   :  { %14701 = vmatpush3.bf16.msra.mxu1 %v16243_v47 }
 0x4c3   :  { %14708 = vmatprep.subr.bf16.mxu1 %v15596_v0 }
 0x564   :  { %v2761_v9 = vpop.f32.mrb[28].mxu1  ;;  %v3003_v54 = vpop.f32.mrb[36].mxu0 }
 0x565   :  { %v2762_v59 = vadd.f32 %v2761_v9, %v16117_v63  ;;  %v13349_v16 = vpop.f32.mrb[29].mxu1  ;;  %v13382_v19 = vpop.f32.mrb[37].mxu0  ;;  %v3004_v9 = vadd.f32 %v16050_v52, %v3003_v54  ;;  %v16274_v52 = vld [vmem:[%s17554_s3 + $0x3] ss:$0 sm:$0xff]  ;;  %v16279_v54 = vld [vmem:[%s17554_s3 + $0x2] ss:$0 sm:$0xff] }
 0x567   :  { %v2771_v22 = vadd.f32 %v16031_v17, %v2762_v59  ;;  %v16256_v17 = vld [vmem:[%s17554_s3] ss:$0 sm:$0xff] }
 0x569   :  { %v12101_v25 = vmul.f32 -1.442695, %v2771_v22 }
 0x56b   :  { %15257 = vpow2.f32 %v12101_v25 }
 0x56c   :  { %v2914_v28 = vpop.f32.mrb[30].mxu1  ;;  %v3179_v27 = vpop.f32.mrb[38].mxu0 }
 0x56d   :  { %v2915_v7 = vadd.f32 %v2914_v28, %v16121_v62  ;;  %v13371_v42 = vpop.f32.mrb[31].mxu1  ;;  %v13404_v57 = vpop.f32.mrb[39].mxu0 }
 0x56f   :  { %v2924_v23 = vadd.f32 %v16037_v41, %v2915_v7  ;;  %v16262_v41 = vld [vmem:[%s17554_s3 + $0x1] ss:$0 sm:$0xff] }
 0x571   :  { %v12105_v45 = vmul.f32 -1.442695, %v2924_v23 }
 0x573   :  { %15259 = vpow2.f32 %v12105_v45 }
 0x574   :  { %v3079_v49 = vpop.f32.mrb[32].mxu1  ;;  %v3335_v50 = vpop.f32.mrb[40].mxu0 }
 0x575   :  { %v15258_v58 = vpop.eup %15257  ;;  %v13393_v63 = vpop.f32.mrb[33].mxu1  ;;  %v3080_v34 = vadd.f32 %v16044_v13, %v3079_v49 }
 0x576   :  { %v13420_v2 = vpop.f32.mrb[41].mxu0  ;;  %v2775_v5 = vadd.f32 1.0, %v15258_v58 }
 0x578   :  { %15261 = vrcp.f32 %v2775_v5  ;;  %v3252_v6 = vpop.f32.mrb[34].mxu1 }
 0x579   :  { %v3253_v62 = vadd.f32 %v3252_v6, %v3179_v27  ;;  %v13409_v14 = vpop.f32.mrb[35].mxu1 }
 0x57b   :  { %v3262_v12 = vadd.f32 %v16256_v17, %v3253_v62 }
 0x57c   :  { %v3405_v37 = vpop.f32.mrb[36].mxu1  ;;  %v3570_v39 = vpop.f32.mrb[42].mxu0 }
 0x57d   :  { %v15260_v48 = vpop.eup %15259  ;;  %v12116_v51 = vmul.f32 -1.442695, %v3262_v12  ;;  %v3406_v4 = vadd.f32 %v3405_v37, %v3335_v50  ;;  %v13441_v8 = vpop.f32.mrb[43].mxu0  ;;  %v3571_v63 = vadd.f32 %v16274_v52, %v3570_v39  ;;  %v3585_v12 = vld [vmem:[#allocation8 + $0x20] sm:$0xff] }
 0x57e   :  { %v13425_v24 = vpop.f32.mrb[37].mxu1  ;;  %v2928_v30 = vadd.f32 1.0, %v15260_v48  ;;  %v3586_v48 = vld [vmem:[#allocation8 + $0x28] sm:$0xff] }
 0x57f   :  { %15263 = vpow2.f32 %v12116_v51  ;;  %v3415_v33 = vadd.f32 %v16262_v41, %v3406_v4  ;;  %v4090_v51 = vld [vmem:[#allocation10 + $0x68] sm:$0xff]  ;;  %v16289_v24 = vpack.c.bf16 %v3586_v48, %v3585_v12  ;;  %v4087_v12 = vld [vmem:[#allocation8 + $0xb0] sm:$0xff]  ;;  %v4088_v48 = vld [vmem:[#allocation8 + $0xb8] sm:$0xff] }
 0x580   :  { %v3494_v26 = vpop.f32.mrb[38].mxu1  ;;  %15265 = vrcp.f32 %v2928_v30 }
 0x581   :  { %v13430_v32 = vpop.f32.mrb[39].mxu1  ;;  %v12120_v44 = vmul.f32 -1.442695, %v3415_v33  ;;  %v3495_v2 = vadd.f32 %v16279_v54, %v3494_v26  ;;  %v3587_v33 = vld [vmem:[#allocation8 + $0x30] sm:$0xff] }
 0x582   :  { %v15262_v35 = vpop.eup %15261  ;;  %v4091_v32 = vld [vmem:[#allocation10 + $0x70] sm:$0xff] }
 0x583   :  { %v3083_v59 = vmul.f32 %v15262_v35, %v3080_v34  ;;  %15267 = vpow2.f32 %v12120_v44  ;;  %v3588_v34 = vld [vmem:[#allocation8 + $0x38] sm:$0xff] }
 0x584   :  { %v4092_v35 = vld [vmem:[#allocation10 + $0x78] sm:$0xff] }
 0x585   :  { %v3084_v16 = vadd.f32 %v3083_v59, %v3004_v9  ;;  %v16303_v44 = vpack.c.bf16 %v4092_v35, %v4091_v32  ;;  %v3601_v9 = vld [vmem:[#allocation10 + $0x40] sm:$0xff]  ;;  %v3602_v59 = vld [vmem:[#allocation10 + $0x48] sm:$0xff] }
 0x587   :  { %15269 = vtanh.f32 %v3084_v16  ;;  %v4093_v16 = vld [vmem:[#allocation10 + $0x80] sm:$0xff] }
 0x588   :  { %v16267_v19 = vpop.f32.mrb[40].mxu1 }
 0x589   :  { %v15264_v22 = vpop.eup %15263  ;;  %v13452_v25 = vpop.f32.mrb[41].mxu1 }
 0x58a   :  { %v3266_v28 = vadd.f32 1.0, %v15264_v22  ;;  %v15266_v27 = vpop.eup %15265  ;;  %v4094_v22 = vld [vmem:[#allocation10 + $0x88] sm:$0xff]  ;;  %v16313_v25 = vpack.c.bf16 %v3602_v59, %v3601_v9  ;;  %v16373_v9 = vld [vmem:[%s17557_s6 + $0x1] ss:$0 sm:$0xff] }
 0x58b   :  { %v3086_v13 = vsub.f32 1.0, %v15266_v27  ;;  %v3088_v49 = vmul.f32 %v15266_v27, %v16058_v46  ;;  %v4089_v46 = vld [vmem:[#allocation10 + $0x60] sm:$0xff]  ;;  %v3603_v27 = vld [vmem:[#allocation10 + $0x50] sm:$0xff] }
 0x58c   :  { %15271 = vrcp.f32 %v3266_v28  ;;  %v16291_v30 = vpack.c.bf16 %v4090_v51, %v4089_v46  ;;  %v16315_v28 = vpack.c.bf16 %v4094_v22, %v4093_v16  ;;  %v16357_v46 = vpack.c.bf16 %v4088_v48, %v4087_v12  ;;  %v16366_v51 = vld [vmem:[%s17557_s6] ss:$0 sm:$0xff]  ;;  %v16384_v12 = vld [vmem:[%s17557_s6 + $0x3] ss:$0 sm:$0xff]  ;;  %v16389_v48 = vld [vmem:[%s17557_s6 + $0x2] ss:$0 sm:$0xff] }
 0x58d   :  { %v15268_v7 = vpop.eup %15267 }
 0x58e   :  { %v3419_v50 = vadd.f32 1.0, %v15268_v7  ;;  %v3604_v7 = vld [vmem:[#allocation10 + $0x58] sm:$0xff] }
 0x590   :  { %v16269_v42 = vpop.f32.mrb[42].mxu1  ;;  %15273 = vrcp.f32 %v3419_v50  ;;  %v4078_v50 = vld [vmem:[#allocation8 + $0x68] sm:$0xff] }
 0x591   :  { %v15270_v57 = vpop.eup %15269  ;;  %v13474_v23 = vpop.f32.mrb[43].mxu1 }
 0x592   :  { %v3087_v45 = vmul.f32 %v15270_v57, %v3086_v13  ;;  %v4095_v13 = vld [vmem:[#allocation10 + $0x90] sm:$0xff]  ;;  %v4096_v57 = vld [vmem:[#allocation10 + $0x98] sm:$0xff]  ;;  %v16325_v23 = vpack.c.bf16 %v3604_v7, %v3603_v27 }
 0x594   :  { %v16282_v58 = vadd.f32 %v3088_v49, %v3087_v45  ;;  %v16327_v45 = vpack.c.bf16 %v4096_v57, %v4095_v13  ;;  %v4077_v49 = vld [vmem:[#allocation8 + $0x60] sm:$0xff] }
 0x596   :  { %v15272_v5 = vpop.eup %15271  ;;  %3091 = vst.msk [vmem:[#allocation11 + $0x2] sm:$0x3] %vm1604_vm3, %v16282_v58 }
 0x597   :  { %v3574_v6 = vmul.f32 %v15272_v5, %v3571_v63  ;;  %v4085_v63 = vld [vmem:[#allocation8 + $0xa0] sm:$0xff]  ;;  %v4086_v5 = vld [vmem:[#allocation8 + $0xa8] sm:$0xff] }
 0x599   :  { %v3575_v62 = vadd.f32 %v3574_v6, %v3495_v2  ;;  %v16347_v2 = vpack.c.bf16 %v4078_v50, %v4077_v49  ;;  %v16349_v6 = vpack.c.bf16 %v4086_v5, %v4085_v63 }
 0x59a   :  { %v15274_v14 = vpop.eup %15273 }
 0x59b   :  { %15275 = vtanh.f32 %v3575_v62  ;;  %v3577_v37 = vsub.f32 1.0, %v15274_v14  ;;  %v3579_v8 = vmul.f32 %v15274_v14, %v16065_v15  ;;  %v16301_v15 = vpack.c.bf16 %v3588_v34, %v3587_v33  ;;  %v4079_v62 = vld [vmem:[#allocation8 + $0x70] sm:$0xff]  ;;  %v4080_v14 = vld [vmem:[#allocation8 + $0x78] sm:$0xff] }
 0x5a5   :  { %v15276_v4 = vpop.eup %15275 }
 0x5a6   :  { %v3578_v39 = vmul.f32 %v15276_v4, %v3577_v37  ;;  %v16355_v37 = vpack.c.bf16 %v4080_v14, %v4079_v62 }
 0x5a8   :  { %v16293_v26 = vadd.f32 %v3579_v8, %v3578_v39 }
 0x5aa   :  { %13462 = vmatmul.mubr.msk.f32.vlgmr.msra.gmra.mrb[44].mxu0 %vm122_vm2, %v16293_v26  ;;  %13495 = vmatmul.mubr.msk.f32.vlgmr.msra.gmra.mrb[44].mxu1 %vm122_vm2, %v16293_v26 }
 0x5ab   :  { %14692 = vmatpush3.bf16.msra.mxu0 %v16289_v24  ;;  %14710 = vmatpush3.bf16.msra.mxu1 %v16291_v30 }
 0x5ac   :  { %14693 = vmatprep.subr.bf16.mxu0 %v15596_v0  ;;  %14711 = vmatprep.subr.bf16.mxu1 %v15596_v0 }
 0x5ad   :  { %13483 = vmatprep.mubr.msk.f32.mxu0 %vm15597_vm0, %v15598_v1  ;;  %13516 = vmatprep.mubr.msk.f32.mxu1 %vm15597_vm0, %v15598_v1 }
 0x5af   :  { %14695 = vmatpush3.bf16.msra.mxu0 %v16301_v15  ;;  %14713 = vmatpush3.bf16.msra.mxu1 %v16303_v44 }
 0x5b0   :  { %14702 = vmatprep.subr.bf16.mxu0 %v15596_v0  ;;  %14720 = vmatprep.subr.bf16.mxu1 %v15596_v0 }
 0x5b2   :  { %13484 = vmatmul.mubr.msk.f32.vlgmr.msra.gmra.mrb[46].mxu0 %vm122_vm2, %v16293_v26  ;;  %13517 = vmatmul.mubr.msk.f32.vlgmr.msra.gmra.mrb[46].mxu1 %vm122_vm2, %v16282_v58 }
 0x5b3   :  { %14704 = vmatpush3.bf16.msra.mxu0 %v16313_v25  ;;  %14722 = vmatpush3.bf16.msra.mxu1 %v16315_v28 }
 0x5b4   :  { %14705 = vmatprep.subr.bf16.mxu0 %v15596_v0  ;;  %14723 = vmatprep.subr.bf16.mxu1 %v15596_v0 }
 0x5b5   :  { %13505 = vmatprep.mubr.msk.f32.mxu0 %vm15597_vm0, %v15598_v1  ;;  %13538 = vmatprep.mubr.msk.f32.mxu1 %vm15597_vm0, %v15598_v1 }
 0x5b7   :  { %14707 = vmatpush3.bf16.msra.mxu0 %v16325_v23  ;;  %14725 = vmatpush3.bf16.msra.mxu1 %v16327_v45 }
 0x5b8   :  { %14714 = vmatprep.subr.bf16.mxu0 %v15596_v0  ;;  %14732 = vmatprep.subr.bf16.mxu1 %v15596_v0 }
 0x5ba   :  { %13506 = vmatmul.mubr.msk.f32.vlgmr.msra.gmra.mrb[48].mxu0 %vm122_vm2, %v16128_v36  ;;  %13539 = vmatmul.mubr.msk.f32.vlgmr.msra.gmra.mrb[48].mxu1 %vm122_vm2, %v16282_v58 }
 0x5bb   :  { %13527 = vmatprep.mubr.msk.f32.mxu0 %vm15597_vm0, %v15598_v1  ;;  %13560 = vmatprep.mubr.msk.f32.mxu1 %vm15597_vm0, %v15598_v1 }
 0x5bc   :  { %14716 = vmatpush3.bf16.msra.mxu0 %v16347_v2  ;;  %14734 = vmatpush3.bf16.msra.mxu1 %v16349_v6 }
 0x5bd   :  { %14717 = vmatprep.subr.bf16.mxu0 %v15596_v0  ;;  %14735 = vmatprep.subr.bf16.mxu1 %v15596_v0 }
 0x5c0   :  { %14719 = vmatpush3.bf16.msra.mxu0 %v16355_v37  ;;  %14737 = vmatpush3.bf16.msra.mxu1 %v16357_v46 }
 0x5c1   :  { %14726 = vmatprep.subr.bf16.mxu0 %v15596_v0  ;;  %14744 = vmatprep.subr.bf16.mxu1 %v15596_v0 }
 0x67d   :  { %v3748_v4 = vpop.f32.mrb[44].mxu0  ;;  %v3990_v8 = vpop.f32.mrb[44].mxu1 }
 0x67e   :  { %v3749_v39 = vadd.f32 %v3748_v4, %v16267_v19  ;;  %v13463_v33 = vpop.f32.mrb[45].mxu0  ;;  %v13496_v34 = vpop.f32.mrb[45].mxu1 }
 0x67f   :  { %v3991_v33 = vadd.f32 %v16389_v48, %v3990_v8 }
 0x680   :  { %v3758_v32 = vadd.f32 %v16366_v51, %v3749_v39 }
 0x682   :  { %v12131_v35 = vmul.f32 -1.442695, %v3758_v32 }
 0x684   :  { %15277 = vpow2.f32 %v12131_v35 }
 0x685   :  { %v3901_v59 = vpop.f32.mrb[46].mxu0  ;;  %v16375_v16 = vpop.f32.mrb[46].mxu1 }
 0x686   :  { %v3902_v22 = vadd.f32 %v3901_v59, %v16269_v42  ;;  %v13485_v27 = vpop.f32.mrb[47].mxu0  ;;  %v13518_v7 = vpop.f32.mrb[47].mxu1 }
 0x687   :  { %v4082_v27 = vld [vmem:[#allocation8 + $0x88] sm:$0xff] }
 0x688   :  { %v3911_v19 = vadd.f32 %v16373_v9, %v3902_v22  ;;  %v4081_v22 = vld [vmem:[#allocation8 + $0x80] sm:$0xff] }
 0x68a   :  { %v12135_v13 = vmul.f32 -1.442695, %v3911_v19 }
 0x68c   :  { %15279 = vpow2.f32 %v12135_v13 }
 0x68d   :  { %v4066_v57 = vpop.f32.mrb[48].mxu0  ;;  %v16379_v49 = vpop.f32.mrb[48].mxu1 }
 0x68e   :  { %v15278_v50 = vpop.eup %15277  ;;  %v13507_v63 = vpop.f32.mrb[49].mxu0  ;;  %v4067_v4 = vadd.f32 %v16384_v12, %v4066_v57  ;;  %v4083_v57 = vld [vmem:[#allocation8 + $0x90] sm:$0xff] }
 0x68f   :  { %v13540_v5 = vpop.f32.mrb[49].mxu1  ;;  %v3762_v62 = vadd.f32 1.0, %v15278_v50  ;;  %v16394_v50 = vpack.c.bf16 %v4082_v27, %v4081_v22 }
 0x690   :  { %v4084_v5 = vld [vmem:[#allocation8 + $0x98] sm:$0xff] }
 0x691   :  { %15281 = vrcp.f32 %v3762_v62  ;;  %v16404_v8 = vpack.c.bf16 %v4084_v5, %v4083_v57  ;;  %v4098_v62 = vld [vmem:[#allocation10 + $0xa8] sm:$0xff] }
 0x696   :  { %v15280_v14 = vpop.eup %15279 }
 0x697   :  { %v3915_v42 = vadd.f32 1.0, %v15280_v14 }
 0x699   :  { %15283 = vrcp.f32 %v3915_v42  ;;  %v4100_v42 = vld [vmem:[#allocation10 + $0xb8] sm:$0xff] }
 0x69b   :  { %v15282_v39 = vpop.eup %15281 }
 0x69c   :  { %v4070_v34 = vmul.f32 %v15282_v39, %v4067_v4 }
 0x69e   :  { %v4071_v32 = vadd.f32 %v4070_v34, %v3991_v33 }
 0x6a0   :  { %15285 = vtanh.f32 %v4071_v32 }
 0x6a3   :  { %v15284_v35 = vpop.eup %15283 }
 0x6a4   :  { %v4073_v59 = vsub.f32 1.0, %v15284_v35  ;;  %v4075_v19 = vmul.f32 %v15284_v35, %v16128_v36  ;;  %v4097_v36 = vld [vmem:[#allocation10 + $0xa0] sm:$0xff] }
 0x6a5   :  { %v16414_v14 = vpack.c.bf16 %v4098_v62, %v4097_v36 }
 0x6aa   :  { %v15286_v7 = vpop.eup %15285 }
 0x6ab   :  { %v4074_v13 = vmul.f32 %v15286_v7, %v4073_v59 }
 0x6ad   :  { %v16396_v63 = vadd.f32 %v4075_v19, %v4074_v13 }
 0x6af   :  { %13528 = vmatmul.mubr.msk.f32.vlgmr.msra.gmra.mrb[50].mxu0 %vm122_vm2, %v16396_v63  ;;  %13561 = vmatmul.mubr.msk.f32.vlgmr.msra.gmra.mrb[50].mxu1 %vm122_vm2, %v16396_v63 }
 0x6b0   :  { %14728 = vmatpush3.bf16.msra.mxu0 %v16394_v50  ;;  %14746 = vmatpush3.bf16.msra.mxu1 %v16126_v31  ;;  %v4099_v31 = vld [vmem:[#allocation10 + $0xb0] sm:$0xff] }
 0x6b1   :  { %14729 = vmatprep.subr.bf16.mxu0 %v15596_v0  ;;  %14747 = vmatprep.subr.bf16.mxu1 %v15596_v0  ;;  %v16424_v4 = vpack.c.bf16 %v4100_v42, %v4099_v31  ;;  %v16509_v42 = vld [vmem:[%s17557_s6 + $0x7] ss:$0 sm:$0xff] }
 0x6b2   :  { %13549 = vmatprep.mubr.msk.f32.mxu0 %vm15597_vm0, %v15598_v1  ;;  %13582 = vmatprep.mubr.msk.f32.mxu1 %vm15597_vm0, %v15598_v1 }
 0x6b4   :  { %14731 = vmatpush3.bf16.msra.mxu0 %v16404_v8  ;;  %14749 = vmatpush3.bf16.msra.mxu1 %v16136_v55  ;;  %v4579_v55 = vld [vmem:[#allocation2 + $0x6] sm:$0x3] }
 0x6b5   :  { %14738 = vmatprep.subr.bf16.mxu0 %v15596_v0  ;;  %14750 = vmatprep.subr.bf16.mxu1 %v15596_v0 }
 0x6b7   :  { %13550 = vmatmul.mubr.msk.f32.vlgmr.msra.gmra.mrb[52].mxu0 %vm122_vm2, %v16396_v63  ;;  %13583 = vmatmul.mubr.msk.f32.vlgmr.msra.gmra.mrb[52].mxu1 %vm122_vm2, %v16293_v26 }
 0x6b8   :  { %14740 = vmatpush3.bf16.msra.mxu0 %v16414_v14  ;;  %14752 = vmatpush3.bf16.msra.mxu1 %v16146_v56  ;;  %v16494_v56 = vld [vmem:[%s17557_s6 + $0x4] ss:$0 sm:$0xff] }
 0x6b9   :  { %14741 = vmatprep.subr.bf16.mxu0 %v15596_v0  ;;  %14753 = vmatprep.subr.bf16.mxu1 %v15596_v0 }
 0x6ba   :  { %13571 = vmatprep.mubr.msk.f32.mxu0 %vm15597_vm0, %v15598_v1  ;;  %13598 = vmatprep.mubr.msk.f32.mxu1 %vm15597_vm0, %v15598_v1 }
 0x6bc   :  { %14743 = vmatpush3.bf16.msra.mxu0 %v16424_v4  ;;  %14755 = vmatpush3.bf16.msra.mxu1 %v16156_v40 }
 0x6bd   :  { %13585 = vmatprep.subr.mxu0 %v15598_v1  ;;  %14756 = vmatprep.subr.bf16.mxu1 %v15596_v0 }
 0x6bf   :  { %13572 = vmatmul.mubr.msk.f32.vlgmr.msra.gmra.mrb[54].mxu0 %vm122_vm2, %v16282_v58  ;;  %13599 = vmatmul.mubr.msk.f32.vlgmr.msra.gmra.mrb[54].mxu1 %vm122_vm2, %v16293_v26 }
 0x6c0   :  { %13586 = vmatpush3.msra.mxu0 %v16170_v61  ;;  %14758 = vmatpush3.bf16.msra.mxu1 %v16166_v53 }
 0x6c1   :  { %13587 = vmatprep.mubr.msk.f32.mxu0 %vm15597_vm0, %v15598_v1  ;;  %14759 = vmatprep.subr.bf16.mxu1 %v15596_v0 }
 0x6c2   :  { %13601 = vmatprep.subr.mxu0 %v15598_v1  ;;  %13619 = vmatprep.mubr.msk.f32.mxu1 %vm15597_vm0, %v15598_v1 }
 0x6c3   :  { %13588 = vmatmul.mubr.msk.f32.vlgmr.msra.gmra.mrb[56].mxu0 %vm196_vm1, %v4579_v55 }
 0x6c4   :  { %14761 = vmatpush3.bf16.msra.mxu1 %v16178_v3  ;;  %13602 = vmatpush3.msra.mxu0 %v16183_v10 }
 0x6c5   :  { %13603 = vmatprep.mubr.msk.f32.mxu0 %vm15597_vm0, %v15598_v1  ;;  %13606 = vmatprep.subr.mxu0 %v15598_v1 }
 0x6c6   :  { %14768 = vmatprep.subr.bf16.mxu1 %v15596_v0 }
 0x6c7   :  { %13604 = vmatmul.mubr.msk.f32.vlgmr.msra.gmra.mrb[58].mxu0 %vm196_vm1, %v4579_v55  ;;  %13620 = vmatmul.mubr.msk.f32.vlgmr.msra.gmra.mrb[56].mxu1 %vm122_vm2, %v16293_v26 }
 0x6c8   :  { %13607 = vmatpush3.msra.mxu0 %v16194_v11  ;;  %13608 = vmatprep.mubr.msk.f32.mxu0 %vm15597_vm0, %v15598_v1 }
 0x6c9   :  { %14762 = vmatprep.subr.bf16.mxu0 %v15596_v0  ;;  %14770 = vmatpush3.bf16.msra.mxu1 %v16233_v20 }
 0x6ca   :  { %14771 = vmatprep.subr.bf16.mxu1 %v15596_v0  ;;  %13641 = vmatprep.mubr.msk.f32.mxu1 %vm15597_vm0, %v15598_v1 }
 0x6cb   :  { %13609 = vmatmul.mubr.msk.f32.vlgmr.msra.gmra.mrb[60].mxu0 %vm196_vm1, %v4579_v55 }
 0x6cc   :  { %14764 = vmatpush3.bf16.msra.mxu0 %v16203_v18  ;;  %13630 = vmatprep.mubr.msk.f32.mxu0 %vm15597_vm0, %v15598_v1 }
 0x6cd   :  { %14765 = vmatprep.subr.bf16.mxu0 %v15596_v0  ;;  %14773 = vmatpush3.bf16.msra.mxu1 %v16241_v38 }
 0x6ce   :  { %14780 = vmatprep.subr.bf16.mxu1 %v15596_v0 }
 0x6d0   :  { %14767 = vmatpush3.bf16.msra.mxu0 %v16210_v43  ;;  %v16501_v43 = vld [vmem:[%s17557_s6 + $0x5] ss:$0 sm:$0xff] }
 0x6d1   :  { %14774 = vmatprep.subr.bf16.mxu0 %v15596_v0 }
 0x6d3   :  { %13631 = vmatmul.mubr.msk.f32.vlgmr.msra.gmra.mrb[62].mxu0 %vm122_vm2, %v16396_v63 }
 0x6d4   :  { %14776 = vmatpush3.bf16.msra.mxu0 %v16216_v60  ;;  %13652 = vmatprep.mubr.msk.f32.mxu0 %vm15597_vm0, %v15598_v1 }
 0x6d5   :  { %14777 = vmatprep.subr.bf16.mxu0 %v15596_v0 }
 0x6d8   :  { %14779 = vmatpush3.bf16.msra.mxu0 %v16222_v21 }
 0x6d9   :  { %14786 = vmatprep.subr.bf16.mxu0 %v15596_v0 }
 0x6db   :  { %13653 = vmatmul.mubr.msk.f32.vlgmr.msra.gmra.mrb[64].mxu0 %vm122_vm2, %v16396_v63 }
 0x6dc   :  { %14788 = vmatpush3.bf16.msra.mxu0 %v16235_v29  ;;  %13674 = vmatprep.mubr.msk.f32.mxu0 %vm15597_vm0, %v15598_v1 }
 0x6dd   :  { %14789 = vmatprep.subr.bf16.mxu0 %v15596_v0 }
 0x6e0   :  { %14791 = vmatpush3.bf16.msra.mxu0 %v16243_v47 }
 0x6e1   :  { %14798 = vmatprep.subr.bf16.mxu0 %v15596_v0 }
 0x782   :  { %v4247_v40 = vpop.f32.mrb[50].mxu0  ;;  %v4489_v53 = vpop.f32.mrb[50].mxu1 }
 0x783   :  { %v4248_v61 = vadd.f32 %v4247_v40, %v16375_v16  ;;  %v13529_v3 = vpop.f32.mrb[51].mxu0  ;;  %v13562_v10 = vpop.f32.mrb[51].mxu1 }
 0x785   :  { %v4257_v11 = vadd.f32 %v16494_v56, %v4248_v61 }
 0x787   :  { %v12147_v18 = vmul.f32 -1.442695, %v4257_v11 }
 0x789   :  { %15287 = vpow2.f32 %v12147_v18 }
 0x78a   :  { %v4400_v60 = vpop.f32.mrb[52].mxu0  ;;  %v4665_v21 = vpop.f32.mrb[52].mxu1 }
 0x78b   :  { %v4401_v20 = vadd.f32 %v4400_v60, %v16379_v49  ;;  %v13551_v29 = vpop.f32.mrb[53].mxu0  ;;  %v13584_v38 = vpop.f32.mrb[53].mxu1 }
 0x78d   :  { %v4410_v47 = vadd.f32 %v16501_v43, %v4401_v20 }
 0x78f   :  { %v12151_v16 = vmul.f32 -1.442695, %v4410_v47 }
 0x791   :  { %15289 = vpow2.f32 %v12151_v16 }
 0x792   :  { %v4565_v39 = vpop.f32.mrb[54].mxu0  ;;  %v4821_v33 = vpop.f32.mrb[54].mxu1 }
 0x793   :  { %v15288_v34 = vpop.eup %15287  ;;  %v13573_v32 = vpop.f32.mrb[55].mxu0  ;;  %v4566_v3 = vadd.f32 %v16509_v42, %v4565_v39 }
 0x794   :  { %v13600_v35 = vpop.f32.mrb[55].mxu1  ;;  %v4261_v59 = vadd.f32 1.0, %v15288_v34 }
 0x796   :  { %15291 = vrcp.f32 %v4261_v59  ;;  %v4738_v22 = vpop.f32.mrb[56].mxu0 }
 0x797   :  { %v4739_v27 = vadd.f32 %v4738_v22, %v4665_v21  ;;  %v13589_v7 = vpop.f32.mrb[57].mxu0 }
 0x799   :  { %v4748_v19 = vadd.f32 %v16256_v17, %v4739_v27  ;;  %v16515_v17 = vld [vmem:[%s17557_s6 + $0x6] ss:$0 sm:$0xff] }
 0x79a   :  { %v4891_v13 = vpop.f32.mrb[58].mxu0  ;;  %v5056_v49 = vpop.f32.mrb[56].mxu1  ;;  %v4490_v60 = vadd.f32 %v16515_v17, %v4489_v53 }
 0x79b   :  { %v15290_v57 = vpop.eup %15289  ;;  %v12162_v5 = vmul.f32 -1.442695, %v4748_v19  ;;  %v4892_v36 = vadd.f32 %v4891_v13, %v4821_v33  ;;  %v13621_v62 = vpop.f32.mrb[57].mxu1  ;;  %v5057_v7 = vadd.f32 %v16274_v52, %v5056_v49 }
 0x79c   :  { %v13605_v31 = vpop.f32.mrb[59].mxu0  ;;  %v4414_v55 = vadd.f32 1.0, %v15290_v57 }
 0x79d   :  { %15293 = vpow2.f32 %v12162_v5  ;;  %v4901_v40 = vadd.f32 %v16262_v41, %v4892_v36 }
 0x79e   :  { %v4980_v61 = vpop.f32.mrb[60].mxu0  ;;  %15295 = vrcp.f32 %v4414_v55 }
 0x79f   :  { %v13610_v10 = vpop.f32.mrb[61].mxu0  ;;  %v12166_v18 = vmul.f32 -1.442695, %v4901_v40  ;;  %v4981_v19 = vadd.f32 %v16279_v54, %v4980_v61 }
 0x7a0   :  { %v15292_v11 = vpop.eup %15291 }
 0x7a1   :  { %v4569_v21 = vmul.f32 %v15292_v11, %v4566_v3  ;;  %15297 = vpow2.f32 %v12166_v18 }
 0x7a3   :  { %v4570_v20 = vadd.f32 %v4569_v21, %v4490_v60 }
 0x7a5   :  { %15299 = vtanh.f32 %v4570_v20 }
 0x7a6   :  { %v16519_v29 = vpop.f32.mrb[62].mxu0 }
 0x7a7   :  { %v15294_v41 = vpop.eup %15293  ;;  %v13632_v38 = vpop.f32.mrb[63].mxu0 }
 0x7a8   :  { %v4752_v47 = vadd.f32 1.0, %v15294_v41  ;;  %v15296_v16 = vpop.eup %15295 }
 0x7a9   :  { %v4572_v39 = vsub.f32 1.0, %v15296_v16  ;;  %v4574_v53 = vmul.f32 %v15296_v16, %v16282_v58  ;;  %v6070_v16 = vld [vmem:[#allocation7 + $0x8] sm:$0xff] }
 0x7aa   :  { %15301 = vrcp.f32 %v4752_v47  ;;  %v6069_v47 = vld [vmem:[#allocation7] sm:$0xff] }
 0x7ab   :  { %v15298_v33 = vpop.eup %15297 }
 0x7ac   :  { %v4905_v22 = vadd.f32 1.0, %v15298_v33 }
 0x7ae   :  { %v16521_v34 = vpop.f32.mrb[64].mxu0  ;;  %15303 = vrcp.f32 %v4905_v22  ;;  %v6075_v22 = vld [vmem:[#allocation7 + $0x30] sm:$0xff] }
 0x7af   :  { %v15300_v32 = vpop.eup %15299  ;;  %v13654_v35 = vpop.f32.mrb[65].mxu0 }
 0x7b0   :  { %v4573_v59 = vmul.f32 %v15300_v32, %v4572_v39  ;;  %v16592_v32 = vpack.c.bf16 %v6070_v16, %v6069_v47 }
 0x7b2   :  { %v16524_v27 = vadd.f32 %v4574_v53, %v4573_v59  ;;  %v6072_v59 = vld [vmem:[#allocation7 + $0x18] sm:$0xff]  ;;  %v6074_v53 = vld [vmem:[#allocation7 + $0x28] sm:$0xff] }
 0x7b4   :  { %v15302_v13 = vpop.eup %15301  ;;  %4577 = vst.msk [vmem:[#allocation11 + $0x4] sm:$0x3] %vm1604_vm3, %v16524_v27 }
 0x7b5   :  { %v5060_v57 = vmul.f32 %v15302_v13, %v5057_v7  ;;  %v6076_v7 = vld [vmem:[#allocation7 + $0x38] sm:$0xff]  ;;  %v6078_v13 = vld [vmem:[#allocation7 + $0x48] sm:$0xff] }
 0x7b7   :  { %v5061_v5 = vadd.f32 %v5060_v57, %v4981_v19  ;;  %v6077_v19 = vld [vmem:[#allocation7 + $0x40] sm:$0xff]  ;;  %v16636_v57 = vld [vmem:[#allocation5] sm:$0xff] }
 0x7b8   :  { %v15304_v36 = vpop.eup %15303 }
 0x7b9   :  { %15305 = vtanh.f32 %v5061_v5  ;;  %v5063_v62 = vsub.f32 1.0, %v15304_v36  ;;  %v5065_v58 = vmul.f32 %v15304_v36, %v16293_v26  ;;  %v6079_v5 = vld [vmem:[#allocation7 + $0x50] sm:$0xff]  ;;  %v6080_v36 = vld [vmem:[#allocation7 + $0x58] sm:$0xff] }
 0x7c3   :  { %v15306_v31 = vpop.eup %15305 }
 0x7c4   :  { %v5064_v55 = vmul.f32 %v15306_v31, %v5063_v62  ;;  %v16644_v62 = vpack.c.bf16 %v6080_v36, %v6079_v5  ;;  %v16649_v31 = vld [vmem:[#allocation5 + $0x8] sm:$0xff] }
 0x7c6   :  { %v16531_v40 = vadd.f32 %v5065_v58, %v5064_v55  ;;  %v16660_v58 = vld [vmem:[#allocation5 + $0x10] sm:$0xff]  ;;  %v6565_v55 = vld [vmem:[#allocation10] sm:$0xff] }
 0x7c8   :  { %13642 = vmatmul.mubr.msk.f32.vlgmr.msra.gmra.mrb[58].mxu1 %vm122_vm2, %v16531_v40  ;;  %13675 = vmatmul.mubr.msk.f32.vlgmr.msra.gmra.mrb[66].mxu0 %vm122_vm2, %v16531_v40 }
 0x7c9   :  { %14782 = vmatpush3.bf16.msra.mxu1 %v16289_v24  ;;  %14800 = vmatpush3.bf16.msra.mxu0 %v16291_v30 }
 0x7ca   :  { %14783 = vmatprep.subr.bf16.mxu1 %v15596_v0  ;;  %14801 = vmatprep.subr.bf16.mxu0 %v15596_v0 }
 0x7cb   :  { %13663 = vmatprep.mubr.msk.f32.mxu1 %vm15597_vm0, %v15598_v1  ;;  %13696 = vmatprep.mubr.msk.f32.mxu0 %vm15597_vm0, %v15598_v1 }
 0x7cd   :  { %14785 = vmatpush3.bf16.msra.mxu1 %v16301_v15  ;;  %14803 = vmatpush3.bf16.msra.mxu0 %v16303_v44 }
 0x7ce   :  { %14792 = vmatprep.subr.bf16.mxu1 %v15596_v0  ;;  %14810 = vmatprep.subr.bf16.mxu0 %v15596_v0 }
 0x7d0   :  { %13664 = vmatmul.mubr.msk.f32.vlgmr.msra.gmra.mrb[60].mxu1 %vm122_vm2, %v16531_v40  ;;  %13697 = vmatmul.mubr.msk.f32.vlgmr.msra.gmra.mrb[68].mxu0 %vm122_vm2, %v16524_v27 }
 0x7d1   :  { %14794 = vmatpush3.bf16.msra.mxu1 %v16313_v25  ;;  %14812 = vmatpush3.bf16.msra.mxu0 %v16315_v28 }
 0x7d2   :  { %14795 = vmatprep.subr.bf16.mxu1 %v15596_v0  ;;  %14813 = vmatprep.subr.bf16.mxu0 %v15596_v0 }
 0x7d3   :  { %13685 = vmatprep.mubr.msk.f32.mxu1 %vm15597_vm0, %v15598_v1  ;;  %13718 = vmatprep.mubr.msk.f32.mxu0 %vm15597_vm0, %v15598_v1 }
 0x7d5   :  { %14797 = vmatpush3.bf16.msra.mxu1 %v16325_v23  ;;  %14815 = vmatpush3.bf16.msra.mxu0 %v16327_v45 }
 0x7d6   :  { %14804 = vmatprep.subr.bf16.mxu1 %v15596_v0  ;;  %14822 = vmatprep.subr.bf16.mxu0 %v15596_v0 }
 0x7d8   :  { %13686 = vmatmul.mubr.msk.f32.vlgmr.msra.gmra.mrb[62].mxu1 %vm122_vm2, %v16396_v63  ;;  %13719 = vmatmul.mubr.msk.f32.vlgmr.msra.gmra.mrb[70].mxu0 %vm122_vm2, %v16524_v27 }
 0x7d9   :  { %14806 = vmatpush3.bf16.msra.mxu1 %v16347_v2  ;;  %14824 = vmatpush3.bf16.msra.mxu0 %v16349_v6 }
 0x7da   :  { %14807 = vmatprep.subr.bf16.mxu1 %v15596_v0  ;;  %14825 = vmatprep.subr.bf16.mxu0 %v15596_v0 }
 0x7db   :  { %13707 = vmatprep.mubr.msk.f32.mxu1 %vm15597_vm0, %v15598_v1  ;;  %13740 = vmatprep.mubr.msk.f32.mxu0 %vm15597_vm0, %v15598_v1 }
 0x7dd   :  { %14809 = vmatpush3.bf16.msra.mxu1 %v16355_v37  ;;  %14827 = vmatpush3.bf16.msra.mxu0 %v16357_v46 }
 0x7de   :  { %14816 = vmatprep.subr.bf16.mxu1 %v15596_v0  ;;  %14834 = vmatprep.subr.bf16.mxu0 %v15596_v0 }
 0x89b   :  { %v5234_v52 = vpop.f32.mrb[58].mxu1  ;;  %v5476_v54 = vpop.f32.mrb[66].mxu0 }
 0x89c   :  { %v5235_v24 = vadd.f32 %v5234_v52, %v16519_v29  ;;  %v13643_v30 = vpop.f32.mrb[59].mxu1  ;;  %v13676_v26 = vpop.f32.mrb[67].mxu0  ;;  %v5477_v20 = vadd.f32 %v16389_v48, %v5476_v54  ;;  %v6566_v52 = vld [vmem:[#allocation10 + $0x8] sm:$0xff] }
 0x89d   :  { %v16669_v54 = vpack.c.bf16 %v6566_v52, %v6565_v55  ;;  %v6568_v30 = vld [vmem:[#allocation10 + $0x18] sm:$0xff] }
 0x89e   :  { %v5244_v15 = vadd.f32 %v16366_v51, %v5235_v24  ;;  %v6567_v24 = vld [vmem:[#allocation10 + $0x10] sm:$0xff] }
 0x89f   :  { %v16676_v26 = vpack.c.bf16 %v6568_v30, %v6567_v24 }
 0x8a0   :  { %v12177_v44 = vmul.f32 -1.442695, %v5244_v15  ;;  %v6569_v15 = vld [vmem:[#allocation10 + $0x20] sm:$0xff] }
 0x8a2   :  { %15307 = vpow2.f32 %v12177_v44  ;;  %v6570_v44 = vld [vmem:[#allocation10 + $0x28] sm:$0xff] }
 0x8a3   :  { %v5387_v25 = vpop.f32.mrb[60].mxu1  ;;  %v16583_v28 = vpop.f32.mrb[68].mxu0 }
 0x8a4   :  { %v5388_v23 = vadd.f32 %v5387_v25, %v16521_v34  ;;  %v13665_v45 = vpop.f32.mrb[61].mxu1  ;;  %v13698_v2 = vpop.f32.mrb[69].mxu0  ;;  %v16682_v25 = vpack.c.bf16 %v6570_v44, %v6569_v15 }
 0x8a5   :  { %v6572_v45 = vld [vmem:[#allocation10 + $0x38] sm:$0xff] }
 0x8a6   :  { %v5397_v6 = vadd.f32 %v16373_v9, %v5388_v23  ;;  %v6571_v23 = vld [vmem:[#allocation10 + $0x30] sm:$0xff] }
 0x8a7   :  { %v16688_v2 = vpack.c.bf16 %v6572_v45, %v6571_v23 }
 0x8a8   :  { %v12181_v37 = vmul.f32 -1.442695, %v5397_v6  ;;  %v6553_v6 = vld [vmem:[#allocation8] sm:$0xff] }
 0x8aa   :  { %15309 = vpow2.f32 %v12181_v37  ;;  %v6554_v37 = vld [vmem:[#allocation8 + $0x8] sm:$0xff] }
 0x8ab   :  { %v5552_v46 = vpop.f32.mrb[62].mxu1  ;;  %v16587_v49 = vpop.f32.mrb[70].mxu0 }
 0x8ac   :  { %v15308_v61 = vpop.eup %15307  ;;  %v13687_v3 = vpop.f32.mrb[63].mxu1  ;;  %v5553_v60 = vadd.f32 %v16384_v12, %v5552_v46  ;;  %v6071_v12 = vld [vmem:[#allocation7 + $0x10] sm:$0xff]  ;;  %v6561_v46 = vld [vmem:[#allocation8 + $0x40] sm:$0xff] }
 0x8ad   :  { %v13720_v10 = vpop.f32.mrb[71].mxu0  ;;  %v5248_v51 = vadd.f32 1.0, %v15308_v61  ;;  %v16602_v48 = vpack.c.bf16 %v6072_v59, %v6071_v12  ;;  %v16699_v61 = vpack.c.bf16 %v6554_v37, %v6553_v6  ;;  %v6562_v3 = vld [vmem:[#allocation8 + $0x48] sm:$0xff] }
 0x8ae   :  { %v16701_v10 = vpack.c.bf16 %v6562_v3, %v6561_v46 }
 0x8af   :  { %15311 = vrcp.f32 %v5248_v51  ;;  %v6555_v51 = vld [vmem:[#allocation8 + $0x10] sm:$0xff] }
 0x8b4   :  { %v15310_v11 = vpop.eup %15309 }
 0x8b5   :  { %v5401_v18 = vadd.f32 1.0, %v15310_v11  ;;  %v6556_v11 = vld [vmem:[#allocation8 + $0x18] sm:$0xff] }
 0x8b7   :  { %15313 = vrcp.f32 %v5401_v18  ;;  %v6563_v18 = vld [vmem:[#allocation8 + $0x50] sm:$0xff] }
 0x8b9   :  { %v15312_v21 = vpop.eup %15311 }
 0x8ba   :  { %v5556_v29 = vmul.f32 %v15312_v21, %v5553_v60  ;;  %v16707_v60 = vpack.c.bf16 %v6556_v11, %v6555_v51  ;;  %v6564_v21 = vld [vmem:[#allocation8 + $0x58] sm:$0xff] }
 0x8bc   :  { %v5557_v9 = vadd.f32 %v5556_v29, %v5477_v20  ;;  %v16709_v20 = vpack.c.bf16 %v6564_v21, %v6563_v18 }
 0x8be   :  { %15315 = vtanh.f32 %v5557_v9 }
 0x8c1   :  { %v15314_v41 = vpop.eup %15313 }
 0x8c2   :  { %v5559_v38 = vsub.f32 1.0, %v15314_v41  ;;  %v5561_v34 = vmul.f32 %v15314_v41, %v16396_v63  ;;  %v6073_v63 = vld [vmem:[#allocation7 + $0x20] sm:$0xff] }
 0x8c8   :  { %v15316_v33 = vpop.eup %15315 }
 0x8c9   :  { %v5560_v39 = vmul.f32 %v15316_v33, %v5559_v38 }
 0x8cb   :  { %v16594_v35 = vadd.f32 %v5561_v34, %v5560_v39 }
 0x8cd   :  { %13708 = vmatmul.mubr.msk.f32.vlgmr.msra.gmra.mrb[64].mxu1 %vm122_vm2, %v16594_v35  ;;  %13741 = vmatmul.mubr.msk.f32.vlgmr.msra.gmra.mrb[72].mxu0 %vm122_vm2, %v16594_v35 }
 0x8ce   :  { %14818 = vmatpush3.bf16.msra.mxu1 %v16394_v50  ;;  %14836 = vmatpush3.bf16.msra.mxu0 %v16592_v32  ;;  %v16612_v50 = vpack.c.bf16 %v6074_v53, %v6073_v63 }
 0x8cf   :  { %14819 = vmatprep.subr.bf16.mxu1 %v15596_v0  ;;  %14837 = vmatprep.subr.bf16.mxu0 %v15596_v0 }
 0x8d0   :  { %13729 = vmatprep.mubr.msk.f32.mxu1 %vm15597_vm0, %v15598_v1  ;;  %13762 = vmatprep.mubr.msk.f32.mxu0 %vm15597_vm0, %v15598_v1 }
 0x8d2   :  { %14821 = vmatpush3.bf16.msra.mxu1 %v16404_v8  ;;  %14839 = vmatpush3.bf16.msra.mxu0 %v16602_v48  ;;  %v16622_v8 = vpack.c.bf16 %v6076_v7, %v6075_v22 }
 0x8d3   :  { %14828 = vmatprep.subr.bf16.mxu1 %v15596_v0  ;;  %14840 = vmatprep.subr.bf16.mxu0 %v15596_v0 }
 0x8d5   :  { %13730 = vmatmul.mubr.msk.f32.vlgmr.msra.gmra.mrb[66].mxu1 %vm122_vm2, %v16594_v35  ;;  %13763 = vmatmul.mubr.msk.f32.vlgmr.msra.gmra.mrb[74].mxu0 %vm122_vm2, %v16531_v40 }
 0x8d6   :  { %14830 = vmatpush3.bf16.msra.mxu1 %v16414_v14  ;;  %14842 = vmatpush3.bf16.msra.mxu0 %v16612_v50  ;;  %v16632_v14 = vpack.c.bf16 %v6078_v13, %v6077_v19 }
 0x8d7   :  { %14831 = vmatprep.subr.bf16.mxu1 %v15596_v0  ;;  %14843 = vmatprep.subr.bf16.mxu0 %v15596_v0 }
 0x8d8   :  { %13751 = vmatprep.mubr.msk.f32.mxu1 %vm15597_vm0, %v15598_v1  ;;  %13778 = vmatprep.mubr.msk.f32.mxu0 %vm15597_vm0, %v15598_v1 }
 0x8da   :  { %14833 = vmatpush3.bf16.msra.mxu1 %v16424_v4  ;;  %14845 = vmatpush3.bf16.msra.mxu0 %v16622_v8  ;;  %v6065_v4 = vld [vmem:[#allocation2 + $0x8] sm:$0x3] }
 0x8db   :  { %13765 = vmatprep.subr.mxu1 %v15598_v1  ;;  %14846 = vmatprep.subr.bf16.mxu0 %v15596_v0 }
 0x8dd   :  { %13752 = vmatmul.mubr.msk.f32.vlgmr.msra.gmra.mrb[68].mxu1 %vm122_vm2, %v16524_v27  ;;  %13779 = vmatmul.mubr.msk.f32.vlgmr.msra.gmra.mrb[76].mxu0 %vm122_vm2, %v16531_v40 }
 0x8de   :  { %13766 = vmatpush3.msra.mxu1 %v16636_v57  ;;  %14848 = vmatpush3.bf16.msra.mxu0 %v16632_v14 }
 0x8df   :  { %13767 = vmatprep.mubr.msk.f32.mxu1 %vm15597_vm0, %v15598_v1  ;;  %14849 = vmatprep.subr.bf16.mxu0 %v15596_v0 }
 0x8e0   :  { %13781 = vmatprep.subr.mxu1 %v15598_v1  ;;  %13799 = vmatprep.mubr.msk.f32.mxu0 %vm15597_vm0, %v15598_v1 }
 0x8e1   :  { %13768 = vmatmul.mubr.msk.f32.vlgmr.msra.gmra.mrb[70].mxu1 %vm196_vm1, %v6065_v4 }
 0x8e2   :  { %14851 = vmatpush3.bf16.msra.mxu0 %v16644_v62  ;;  %13782 = vmatpush3.msra.mxu1 %v16649_v31 }
 0x8e3   :  { %13783 = vmatprep.mubr.msk.f32.mxu1 %vm15597_vm0, %v15598_v1  ;;  %13786 = vmatprep.subr.mxu1 %v15598_v1 }
 0x8e4   :  { %14858 = vmatprep.subr.bf16.mxu0 %v15596_v0 }
 0x8e5   :  { %13784 = vmatmul.mubr.msk.f32.vlgmr.msra.gmra.mrb[72].mxu1 %vm196_vm1, %v6065_v4  ;;  %13800 = vmatmul.mubr.msk.f32.vlgmr.msra.gmra.mrb[78].mxu0 %vm122_vm2, %v16531_v40 }
 0x8e6   :  { %13787 = vmatpush3.msra.mxu1 %v16660_v58  ;;  %13788 = vmatprep.mubr.msk.f32.mxu1 %vm15597_vm0, %v15598_v1 }
 0x8e7   :  { %14852 = vmatprep.subr.bf16.mxu1 %v15596_v0  ;;  %13821 = vmatprep.mubr.msk.f32.mxu0 %vm15597_vm0, %v15598_v1 }
 0x8e8   :  { %14860 = vmatpush3.bf16.msra.mxu0 %v16699_v61 }
 0x8e9   :  { %13789 = vmatmul.mubr.msk.f32.vlgmr.msra.gmra.mrb[74].mxu1 %vm196_vm1, %v6065_v4  ;;  %14861 = vmatprep.subr.bf16.mxu0 %v15596_v0 }
 0x8ea   :  { %14854 = vmatpush3.bf16.msra.mxu1 %v16669_v54  ;;  %13810 = vmatprep.mubr.msk.f32.mxu1 %vm15597_vm0, %v15598_v1 }
 0x8eb   :  { %14855 = vmatprep.subr.bf16.mxu1 %v15596_v0 }
 0x8ec   :  { %14863 = vmatpush3.bf16.msra.mxu0 %v16707_v60 }
 0x8ed   :  { %14870 = vmatprep.subr.bf16.mxu0 %v15596_v0 }
 0x8ee   :  { %14857 = vmatpush3.bf16.msra.mxu1 %v16676_v26 }
 0x8ef   :  { %14864 = vmatprep.subr.bf16.mxu1 %v15596_v0 }
 0x8f1   :  { %13811 = vmatmul.mubr.msk.f32.vlgmr.msra.gmra.mrb[76].mxu1 %vm122_vm2, %v16594_v35 }
 0x8f2   :  { %14866 = vmatpush3.bf16.msra.mxu1 %v16682_v25  ;;  %13832 = vmatprep.mubr.msk.f32.mxu1 %vm15597_vm0, %v15598_v1 }
 0x8f3   :  { %14867 = vmatprep.subr.bf16.mxu1 %v15596_v0 }
 0x8f6   :  { %14869 = vmatpush3.bf16.msra.mxu1 %v16688_v2 }
 0x8f7   :  { %14876 = vmatprep.subr.bf16.mxu1 %v15596_v0 }
 0x8f9   :  { %13833 = vmatmul.mubr.msk.f32.vlgmr.msra.gmra.mrb[78].mxu1 %vm122_vm2, %v16594_v35 }
 0x8fa   :  { %13854 = vmatprep.mubr.msk.f32.mxu1 %vm15597_vm0, %v15598_v1  ;;  %14878 = vmatpush3.bf16.msra.mxu1 %v16701_v10 }
 0x8fb   :  { %14879 = vmatprep.subr.bf16.mxu1 %v15596_v0 }
 0x8fe   :  { %14881 = vmatpush3.bf16.msra.mxu1 %v16709_v20 }
 0x8ff   :  { %14888 = vmatprep.subr.bf16.mxu1 %v15596_v0 }
 0x9a0   :  { %v5733_v29 = vpop.f32.mrb[64].mxu1  ;;  %v5975_v9 = vpop.f32.mrb[72].mxu0 }
 0x9a1   :  { %v5734_v41 = vadd.f32 %v5733_v29, %v16583_v28  ;;  %v13709_v38 = vpop.f32.mrb[65].mxu1  ;;  %v13742_v47 = vpop.f32.mrb[73].mxu0  ;;  %v5976_v29 = vadd.f32 %v16515_v17, %v5975_v9  ;;  %v16740_v17 = vld [vmem:[%s17554_s3 + $0x3] ss:$0 sm:$0xff]  ;;  %v16745_v9 = vld [vmem:[%s17554_s3 + $0x2] ss:$0 sm:$0xff] }
 0x9a3   :  { %v5743_v16 = vadd.f32 %v16494_v56, %v5734_v41  ;;  %v16722_v56 = vld [vmem:[%s17554_s3] ss:$0 sm:$0xff] }
 0x9a5   :  { %v12193_v33 = vmul.f32 -1.442695, %v5743_v16 }
 0x9a7   :  { %15317 = vpow2.f32 %v12193_v33 }
 0x9a8   :  { %v5886_v34 = vpop.f32.mrb[66].mxu1  ;;  %v6151_v39 = vpop.f32.mrb[74].mxu0 }
 0x9a9   :  { %v5887_v12 = vadd.f32 %v5886_v34, %v16587_v49  ;;  %v13731_v59 = vpop.f32.mrb[67].mxu1  ;;  %v13764_v63 = vpop.f32.mrb[75].mxu0 }
 0x9ab   :  { %v5896_v53 = vadd.f32 %v16501_v43, %v5887_v12  ;;  %v16728_v43 = vld [vmem:[%s17554_s3 + $0x1] ss:$0 sm:$0xff] }
 0x9ad   :  { %v12197_v22 = vmul.f32 -1.442695, %v5896_v53 }
 0x9af   :  { %15319 = vpow2.f32 %v12197_v22 }
 0x9b0   :  { %v6051_v7 = vpop.f32.mrb[68].mxu1  ;;  %v6307_v19 = vpop.f32.mrb[76].mxu0 }
 0x9b1   :  { %v15318_v13 = vpop.eup %15317  ;;  %v13753_v28 = vpop.f32.mrb[69].mxu1  ;;  %v6052_v51 = vadd.f32 %v16509_v42, %v6051_v7 }
 0x9b2   :  { %v13780_v5 = vpop.f32.mrb[77].mxu0  ;;  %v5747_v36 = vadd.f32 1.0, %v15318_v13 }
 0x9b4   :  { %15321 = vrcp.f32 %v5747_v36  ;;  %v6224_v4 = vpop.f32.mrb[70].mxu1 }
 0x9b5   :  { %v6225_v49 = vadd.f32 %v6224_v4, %v6151_v39  ;;  %v13769_v55 = vpop.f32.mrb[71].mxu1 }
 0x9b7   :  { %v6234_v52 = vadd.f32 %v16722_v56, %v6225_v49 }
 0x9b8   :  { %v6377_v24 = vpop.f32.mrb[72].mxu1  ;;  %v6542_v30 = vpop.f32.mrb[78].mxu0 }
 0x9b9   :  { %v15320_v15 = vpop.eup %15319  ;;  %v12208_v44 = vmul.f32 -1.442695, %v6234_v52  ;;  %v6378_v23 = vadd.f32 %v6377_v24, %v6307_v19  ;;  %v13801_v45 = vpop.f32.mrb[79].mxu0  ;;  %v6543_v28 = vadd.f32 %v16740_v17, %v6542_v30  ;;  %v6557_v52 = vld [vmem:[#allocation8 + $0x20] sm:$0xff] }
 0x9ba   :  { %v13785_v6 = vpop.f32.mrb[73].mxu1  ;;  %v5900_v37 = vadd.f32 1.0, %v15320_v15  ;;  %v6558_v15 = vld [vmem:[#allocation8 + $0x28] sm:$0xff] }
 0x9bb   :  { %15323 = vpow2.f32 %v12208_v44  ;;  %v6387_v46 = vadd.f32 %v16728_v43, %v6378_v23  ;;  %v7062_v44 = vld [vmem:[#allocation10 + $0x68] sm:$0xff]  ;;  %v16755_v6 = vpack.c.bf16 %v6558_v15, %v6557_v52  ;;  %v7059_v52 = vld [vmem:[#allocation8 + $0xb0] sm:$0xff]  ;;  %v7060_v15 = vld [vmem:[#allocation8 + $0xb8] sm:$0xff] }
 0x9bc   :  { %v6466_v3 = vpop.f32.mrb[74].mxu1  ;;  %15325 = vrcp.f32 %v5900_v37 }
 0x9bd   :  { %v13790_v11 = vpop.f32.mrb[75].mxu1  ;;  %v12212_v21 = vmul.f32 -1.442695, %v6387_v46  ;;  %v6467_v5 = vadd.f32 %v16745_v9, %v6466_v3  ;;  %v6559_v46 = vld [vmem:[#allocation8 + $0x30] sm:$0xff] }
 0x9be   :  { %v15322_v18 = vpop.eup %15321  ;;  %v7063_v11 = vld [vmem:[#allocation10 + $0x70] sm:$0xff] }
 0x9bf   :  { %v6055_v41 = vmul.f32 %v15322_v18, %v6052_v51  ;;  %15327 = vpow2.f32 %v12212_v21  ;;  %v6560_v51 = vld [vmem:[#allocation8 + $0x38] sm:$0xff] }
 0x9c0   :  { %v7064_v18 = vld [vmem:[#allocation10 + $0x78] sm:$0xff] }
 0x9c1   :  { %v6056_v38 = vadd.f32 %v6055_v41, %v5976_v29  ;;  %v16769_v21 = vpack.c.bf16 %v7064_v18, %v7063_v11  ;;  %v6573_v29 = vld [vmem:[#allocation10 + $0x40] sm:$0xff]  ;;  %v6574_v41 = vld [vmem:[#allocation10 + $0x48] sm:$0xff] }
 0x9c3   :  { %15329 = vtanh.f32 %v6056_v38  ;;  %v7065_v38 = vld [vmem:[#allocation10 + $0x80] sm:$0xff] }
 0x9c4   :  { %v16733_v47 = vpop.f32.mrb[76].mxu1 }
 0x9c5   :  { %v15324_v16 = vpop.eup %15323  ;;  %v13812_v33 = vpop.f32.mrb[77].mxu1 }
 0x9c6   :  { %v6238_v34 = vadd.f32 1.0, %v15324_v16  ;;  %v15326_v39 = vpop.eup %15325  ;;  %v7066_v16 = vld [vmem:[#allocation10 + $0x88] sm:$0xff]  ;;  %v16779_v33 = vpack.c.bf16 %v6574_v41, %v6573_v29  ;;  %v16839_v29 = vld [vmem:[%s17557_s6 + $0x1] ss:$0 sm:$0xff] }
 0x9c7   :  { %v6058_v42 = vsub.f32 1.0, %v15326_v39  ;;  %v6060_v7 = vmul.f32 %v15326_v39, %v16524_v27  ;;  %v7061_v27 = vld [vmem:[#allocation10 + $0x60] sm:$0xff]  ;;  %v6575_v39 = vld [vmem:[#allocation10 + $0x50] sm:$0xff] }
 0x9c8   :  { %15331 = vrcp.f32 %v6238_v34  ;;  %v16757_v37 = vpack.c.bf16 %v7062_v44, %v7061_v27  ;;  %v16781_v34 = vpack.c.bf16 %v7066_v16, %v7065_v38  ;;  %v16823_v27 = vpack.c.bf16 %v7060_v15, %v7059_v52  ;;  %v16832_v44 = vld [vmem:[%s17557_s6] ss:$0 sm:$0xff]  ;;  %v16850_v52 = vld [vmem:[%s17557_s6 + $0x3] ss:$0 sm:$0xff]  ;;  %v16855_v15 = vld [vmem:[%s17557_s6 + $0x2] ss:$0 sm:$0xff] }
 0x9c9   :  { %v15328_v12 = vpop.eup %15327 }
 0x9ca   :  { %v6391_v19 = vadd.f32 1.0, %v15328_v12  ;;  %v6576_v12 = vld [vmem:[#allocation10 + $0x58] sm:$0xff] }
 0x9cc   :  { %v16735_v59 = vpop.f32.mrb[78].mxu1  ;;  %15333 = vrcp.f32 %v6391_v19  ;;  %v7050_v19 = vld [vmem:[#allocation8 + $0x68] sm:$0xff] }
 0x9cd   :  { %v15330_v63 = vpop.eup %15329  ;;  %v13834_v53 = vpop.f32.mrb[79].mxu1 }
 0x9ce   :  { %v6059_v22 = vmul.f32 %v15330_v63, %v6058_v42  ;;  %v7067_v42 = vld [vmem:[#allocation10 + $0x90] sm:$0xff]  ;;  %v7068_v63 = vld [vmem:[#allocation10 + $0x98] sm:$0xff]  ;;  %v16791_v53 = vpack.c.bf16 %v6576_v12, %v6575_v39 }
 0x9d0   :  { %v16748_v13 = vadd.f32 %v6060_v7, %v6059_v22  ;;  %v16793_v22 = vpack.c.bf16 %v7068_v63, %v7067_v42  ;;  %v7049_v7 = vld [vmem:[#allocation8 + $0x60] sm:$0xff] }
 0x9d2   :  { %v15332_v36 = vpop.eup %15331  ;;  %6063 = vst.msk [vmem:[#allocation11 + $0x6] sm:$0x3] %vm1604_vm3, %v16748_v13 }
 0x9d3   :  { %v6546_v4 = vmul.f32 %v15332_v36, %v6543_v28  ;;  %v7057_v28 = vld [vmem:[#allocation8 + $0xa0] sm:$0xff]  ;;  %v7058_v36 = vld [vmem:[#allocation8 + $0xa8] sm:$0xff] }
 0x9d5   :  { %v6547_v49 = vadd.f32 %v6546_v4, %v6467_v5  ;;  %v16813_v5 = vpack.c.bf16 %v7050_v19, %v7049_v7  ;;  %v16815_v4 = vpack.c.bf16 %v7058_v36, %v7057_v28 }
 0x9d6   :  { %v15334_v55 = vpop.eup %15333 }
 0x9d7   :  { %15335 = vtanh.f32 %v6547_v49  ;;  %v6549_v24 = vsub.f32 1.0, %v15334_v55  ;;  %v6551_v45 = vmul.f32 %v15334_v55, %v16531_v40  ;;  %v16767_v40 = vpack.c.bf16 %v6560_v51, %v6559_v46  ;;  %v7051_v49 = vld [vmem:[#allocation8 + $0x70] sm:$0xff]  ;;  %v7052_v55 = vld [vmem:[#allocation8 + $0x78] sm:$0xff] }
 0x9e1   :  { %v15336_v23 = vpop.eup %15335 }
 0x9e2   :  { %v6550_v30 = vmul.f32 %v15336_v23, %v6549_v24  ;;  %v16821_v24 = vpack.c.bf16 %v7052_v55, %v7051_v49 }
 0x9e4   :  { %v16759_v3 = vadd.f32 %v6551_v45, %v6550_v30 }
 0x9e6   :  { %13822 = vmatmul.mubr.msk.f32.vlgmr.msra.gmra.mrb[80].mxu0 %vm122_vm2, %v16759_v3  ;;  %13855 = vmatmul.mubr.msk.f32.vlgmr.msra.gmra.mrb[80].mxu1 %vm122_vm2, %v16759_v3 }
 0x9e7   :  { %14872 = vmatpush3.bf16.msra.mxu0 %v16755_v6  ;;  %14890 = vmatpush3.bf16.msra.mxu1 %v16757_v37 }
 0x9e8   :  { %14873 = vmatprep.subr.bf16.mxu0 %v15596_v0  ;;  %14891 = vmatprep.subr.bf16.mxu1 %v15596_v0 }
 0x9e9   :  { %13843 = vmatprep.mubr.msk.f32.mxu0 %vm15597_vm0, %v15598_v1  ;;  %13876 = vmatprep.mubr.msk.f32.mxu1 %vm15597_vm0, %v15598_v1 }
 0x9eb   :  { %14875 = vmatpush3.bf16.msra.mxu0 %v16767_v40  ;;  %14893 = vmatpush3.bf16.msra.mxu1 %v16769_v21 }
 0x9ec   :  { %14882 = vmatprep.subr.bf16.mxu0 %v15596_v0  ;;  %14900 = vmatprep.subr.bf16.mxu1 %v15596_v0 }
 0x9ee   :  { %13844 = vmatmul.mubr.msk.f32.vlgmr.msra.gmra.mrb[82].mxu0 %vm122_vm2, %v16759_v3  ;;  %13877 = vmatmul.mubr.msk.f32.vlgmr.msra.gmra.mrb[82].mxu1 %vm122_vm2, %v16748_v13 }
 0x9ef   :  { %14884 = vmatpush3.bf16.msra.mxu0 %v16779_v33  ;;  %14902 = vmatpush3.bf16.msra.mxu1 %v16781_v34 }
 0x9f0   :  { %14885 = vmatprep.subr.bf16.mxu0 %v15596_v0  ;;  %14903 = vmatprep.subr.bf16.mxu1 %v15596_v0 }
 0x9f1   :  { %13865 = vmatprep.mubr.msk.f32.mxu0 %vm15597_vm0, %v15598_v1  ;;  %13898 = vmatprep.mubr.msk.f32.mxu1 %vm15597_vm0, %v15598_v1 }
 0x9f3   :  { %14887 = vmatpush3.bf16.msra.mxu0 %v16791_v53  ;;  %14905 = vmatpush3.bf16.msra.mxu1 %v16793_v22 }
 0x9f4   :  { %14894 = vmatprep.subr.bf16.mxu0 %v15596_v0  ;;  %14912 = vmatprep.subr.bf16.mxu1 %v15596_v0 }
 0x9f6   :  { %13866 = vmatmul.mubr.msk.f32.vlgmr.msra.gmra.mrb[84].mxu0 %vm122_vm2, %v16594_v35  ;;  %13899 = vmatmul.mubr.msk.f32.vlgmr.msra.gmra.mrb[84].mxu1 %vm122_vm2, %v16748_v13 }
 0x9f7   :  { %13887 = vmatprep.mubr.msk.f32.mxu0 %vm15597_vm0, %v15598_v1  ;;  %13920 = vmatprep.mubr.msk.f32.mxu1 %vm15597_vm0, %v15598_v1 }
 0x9f8   :  { %14896 = vmatpush3.bf16.msra.mxu0 %v16813_v5  ;;  %14914 = vmatpush3.bf16.msra.mxu1 %v16815_v4 }
 0x9f9   :  { %14897 = vmatprep.subr.bf16.mxu0 %v15596_v0  ;;  %14915 = vmatprep.subr.bf16.mxu1 %v15596_v0 }
 0x9fc   :  { %14899 = vmatpush3.bf16.msra.mxu0 %v16821_v24  ;;  %14917 = vmatpush3.bf16.msra.mxu1 %v16823_v27 }
 0x9fd   :  { %14906 = vmatprep.subr.bf16.mxu0 %v15596_v0  ;;  %14924 = vmatprep.subr.bf16.mxu1 %v15596_v0 }
 0xab9   :  { %v6720_v23 = vpop.f32.mrb[80].mxu0  ;;  %v6962_v45 = vpop.f32.mrb[80].mxu1 }
 0xaba   :  { %v6721_v30 = vadd.f32 %v6720_v23, %v16733_v47  ;;  %v13823_v46 = vpop.f32.mrb[81].mxu0  ;;  %v13856_v51 = vpop.f32.mrb[81].mxu1 }
 0xabb   :  { %v6963_v46 = vadd.f32 %v16855_v15, %v6962_v45 }
 0xabc   :  { %v6730_v11 = vadd.f32 %v16832_v44, %v6721_v30 }
 0xabe   :  { %v12223_v18 = vmul.f32 -1.442695, %v6730_v11 }
 0xac0   :  { %15337 = vpow2.f32 %v12223_v18 }
 0xac1   :  { %v6873_v41 = vpop.f32.mrb[82].mxu0  ;;  %v16841_v38 = vpop.f32.mrb[82].mxu1 }
 0xac2   :  { %v6874_v16 = vadd.f32 %v6873_v41, %v16735_v59  ;;  %v13845_v39 = vpop.f32.mrb[83].mxu0  ;;  %v13878_v12 = vpop.f32.mrb[83].mxu1 }
 0xac3   :  { %v7054_v39 = vld [vmem:[#allocation8 + $0x88] sm:$0xff] }
 0xac4   :  { %v6883_v47 = vadd.f32 %v16839_v29, %v6874_v16  ;;  %v7053_v16 = vld [vmem:[#allocation8 + $0x80] sm:$0xff] }
 0xac6   :  { %v12227_v42 = vmul.f32 -1.442695, %v6883_v47 }
 0xac8   :  { %15339 = vpow2.f32 %v12227_v42 }
 0xac9   :  { %v7038_v63 = vpop.f32.mrb[84].mxu0  ;;  %v16845_v7 = vpop.f32.mrb[84].mxu1 }
 0xaca   :  { %v15338_v19 = vpop.eup %15337  ;;  %v13867_v28 = vpop.f32.mrb[85].mxu0  ;;  %v7039_v23 = vadd.f32 %v16850_v52, %v7038_v63  ;;  %v7055_v63 = vld [vmem:[#allocation8 + $0x90] sm:$0xff] }
 0xacb   :  { %v13900_v36 = vpop.f32.mrb[85].mxu1  ;;  %v6734_v49 = vadd.f32 1.0, %v15338_v19  ;;  %v16860_v19 = vpack.c.bf16 %v7054_v39, %v7053_v16 }
 0xacc   :  { %v7056_v36 = vld [vmem:[#allocation8 + $0x98] sm:$0xff] }
 0xacd   :  { %15341 = vrcp.f32 %v6734_v49  ;;  %v16870_v45 = vpack.c.bf16 %v7056_v36, %v7055_v63  ;;  %v7070_v49 = vld [vmem:[#allocation10 + $0xa8] sm:$0xff] }
 0xad2   :  { %v15340_v55 = vpop.eup %15339 }
 0xad3   :  { %v6887_v59 = vadd.f32 1.0, %v15340_v55 }
 0xad5   :  { %15343 = vrcp.f32 %v6887_v59  ;;  %v7072_v59 = vld [vmem:[#allocation10 + $0xb8] sm:$0xff] }
 0xad7   :  { %v15342_v30 = vpop.eup %15341 }
 0xad8   :  { %v7042_v51 = vmul.f32 %v15342_v30, %v7039_v23 }
 0xada   :  { %v7043_v11 = vadd.f32 %v7042_v51, %v6963_v46 }
 0xadc   :  { %15345 = vtanh.f32 %v7043_v11 }
 0xadf   :  { %v15344_v18 = vpop.eup %15343 }
 0xae0   :  { %v7045_v41 = vsub.f32 1.0, %v15344_v18  ;;  %v7047_v47 = vmul.f32 %v15344_v18, %v16594_v35  ;;  %v7069_v35 = vld [vmem:[#allocation10 + $0xa0] sm:$0xff] }
 0xae1   :  { %v16880_v55 = vpack.c.bf16 %v7070_v49, %v7069_v35 }
 0xae6   :  { %v15346_v12 = vpop.eup %15345 }
 0xae7   :  { %v7046_v42 = vmul.f32 %v15346_v12, %v7045_v41 }
 0xae9   :  { %v16862_v28 = vadd.f32 %v7047_v47, %v7046_v42 }
 0xaeb   :  { %13888 = vmatmul.mubr.msk.f32.vlgmr.msra.gmra.mrb[86].mxu0 %vm122_vm2, %v16862_v28  ;;  %13921 = vmatmul.mubr.msk.f32.vlgmr.msra.gmra.mrb[86].mxu1 %vm122_vm2, %v16862_v28 }
 0xaec   :  { %14908 = vmatpush3.bf16.msra.mxu0 %v16860_v19  ;;  %14926 = vmatpush3.bf16.msra.mxu1 %v16592_v32  ;;  %v7071_v32 = vld [vmem:[#allocation10 + $0xb0] sm:$0xff] }
 0xaed   :  { %14909 = vmatprep.subr.bf16.mxu0 %v15596_v0  ;;  %14927 = vmatprep.subr.bf16.mxu1 %v15596_v0  ;;  %v16890_v23 = vpack.c.bf16 %v7072_v59, %v7071_v32  ;;  %v16975_v59 = vld [vmem:[%s17557_s6 + $0x7] ss:$0 sm:$0xff] }
 0xaee   :  { %13909 = vmatprep.mubr.msk.f32.mxu0 %vm15597_vm0, %v15598_v1  ;;  %13942 = vmatprep.mubr.msk.f32.mxu1 %vm15597_vm0, %v15598_v1 }
 0xaf0   :  { %14911 = vmatpush3.bf16.msra.mxu0 %v16870_v45  ;;  %14929 = vmatpush3.bf16.msra.mxu1 %v16602_v48  ;;  %v7551_v48 = vld [vmem:[#allocation2 + $0xa] sm:$0x3] }
 0xaf1   :  { %14918 = vmatprep.subr.bf16.mxu0 %v15596_v0  ;;  %14930 = vmatprep.subr.bf16.mxu1 %v15596_v0 }
 0xaf3   :  { %13910 = vmatmul.mubr.msk.f32.vlgmr.msra.gmra.mrb[88].mxu0 %vm122_vm2, %v16862_v28  ;;  %13943 = vmatmul.mubr.msk.f32.vlgmr.msra.gmra.mrb[88].mxu1 %vm122_vm2, %v16759_v3 }
 0xaf4   :  { %14920 = vmatpush3.bf16.msra.mxu0 %v16880_v55  ;;  %14932 = vmatpush3.bf16.msra.mxu1 %v16612_v50  ;;  %v16960_v50 = vld [vmem:[%s17557_s6 + $0x4] ss:$0 sm:$0xff] }
 0xaf5   :  { %14921 = vmatprep.subr.bf16.mxu0 %v15596_v0  ;;  %14933 = vmatprep.subr.bf16.mxu1 %v15596_v0 }
 0xaf6   :  { %13931 = vmatprep.mubr.msk.f32.mxu0 %vm15597_vm0, %v15598_v1  ;;  %13958 = vmatprep.mubr.msk.f32.mxu1 %vm15597_vm0, %v15598_v1 }
 0xaf8   :  { %14923 = vmatpush3.bf16.msra.mxu0 %v16890_v23  ;;  %14935 = vmatpush3.bf16.msra.mxu1 %v16622_v8 }
 0xaf9   :  { %13945 = vmatprep.subr.mxu0 %v15598_v1  ;;  %14936 = vmatprep.subr.bf16.mxu1 %v15596_v0 }
 0xafb   :  { %13932 = vmatmul.mubr.msk.f32.vlgmr.msra.gmra.mrb[90].mxu0 %vm122_vm2, %v16748_v13  ;;  %13959 = vmatmul.mubr.msk.f32.vlgmr.msra.gmra.mrb[90].mxu1 %vm122_vm2, %v16759_v3 }
 0xafc   :  { %13946 = vmatpush3.msra.mxu0 %v16636_v57  ;;  %14938 = vmatpush3.bf16.msra.mxu1 %v16632_v14 }
 0xafd   :  { %13947 = vmatprep.mubr.msk.f32.mxu0 %vm15597_vm0, %v15598_v1  ;;  %14939 = vmatprep.subr.bf16.mxu1 %v15596_v0 }
 0xafe   :  { %13961 = vmatprep.subr.mxu0 %v15598_v1  ;;  %13979 = vmatprep.mubr.msk.f32.mxu1 %vm15597_vm0, %v15598_v1 }
 0xaff   :  { %13948 = vmatmul.mubr.msk.f32.vlgmr.msra.gmra.mrb[92].mxu0 %vm196_vm1, %v7551_v48 }
 0xb00   :  { %14941 = vmatpush3.bf16.msra.mxu1 %v16644_v62  ;;  %13962 = vmatpush3.msra.mxu0 %v16649_v31 }
 0xb01   :  { %13963 = vmatprep.mubr.msk.f32.mxu0 %vm15597_vm0, %v15598_v1  ;;  %13966 = vmatprep.subr.mxu0 %v15598_v1 }
 0xb02   :  { %14948 = vmatprep.subr.bf16.mxu1 %v15596_v0 }
 0xb03   :  { %13964 = vmatmul.mubr.msk.f32.vlgmr.msra.gmra.mrb[94].mxu0 %vm196_vm1, %v7551_v48  ;;  %13980 = vmatmul.mubr.msk.f32.vlgmr.msra.gmra.mrb[92].mxu1 %vm122_vm2, %v16759_v3 }
 0xb04   :  { %13967 = vmatpush3.msra.mxu0 %v16660_v58  ;;  %13968 = vmatprep.mubr.msk.f32.mxu0 %vm15597_vm0, %v15598_v1 }
 0xb05   :  { %14942 = vmatprep.subr.bf16.mxu0 %v15596_v0  ;;  %14950 = vmatpush3.bf16.msra.mxu1 %v16699_v61 }
 0xb06   :  { %14951 = vmatprep.subr.bf16.mxu1 %v15596_v0  ;;  %14001 = vmatprep.mubr.msk.f32.mxu1 %vm15597_vm0, %v15598_v1 }
 0xb07   :  { %13969 = vmatmul.mubr.msk.f32.vlgmr.msra.gmra.mrb[96].mxu0 %vm196_vm1, %v7551_v48 }
 0xb08   :  { %14944 = vmatpush3.bf16.msra.mxu0 %v16669_v54  ;;  %13990 = vmatprep.mubr.msk.f32.mxu0 %vm15597_vm0, %v15598_v1 }
 0xb09   :  { %14945 = vmatprep.subr.bf16.mxu0 %v15596_v0  ;;  %14953 = vmatpush3.bf16.msra.mxu1 %v16707_v60 }
 0xb0a   :  { %14960 = vmatprep.subr.bf16.mxu1 %v15596_v0 }
 0xb0c   :  { %14947 = vmatpush3.bf16.msra.mxu0 %v16676_v26  ;;  %v16967_v26 = vld [vmem:[%s17557_s6 + $0x5] ss:$0 sm:$0xff] }
 0xb0d   :  { %14954 = vmatprep.subr.bf16.mxu0 %v15596_v0 }
 0xb0f   :  { %13991 = vmatmul.mubr.msk.f32.vlgmr.msra.gmra.mrb[98].mxu0 %vm122_vm2, %v16862_v28 }
 0xb10   :  { %14956 = vmatpush3.bf16.msra.mxu0 %v16682_v25  ;;  %14012 = vmatprep.mubr.msk.f32.mxu0 %vm15597_vm0, %v15598_v1 }
 0xb11   :  { %14957 = vmatprep.subr.bf16.mxu0 %v15596_v0 }
 0xb14   :  { %14959 = vmatpush3.bf16.msra.mxu0 %v16688_v2 }
 0xb15   :  { %14966 = vmatprep.subr.bf16.mxu0 %v15596_v0 }
 0xb17   :  { %14013 = vmatmul.mubr.msk.f32.vlgmr.msra.gmra.mrb[100].mxu0 %vm122_vm2, %v16862_v28 }
 0xb18   :  { %14968 = vmatpush3.bf16.msra.mxu0 %v16701_v10  ;;  %14034 = vmatprep.mubr.msk.f32.mxu0 %vm15597_vm0, %v15598_v1 }
 0xb19   :  { %14969 = vmatprep.subr.bf16.mxu0 %v15596_v0 }
 0xb1c   :  { %14971 = vmatpush3.bf16.msra.mxu0 %v16709_v20 }
 0xb1d   :  { %14978 = vmatprep.subr.bf16.mxu0 %v15596_v0 }
 0xbbe   :  { %v7219_v8 = vpop.f32.mrb[86].mxu0  ;;  %v7461_v14 = vpop.f32.mrb[86].mxu1 }
 0xbbf   :  { %v7220_v57 = vadd.f32 %v7219_v8, %v16841_v38  ;;  %v13889_v62 = vpop.f32.mrb[87].mxu0  ;;  %v13922_v31 = vpop.f32.mrb[87].mxu1 }
 0xbc1   :  { %v7229_v58 = vadd.f32 %v16960_v50, %v7220_v57 }
 0xbc3   :  { %v12239_v54 = vmul.f32 -1.442695, %v7229_v58 }
 0xbc5   :  { %15347 = vpow2.f32 %v12239_v54 }
 0xbc6   :  { %v7372_v25 = vpop.f32.mrb[88].mxu0  ;;  %v7637_v2 = vpop.f32.mrb[88].mxu1 }
 0xbc7   :  { %v7373_v61 = vadd.f32 %v7372_v25, %v16845_v7  ;;  %v13911_v10 = vpop.f32.mrb[89].mxu0  ;;  %v13944_v60 = vpop.f32.mrb[89].mxu1 }
 0xbc9   :  { %v7382_v20 = vadd.f32 %v16967_v26, %v7373_v61 }
 0xbcb   :  { %v12243_v38 = vmul.f32 -1.442695, %v7382_v20 }
 0xbcd   :  { %15349 = vpow2.f32 %v12243_v38 }
 0xbce   :  { %v7537_v30 = vpop.f32.mrb[90].mxu0  ;;  %v7793_v46 = vpop.f32.mrb[90].mxu1 }
 0xbcf   :  { %v15348_v51 = vpop.eup %15347  ;;  %v13933_v11 = vpop.f32.mrb[91].mxu0  ;;  %v7538_v62 = vadd.f32 %v16975_v59, %v7537_v30 }
 0xbd0   :  { %v13960_v18 = vpop.f32.mrb[91].mxu1  ;;  %v7233_v41 = vadd.f32 1.0, %v15348_v51 }
 0xbd2   :  { %15351 = vrcp.f32 %v7233_v41  ;;  %v7710_v16 = vpop.f32.mrb[92].mxu0 }
 0xbd3   :  { %v7711_v39 = vadd.f32 %v7710_v16, %v7637_v2  ;;  %v13949_v12 = vpop.f32.mrb[93].mxu0 }
 0xbd5   :  { %v7720_v47 = vadd.f32 %v16722_v56, %v7711_v39  ;;  %v16981_v56 = vld [vmem:[%s17557_s6 + $0x6] ss:$0 sm:$0xff] }
 0xbd6   :  { %v7863_v42 = vpop.f32.mrb[94].mxu0  ;;  %v8028_v7 = vpop.f32.mrb[92].mxu1  ;;  %v7462_v25 = vadd.f32 %v16981_v56, %v7461_v14 }
 0xbd7   :  { %v15350_v63 = vpop.eup %15349  ;;  %v12254_v36 = vmul.f32 -1.442695, %v7720_v47  ;;  %v7864_v35 = vadd.f32 %v7863_v42, %v7793_v46  ;;  %v13981_v49 = vpop.f32.mrb[93].mxu1  ;;  %v8029_v12 = vadd.f32 %v16740_v17, %v8028_v7 }
 0xbd8   :  { %v13965_v32 = vpop.f32.mrb[95].mxu0  ;;  %v7386_v48 = vadd.f32 1.0, %v15350_v63 }
 0xbd9   :  { %15353 = vpow2.f32 %v12254_v36  ;;  %v7873_v8 = vadd.f32 %v16728_v43, %v7864_v35 }
 0xbda   :  { %v7952_v57 = vpop.f32.mrb[96].mxu0  ;;  %15355 = vrcp.f32 %v7386_v48 }
 0xbdb   :  { %v13970_v31 = vpop.f32.mrb[97].mxu0  ;;  %v12258_v54 = vmul.f32 -1.442695, %v7873_v8  ;;  %v7953_v47 = vadd.f32 %v16745_v9, %v7952_v57 }
 0xbdc   :  { %v15352_v58 = vpop.eup %15351 }
 0xbdd   :  { %v7541_v2 = vmul.f32 %v15352_v58, %v7538_v62  ;;  %15357 = vpow2.f32 %v12258_v54 }
 0xbdf   :  { %v7542_v61 = vadd.f32 %v7541_v2, %v7462_v25 }
 0xbe1   :  { %15359 = vtanh.f32 %v7542_v61 }
 0xbe2   :  { %v16985_v10 = vpop.f32.mrb[98].mxu0 }
 0xbe3   :  { %v15354_v43 = vpop.eup %15353  ;;  %v13992_v60 = vpop.f32.mrb[99].mxu0 }
 0xbe4   :  { %v7724_v20 = vadd.f32 1.0, %v15354_v43  ;;  %v15356_v38 = vpop.eup %15355 }
 0xbe5   :  { %v7544_v30 = vsub.f32 1.0, %v15356_v38  ;;  %v7546_v14 = vmul.f32 %v15356_v38, %v16748_v13  ;;  %v9042_v38 = vld [vmem:[#allocation7 + $0x8] sm:$0xff] }
 0xbe6   :  { %15361 = vrcp.f32 %v7724_v20  ;;  %v9041_v20 = vld [vmem:[#allocation7] sm:$0xff] }
 0xbe7   :  { %v15358_v46 = vpop.eup %15357 }
 0xbe8   :  { %v7877_v16 = vadd.f32 1.0, %v15358_v46 }
 0xbea   :  { %v16987_v51 = vpop.f32.mrb[100].mxu0  ;;  %15363 = vrcp.f32 %v7877_v16  ;;  %v9047_v16 = vld [vmem:[#allocation7 + $0x30] sm:$0xff] }
 0xbeb   :  { %v15360_v11 = vpop.eup %15359  ;;  %v14014_v18 = vpop.f32.mrb[101].mxu0 }
 0xbec   :  { %v7545_v41 = vmul.f32 %v15360_v11, %v7544_v30  ;;  %v17058_v11 = vpack.c.bf16 %v9042_v38, %v9041_v20 }
 0xbee   :  { %v16990_v39 = vadd.f32 %v7546_v14, %v7545_v41  ;;  %v9044_v41 = vld [vmem:[#allocation7 + $0x18] sm:$0xff]  ;;  %v9046_v14 = vld [vmem:[#allocation7 + $0x28] sm:$0xff] }
 0xbf0   :  { %v15362_v42 = vpop.eup %15361  ;;  %7549 = vst.msk [vmem:[#allocation11 + $0x8] sm:$0x3] %vm1604_vm3, %v16990_v39 }
 0xbf1   :  { %v8032_v63 = vmul.f32 %v15362_v42, %v8029_v12  ;;  %v9048_v12 = vld [vmem:[#allocation7 + $0x38] sm:$0xff]  ;;  %v9050_v42 = vld [vmem:[#allocation7 + $0x48] sm:$0xff] }
 0xbf3   :  { %v8033_v36 = vadd.f32 %v8032_v63, %v7953_v47  ;;  %v9049_v47 = vld [vmem:[#allocation7 + $0x40] sm:$0xff]  ;;  %v17102_v63 = vld [vmem:[#allocation5] sm:$0xff] }
 0xbf4   :  { %v15364_v35 = vpop.eup %15363 }
 0xbf5   :  { %15365 = vtanh.f32 %v8033_v36  ;;  %v8035_v49 = vsub.f32 1.0, %v15364_v35  ;;  %v8037_v13 = vmul.f32 %v15364_v35, %v16759_v3  ;;  %v9051_v36 = vld [vmem:[#allocation7 + $0x50] sm:$0xff]  ;;  %v9052_v35 = vld [vmem:[#allocation7 + $0x58] sm:$0xff] }
 0xbff   :  { %v15366_v32 = vpop.eup %15365 }
 0xc00   :  { %v8036_v48 = vmul.f32 %v15366_v32, %v8035_v49  ;;  %v17110_v49 = vpack.c.bf16 %v9052_v35, %v9051_v36  ;;  %v17115_v32 = vld [vmem:[#allocation5 + $0x8] sm:$0xff] }
 0xc02   :  { %v16997_v8 = vadd.f32 %v8037_v13, %v8036_v48  ;;  %v17126_v13 = vld [vmem:[#allocation5 + $0x10] sm:$0xff]  ;;  %v9537_v48 = vld [vmem:[#allocation10] sm:$0xff] }
 0xc04   :  { %14002 = vmatmul.mubr.msk.f32.vlgmr.msra.gmra.mrb[94].mxu1 %vm122_vm2, %v16997_v8  ;;  %14035 = vmatmul.mubr.msk.f32.vlgmr.msra.gmra.mrb[102].mxu0 %vm122_vm2, %v16997_v8 }
 0xc05   :  { %14962 = vmatpush3.bf16.msra.mxu1 %v16755_v6  ;;  %14980 = vmatpush3.bf16.msra.mxu0 %v16757_v37 }
 0xc06   :  { %14963 = vmatprep.subr.bf16.mxu1 %v15596_v0  ;;  %14981 = vmatprep.subr.bf16.mxu0 %v15596_v0 }
 0xc07   :  { %14023 = vmatprep.mubr.msk.f32.mxu1 %vm15597_vm0, %v15598_v1  ;;  %14056 = vmatprep.mubr.msk.f32.mxu0 %vm15597_vm0, %v15598_v1 }
 0xc09   :  { %14965 = vmatpush3.bf16.msra.mxu1 %v16767_v40  ;;  %14983 = vmatpush3.bf16.msra.mxu0 %v16769_v21 }
 0xc0a   :  { %14972 = vmatprep.subr.bf16.mxu1 %v15596_v0  ;;  %14990 = vmatprep.subr.bf16.mxu0 %v15596_v0 }
 0xc0c   :  { %14024 = vmatmul.mubr.msk.f32.vlgmr.msra.gmra.mrb[96].mxu1 %vm122_vm2, %v16997_v8  ;;  %14057 = vmatmul.mubr.msk.f32.vlgmr.msra.gmra.mrb[104].mxu0 %vm122_vm2, %v16990_v39 }
 0xc0d   :  { %14974 = vmatpush3.bf16.msra.mxu1 %v16779_v33  ;;  %14992 = vmatpush3.bf16.msra.mxu0 %v16781_v34 }
 0xc0e   :  { %14975 = vmatprep.subr.bf16.mxu1 %v15596_v0  ;;  %14993 = vmatprep.subr.bf16.mxu0 %v15596_v0 }
 0xc0f   :  { %14045 = vmatprep.mubr.msk.f32.mxu1 %vm15597_vm0, %v15598_v1  ;;  %14078 = vmatprep.mubr.msk.f32.mxu0 %vm15597_vm0, %v15598_v1 }
 0xc11   :  { %14977 = vmatpush3.bf16.msra.mxu1 %v16791_v53  ;;  %14995 = vmatpush3.bf16.msra.mxu0 %v16793_v22 }
 0xc12   :  { %14984 = vmatprep.subr.bf16.mxu1 %v15596_v0  ;;  %15002 = vmatprep.subr.bf16.mxu0 %v15596_v0 }
 0xc14   :  { %14046 = vmatmul.mubr.msk.f32.vlgmr.msra.gmra.mrb[98].mxu1 %vm122_vm2, %v16862_v28  ;;  %14079 = vmatmul.mubr.msk.f32.vlgmr.msra.gmra.mrb[106].mxu0 %vm122_vm2, %v16990_v39 }
 0xc15   :  { %14986 = vmatpush3.bf16.msra.mxu1 %v16813_v5  ;;  %15004 = vmatpush3.bf16.msra.mxu0 %v16815_v4 }
 0xc16   :  { %14987 = vmatprep.subr.bf16.mxu1 %v15596_v0  ;;  %15005 = vmatprep.subr.bf16.mxu0 %v15596_v0 }
 0xc17   :  { %14067 = vmatprep.mubr.msk.f32.mxu1 %vm15597_vm0, %v15598_v1  ;;  %14100 = vmatprep.mubr.msk.f32.mxu0 %vm15597_vm0, %v15598_v1 }
 0xc19   :  { %14989 = vmatpush3.bf16.msra.mxu1 %v16821_v24  ;;  %15007 = vmatpush3.bf16.msra.mxu0 %v16823_v27 }
 0xc1a   :  { %14996 = vmatprep.subr.bf16.mxu1 %v15596_v0  ;;  %15014 = vmatprep.subr.bf16.mxu0 %v15596_v0 }
 0xcd7   :  { %v8206_v17 = vpop.f32.mrb[94].mxu1  ;;  %v8448_v9 = vpop.f32.mrb[102].mxu0 }
 0xcd8   :  { %v8207_v6 = vadd.f32 %v8206_v17, %v16985_v10  ;;  %v14003_v37 = vpop.f32.mrb[95].mxu1  ;;  %v14036_v3 = vpop.f32.mrb[103].mxu0  ;;  %v8449_v61 = vadd.f32 %v16855_v15, %v8448_v9  ;;  %v9538_v17 = vld [vmem:[#allocation10 + $0x8] sm:$0xff] }
 0xcd9   :  { %v17135_v9 = vpack.c.bf16 %v9538_v17, %v9537_v48  ;;  %v9540_v37 = vld [vmem:[#allocation10 + $0x18] sm:$0xff] }
 0xcda   :  { %v8216_v40 = vadd.f32 %v16832_v44, %v8207_v6  ;;  %v9539_v6 = vld [vmem:[#allocation10 + $0x10] sm:$0xff] }
 0xcdb   :  { %v17142_v3 = vpack.c.bf16 %v9540_v37, %v9539_v6 }
 0xcdc   :  { %v12269_v21 = vmul.f32 -1.442695, %v8216_v40  ;;  %v9541_v40 = vld [vmem:[#allocation10 + $0x20] sm:$0xff] }
 0xcde   :  { %15367 = vpow2.f32 %v12269_v21  ;;  %v9542_v21 = vld [vmem:[#allocation10 + $0x28] sm:$0xff] }
 0xcdf   :  { %v8359_v33 = vpop.f32.mrb[96].mxu1  ;;  %v17049_v34 = vpop.f32.mrb[104].mxu0 }
 0xce0   :  { %v8360_v53 = vadd.f32 %v8359_v33, %v16987_v51  ;;  %v14025_v22 = vpop.f32.mrb[97].mxu1  ;;  %v14058_v5 = vpop.f32.mrb[105].mxu0  ;;  %v17148_v33 = vpack.c.bf16 %v9542_v21, %v9541_v40 }
 0xce1   :  { %v9544_v22 = vld [vmem:[#allocation10 + $0x38] sm:$0xff] }
 0xce2   :  { %v8369_v4 = vadd.f32 %v16839_v29, %v8360_v53  ;;  %v9543_v53 = vld [vmem:[#allocation10 + $0x30] sm:$0xff] }
 0xce3   :  { %v17154_v5 = vpack.c.bf16 %v9544_v22, %v9543_v53 }
 0xce4   :  { %v12273_v24 = vmul.f32 -1.442695, %v8369_v4  ;;  %v9525_v4 = vld [vmem:[#allocation8] sm:$0xff] }
 0xce6   :  { %15369 = vpow2.f32 %v12273_v24  ;;  %v9526_v24 = vld [vmem:[#allocation8 + $0x8] sm:$0xff] }
 0xce7   :  { %v8524_v27 = vpop.f32.mrb[98].mxu1  ;;  %v17053_v7 = vpop.f32.mrb[106].mxu0 }
 0xce8   :  { %v15368_v57 = vpop.eup %15367  ;;  %v14047_v62 = vpop.f32.mrb[99].mxu1  ;;  %v8525_v25 = vadd.f32 %v16850_v52, %v8524_v27  ;;  %v9043_v52 = vld [vmem:[#allocation7 + $0x10] sm:$0xff]  ;;  %v9533_v27 = vld [vmem:[#allocation8 + $0x40] sm:$0xff] }
 0xce9   :  { %v14080_v31 = vpop.f32.mrb[107].mxu0  ;;  %v8220_v44 = vadd.f32 1.0, %v15368_v57  ;;  %v17068_v15 = vpack.c.bf16 %v9044_v41, %v9043_v52  ;;  %v17165_v57 = vpack.c.bf16 %v9526_v24, %v9525_v4  ;;  %v9534_v62 = vld [vmem:[#allocation8 + $0x48] sm:$0xff] }
 0xcea   :  { %v17167_v31 = vpack.c.bf16 %v9534_v62, %v9533_v27 }
 0xceb   :  { %15371 = vrcp.f32 %v8220_v44  ;;  %v9527_v44 = vld [vmem:[#allocation8 + $0x10] sm:$0xff] }
 0xcf0   :  { %v15370_v58 = vpop.eup %15369 }
 0xcf1   :  { %v8373_v54 = vadd.f32 1.0, %v15370_v58  ;;  %v9528_v58 = vld [vmem:[#allocation8 + $0x18] sm:$0xff] }
 0xcf3   :  { %15373 = vrcp.f32 %v8373_v54  ;;  %v9535_v54 = vld [vmem:[#allocation8 + $0x50] sm:$0xff] }
 0xcf5   :  { %v15372_v2 = vpop.eup %15371 }
 0xcf6   :  { %v8528_v10 = vmul.f32 %v15372_v2, %v8525_v25  ;;  %v17173_v25 = vpack.c.bf16 %v9528_v58, %v9527_v44  ;;  %v9536_v2 = vld [vmem:[#allocation8 + $0x58] sm:$0xff] }
 0xcf8   :  { %v8529_v29 = vadd.f32 %v8528_v10, %v8449_v61  ;;  %v17175_v61 = vpack.c.bf16 %v9536_v2, %v9535_v54 }
 0xcfa   :  { %15375 = vtanh.f32 %v8529_v29 }
 0xcfd   :  { %v15374_v43 = vpop.eup %15373 }
 0xcfe   :  { %v8531_v60 = vsub.f32 1.0, %v15374_v43  ;;  %v8533_v51 = vmul.f32 %v15374_v43, %v16862_v28  ;;  %v9045_v28 = vld [vmem:[#allocation7 + $0x20] sm:$0xff] }
 0xd04   :  { %v15376_v46 = vpop.eup %15375 }
 0xd05   :  { %v8532_v30 = vmul.f32 %v15376_v46, %v8531_v60 }
 0xd07   :  { %v17060_v18 = vadd.f32 %v8533_v51, %v8532_v30 }
 0xd09   :  { %14068 = vmatmul.mubr.msk.f32.vlgmr.msra.gmra.mrb[100].mxu1 %vm122_vm2, %v17060_v18  ;;  %14101 = vmatmul.mubr.msk.f32.vlgmr.msra.gmra.mrb[108].mxu0 %vm122_vm2, %v17060_v18 }
 0xd0a   :  { %14998 = vmatpush3.bf16.msra.mxu1 %v16860_v19  ;;  %15016 = vmatpush3.bf16.msra.mxu0 %v17058_v11  ;;  %v17078_v19 = vpack.c.bf16 %v9046_v14, %v9045_v28 }
 0xd0b   :  { %14999 = vmatprep.subr.bf16.mxu1 %v15596_v0  ;;  %15017 = vmatprep.subr.bf16.mxu0 %v15596_v0 }
 0xd0c   :  { %14089 = vmatprep.mubr.msk.f32.mxu1 %vm15597_vm0, %v15598_v1  ;;  %14122 = vmatprep.mubr.msk.f32.mxu0 %vm15597_vm0, %v15598_v1 }
 0xd0e   :  { %15001 = vmatpush3.bf16.msra.mxu1 %v16870_v45  ;;  %15019 = vmatpush3.bf16.msra.mxu0 %v17068_v15  ;;  %v17088_v45 = vpack.c.bf16 %v9048_v12, %v9047_v16 }
 0xd0f   :  { %15008 = vmatprep.subr.bf16.mxu1 %v15596_v0  ;;  %15020 = vmatprep.subr.bf16.mxu0 %v15596_v0 }
 0xd11   :  { %14090 = vmatmul.mubr.msk.f32.vlgmr.msra.gmra.mrb[102].mxu1 %vm122_vm2, %v17060_v18  ;;  %14123 = vmatmul.mubr.msk.f32.vlgmr.msra.gmra.mrb[110].mxu0 %vm122_vm2, %v16997_v8 }
 0xd12   :  { %15010 = vmatpush3.bf16.msra.mxu1 %v16880_v55  ;;  %15022 = vmatpush3.bf16.msra.mxu0 %v17078_v19  ;;  %v17098_v55 = vpack.c.bf16 %v9050_v42, %v9049_v47 }
 0xd13   :  { %15011 = vmatprep.subr.bf16.mxu1 %v15596_v0  ;;  %15023 = vmatprep.subr.bf16.mxu0 %v15596_v0 }
 0xd14   :  { %14111 = vmatprep.mubr.msk.f32.mxu1 %vm15597_vm0, %v15598_v1  ;;  %14138 = vmatprep.mubr.msk.f32.mxu0 %vm15597_vm0, %v15598_v1 }
 0xd16   :  { %15013 = vmatpush3.bf16.msra.mxu1 %v16890_v23  ;;  %15025 = vmatpush3.bf16.msra.mxu0 %v17088_v45  ;;  %v9037_v23 = vld [vmem:[#allocation2 + $0xc] sm:$0x3] }
 0xd17   :  { %14125 = vmatprep.subr.mxu1 %v15598_v1  ;;  %15026 = vmatprep.subr.bf16.mxu0 %v15596_v0 }
 0xd19   :  { %14112 = vmatmul.mubr.msk.f32.vlgmr.msra.gmra.mrb[104].mxu1 %vm122_vm2, %v16990_v39  ;;  %14139 = vmatmul.mubr.msk.f32.vlgmr.msra.gmra.mrb[112].mxu0 %vm122_vm2, %v16997_v8 }
 0xd1a   :  { %14126 = vmatpush3.msra.mxu1 %v17102_v63  ;;  %15028 = vmatpush3.bf16.msra.mxu0 %v17098_v55 }
 0xd1b   :  { %14127 = vmatprep.mubr.msk.f32.mxu1 %vm15597_vm0, %v15598_v1  ;;  %15029 = vmatprep.subr.bf16.mxu0 %v15596_v0 }
 0xd1c   :  { %14141 = vmatprep.subr.mxu1 %v15598_v1  ;;  %14159 = vmatprep.mubr.msk.f32.mxu0 %vm15597_vm0, %v15598_v1 }
 0xd1d   :  { %14128 = vmatmul.mubr.msk.f32.vlgmr.msra.gmra.mrb[106].mxu1 %vm196_vm1, %v9037_v23 }
 0xd1e   :  { %15031 = vmatpush3.bf16.msra.mxu0 %v17110_v49  ;;  %14142 = vmatpush3.msra.mxu1 %v17115_v32 }
 0xd1f   :  { %14143 = vmatprep.mubr.msk.f32.mxu1 %vm15597_vm0, %v15598_v1  ;;  %14146 = vmatprep.subr.mxu1 %v15598_v1 }
 0xd20   :  { %15038 = vmatprep.subr.bf16.mxu0 %v15596_v0 }
 0xd21   :  { %14144 = vmatmul.mubr.msk.f32.vlgmr.msra.gmra.mrb[108].mxu1 %vm196_vm1, %v9037_v23  ;;  %14160 = vmatmul.mubr.msk.f32.vlgmr.msra.gmra.mrb[114].mxu0 %vm122_vm2, %v16997_v8 }
 0xd22   :  { %14147 = vmatpush3.msra.mxu1 %v17126_v13  ;;  %14148 = vmatprep.mubr.msk.f32.mxu1 %vm15597_vm0, %v15598_v1 }
 0xd23   :  { %15032 = vmatprep.subr.bf16.mxu1 %v15596_v0  ;;  %14181 = vmatprep.mubr.msk.f32.mxu0 %vm15597_vm0, %v15598_v1 }
 0xd24   :  { %15040 = vmatpush3.bf16.msra.mxu0 %v17165_v57 }
 0xd25   :  { %14149 = vmatmul.mubr.msk.f32.vlgmr.msra.gmra.mrb[110].mxu1 %vm196_vm1, %v9037_v23  ;;  %15041 = vmatprep.subr.bf16.mxu0 %v15596_v0 }
 0xd26   :  { %15034 = vmatpush3.bf16.msra.mxu1 %v17135_v9  ;;  %14170 = vmatprep.mubr.msk.f32.mxu1 %vm15597_vm0, %v15598_v1 }
 0xd27   :  { %15035 = vmatprep.subr.bf16.mxu1 %v15596_v0 }
 0xd28   :  { %15043 = vmatpush3.bf16.msra.mxu0 %v17173_v25 }
 0xd29   :  { %15050 = vmatprep.subr.bf16.mxu0 %v15596_v0 }
 0xd2a   :  { %15037 = vmatpush3.bf16.msra.mxu1 %v17142_v3 }
 0xd2b   :  { %15044 = vmatprep.subr.bf16.mxu1 %v15596_v0 }
 0xd2d   :  { %14171 = vmatmul.mubr.msk.f32.vlgmr.msra.gmra.mrb[112].mxu1 %vm122_vm2, %v17060_v18 }
 0xd2e   :  { %15046 = vmatpush3.bf16.msra.mxu1 %v17148_v33  ;;  %14192 = vmatprep.mubr.msk.f32.mxu1 %vm15597_vm0, %v15598_v1 }
 0xd2f   :  { %15047 = vmatprep.subr.bf16.mxu1 %v15596_v0 }
 0xd32   :  { %15049 = vmatpush3.bf16.msra.mxu1 %v17154_v5 }
 0xd33   :  { %15056 = vmatprep.subr.bf16.mxu1 %v15596_v0 }
 0xd35   :  { %14193 = vmatmul.mubr.msk.f32.vlgmr.msra.gmra.mrb[114].mxu1 %vm122_vm2, %v17060_v18 }
 0xd36   :  { %14214 = vmatprep.mubr.msk.f32.mxu1 %vm15597_vm0, %v15598_v1  ;;  %15058 = vmatpush3.bf16.msra.mxu1 %v17167_v31 }
 0xd37   :  { %15059 = vmatprep.subr.bf16.mxu1 %v15596_v0 }
 0xd3a   :  { %15061 = vmatpush3.bf16.msra.mxu1 %v17175_v61 }
 0xd3b   :  { %15068 = vmatprep.subr.bf16.mxu1 %v15596_v0 }
 0xddc   :  { %v8705_v10 = vpop.f32.mrb[100].mxu1  ;;  %v8947_v29 = vpop.f32.mrb[108].mxu0 }
 0xddd   :  { %v8706_v43 = vadd.f32 %v8705_v10, %v17049_v34  ;;  %v14069_v60 = vpop.f32.mrb[101].mxu1  ;;  %v14102_v20 = vpop.f32.mrb[109].mxu0  ;;  %v8948_v10 = vadd.f32 %v16981_v56, %v8947_v29  ;;  %v17206_v56 = vld [vmem:[%s17554_s3 + $0x3] ss:$0 sm:$0xff]  ;;  %v17211_v29 = vld [vmem:[%s17554_s3 + $0x2] ss:$0 sm:$0xff] }
 0xddf   :  { %v8715_v38 = vadd.f32 %v16960_v50, %v8706_v43  ;;  %v17188_v50 = vld [vmem:[%s17554_s3] ss:$0 sm:$0xff] }
 0xde1   :  { %v12285_v46 = vmul.f32 -1.442695, %v8715_v38 }
 0xde3   :  { %15377 = vpow2.f32 %v12285_v46 }
 0xde4   :  { %v8858_v51 = vpop.f32.mrb[102].mxu1  ;;  %v9123_v30 = vpop.f32.mrb[110].mxu0 }
 0xde5   :  { %v8859_v52 = vadd.f32 %v8858_v51, %v17053_v7  ;;  %v14091_v41 = vpop.f32.mrb[103].mxu1  ;;  %v14124_v28 = vpop.f32.mrb[111].mxu0 }
 0xde7   :  { %v8868_v14 = vadd.f32 %v16967_v26, %v8859_v52  ;;  %v17194_v26 = vld [vmem:[%s17554_s3 + $0x1] ss:$0 sm:$0xff] }
 0xde9   :  { %v12289_v16 = vmul.f32 -1.442695, %v8868_v14 }
 0xdeb   :  { %15379 = vpow2.f32 %v12289_v16 }
 0xdec   :  { %v9023_v12 = vpop.f32.mrb[104].mxu1  ;;  %v9279_v47 = vpop.f32.mrb[112].mxu0 }
 0xded   :  { %v15378_v42 = vpop.eup %15377  ;;  %v14113_v34 = vpop.f32.mrb[105].mxu1  ;;  %v9024_v44 = vadd.f32 %v16975_v59, %v9023_v12 }
 0xdee   :  { %v14140_v36 = vpop.f32.mrb[113].mxu0  ;;  %v8719_v35 = vadd.f32 1.0, %v15378_v42 }
 0xdf0   :  { %15381 = vrcp.f32 %v8719_v35  ;;  %v9196_v23 = vpop.f32.mrb[106].mxu1 }
 0xdf1   :  { %v9197_v7 = vadd.f32 %v9196_v23, %v9123_v30  ;;  %v14129_v48 = vpop.f32.mrb[107].mxu1 }
 0xdf3   :  { %v9206_v17 = vadd.f32 %v17188_v50, %v9197_v7 }
 0xdf4   :  { %v9349_v6 = vpop.f32.mrb[108].mxu1  ;;  %v9514_v37 = vpop.f32.mrb[114].mxu0 }
 0xdf5   :  { %v15380_v40 = vpop.eup %15379  ;;  %v12300_v21 = vmul.f32 -1.442695, %v9206_v17  ;;  %v9350_v53 = vadd.f32 %v9349_v6, %v9279_v47  ;;  %v14161_v22 = vpop.f32.mrb[115].mxu0  ;;  %v9515_v34 = vadd.f32 %v17206_v56, %v9514_v37  ;;  %v9529_v17 = vld [vmem:[#allocation8 + $0x20] sm:$0xff] }
 0xdf6   :  { %v14145_v4 = vpop.f32.mrb[109].mxu1  ;;  %v8872_v24 = vadd.f32 1.0, %v15380_v40  ;;  %v9530_v40 = vld [vmem:[#allocation8 + $0x28] sm:$0xff] }
 0xdf7   :  { %15383 = vpow2.f32 %v12300_v21  ;;  %v9359_v27 = vadd.f32 %v17194_v26, %v9350_v53  ;;  %v10034_v21 = vld [vmem:[#allocation10 + $0x68] sm:$0xff]  ;;  %v17221_v4 = vpack.c.bf16 %v9530_v40, %v9529_v17  ;;  %v10031_v17 = vld [vmem:[#allocation8 + $0xb0] sm:$0xff]  ;;  %v10032_v40 = vld [vmem:[#allocation8 + $0xb8] sm:$0xff] }
 0xdf8   :  { %v9438_v62 = vpop.f32.mrb[110].mxu1  ;;  %15385 = vrcp.f32 %v8872_v24 }
 0xdf9   :  { %v14150_v58 = vpop.f32.mrb[111].mxu1  ;;  %v12304_v2 = vmul.f32 -1.442695, %v9359_v27  ;;  %v9439_v36 = vadd.f32 %v17211_v29, %v9438_v62  ;;  %v9531_v27 = vld [vmem:[#allocation8 + $0x30] sm:$0xff] }
 0xdfa   :  { %v15382_v54 = vpop.eup %15381  ;;  %v10035_v58 = vld [vmem:[#allocation10 + $0x70] sm:$0xff] }
 0xdfb   :  { %v9027_v43 = vmul.f32 %v15382_v54, %v9024_v44  ;;  %15387 = vpow2.f32 %v12304_v2  ;;  %v9532_v44 = vld [vmem:[#allocation8 + $0x38] sm:$0xff] }
 0xdfc   :  { %v10036_v54 = vld [vmem:[#allocation10 + $0x78] sm:$0xff] }
 0xdfd   :  { %v9028_v60 = vadd.f32 %v9027_v43, %v8948_v10  ;;  %v17235_v2 = vpack.c.bf16 %v10036_v54, %v10035_v58  ;;  %v9545_v10 = vld [vmem:[#allocation10 + $0x40] sm:$0xff]  ;;  %v9546_v43 = vld [vmem:[#allocation10 + $0x48] sm:$0xff] }
 0xdff   :  { %15389 = vtanh.f32 %v9028_v60  ;;  %v10037_v60 = vld [vmem:[#allocation10 + $0x80] sm:$0xff] }
 0xe00   :  { %v17199_v20 = vpop.f32.mrb[112].mxu1 }
 0xe01   :  { %v15384_v38 = vpop.eup %15383  ;;  %v14172_v46 = vpop.f32.mrb[113].mxu1 }
 0xe02   :  { %v9210_v51 = vadd.f32 1.0, %v15384_v38  ;;  %v15386_v30 = vpop.eup %15385  ;;  %v10038_v38 = vld [vmem:[#allocation10 + $0x88] sm:$0xff]  ;;  %v17245_v46 = vpack.c.bf16 %v9546_v43, %v9545_v10  ;;  %v17305_v10 = vld [vmem:[%s17557_s6 + $0x1] ss:$0 sm:$0xff] }
 0xe03   :  { %v9030_v59 = vsub.f32 1.0, %v15386_v30  ;;  %v9032_v12 = vmul.f32 %v15386_v30, %v16990_v39  ;;  %v10033_v39 = vld [vmem:[#allocation10 + $0x60] sm:$0xff]  ;;  %v9547_v30 = vld [vmem:[#allocation10 + $0x50] sm:$0xff] }
 0xe04   :  { %15391 = vrcp.f32 %v9210_v51  ;;  %v17223_v24 = vpack.c.bf16 %v10034_v21, %v10033_v39  ;;  %v17247_v51 = vpack.c.bf16 %v10038_v38, %v10037_v60  ;;  %v17289_v39 = vpack.c.bf16 %v10032_v40, %v10031_v17  ;;  %v17298_v21 = vld [vmem:[%s17557_s6] ss:$0 sm:$0xff]  ;;  %v17316_v17 = vld [vmem:[%s17557_s6 + $0x3] ss:$0 sm:$0xff]  ;;  %v17321_v40 = vld [vmem:[%s17557_s6 + $0x2] ss:$0 sm:$0xff] }
 0xe05   :  { %v15388_v52 = vpop.eup %15387 }
 0xe06   :  { %v9363_v47 = vadd.f32 1.0, %v15388_v52  ;;  %v9548_v52 = vld [vmem:[#allocation10 + $0x58] sm:$0xff] }
 0xe08   :  { %v17201_v41 = vpop.f32.mrb[114].mxu1  ;;  %15393 = vrcp.f32 %v9363_v47  ;;  %v10022_v47 = vld [vmem:[#allocation8 + $0x68] sm:$0xff] }
 0xe09   :  { %v15390_v28 = vpop.eup %15389  ;;  %v14194_v14 = vpop.f32.mrb[115].mxu1 }
 0xe0a   :  { %v9031_v16 = vmul.f32 %v15390_v28, %v9030_v59  ;;  %v10039_v59 = vld [vmem:[#allocation10 + $0x90] sm:$0xff]  ;;  %v10040_v28 = vld [vmem:[#allocation10 + $0x98] sm:$0xff]  ;;  %v17257_v14 = vpack.c.bf16 %v9548_v52, %v9547_v30 }
 0xe0c   :  { %v17214_v42 = vadd.f32 %v9032_v12, %v9031_v16  ;;  %v17259_v16 = vpack.c.bf16 %v10040_v28, %v10039_v59  ;;  %v10021_v12 = vld [vmem:[#allocation8 + $0x60] sm:$0xff] }
 0xe0e   :  { %v15392_v35 = vpop.eup %15391  ;;  %9035 = vst.msk [vmem:[#allocation11 + $0xa] sm:$0x3] %vm1604_vm3, %v17214_v42 }
 0xe0f   :  { %v9518_v23 = vmul.f32 %v15392_v35, %v9515_v34  ;;  %v10029_v34 = vld [vmem:[#allocation8 + $0xa0] sm:$0xff]  ;;  %v10030_v35 = vld [vmem:[#allocation8 + $0xa8] sm:$0xff] }
 0xe11   :  { %v9519_v7 = vadd.f32 %v9518_v23, %v9439_v36  ;;  %v17279_v36 = vpack.c.bf16 %v10022_v47, %v10021_v12  ;;  %v17281_v23 = vpack.c.bf16 %v10030_v35, %v10029_v34 }
 0xe12   :  { %v15394_v48 = vpop.eup %15393 }
 0xe13   :  { %15395 = vtanh.f32 %v9519_v7  ;;  %v9521_v6 = vsub.f32 1.0, %v15394_v48  ;;  %v9523_v22 = vmul.f32 %v15394_v48, %v16997_v8  ;;  %v17233_v8 = vpack.c.bf16 %v9532_v44, %v9531_v27  ;;  %v10023_v7 = vld [vmem:[#allocation8 + $0x70] sm:$0xff]  ;;  %v10024_v48 = vld [vmem:[#allocation8 + $0x78] sm:$0xff] }
 0xe1d   :  { %v15396_v53 = vpop.eup %15395 }
 0xe1e   :  { %v9522_v37 = vmul.f32 %v15396_v53, %v9521_v6  ;;  %v17287_v6 = vpack.c.bf16 %v10024_v48, %v10023_v7 }
 0xe20   :  { %v17225_v62 = vadd.f32 %v9523_v22, %v9522_v37 }
 0xe22   :  { %14182 = vmatmul.mubr.msk.f32.vlgmr.msra.gmra.mrb[116].mxu0 %vm122_vm2, %v17225_v62  ;;  %14215 = vmatmul.mubr.msk.f32.vlgmr.msra.gmra.mrb[116].mxu1 %vm122_vm2, %v17225_v62 }
 0xe23   :  { %15052 = vmatpush3.bf16.msra.mxu0 %v17221_v4  ;;  %15070 = vmatpush3.bf16.msra.mxu1 %v17223_v24 }
 0xe24   :  { %15053 = vmatprep.subr.bf16.mxu0 %v15596_v0  ;;  %15071 = vmatprep.subr.bf16.mxu1 %v15596_v0 }
 0xe25   :  { %14203 = vmatprep.mubr.msk.f32.mxu0 %vm15597_vm0, %v15598_v1  ;;  %14236 = vmatprep.mubr.msk.f32.mxu1 %vm15597_vm0, %v15598_v1 }
 0xe27   :  { %15055 = vmatpush3.bf16.msra.mxu0 %v17233_v8  ;;  %15073 = vmatpush3.bf16.msra.mxu1 %v17235_v2 }
 0xe28   :  { %15062 = vmatprep.subr.bf16.mxu0 %v15596_v0  ;;  %15080 = vmatprep.subr.bf16.mxu1 %v15596_v0 }
 0xe2a   :  { %14204 = vmatmul.mubr.msk.f32.vlgmr.msra.gmra.mrb[118].mxu0 %vm122_vm2, %v17225_v62  ;;  %14237 = vmatmul.mubr.msk.f32.vlgmr.msra.gmra.mrb[118].mxu1 %vm122_vm2, %v17214_v42 }
 0xe2b   :  { %15064 = vmatpush3.bf16.msra.mxu0 %v17245_v46  ;;  %15082 = vmatpush3.bf16.msra.mxu1 %v17247_v51 }
 0xe2c   :  { %15065 = vmatprep.subr.bf16.mxu0 %v15596_v0  ;;  %15083 = vmatprep.subr.bf16.mxu1 %v15596_v0 }
 0xe2d   :  { %14225 = vmatprep.mubr.msk.f32.mxu0 %vm15597_vm0, %v15598_v1  ;;  %14258 = vmatprep.mubr.msk.f32.mxu1 %vm15597_vm0, %v15598_v1 }
 0xe2f   :  { %15067 = vmatpush3.bf16.msra.mxu0 %v17257_v14  ;;  %15085 = vmatpush3.bf16.msra.mxu1 %v17259_v16 }
 0xe30   :  { %15074 = vmatprep.subr.bf16.mxu0 %v15596_v0  ;;  %15092 = vmatprep.subr.bf16.mxu1 %v15596_v0 }
 0xe32   :  { %14226 = vmatmul.mubr.msk.f32.vlgmr.msra.gmra.mrb[120].mxu0 %vm122_vm2, %v17060_v18  ;;  %14259 = vmatmul.mubr.msk.f32.vlgmr.msra.gmra.mrb[120].mxu1 %vm122_vm2, %v17214_v42 }
 0xe33   :  { %14247 = vmatprep.mubr.msk.f32.mxu0 %vm15597_vm0, %v15598_v1  ;;  %14280 = vmatprep.mubr.msk.f32.mxu1 %vm15597_vm0, %v15598_v1 }
 0xe34   :  { %15076 = vmatpush3.bf16.msra.mxu0 %v17279_v36  ;;  %15094 = vmatpush3.bf16.msra.mxu1 %v17281_v23 }
 0xe35   :  { %15077 = vmatprep.subr.bf16.mxu0 %v15596_v0  ;;  %15095 = vmatprep.subr.bf16.mxu1 %v15596_v0 }
 0xe38   :  { %15079 = vmatpush3.bf16.msra.mxu0 %v17287_v6  ;;  %15097 = vmatpush3.bf16.msra.mxu1 %v17289_v39 }
 0xe39   :  { %15086 = vmatprep.subr.bf16.mxu0 %v15596_v0  ;;  %15104 = vmatprep.subr.bf16.mxu1 %v15596_v0 }
 0xef5   :  { %v9692_v53 = vpop.f32.mrb[116].mxu0  ;;  %v9934_v22 = vpop.f32.mrb[116].mxu1 }
 0xef6   :  { %v9693_v37 = vadd.f32 %v9692_v53, %v17199_v20  ;;  %v14183_v27 = vpop.f32.mrb[117].mxu0  ;;  %v14216_v44 = vpop.f32.mrb[117].mxu1 }
 0xef7   :  { %v9935_v27 = vadd.f32 %v17321_v40, %v9934_v22 }
 0xef8   :  { %v9702_v58 = vadd.f32 %v17298_v21, %v9693_v37 }
 0xefa   :  { %v12315_v54 = vmul.f32 -1.442695, %v9702_v58 }
 0xefc   :  { %15397 = vpow2.f32 %v12315_v54 }
 0xefd   :  { %v9845_v43 = vpop.f32.mrb[118].mxu0  ;;  %v17307_v60 = vpop.f32.mrb[118].mxu1 }
 0xefe   :  { %v9846_v38 = vadd.f32 %v9845_v43, %v17201_v41  ;;  %v14205_v30 = vpop.f32.mrb[119].mxu0  ;;  %v14238_v52 = vpop.f32.mrb[119].mxu1 }
 0xeff   :  { %v10026_v30 = vld [vmem:[#allocation8 + $0x88] sm:$0xff] }
 0xf00   :  { %v9855_v20 = vadd.f32 %v17305_v10, %v9846_v38  ;;  %v10025_v38 = vld [vmem:[#allocation8 + $0x80] sm:$0xff] }
 0xf02   :  { %v12319_v59 = vmul.f32 -1.442695, %v9855_v20 }
 0xf04   :  { %15399 = vpow2.f32 %v12319_v59 }
 0xf05   :  { %v10010_v28 = vpop.f32.mrb[120].mxu0  ;;  %v17311_v12 = vpop.f32.mrb[120].mxu1 }
 0xf06   :  { %v15398_v47 = vpop.eup %15397  ;;  %v14227_v34 = vpop.f32.mrb[121].mxu0  ;;  %v10011_v53 = vadd.f32 %v17316_v17, %v10010_v28  ;;  %v10027_v28 = vld [vmem:[#allocation8 + $0x90] sm:$0xff] }
 0xf07   :  { %v14260_v35 = vpop.f32.mrb[121].mxu1  ;;  %v9706_v7 = vadd.f32 1.0, %v15398_v47  ;;  %v17326_v47 = vpack.c.bf16 %v10026_v30, %v10025_v38 }
 0xf08   :  { %v10028_v35 = vld [vmem:[#allocation8 + $0x98] sm:$0xff] }
 0xf09   :  { %15401 = vrcp.f32 %v9706_v7  ;;  %v17336_v22 = vpack.c.bf16 %v10028_v35, %v10027_v28  ;;  %v10042_v7 = vld [vmem:[#allocation10 + $0xa8] sm:$0xff] }
 0xf0e   :  { %v15400_v48 = vpop.eup %15399 }
 0xf0f   :  { %v9859_v41 = vadd.f32 1.0, %v15400_v48 }
 0xf11   :  { %15403 = vrcp.f32 %v9859_v41  ;;  %v10044_v41 = vld [vmem:[#allocation10 + $0xb8] sm:$0xff] }
 0xf13   :  { %v15402_v37 = vpop.eup %15401 }
 0xf14   :  { %v10014_v44 = vmul.f32 %v15402_v37, %v10011_v53 }
 0xf16   :  { %v10015_v58 = vadd.f32 %v10014_v44, %v9935_v27 }
 0xf18   :  { %15405 = vtanh.f32 %v10015_v58 }
 0xf1b   :  { %v15404_v54 = vpop.eup %15403 }
 0xf1c   :  { %v10017_v43 = vsub.f32 1.0, %v15404_v54  ;;  %v10019_v20 = vmul.f32 %v15404_v54, %v17060_v18  ;;  %v10041_v18 = vld [vmem:[#allocation10 + $0xa0] sm:$0xff] }
 0xf1d   :  { %v17346_v48 = vpack.c.bf16 %v10042_v7, %v10041_v18 }
 0xf22   :  { %v15406_v52 = vpop.eup %15405 }
 0xf23   :  { %v10018_v59 = vmul.f32 %v15406_v52, %v10017_v43 }
 0xf25   :  { %v17328_v34 = vadd.f32 %v10019_v20, %v10018_v59 }
 0xf27   :  { %14248 = vmatmul.mubr.msk.f32.vlgmr.msra.gmra.mrb[122].mxu0 %vm122_vm2, %v17328_v34  ;;  %14281 = vmatmul.mubr.msk.f32.vlgmr.msra.gmra.mrb[122].mxu1 %vm122_vm2, %v17328_v34 }
 0xf28   :  { %15088 = vmatpush3.bf16.msra.mxu0 %v17326_v47  ;;  %15106 = vmatpush3.bf16.msra.mxu1 %v17058_v11  ;;  %v10043_v11 = vld [vmem:[#allocation10 + $0xb0] sm:$0xff] }
 0xf29   :  { %15089 = vmatprep.subr.bf16.mxu0 %v15596_v0  ;;  %15107 = vmatprep.subr.bf16.mxu1 %v15596_v0  ;;  %v17356_v53 = vpack.c.bf16 %v10044_v41, %v10043_v11  ;;  %v17441_v41 = vld [vmem:[%s17557_s6 + $0x7] ss:$0 sm:$0xff] }
 0xf2a   :  { %14269 = vmatprep.mubr.msk.f32.mxu0 %vm15597_vm0, %v15598_v1  ;;  %14302 = vmatprep.mubr.msk.f32.mxu1 %vm15597_vm0, %v15598_v1 }
 0xf2c   :  { %15091 = vmatpush3.bf16.msra.mxu0 %v17336_v22  ;;  %15109 = vmatpush3.bf16.msra.mxu1 %v17068_v15  ;;  %v10523_v15 = vld [vmem:[#allocation2 + $0xe] sm:$0x3] }
 0xf2d   :  { %15098 = vmatprep.subr.bf16.mxu0 %v15596_v0  ;;  %15110 = vmatprep.subr.bf16.mxu1 %v15596_v0 }
 0xf2f   :  { %14270 = vmatmul.mubr.msk.f32.vlgmr.msra.gmra.mrb[124].mxu0 %vm122_vm2, %v17328_v34  ;;  %14303 = vmatmul.mubr.msk.f32.vlgmr.msra.gmra.mrb[124].mxu1 %vm122_vm2, %v17225_v62 }
 0xf30   :  { %15100 = vmatpush3.bf16.msra.mxu0 %v17346_v48  ;;  %15112 = vmatpush3.bf16.msra.mxu1 %v17078_v19  ;;  %v17426_v19 = vld [vmem:[%s17557_s6 + $0x4] ss:$0 sm:$0xff] }
 0xf31   :  { %15101 = vmatprep.subr.bf16.mxu0 %v15596_v0  ;;  %15113 = vmatprep.subr.bf16.mxu1 %v15596_v0 }
 0xf32   :  { %14291 = vmatprep.mubr.msk.f32.mxu0 %vm15597_vm0, %v15598_v1  ;;  %14318 = vmatprep.mubr.msk.f32.mxu1 %vm15597_vm0, %v15598_v1 }
 0xf34   :  { %15103 = vmatpush3.bf16.msra.mxu0 %v17356_v53  ;;  %15115 = vmatpush3.bf16.msra.mxu1 %v17088_v45 }
 0xf35   :  { %14305 = vmatprep.subr.mxu0 %v15598_v1  ;;  %15116 = vmatprep.subr.bf16.mxu1 %v15596_v0 }
 0xf37   :  { %14292 = vmatmul.mubr.msk.f32.vlgmr.msra.gmra.mrb[126].mxu0 %vm122_vm2, %v17214_v42  ;;  %14319 = vmatmul.mubr.msk.f32.vlgmr.msra.gmra.mrb[126].mxu1 %vm122_vm2, %v17225_v62 }
 0xf38   :  { %14306 = vmatpush3.msra.mxu0 %v17102_v63  ;;  %15118 = vmatpush3.bf16.msra.mxu1 %v17098_v55 }
 0xf39   :  { %14307 = vmatprep.mubr.msk.f32.mxu0 %vm15597_vm0, %v15598_v1  ;;  %15119 = vmatprep.subr.bf16.mxu1 %v15596_v0 }
 0xf3a   :  { %14321 = vmatprep.subr.mxu0 %v15598_v1  ;;  %14339 = vmatprep.mubr.msk.f32.mxu1 %vm15597_vm0, %v15598_v1 }
 0xf3b   :  { %14308 = vmatmul.mubr.msk.f32.vlgmr.msra.gmra.mrb[128].mxu0 %vm196_vm1, %v10523_v15 }
 0xf3c   :  { %15121 = vmatpush3.bf16.msra.mxu1 %v17110_v49  ;;  %14322 = vmatpush3.msra.mxu0 %v17115_v32 }
 0xf3d   :  { %14323 = vmatprep.mubr.msk.f32.mxu0 %vm15597_vm0, %v15598_v1  ;;  %14326 = vmatprep.subr.mxu0 %v15598_v1 }
 0xf3e   :  { %15128 = vmatprep.subr.bf16.mxu1 %v15596_v0 }
 0xf3f   :  { %14324 = vmatmul.mubr.msk.f32.vlgmr.msra.gmra.mrb[130].mxu0 %vm196_vm1, %v10523_v15  ;;  %14340 = vmatmul.mubr.msk.f32.vlgmr.msra.gmra.mrb[128].mxu1 %vm122_vm2, %v17225_v62 }
 0xf40   :  { %14327 = vmatpush3.msra.mxu0 %v17126_v13  ;;  %14328 = vmatprep.mubr.msk.f32.mxu0 %vm15597_vm0, %v15598_v1 }
 0xf41   :  { %15122 = vmatprep.subr.bf16.mxu0 %v15596_v0  ;;  %15130 = vmatpush3.bf16.msra.mxu1 %v17165_v57 }
 0xf42   :  { %15131 = vmatprep.subr.bf16.mxu1 %v15596_v0  ;;  %14361 = vmatprep.mubr.msk.f32.mxu1 %vm15597_vm0, %v15598_v1 }
 0xf43   :  { %14329 = vmatmul.mubr.msk.f32.vlgmr.msra.gmra.mrb[132].mxu0 %vm196_vm1, %v10523_v15 }
 0xf44   :  { %15124 = vmatpush3.bf16.msra.mxu0 %v17135_v9  ;;  %14350 = vmatprep.mubr.msk.f32.mxu0 %vm15597_vm0, %v15598_v1 }
 0xf45   :  { %15125 = vmatprep.subr.bf16.mxu0 %v15596_v0  ;;  %15133 = vmatpush3.bf16.msra.mxu1 %v17173_v25 }
 0xf46   :  { %15140 = vmatprep.subr.bf16.mxu1 %v15596_v0 }
 0xf48   :  { %15127 = vmatpush3.bf16.msra.mxu0 %v17142_v3  ;;  %v17433_v3 = vld [vmem:[%s17557_s6 + $0x5] ss:$0 sm:$0xff] }
 0xf49   :  { %15134 = vmatprep.subr.bf16.mxu0 %v15596_v0 }
 0xf4b   :  { %14351 = vmatmul.mubr.msk.f32.vlgmr.msra.gmra.mrb[134].mxu0 %vm122_vm2, %v17328_v34 }
 0xf4c   :  { %15136 = vmatpush3.bf16.msra.mxu0 %v17148_v33  ;;  %14372 = vmatprep.mubr.msk.f32.mxu0 %vm15597_vm0, %v15598_v1 }
 0xf4d   :  { %15137 = vmatprep.subr.bf16.mxu0 %v15596_v0 }
 0xf50   :  { %15139 = vmatpush3.bf16.msra.mxu0 %v17154_v5 }
 0xf51   :  { %15146 = vmatprep.subr.bf16.mxu0 %v15596_v0 }
 0xf53   :  { %14373 = vmatmul.mubr.msk.f32.vlgmr.msra.gmra.mrb[136].mxu0 %vm122_vm2, %v17328_v34 }
 0xf54   :  { %15148 = vmatpush3.bf16.msra.mxu0 %v17167_v31  ;;  %14394 = vmatprep.mubr.msk.f32.mxu0 %vm15597_vm0, %v15598_v1 }
 0xf55   :  { %15149 = vmatprep.subr.bf16.mxu0 %v15596_v0 }
 0xf58   :  { %15151 = vmatpush3.bf16.msra.mxu0 %v17175_v61 }
 0xf59   :  { %15158 = vmatprep.subr.bf16.mxu0 %v15596_v0 }
 0xffa   :  { %v10191_v45 = vpop.f32.mrb[122].mxu0  ;;  %v10433_v55 = vpop.f32.mrb[122].mxu1 }
 0xffb   :  { %v10192_v63 = vadd.f32 %v10191_v45, %v17307_v60  ;;  %v14249_v49 = vpop.f32.mrb[123].mxu0  ;;  %v14282_v32 = vpop.f32.mrb[123].mxu1 }
 0xffd   :  { %v10201_v13 = vadd.f32 %v17426_v19, %v10192_v63 }
 0xfff   :  { %v12331_v9 = vmul.f32 -1.442695, %v10201_v13 }
0x1001   :  { %15407 = vpow2.f32 %v12331_v9 }
0x1002   :  { %v10344_v33 = vpop.f32.mrb[124].mxu0  ;;  %v10609_v5 = vpop.f32.mrb[124].mxu1 }
0x1003   :  { %v10345_v57 = vadd.f32 %v10344_v33, %v17311_v12  ;;  %v14271_v31 = vpop.f32.mrb[125].mxu0  ;;  %v14304_v25 = vpop.f32.mrb[125].mxu1 }
0x1005   :  { %v10354_v61 = vadd.f32 %v17433_v3, %v10345_v57 }
0x1007   :  { %v12335_v60 = vmul.f32 -1.442695, %v10354_v61 }
0x1009   :  { %15409 = vpow2.f32 %v12335_v60 }
0x100a   :  { %v10509_v37 = vpop.f32.mrb[126].mxu0  ;;  %v10765_v27 = vpop.f32.mrb[126].mxu1 }
0x100b   :  { %v15408_v44 = vpop.eup %15407  ;;  %v14293_v58 = vpop.f32.mrb[127].mxu0  ;;  %v10510_v49 = vadd.f32 %v17441_v41, %v10509_v37 }
0x100c   :  { %v14320_v54 = vpop.f32.mrb[127].mxu1  ;;  %v10205_v43 = vadd.f32 1.0, %v15408_v44 }
0x100e   :  { %15411 = vrcp.f32 %v10205_v43  ;;  %v10682_v38 = vpop.f32.mrb[128].mxu0 }
0x100f   :  { %v10683_v30 = vadd.f32 %v10682_v38, %v10609_v5  ;;  %v14309_v52 = vpop.f32.mrb[129].mxu0 }
0x1011   :  { %v10692_v20 = vadd.f32 %v17188_v50, %v10683_v30  ;;  %v17447_v50 = vld [vmem:[%s17557_s6 + $0x6] ss:$0 sm:$0xff]  ;;  %s15599_s6 = smov [#allocation11]  }
0x1012   :  { %v10835_v59 = vpop.f32.mrb[130].mxu0  ;;  %v11000_v12 = vpop.f32.mrb[128].mxu1  ;;  %v10434_v33 = vadd.f32 %v17447_v50, %v10433_v55  ;;  %s12013_s8 = sshll.u32 %s15599_s6, 4  ;;  %s12014_s8 = int_to_ptr.vmem [resolvable:$true] %s12013_s8 }
0x1013   :  { %v15410_v28 = vpop.eup %15409  ;;  %v12346_v35 = vmul.f32 -1.442695, %v10692_v20  ;;  %v10836_v18 = vadd.f32 %v10835_v59, %v10765_v27  ;;  %v14341_v7 = vpop.f32.mrb[129].mxu1  ;;  %v11001_v52 = vadd.f32 %v17206_v56, %v11000_v12  ;;  %s15557_s9 = scalar_lea.vmem %s12014_s8, 256  ;;  %p15562_p13 = scmp.lt.s32.totalorder %s12014_s8, %s12014_s8 }
0x1014   :  { %v14325_v11 = vpop.f32.mrb[131].mxu0  ;;  %v10358_v15 = vadd.f32 1.0, %v15410_v28  ;;  %p15558_p12 = scmp.ne.s32.totalorder %s12014_s8, %s15557_s9  ;;  %p15563_p0 = scmp.lt.s32.totalorder %s15557_s9, %s15557_s9 }
0x1015   :  { %15413 = vpow2.f32 %v12346_v35  ;;  %v10845_v45 = vadd.f32 %v17194_v26, %v10836_v18 }
0x1016   :  { %v10924_v63 = vpop.f32.mrb[132].mxu0  ;;  %15415 = vrcp.f32 %v10358_v15  ;;  %p15564_p1 = por %p15563_p0, %p15562_p13 }
0x1017   :  { %v14330_v32 = vpop.f32.mrb[133].mxu0  ;;  %v12350_v9 = vmul.f32 -1.442695, %v10845_v45  ;;  %v10925_v20 = vadd.f32 %v17211_v29, %v10924_v63 }
0x1018   :  { %v15412_v13 = vpop.eup %15411  ;;  %p15565_p2 = pnand %p15564_p1, %p15558_p12 }
0x1019   :  { %v10513_v5 = vmul.f32 %v15412_v13, %v10510_v49  ;;  %15417 = vpow2.f32 %v12350_v9 }
0x101b   :  { %v10514_v57 = vadd.f32 %v10513_v5, %v10434_v33 }
0x101d   :  { %15419 = vtanh.f32 %v10514_v57 }
0x101e   :  { %v17451_v31 = vpop.f32.mrb[134].mxu0 }
0x101f   :  { %v15414_v26 = vpop.eup %15413  ;;  %v14352_v25 = vpop.f32.mrb[135].mxu0 }
0x1020   :  { %v10696_v61 = vadd.f32 1.0, %v15414_v26  ;;  %v15416_v60 = vpop.eup %15415 }
0x1021   :  { %v10516_v37 = vsub.f32 1.0, %v15416_v60  ;;  %v10518_v55 = vmul.f32 %v15416_v60, %v17214_v42 }
0x1022   :  { %15421 = vrcp.f32 %v10696_v61 }
0x1023   :  { %v15418_v27 = vpop.eup %15417 }
0x1024   :  { %v10849_v38 = vadd.f32 1.0, %v15418_v27 }
0x1026   :  { %v17453_v44 = vpop.f32.mrb[136].mxu0  ;;  %15423 = vrcp.f32 %v10849_v38 }
0x1027   :  { %v15420_v58 = vpop.eup %15419  ;;  %v14374_v54 = vpop.f32.mrb[137].mxu0 }
0x1028   :  { %v10517_v43 = vmul.f32 %v15420_v58, %v10516_v37 }
0x102a   :  { %v17456_v30 = vadd.f32 %v10518_v55, %v10517_v43 }
0x102c   :  { %v15422_v59 = vpop.eup %15421  ;;  %10521 = vst.msk [vmem:[#allocation11 + $0xc] sm:$0x3] %vm1604_vm3, %v17456_v30 }
0x102d   :  { %v11004_v28 = vmul.f32 %v15422_v59, %v11001_v52 }
0x102f   :  { %v11005_v35 = vadd.f32 %v11004_v28, %v10925_v20 }
0x1030   :  { %v15424_v18 = vpop.eup %15423 }
0x1031   :  { %15425 = vtanh.f32 %v11005_v35  ;;  %v11007_v7 = vsub.f32 1.0, %v15424_v18  ;;  %v11009_v42 = vmul.f32 %v15424_v18, %v17225_v62 }
0x103b   :  { %v15426_v11 = vpop.eup %15425 }
0x103c   :  { %v11008_v15 = vmul.f32 %v15426_v11, %v11007_v7 }
0x103e   :  { %v11010_v45 = vadd.f32 %v11009_v42, %v11008_v15 }
0x1040   :  { %14362 = vmatmul.mubr.msk.f32.vlgmr.msra.gmra.mrb[130].mxu1 %vm122_vm2, %v11010_v45  ;;  %14395 = vmatmul.mubr.msk.f32.vlgmr.msra.gmra.mrb[138].mxu0 %vm122_vm2, %v11010_v45 }
0x1041   :  { %15142 = vmatpush3.bf16.msra.mxu1 %v17221_v4  ;;  %15160 = vmatpush3.bf16.msra.mxu0 %v17223_v24 }
0x1042   :  { %15143 = vmatprep.subr.bf16.mxu1 %v15596_v0  ;;  %15161 = vmatprep.subr.bf16.mxu0 %v15596_v0 }
0x1043   :  { %14383 = vmatprep.mubr.msk.f32.mxu1 %vm15597_vm0, %v15598_v1  ;;  %14416 = vmatprep.mubr.msk.f32.mxu0 %vm15597_vm0, %v15598_v1 }
0x1045   :  { %15145 = vmatpush3.bf16.msra.mxu1 %v17233_v8  ;;  %15163 = vmatpush3.bf16.msra.mxu0 %v17235_v2 }
0x1046   :  { %15152 = vmatprep.subr.bf16.mxu1 %v15596_v0  ;;  %15170 = vmatprep.subr.bf16.mxu0 %v15596_v0 }
0x1048   :  { %14384 = vmatmul.mubr.msk.f32.vlgmr.msra.gmra.mrb[132].mxu1 %vm122_vm2, %v11010_v45  ;;  %14417 = vmatmul.mubr.msk.f32.vlgmr.msra.gmra.mrb[140].mxu0 %vm122_vm2, %v17456_v30 }
0x1049   :  { %15154 = vmatpush3.bf16.msra.mxu1 %v17245_v46  ;;  %15172 = vmatpush3.bf16.msra.mxu0 %v17247_v51 }
0x104a   :  { %15155 = vmatprep.subr.bf16.mxu1 %v15596_v0  ;;  %15173 = vmatprep.subr.bf16.mxu0 %v15596_v0 }
0x104b   :  { %14405 = vmatprep.mubr.msk.f32.mxu1 %vm15597_vm0, %v15598_v1  ;;  %14438 = vmatprep.mubr.msk.f32.mxu0 %vm15597_vm0, %v15598_v1 }
0x104d   :  { %15157 = vmatpush3.bf16.msra.mxu1 %v17257_v14  ;;  %15175 = vmatpush3.bf16.msra.mxu0 %v17259_v16 }
0x104e   :  { %15164 = vmatprep.subr.bf16.mxu1 %v15596_v0  ;;  %15182 = vmatprep.subr.bf16.mxu0 %v15596_v0 }
0x1050   :  { %14406 = vmatmul.mubr.msk.f32.vlgmr.msra.gmra.mrb[134].mxu1 %vm122_vm2, %v17328_v34  ;;  %14439 = vmatmul.mubr.msk.f32.vlgmr.msra.gmra.mrb[142].mxu0 %vm122_vm2, %v17456_v30 }
0x1051   :  { %15166 = vmatpush3.bf16.msra.mxu1 %v17279_v36  ;;  %15184 = vmatpush3.bf16.msra.mxu0 %v17281_v23 }
0x1052   :  { %15167 = vmatprep.subr.bf16.mxu1 %v15596_v0  ;;  %15185 = vmatprep.subr.bf16.mxu0 %v15596_v0 }
0x1053   :  { %14427 = vmatprep.mubr.msk.f32.mxu1 %vm15597_vm0, %v15598_v1  ;;  %14460 = vmatprep.mubr.msk.f32.mxu0 %vm15597_vm0, %v15598_v1 }
0x1055   :  { %15169 = vmatpush3.bf16.msra.mxu1 %v17287_v6  ;;  %15187 = vmatpush3.bf16.msra.mxu0 %v17289_v39 }
0x1056   :  { %15176 = vmatprep.subr.bf16.mxu1 %v15596_v0 }
0x1113   :  { %v11178_v56 = vpop.f32.mrb[130].mxu1  ;;  %v11420_v29 = vpop.f32.mrb[138].mxu0 }
0x1114   :  { %v11179_v4 = vadd.f32 %v11178_v56, %v17451_v31  ;;  %v14363_v24 = vpop.f32.mrb[131].mxu1  ;;  %v14396_v62 = vpop.f32.mrb[139].mxu0  ;;  %v11421_v57 = vadd.f32 %v17321_v40, %v11420_v29 }
0x1116   :  { %v11188_v8 = vadd.f32 %v17298_v21, %v11179_v4 }
0x1118   :  { %v12361_v2 = vmul.f32 -1.442695, %v11188_v8 }
0x111a   :  { %15427 = vpow2.f32 %v12361_v2 }
0x111b   :  { %v11331_v46 = vpop.f32.mrb[132].mxu1  ;;  %v11604_v51 = vpop.f32.mrb[140].mxu0 }
0x111c   :  { %v11332_v14 = vadd.f32 %v11331_v46, %v17453_v44  ;;  %v14385_v16 = vpop.f32.mrb[133].mxu1  ;;  %v14418_v36 = vpop.f32.mrb[141].mxu0 }
0x111e   :  { %v11341_v23 = vadd.f32 %v17305_v10, %v11332_v14 }
0x1120   :  { %v12365_v6 = vmul.f32 -1.442695, %v11341_v23 }
0x1122   :  { %15429 = vpow2.f32 %v12365_v6 }
0x1123   :  { %v11496_v39 = vpop.f32.mrb[134].mxu1  ;;  %v11760_v12 = vpop.f32.mrb[142].mxu0 }
0x1124   :  { %v15428_v63 = vpop.eup %15427  ;;  %v14407_v49 = vpop.f32.mrb[135].mxu1  ;;  %v11497_v33 = vadd.f32 %v17316_v17, %v11496_v39 }
0x1125   :  { %v14440_v32 = vpop.f32.mrb[143].mxu0  ;;  %v11192_v13 = vadd.f32 1.0, %v15428_v63 }
0x1127   :  { %15431 = vrcp.f32 %v11192_v13 }
0x112c   :  { %v15430_v21 = vpop.eup %15429 }
0x112d   :  { %v11345_v9 = vadd.f32 1.0, %v15430_v21 }
0x112f   :  { %15433 = vrcp.f32 %v11345_v9 }
0x1131   :  { %v15432_v5 = vpop.eup %15431 }
0x1132   :  { %v11500_v31 = vmul.f32 %v15432_v5, %v11497_v33 }
0x1134   :  { %v11501_v26 = vadd.f32 %v11500_v31, %v11421_v57 }
0x1136   :  { %15435 = vtanh.f32 %v11501_v26 }
0x1139   :  { %v15434_v10 = vpop.eup %15433 }
0x113a   :  { %v11503_v25 = vsub.f32 1.0, %v15434_v10  ;;  %v11505_v27 = vmul.f32 %v15434_v10, %v17328_v34 }
0x1140   :  { %v15436_v61 = vpop.eup %15435 }
0x1141   :  { %v11504_v60 = vmul.f32 %v15436_v61, %v11503_v25 }
0x1143   :  { %v11506_v44 = vadd.f32 %v11505_v27, %v11504_v60 }
0x1145   :  { %14428 = vmatmul.mubr.msk.f32.vlgmr.msra.gmra.mrb[136].mxu1 %vm122_vm2, %v11506_v44  ;;  %14461 = vmatmul.mubr.msk.f32.vlgmr.msra.gmra.mrb[144].mxu0 %vm122_vm2, %v11506_v44 }
0x1146   :  { %15178 = vmatpush3.bf16.msra.mxu1 %v17326_v47  ;;  %14449 = vmatprep.mubr.msk.f32.mxu1 %vm15597_vm0, %v15598_v1 }
0x1147   :  { %15179 = vmatprep.subr.bf16.mxu1 %v15596_v0 }
0x114a   :  { %15181 = vmatpush3.bf16.msra.mxu1 %v17336_v22 }
0x114b   :  { %15188 = vmatprep.subr.bf16.mxu1 %v15596_v0 }
0x114d   :  { %14450 = vmatmul.mubr.msk.f32.vlgmr.msra.gmra.mrb[138].mxu1 %vm122_vm2, %v11506_v44 }
0x114e   :  { %15190 = vmatpush3.bf16.msra.mxu1 %v17346_v48  ;;  %14471 = vmatprep.mubr.msk.f32.mxu1 %vm15597_vm0, %v15598_v1 }
0x114f   :  { %15191 = vmatprep.subr.bf16.mxu1 %v15596_v0 }
0x1152   :  { %15193 = vmatpush3.bf16.msra.mxu1 %v17356_v53 }
0x1155   :  { %14472 = vmatmul.mubr.msk.f32.vlgmr.msra.gmra.mrb[140].mxu1 %vm122_vm2, %v17456_v30 }
0x1218   :  { %v11677_v17 = vpop.f32.mrb[136].mxu1  ;;  %v11919_v40 = vpop.f32.mrb[144].mxu0 }
0x1219   :  { %v11678_v47 = vadd.f32 %v11677_v17, %v11604_v51  ;;  %v14429_v34 = vpop.f32.mrb[137].mxu1  ;;  %v14462_v22 = vpop.f32.mrb[145].mxu0 }
0x121b   :  { %v11687_v37 = vadd.f32 %v17426_v19, %v11678_v47  ;;  %v11920_v19 = vadd.f32 %v17447_v50, %v11919_v40 }
0x121d   :  { %v12377_v58 = vmul.f32 -1.442695, %v11687_v37 }
0x121f   :  { %15437 = vpow2.f32 %v12377_v58 }
0x1220   :  { %v11830_v48 = vpop.f32.mrb[138].mxu1 }
0x1221   :  { %v11831_v54 = vadd.f32 %v11830_v48, %v11760_v12  ;;  %v14451_v43 = vpop.f32.mrb[139].mxu1 }
0x1223   :  { %v11840_v1 = vadd.f32 %v17433_v3, %v11831_v54 }
0x1225   :  { %v12381_v0 = vmul.f32 -1.442695, %v11840_v1 }
0x1227   :  { %15439 = vpow2.f32 %v12381_v0 }
0x1228   :  { %v11995_v53 = vpop.f32.mrb[140].mxu1 }
0x1229   :  { %v15438_v55 = vpop.eup %15437  ;;  %v14473_v38 = vpop.f32.mrb[141].mxu1  ;;  %v11996_v28 = vadd.f32 %v17441_v41, %v11995_v53 }
0x122a   :  { %v11691_v52 = vadd.f32 1.0, %v15438_v55 }
0x122c   :  { %15441 = vrcp.f32 %v11691_v52 }
0x1231   :  { %v15440_v20 = vpop.eup %15439 }
0x1232   :  { %v11844_v59 = vadd.f32 1.0, %v15440_v20 }
0x1234   :  { %15443 = vrcp.f32 %v11844_v59 }
0x1236   :  { %v15442_v35 = vpop.eup %15441 }
0x1237   :  { %v11999_v18 = vmul.f32 %v15442_v35, %v11996_v28 }
0x1239   :  { %v12000_v7 = vadd.f32 %v11999_v18, %v11920_v19 }
0x123b   :  { %15445 = vtanh.f32 %v12000_v7 }
0x123e   :  { %v15444_v11 = vpop.eup %15443 }
0x123f   :  { %v12002_v3 = vsub.f32 1.0, %v15444_v11  ;;  %v12004_v42 = vmul.f32 %v15444_v11, %v17456_v30 }
0x1245   :  { %v15446_v15 = vpop.eup %15445 }
0x1246   :  { %v12003_v45 = vmul.f32 %v15446_v15, %v12002_v3 }
0x1248   :  { %v12005_v56 = vadd.f32 %v12004_v42, %v12003_v45 }
0x124a   :  { %12007 = vst.msk [vmem:[#allocation11 + $0xe] sm:$0x3] %vm1604_vm3, %v12005_v56 }
0x124b   :  { %15568 = shalt.err (!%p15565_p2)
}
0x124c   :  { %s15569_s14 = scalar_lea.hbm %s17558_s7, 256 }
0x124d   :  { %p15570_p3 = scmp.ne.s32.totalorder %s17558_s7, %s15569_s14  ;;  %p15573_p4 = scmp.lt.u32.totalorder %s15569_s14, %s17558_s7 }
0x124f   :  { %p15575_p5 = pnand %p15573_p4, %p15570_p3 }
0x1251   :  { %15578 = shalt.err (!%p15575_p5)
}
0x1252   :  { %12019 = dma.vmem_to_hbm [thread:$0]  %s12014_s8, 256, %s17558_s7, [#allocation4], %s15592_s4, %s15592_s4, %s15593_s15  }
0x1253   :  { %15585 = dma.done.wait [#allocation4], 256  }
0x1254   :  { %15586 = vsyncadd [#allocation4], 4294967040 }
0x1255   :  { %12023 = vsyncpa [#allocation3], 1 }
0x1256   :  { %12024 = vsyncpa [#allocation6], 1 }
0x1257   :  { %12025 = vsyncpa [#allocation9], 1 }
0x1258   :  { %12026 = vsyncpa [#allocation4], 1 }

</bundles_post_ra>
